<compile_context>
chip_gen: v7x
topology: tpu7x:2x2x1
jax: 0.10.0
libtpu: 0.0.40
codegen_flags: <defaults>
</compile_context>

<pallas_src>
import functools

import jax
import jax.numpy as jnp
import numpy as np
from jax.experimental import pallas as pl
from jax.experimental.pallas import tpu as pltpu


def basic_block_kernel(xflat_ref, w1_ref, b1_ref, w2_ref, b2_ref,
                       out_ref, patch_ref, h1pad_ref, *, H, W):
    """One batch element per grid step.

    xflat_ref : (1, (H+3)*(W+2), Cin) bf16  zero-padded input flattened over
                (padded H, padded W); the extra bottom pad row keeps every
                tap's flat slice in-bounds.
    w1_ref    : (9*Cin, C) bf16  conv1 weights, tap-major im2col layout,
                BN1 scale folded in.
    b1_ref    : (1, C) f32       folded BN1 bias.
    w2_ref    : (9*C, C) bf16    conv2 weights (same layout), BN2 scale folded.
    b2_ref    : (1, C) f32       folded BN2 bias.
    out_ref   : (1, H*(W+2), C) bf16   width-padded flat output slab (the 2
                junk columns per row are stripped in the wrapper).
    patch_ref : (H*(W+2), 9*Cin) bf16  im2col patch scratch (reused by conv2).
    h1pad_ref : ((H+2)*(W+2)+2, C) bf16 padded conv1-activation scratch.
    """
    Cin = xflat_ref.shape[2]
    C = out_ref.shape[2]
    Wp = W + 2
    L = H * Wp                        # width-padded (junk-column) output length

    # ---- conv1: build (L, 9*Cin) im2col patch from 9 shifted CONTIGUOUS flat
    #      slices, then a single fused K=9*Cin MXU contraction (bf16 -> f32).
    for k in range(9):
        kh, kw = divmod(k, 3)
        patch_ref[:, k * Cin:(k + 1) * Cin] = xflat_ref[0, pl.ds(kh * Wp + kw, L), :]
    acc1 = jnp.dot(patch_ref[...], w1_ref[...],
                   preferred_element_type=jnp.float32)        # (L, C) f32

    # ---- bn1 bias (scale already folded into w1) + relu, in f32 ----
    h1 = jnp.maximum(acc1 + b1_ref[...], 0.0)

    # Zero the 2 junk width-pad columns; with the constant-offset placement
    # below they become exactly conv2's zero left/right borders.
    col = jax.lax.broadcasted_iota(jnp.int32, (L, 1), 0) % Wp
    h1 = jnp.where(col < W, h1, 0.0)

    # ---- place conv1 activation into padded scratch: one contiguous body
    #      store + two small border-zero stores (every step; see header note).
    h1pad_ref[pl.ds(0, Wp + 1), :] = jnp.zeros((Wp + 1, C), jnp.bfloat16)
    h1pad_ref[pl.ds(Wp + 1, L), :] = h1.astype(jnp.bfloat16)
    tail = h1pad_ref.shape[0] - (Wp + 1 + L)                  # = Wp + 1
    h1pad_ref[pl.ds(Wp + 1 + L, tail), :] = jnp.zeros((tail, C), jnp.bfloat16)

    # ---- conv2: same im2col scheme, reusing the patch scratch ----
    for k in range(9):
        kh, kw = divmod(k, 3)
        patch_ref[:, k * C:(k + 1) * C] = h1pad_ref[pl.ds(kh * Wp + kw, L), :]
    acc2 = jnp.dot(patch_ref[...], w2_ref[...],
                   preferred_element_type=jnp.float32)        # (L, C) f32

    # ---- bn2 bias + residual add + relu; store the contiguous padded slab ----
    # Residual = interior of the padded input = one contiguous flat slice.
    res = xflat_ref[0, pl.ds(Wp + 1, L), :].astype(jnp.float32)
    out_ref[0] = jnp.maximum(acc2 + b2_ref[...] + res, 0.0).astype(out_ref.dtype)


def basic_block_forward_nhwc(x_nhwc, w1, bn1, w2, bn2, eps=1e-5):
    """NHWC-native entry point. x_nhwc: (N, H, W, Cin); w1/w2 HWIO (3,3,Cin,C)."""
    g1, be1, m1, v1 = bn1
    g2, be2, m2, v2 = bn2
    N, H, W, Cin = x_nhwc.shape
    C = w1.shape[-1]
    assert Cin == C, "stride=1, downsample=None requires inplanes == planes"
    Wp = W + 2
    L = H * Wp                       # kernel output slab rows per image
    Lin = (H + 3) * Wp               # single fused pad: H -> (1, 2), W -> (1, 1)
    Lscr = (H + 2) * Wp + 2          # padded conv1-activation scratch rows

    # Fold inference-mode BN scale into the conv weights; keep the bias apart.
    s1 = g1 / jnp.sqrt(v1 + eps)
    s2 = g2 / jnp.sqrt(v2 + eps)
    w1s = (w1.astype(jnp.float32) * s1).reshape(9 * Cin, C).astype(jnp.bfloat16)
    w2s = (w2.astype(jnp.float32) * s2).reshape(9 * C, C).astype(jnp.bfloat16)
    b1 = (be1 - m1 * s1).reshape(1, C).astype(jnp.float32)
    b2 = (be2 - m2 * s2).reshape(1, C).astype(jnp.float32)

    # One fused spatial zero-pad, then flatten padded (H, W) -> one sublane axis.
    xflat = jnp.pad(x_nhwc.astype(jnp.bfloat16),
                    ((0, 0), (1, 2), (1, 1), (0, 0))).reshape(N, Lin, Cin)

    kernel = functools.partial(basic_block_kernel, H=H, W=W)
    out_flat = pl.pallas_call(
        kernel,
        out_shape=jax.ShapeDtypeStruct((N, L, C), jnp.bfloat16),
        grid_spec=pltpu.PrefetchScalarGridSpec(
            num_scalar_prefetch=0,
            grid=(N,),
            in_specs=[
                pl.BlockSpec((1, Lin, Cin), lambda n: (n, 0, 0)),
                pl.BlockSpec((9 * Cin, C), lambda n: (0, 0)),
                pl.BlockSpec((1, C), lambda n: (0, 0)),
                pl.BlockSpec((9 * C, C), lambda n: (0, 0)),
                pl.BlockSpec((1, C), lambda n: (0, 0)),
            ],
            out_specs=pl.BlockSpec((1, L, C), lambda n: (n, 0, 0)),
            scratch_shapes=[pltpu.VMEM((L, 9 * Cin), jnp.bfloat16),
                            pltpu.VMEM((Lscr, C), jnp.bfloat16)],
        ),
        compiler_params=pltpu.CompilerParams(
            dimension_semantics=("parallel",),
            vmem_limit_bytes=32 * 1024 * 1024),
    )(xflat, w1s, b1, w2s, b2)

    # Strip the 2 junk width-pad columns + upcast in the XLA wrapper so the
    # kernel's store stays one contiguous slab (no in-kernel relayout).
    return out_flat.reshape(N, H, Wp, C)[:, :, :W, :].astype(jnp.float32)


def basic_block_forward(x_nchw, w1, bn1, w2, bn2, eps=1e-5):
    """NCHW adapter matching the PyTorch module's interface."""
    out_nhwc = basic_block_forward_nhwc(jnp.transpose(x_nchw, (0, 2, 3, 1)),
                                        w1, bn1, w2, bn2, eps)
    return jnp.transpose(out_nhwc, (0, 3, 1, 2))


def ref_forward(x_nchw, w1, bn1, w2, bn2, eps=1e-5):
    """Pure-JAX f32 reference (NHWC convs via lax.conv_general_dilated)."""
    g1, be1, m1, v1 = bn1
    g2, be2, m2, v2 = bn2
    x = jnp.transpose(x_nchw, (0, 2, 3, 1)).astype(jnp.float32)
    dn = ('NHWC', 'HWIO', 'NHWC')
    o = jax.lax.conv_general_dilated(x, w1, (1, 1), 'SAME', dimension_numbers=dn)
    o = (o - m1) / jnp.sqrt(v1 + eps) * g1 + be1
    o = jnp.maximum(o, 0.0)
    o = jax.lax.conv_general_dilated(o, w2, (1, 1), 'SAME', dimension_numbers=dn)
    o = (o - m2) / jnp.sqrt(v2 + eps) * g2 + be2
    o = jnp.maximum(o + x, 0.0)
    return jnp.transpose(o, (0, 3, 1, 2))


if __name__ == "__main__":
    key = jax.random.PRNGKey(0)
    N, C, H, W = 2, 4, 16, 16        # inplanes = planes = 4, stride = 1

    ks = jax.random.split(key, 11)
    x = jax.random.normal(ks[0], (N, C, H, W), jnp.float32)

    # conv weights in HWIO layout (3, 3, Cin, Cout), bias=False
    w1 = jax.random.normal(ks[1], (3, 3, C, C), jnp.float32) * 0.1
    w2 = jax.random.normal(ks[2], (3, 3, C, C), jnp.float32) * 0.1

    # BatchNorm2d(planes, affine=True): gamma, beta, running_mean, running_var
    bn1 = (jax.random.normal(ks[3], (C,), jnp.float32) * 0.1 + 1.0,
           jax.random.normal(ks[4], (C,), jnp.float32) * 0.1,
           jax.random.normal(ks[5], (C,), jnp.float32) * 0.1,
           jax.random.uniform(ks[6], (C,), jnp.float32, 0.5, 1.5))
    bn2 = (jax.random.normal(ks[7], (C,), jnp.float32) * 0.1 + 1.0,
           jax.random.normal(ks[8], (C,), jnp.float32) * 0.1,
           jax.random.normal(ks[9], (C,), jnp.float32) * 0.1,
           jax.random.uniform(ks[10], (C,), jnp.float32, 0.5, 1.5))

    out = jax.block_until_ready(basic_block_forward(x, w1, bn1, w2, bn2))
    ref = jax.block_until_ready(ref_forward(x, w1, bn1, w2, bn2))

    # bf16 activations/weights feed the MXU and the output slab is bf16
    # -> loosened tolerance vs. the f32 reference.
    np.testing.assert_allclose(np.asarray(out), np.asarray(ref),
                               rtol=5e-2, atol=5e-2)
    print("KERNEL_OK")
</pallas_src>

<mosaic_0001>
module attributes {stable_mosaic.version = 11 : i64} {
  func.func @basic_block_kernel(%arg0: i32, %arg1: memref<1x342x4xbf16, #tpu.memory_space<vmem>>, %arg2: memref<36x4xbf16, #tpu.memory_space<vmem>>, %arg3: memref<1x4xf32, #tpu.memory_space<vmem>>, %arg4: memref<36x4xbf16, #tpu.memory_space<vmem>>, %arg5: memref<1x4xf32, #tpu.memory_space<vmem>>, %arg6: memref<1x288x4xbf16, #tpu.memory_space<vmem>>, %arg7: memref<288x36xbf16, #tpu.memory_space<vmem>>, %arg8: memref<326x4xbf16, #tpu.memory_space<vmem>>) attributes {dimension_semantics = [#tpu.dimension_semantics<parallel>], iteration_bounds = array<i64: 2>, scalar_prefetch = 0 : i64, scratch_operands = 2 : i64, tpu.core_type = #tpu.core_type<tc>, window_params = [{transform_indices = @transform_0, window_bounds = array<i64: 1, 342, 4>}, {pipeline_mode = #tpu.pipeline_mode<synchronous>, transform_indices = @transform_1, window_bounds = array<i64: 36, 4>}, {pipeline_mode = #tpu.pipeline_mode<synchronous>, transform_indices = @transform_2, window_bounds = array<i64: 1, 4>}, {pipeline_mode = #tpu.pipeline_mode<synchronous>, transform_indices = @transform_3, window_bounds = array<i64: 36, 4>}, {pipeline_mode = #tpu.pipeline_mode<synchronous>, transform_indices = @transform_4, window_bounds = array<i64: 1, 4>}, {transform_indices = @transform_5, window_bounds = array<i64: 1, 288, 4>}]} {
    %c0 = arith.constant 0 : index
    %c0_0 = arith.constant 0 : index
    %c0_1 = arith.constant 0 : index
    %0 = vector.load %arg1[%c0, %c0_0, %c0_1] : memref<1x342x4xbf16, #tpu.memory_space<vmem>>, vector<1x288x4xbf16>
    %1 = vector.shape_cast %0 : vector<1x288x4xbf16> to vector<288x4xbf16>
    %c0_2 = arith.constant 0 : index
    %c0_3 = arith.constant 0 : index
    %2 = vector.load %arg7[%c0_2, %c0_3] : memref<288x36xbf16, #tpu.memory_space<vmem>>, vector<288x4xbf16>
    tpu.vector_store %arg7[%c0_2, %c0_3], %1 {strides = array<i32>} : memref<288x36xbf16, #tpu.memory_space<vmem>>, vector<288x4xbf16>,
    %c0_4 = arith.constant 0 : index
    %c1 = arith.constant 1 : index
    %c0_5 = arith.constant 0 : index
    %3 = vector.load %arg1[%c0_4, %c1, %c0_5] : memref<1x342x4xbf16, #tpu.memory_space<vmem>>, vector<1x288x4xbf16>
    %4 = vector.shape_cast %3 : vector<1x288x4xbf16> to vector<288x4xbf16>
    %c0_6 = arith.constant 0 : index
    %c4 = arith.constant 4 : index
    %5 = vector.load %arg7[%c0_6, %c4] : memref<288x36xbf16, #tpu.memory_space<vmem>>, vector<288x4xbf16>
    tpu.vector_store %arg7[%c0_6, %c4], %4 {strides = array<i32>} : memref<288x36xbf16, #tpu.memory_space<vmem>>, vector<288x4xbf16>,
    %c0_7 = arith.constant 0 : index
    %c2 = arith.constant 2 : index
    %c0_8 = arith.constant 0 : index
    %6 = vector.load %arg1[%c0_7, %c2, %c0_8] : memref<1x342x4xbf16, #tpu.memory_space<vmem>>, vector<1x288x4xbf16>
    %7 = vector.shape_cast %6 : vector<1x288x4xbf16> to vector<288x4xbf16>
    %c0_9 = arith.constant 0 : index
    %c8 = arith.constant 8 : index
    %8 = vector.load %arg7[%c0_9, %c8] : memref<288x36xbf16, #tpu.memory_space<vmem>>, vector<288x4xbf16>
    tpu.vector_store %arg7[%c0_9, %c8], %7 {strides = array<i32>} : memref<288x36xbf16, #tpu.memory_space<vmem>>, vector<288x4xbf16>,
    %c0_10 = arith.constant 0 : index
    %c18 = arith.constant 18 : index
    %c0_11 = arith.constant 0 : index
    %9 = vector.load %arg1[%c0_10, %c18, %c0_11] : memref<1x342x4xbf16, #tpu.memory_space<vmem>>, vector<1x288x4xbf16>
    %10 = vector.shape_cast %9 : vector<1x288x4xbf16> to vector<288x4xbf16>
    %c0_12 = arith.constant 0 : index
    %c12 = arith.constant 12 : index
    %11 = vector.load %arg7[%c0_12, %c12] : memref<288x36xbf16, #tpu.memory_space<vmem>>, vector<288x4xbf16>
    tpu.vector_store %arg7[%c0_12, %c12], %10 {strides = array<i32>} : memref<288x36xbf16, #tpu.memory_space<vmem>>, vector<288x4xbf16>,
    %c0_13 = arith.constant 0 : index
    %c19 = arith.constant 19 : index
    %c0_14 = arith.constant 0 : index
    %12 = vector.load %arg1[%c0_13, %c19, %c0_14] : memref<1x342x4xbf16, #tpu.memory_space<vmem>>, vector<1x288x4xbf16>
    %13 = vector.shape_cast %12 : vector<1x288x4xbf16> to vector<288x4xbf16>
    %c0_15 = arith.constant 0 : index
    %c16 = arith.constant 16 : index
    %14 = vector.load %arg7[%c0_15, %c16] : memref<288x36xbf16, #tpu.memory_space<vmem>>, vector<288x4xbf16>
    tpu.vector_store %arg7[%c0_15, %c16], %13 {strides = array<i32>} : memref<288x36xbf16, #tpu.memory_space<vmem>>, vector<288x4xbf16>,
    %c0_16 = arith.constant 0 : index
    %c20 = arith.constant 20 : index
    %c0_17 = arith.constant 0 : index
    %15 = vector.load %arg1[%c0_16, %c20, %c0_17] : memref<1x342x4xbf16, #tpu.memory_space<vmem>>, vector<1x288x4xbf16>
    %16 = vector.shape_cast %15 : vector<1x288x4xbf16> to vector<288x4xbf16>
    %c0_18 = arith.constant 0 : index
    %c20_19 = arith.constant 20 : index
    %17 = vector.load %arg7[%c0_18, %c20_19] : memref<288x36xbf16, #tpu.memory_space<vmem>>, vector<288x4xbf16>
    tpu.vector_store %arg7[%c0_18, %c20_19], %16 {strides = array<i32>} : memref<288x36xbf16, #tpu.memory_space<vmem>>, vector<288x4xbf16>,
    %c0_20 = arith.constant 0 : index
    %c36 = arith.constant 36 : index
    %c0_21 = arith.constant 0 : index
    %18 = vector.load %arg1[%c0_20, %c36, %c0_21] : memref<1x342x4xbf16, #tpu.memory_space<vmem>>, vector<1x288x4xbf16>
    %19 = vector.shape_cast %18 : vector<1x288x4xbf16> to vector<288x4xbf16>
    %c0_22 = arith.constant 0 : index
    %c24 = arith.constant 24 : index
    %20 = vector.load %arg7[%c0_22, %c24] : memref<288x36xbf16, #tpu.memory_space<vmem>>, vector<288x4xbf16>
    tpu.vector_store %arg7[%c0_22, %c24], %19 {strides = array<i32>} : memref<288x36xbf16, #tpu.memory_space<vmem>>, vector<288x4xbf16>,
    %c0_23 = arith.constant 0 : index
    %c37 = arith.constant 37 : index
    %c0_24 = arith.constant 0 : index
    %21 = vector.load %arg1[%c0_23, %c37, %c0_24] : memref<1x342x4xbf16, #tpu.memory_space<vmem>>, vector<1x288x4xbf16>
    %22 = vector.shape_cast %21 : vector<1x288x4xbf16> to vector<288x4xbf16>
    %c0_25 = arith.constant 0 : index
    %c28 = arith.constant 28 : index
    %23 = vector.load %arg7[%c0_25, %c28] : memref<288x36xbf16, #tpu.memory_space<vmem>>, vector<288x4xbf16>
    tpu.vector_store %arg7[%c0_25, %c28], %22 {strides = array<i32>} : memref<288x36xbf16, #tpu.memory_space<vmem>>, vector<288x4xbf16>,
    %c0_26 = arith.constant 0 : index
    %c38 = arith.constant 38 : index
    %c0_27 = arith.constant 0 : index
    %24 = vector.load %arg1[%c0_26, %c38, %c0_27] : memref<1x342x4xbf16, #tpu.memory_space<vmem>>, vector<1x288x4xbf16>
    %25 = vector.shape_cast %24 : vector<1x288x4xbf16> to vector<288x4xbf16>
    %c0_28 = arith.constant 0 : index
    %c32 = arith.constant 32 : index
    %26 = vector.load %arg7[%c0_28, %c32] : memref<288x36xbf16, #tpu.memory_space<vmem>>, vector<288x4xbf16>
    tpu.vector_store %arg7[%c0_28, %c32], %25 {strides = array<i32>} : memref<288x36xbf16, #tpu.memory_space<vmem>>, vector<288x4xbf16>,
    %c0_29 = arith.constant 0 : index
    %c0_30 = arith.constant 0 : index
    %27 = vector.load %arg7[%c0_29, %c0_30] : memref<288x36xbf16, #tpu.memory_space<vmem>>, vector<288x36xbf16>
    %c0_31 = arith.constant 0 : index
    %c0_32 = arith.constant 0 : index
    %28 = vector.load %arg2[%c0_31, %c0_32] : memref<36x4xbf16, #tpu.memory_space<vmem>>, vector<36x4xbf16>
    %cst = arith.constant dense<0.000000e+00> : vector<288x4xf32>
    %29 = tpu.matmul %27, %28, %cst {dimension_numbers = #tpu.dot_dimension_numbers<[1], [0], [0], [1], [0, 0, 1, 1], [], []>} : vector<288x36xbf16>, vector<36x4xbf16>, vector<288x4xf32> -> vector<288x4xf32>
    %c0_33 = arith.constant 0 : index
    %c0_34 = arith.constant 0 : index
    %30 = vector.load %arg3[%c0_33, %c0_34] : memref<1x4xf32, #tpu.memory_space<vmem>>, vector<1x4xf32>
    %31 = vector.broadcast %30 : vector<1x4xf32> to vector<288x4xf32>
    %32 = arith.addf %29, %31 : vector<288x4xf32>
    %cst_35 = arith.constant 0.000000e+00 : f32
    %33 = vector.broadcast %cst_35 : f32 to vector<288x4xf32>
    %34 = arith.maximumf %32, %33 : vector<288x4xf32>
    %35 = tpu.iota {dimensions = array<i32: 0>} : vector<288x1xi32>
    %c18_i32 = arith.constant 18 : i32
    %c0_i32 = arith.constant 0 : i32
    %36 = arith.cmpi eq, %c18_i32, %c0_i32 : i32
    %c1_i32 = arith.constant 1 : i32
    %37 = arith.select %36, %c1_i32, %c18_i32 : i32
    %38 = vector.broadcast %37 : i32 to vector<288x1xi32>
    %39 = arith.remsi %35, %38 : vector<288x1xi32>
    %c0_i32_36 = arith.constant 0 : i32
    %40 = vector.broadcast %c0_i32_36 : i32 to vector<288x1xi32>
    %41 = arith.cmpi ne, %39, %40 : vector<288x1xi32>
    %c0_i32_37 = arith.constant 0 : i32
    %42 = vector.broadcast %c0_i32_37 : i32 to vector<288x1xi32>
    %43 = arith.cmpi slt, %39, %42 : vector<288x1xi32>
    %c0_i32_38 = arith.constant 0 : i32
    %44 = arith.cmpi slt, %37, %c0_i32_38 : i32
    %45 = vector.broadcast %44 : i1 to vector<288x1xi1>
    %46 = vector.broadcast %45 : vector<288x1xi1> to vector<288x1xi1>
    %47 = arith.xori %43, %46 : vector<288x1xi1>
    %48 = arith.andi %47, %41 : vector<288x1xi1>
    %49 = vector.broadcast %37 : i32 to vector<288x1xi32>
    %50 = arith.addi %39, %49 : vector<288x1xi32>
    %51 = arith.select %48, %50, %39 : vector<288x1xi1>, vector<288x1xi32>
    %c16_i32 = arith.constant 16 : i32
    %52 = vector.broadcast %c16_i32 : i32 to vector<288x1xi32>
    %53 = arith.cmpi slt, %51, %52 : vector<288x1xi32>
    %cst_39 = arith.constant 0.000000e+00 : f32
    %54 = vector.shape_cast %53 : vector<288x1xi1> to vector<288x1xi1>
    %55 = vector.broadcast %54 : vector<288x1xi1> to vector<288x4xi1>
    %56 = vector.broadcast %cst_39 : f32 to vector<288x4xf32>
    %57 = arith.select %55, %34, %56 : vector<288x4xi1>, vector<288x4xf32>
    %cst_40 = arith.constant 0.000000e+00 : bf16
    %58 = vector.broadcast %cst_40 : bf16 to vector<19x4xbf16>
    %c0_41 = arith.constant 0 : index
    %c0_42 = arith.constant 0 : index
    %59 = vector.load %arg8[%c0_41, %c0_42] : memref<326x4xbf16, #tpu.memory_space<vmem>>, vector<19x4xbf16>
    tpu.vector_store %arg8[%c0_41, %c0_42], %58 {strides = array<i32>} : memref<326x4xbf16, #tpu.memory_space<vmem>>, vector<19x4xbf16>,
    %60 = arith.truncf %57 : vector<288x4xf32> to vector<288x4xbf16>
    %c19_43 = arith.constant 19 : index
    %c0_44 = arith.constant 0 : index
    %61 = vector.load %arg8[%c19_43, %c0_44] : memref<326x4xbf16, #tpu.memory_space<vmem>>, vector<288x4xbf16>
    tpu.vector_store %arg8[%c19_43, %c0_44], %60 {strides = array<i32>} : memref<326x4xbf16, #tpu.memory_space<vmem>>, vector<288x4xbf16>,
    %cst_45 = arith.constant 0.000000e+00 : bf16
    %62 = vector.broadcast %cst_45 : bf16 to vector<19x4xbf16>
    %c307 = arith.constant 307 : index
    %c0_46 = arith.constant 0 : index
    %63 = vector.load %arg8[%c307, %c0_46] : memref<326x4xbf16, #tpu.memory_space<vmem>>, vector<19x4xbf16>
    tpu.vector_store %arg8[%c307, %c0_46], %62 {strides = array<i32>} : memref<326x4xbf16, #tpu.memory_space<vmem>>, vector<19x4xbf16>,
    %c0_47 = arith.constant 0 : index
    %c0_48 = arith.constant 0 : index
    %64 = vector.load %arg8[%c0_47, %c0_48] : memref<326x4xbf16, #tpu.memory_space<vmem>>, vector<288x4xbf16>
    %c0_49 = arith.constant 0 : index
    %c0_50 = arith.constant 0 : index
    %65 = vector.load %arg7[%c0_49, %c0_50] : memref<288x36xbf16, #tpu.memory_space<vmem>>, vector<288x4xbf16>
    tpu.vector_store %arg7[%c0_49, %c0_50], %64 {strides = array<i32>} : memref<288x36xbf16, #tpu.memory_space<vmem>>, vector<288x4xbf16>,
    %c1_51 = arith.constant 1 : index
    %c0_52 = arith.constant 0 : index
    %66 = vector.load %arg8[%c1_51, %c0_52] : memref<326x4xbf16, #tpu.memory_space<vmem>>, vector<288x4xbf16>
    %c0_53 = arith.constant 0 : index
    %c4_54 = arith.constant 4 : index
    %67 = vector.load %arg7[%c0_53, %c4_54] : memref<288x36xbf16, #tpu.memory_space<vmem>>, vector<288x4xbf16>
    tpu.vector_store %arg7[%c0_53, %c4_54], %66 {strides = array<i32>} : memref<288x36xbf16, #tpu.memory_space<vmem>>, vector<288x4xbf16>,
    %c2_55 = arith.constant 2 : index
    %c0_56 = arith.constant 0 : index
    %68 = vector.load %arg8[%c2_55, %c0_56] : memref<326x4xbf16, #tpu.memory_space<vmem>>, vector<288x4xbf16>
    %c0_57 = arith.constant 0 : index
    %c8_58 = arith.constant 8 : index
    %69 = vector.load %arg7[%c0_57, %c8_58] : memref<288x36xbf16, #tpu.memory_space<vmem>>, vector<288x4xbf16>
    tpu.vector_store %arg7[%c0_57, %c8_58], %68 {strides = array<i32>} : memref<288x36xbf16, #tpu.memory_space<vmem>>, vector<288x4xbf16>,
    %c18_59 = arith.constant 18 : index
    %c0_60 = arith.constant 0 : index
    %70 = vector.load %arg8[%c18_59, %c0_60] : memref<326x4xbf16, #tpu.memory_space<vmem>>, vector<288x4xbf16>
    %c0_61 = arith.constant 0 : index
    %c12_62 = arith.constant 12 : index
    %71 = vector.load %arg7[%c0_61, %c12_62] : memref<288x36xbf16, #tpu.memory_space<vmem>>, vector<288x4xbf16>
    tpu.vector_store %arg7[%c0_61, %c12_62], %70 {strides = array<i32>} : memref<288x36xbf16, #tpu.memory_space<vmem>>, vector<288x4xbf16>,
    %c19_63 = arith.constant 19 : index
    %c0_64 = arith.constant 0 : index
    %72 = vector.load %arg8[%c19_63, %c0_64] : memref<326x4xbf16, #tpu.memory_space<vmem>>, vector<288x4xbf16>
    %c0_65 = arith.constant 0 : index
    %c16_66 = arith.constant 16 : index
    %73 = vector.load %arg7[%c0_65, %c16_66] : memref<288x36xbf16, #tpu.memory_space<vmem>>, vector<288x4xbf16>
    tpu.vector_store %arg7[%c0_65, %c16_66], %72 {strides = array<i32>} : memref<288x36xbf16, #tpu.memory_space<vmem>>, vector<288x4xbf16>,
    %c20_67 = arith.constant 20 : index
    %c0_68 = arith.constant 0 : index
    %74 = vector.load %arg8[%c20_67, %c0_68] : memref<326x4xbf16, #tpu.memory_space<vmem>>, vector<288x4xbf16>
    %c0_69 = arith.constant 0 : index
    %c20_70 = arith.constant 20 : index
    %75 = vector.load %arg7[%c0_69, %c20_70] : memref<288x36xbf16, #tpu.memory_space<vmem>>, vector<288x4xbf16>
    tpu.vector_store %arg7[%c0_69, %c20_70], %74 {strides = array<i32>} : memref<288x36xbf16, #tpu.memory_space<vmem>>, vector<288x4xbf16>,
    %c36_71 = arith.constant 36 : index
    %c0_72 = arith.constant 0 : index
    %76 = vector.load %arg8[%c36_71, %c0_72] : memref<326x4xbf16, #tpu.memory_space<vmem>>, vector<288x4xbf16>
    %c0_73 = arith.constant 0 : index
    %c24_74 = arith.constant 24 : index
    %77 = vector.load %arg7[%c0_73, %c24_74] : memref<288x36xbf16, #tpu.memory_space<vmem>>, vector<288x4xbf16>
    tpu.vector_store %arg7[%c0_73, %c24_74], %76 {strides = array<i32>} : memref<288x36xbf16, #tpu.memory_space<vmem>>, vector<288x4xbf16>,
    %c37_75 = arith.constant 37 : index
    %c0_76 = arith.constant 0 : index
    %78 = vector.load %arg8[%c37_75, %c0_76] : memref<326x4xbf16, #tpu.memory_space<vmem>>, vector<288x4xbf16>
    %c0_77 = arith.constant 0 : index
    %c28_78 = arith.constant 28 : index
    %79 = vector.load %arg7[%c0_77, %c28_78] : memref<288x36xbf16, #tpu.memory_space<vmem>>, vector<288x4xbf16>
    tpu.vector_store %arg7[%c0_77, %c28_78], %78 {strides = array<i32>} : memref<288x36xbf16, #tpu.memory_space<vmem>>, vector<288x4xbf16>,
    %c38_79 = arith.constant 38 : index
    %c0_80 = arith.constant 0 : index
    %80 = vector.load %arg8[%c38_79, %c0_80] : memref<326x4xbf16, #tpu.memory_space<vmem>>, vector<288x4xbf16>
    %c0_81 = arith.constant 0 : index
    %c32_82 = arith.constant 32 : index
    %81 = vector.load %arg7[%c0_81, %c32_82] : memref<288x36xbf16, #tpu.memory_space<vmem>>, vector<288x4xbf16>
    tpu.vector_store %arg7[%c0_81, %c32_82], %80 {strides = array<i32>} : memref<288x36xbf16, #tpu.memory_space<vmem>>, vector<288x4xbf16>,
    %c0_83 = arith.constant 0 : index
    %c0_84 = arith.constant 0 : index
    %82 = vector.load %arg7[%c0_83, %c0_84] : memref<288x36xbf16, #tpu.memory_space<vmem>>, vector<288x36xbf16>
    %c0_85 = arith.constant 0 : index
    %c0_86 = arith.constant 0 : index
    %83 = vector.load %arg4[%c0_85, %c0_86] : memref<36x4xbf16, #tpu.memory_space<vmem>>, vector<36x4xbf16>
    %cst_87 = arith.constant dense<0.000000e+00> : vector<288x4xf32>
    %84 = tpu.matmul %82, %83, %cst_87 {dimension_numbers = #tpu.dot_dimension_numbers<[1], [0], [0], [1], [0, 0, 1, 1], [], []>} : vector<288x36xbf16>, vector<36x4xbf16>, vector<288x4xf32> -> vector<288x4xf32>
    %c0_88 = arith.constant 0 : index
    %c19_89 = arith.constant 19 : index
    %c0_90 = arith.constant 0 : index
    %85 = vector.load %arg1[%c0_88, %c19_89, %c0_90] : memref<1x342x4xbf16, #tpu.memory_space<vmem>>, vector<1x288x4xbf16>
    %86 = vector.shape_cast %85 : vector<1x288x4xbf16> to vector<288x4xbf16>
    %87 = arith.extf %86 : vector<288x4xbf16> to vector<288x4xf32>
    %c0_91 = arith.constant 0 : index
    %c0_92 = arith.constant 0 : index
    %88 = vector.load %arg5[%c0_91, %c0_92] : memref<1x4xf32, #tpu.memory_space<vmem>>, vector<1x4xf32>
    %89 = vector.broadcast %88 : vector<1x4xf32> to vector<288x4xf32>
    %90 = arith.addf %84, %89 : vector<288x4xf32>
    %91 = arith.addf %90, %87 : vector<288x4xf32>
    %cst_93 = arith.constant 0.000000e+00 : f32
    %92 = vector.broadcast %cst_93 : f32 to vector<288x4xf32>
    %93 = arith.maximumf %91, %92 : vector<288x4xf32>
    %94 = arith.truncf %93 : vector<288x4xf32> to vector<288x4xbf16>
    %c0_94 = arith.constant 0 : index
    %c0_95 = arith.constant 0 : index
    %c0_96 = arith.constant 0 : index
    %95 = vector.load %arg6[%c0_94, %c0_95, %c0_96] : memref<1x288x4xbf16, #tpu.memory_space<vmem>>, vector<1x288x4xbf16>
    %96 = vector.shape_cast %95 : vector<1x288x4xbf16> to vector<288x4xbf16>
    %97 = vector.shape_cast %94 : vector<288x4xbf16> to vector<1x288x4xbf16>
    tpu.vector_store %arg6[%c0_94, %c0_95, %c0_96], %97 {strides = array<i32>} : memref<1x288x4xbf16, #tpu.memory_space<vmem>>, vector<1x288x4xbf16>,
    return
  }
  func.func @transform_0(%arg0: i32) -> (i32, i32, i32) {
    %c0_i32 = arith.constant 0 : i32
    %c0_i32_0 = arith.constant 0 : i32
    %c0_i32_1 = arith.constant 0 : i32
    return %arg0, %c0_i32, %c0_i32_0 : i32, i32, i32
  }
  func.func @transform_1(%arg0: i32) -> (i32, i32) {
    %c0_i32 = arith.constant 0 : i32
    %c0_i32_0 = arith.constant 0 : i32
    %c0_i32_1 = arith.constant 0 : i32
    return %c0_i32, %c0_i32_0 : i32, i32
  }
  func.func @transform_2(%arg0: i32) -> (i32, i32) {
    %c0_i32 = arith.constant 0 : i32
    %c0_i32_0 = arith.constant 0 : i32
    %c0_i32_1 = arith.constant 0 : i32
    return %c0_i32, %c0_i32_0 : i32, i32
  }
  func.func @transform_3(%arg0: i32) -> (i32, i32) {
    %c0_i32 = arith.constant 0 : i32
    %c0_i32_0 = arith.constant 0 : i32
    %c0_i32_1 = arith.constant 0 : i32
    return %c0_i32, %c0_i32_0 : i32, i32
  }
  func.func @transform_4(%arg0: i32) -> (i32, i32) {
    %c0_i32 = arith.constant 0 : i32
    %c0_i32_0 = arith.constant 0 : i32
    %c0_i32_1 = arith.constant 0 : i32
    return %c0_i32, %c0_i32_0 : i32, i32
  }
  func.func @transform_5(%arg0: i32) -> (i32, i32, i32) {
    %c0_i32 = arith.constant 0 : i32
    %c0_i32_0 = arith.constant 0 : i32
    %c0_i32_1 = arith.constant 0 : i32
    return %arg0, %c0_i32, %c0_i32_0 : i32, i32, i32
  }
}

</mosaic_0001>

<bundles_post_ra>
// kernel: tpu_custom_call.1
= control target key start
LH: loop header
LB: loop body
LE: loop exit
PB: predicated region body
PF: predicated region fallthrough
CT: control target
= control target key end

     0   :  { %s8826_s18 = smov 0   ;;  %s12457_s0 = inlined_call_operand.vmem [shape: bf16[2,342,4], index: 0, kind: input, shape index: {}]   ;;  %s12458_s1 = inlined_call_operand.vmem [shape: bf16[36,4], index: 1, kind: input, shape index: {}]   ;;  %s12459_s2 = inlined_call_operand.vmem [shape: f32[1,4], index: 2, kind: input, shape index: {}]   ;;  %s12460_s3 = inlined_call_operand.vmem [shape: bf16[36,4], index: 3, kind: input, shape index: {}]   ;;  %s12461_s4 = inlined_call_operand.vmem [shape: f32[1,4], index: 4, kind: input, shape index: {}]   ;;  %s12462_s5 = inlined_call_operand.vmem [shape: bf16[2,288,4], index: 5, kind: output, shape index: {}]  }
   0x1 LB: > { %s7589_s19 = sadd.s32 4294967295, %s8785_s18   ;;  %p7593_p0 = scmp.ge.s32.totalorder %s8785_s18, 1  ;;  %s8785_s18 = sphi %s8826_s18, %s15_s18  }
   0x2   : > { %p187_p1 = scmp.lt.s32.totalorder %s8785_s18, 3 }
   0x4   : > { %p188_p2 = pnand %p7593_p0, %p187_p1 }
   0x5   : > { %p215_p3 = scmp.lt.s32.totalorder (!%p188_p2), %s7589_s19, 1  ;;  %vm12470_vm0 = vcmask (!%p188_p2), 1046528   ;;  %vm12473_vm1 = vcmask (!%p188_p2), 1045504   ;;  %s8787_s24 = smov (!%p188_p2), 12   ;;  %vm12467_vm2 = vsmask.f32 (!%p188_p2), 7424 }
   0x6   : > { %191 = sbr.rel (%p188_p2) target bundleno = 1115 (0x45b), region = 40  ;;  %s8788_s25 = smov (!%p188_p2), 8   ;;  %vm12465_vm3 = vsmask.f32 (!%p188_p2), 6400  ;;  %vm12471_vm4 = vsmask.f32 (!%p188_p2), 5376 }
   0x7   : > { %s8789_s26 = smov (!%p188_p2), 20   ;;  %s8790_s27 = smov (!%p188_p2), 4   ;;  %vm12472_vm5 = vcmask (!%p188_p2), 1044480   ;;  %vm12468_vm6 = vcmask (!%p188_p2), 31744   ;;  %vm12463_vm7 = vcmask (!%p188_p2), 1041408   ;;  %vm12478_vm8 = vcmask (!%p188_p2), 64544  }
   0x8   : > { %s8791_s28 = smov (!%p188_p2), 16   ;;  %s8792_s29 = smov (!%p188_p2), 24   ;;  %vm12477_vm9 = vcmask (!%p188_p2), 97344   ;;  %vm12476_vm10 = vcmask (!%p188_p2), 130144   ;;  %vm12474_vm11 = vcmask (!%p188_p2), 162944   ;;  %vm12485_vm12 = vcmask (!%p188_p2), 195744  }
   0x9   : > { %s8793_s30 = smov (!%p188_p2), 28   ;;  %s8794_s6 = smov (!%p188_p2), 32   ;;  %vm12466_vm13 = vcmask (!%p188_p2), 228544   ;;  %vm12464_vm14 = vcmask (!%p188_p2), 261344   ;;  %vm12479_vm15 = vcmask (!%p188_p2), 294144  }
   0xd   : > { %s13044_s19 = smov (!%p215_p3, %s7589_s19), 1 }
   0xe   : > { %s8339_s20 = smul.u32 172, %s13044_s19 }
  0x10   : > { %s8840_s23 = scalar_lea.vmem %s12457_s0, %s8339_s20 }
  0x11   : > { %v8430_v0 = vld [vmem:[%s8840_s23 + $0x8] sm:$0xfe]   ;;  %v8431_v1 = vld [vmem:[%s8840_s23 + $0x10] sm:$0xff]   ;;  %v8432_v4 = vld [vmem:[%s8840_s23] sm:$0xfe]  }
  0x12   : > { %v1112_v2 = vrot.slane %v8430_v0, 1  ;;  %v1113_v3 = vrot.slane %v8431_v1, 1  ;;  %v8433_v5 = vld [vmem:[%s8840_s23 + $0x8] sm:$0xff]   ;;  %v872_v7 = vrot.slane %v8432_v4, 1  ;;  %v8435_v8 = vld [vmem:[%s8840_s23 + $0x10] sm:$0xff]   ;;  %v8854_v13 = vld [vmem:[%s8840_s23 + $0x18] sm:$0xff]  }
  0x13   : > { %v873_v9 = vrot.slane %v8433_v5, 1  ;;  %v8434_v10 = vld [vmem:[%s8840_s23 + $0x8] sm:$0xfc]   ;;  %v8851_v11 = vld [vmem:[%s8840_s23 + $0x10] sm:$0xff]   ;;  %v1728_v12 = vrot.slane %v8435_v8, 2  ;;  %v8438_v17 = vld [vmem:[%s8840_s23] sm:$0xff]  }
  0x14   : > { %v1114_v6 = vsel %vm12470_vm0, %v1112_v2, %v1113_v3  ;;  %v1727_v15 = vrot.slane %v8434_v10, 2  ;;  %v875_v16 = vrot.slane %v8851_v11, 1  ;;  %v1115_v20 = vrot.slane %v8854_v13, 1  ;;  %v8439_v21 = vld [vmem:[%s8840_s23 + $0x8] sm:$0xff]   ;;  %v8868_v24 = vld [vmem:[%s8840_s23 + $0x18] sm:$0xff]   ;;  %v8871_v25 = vld [vmem:[%s8840_s23 + $0x10] sm:$0xff]  }
  0x15   : > { %1149 = vrot.lane.b32.xlu0 %v1114_v6, %s8787_s24  ;;  %v874_v14 = vsel %vm12470_vm0, %v872_v7, %v873_v9  ;;  %v521_v22 = vshrl.u32 %v8438_v17, 16  ;;  %v523_v23 = vshll.u32 %v8438_v17, 16  ;;  %v528_v26 = vshll.u32 %v8439_v21, 16  ;;  %v8442_v31 = vld [vmem:[%s8840_s23 + $0x10] sm:$0xff]   ;;  %v8443_v34 = vld [vmem:[%s8840_s23 + $0x18] sm:$0xff]   ;;  %v8888_v46 = vld [vmem:[%s8840_s23 + $0x20] sm:$0xff]  }
  0x16   : > { %909 = vrot.lane.b32.xlu1 %v874_v14, %s8788_s25  ;;  %v1729_v18 = vsel %vm12473_vm1, %v1727_v15, %v1728_v12  ;;  %v876_v19 = vsel %vm12470_vm0, %v873_v9, %v875_v16  ;;  %v532_v27 = vshrl.u32 %v8439_v21, 16  ;;  %v1730_v29 = vrot.slane %v8868_v24, 2  ;;  %v8446_v42 = vld [vmem:[%s8840_s23 + $0x18] sm:$0xff]   ;;  %v8444_v45 = vld [vmem:[%s8840_s23 + $0x8] sm:$0xfe]   ;;  %v8450_v4 = vld [vmem:[%s8840_s23 + $0x20] sm:$0xff]  }
  0x17   : > { %v525_v28 = vrot.slane %v523_v23, 1  ;;  %v536_v30 = vshll.u32 %v8871_v25, 16  ;;  %v1116_v32 = vsel %vm12470_vm0, %v1113_v3, %v1115_v20  ;;  %v530_v33 = vrot.slane %v528_v26, 1  ;;  %v8449_v51 = vld [vmem:[%s8840_s23 + $0x18] sm:$0xff]   ;;  %v8445_v57 = vld [vmem:[%s8840_s23 + $0x10] sm:$0xfc]  }
  0x18   : > { %v1362_v37 = vshrl.u32 %v8442_v31, 16  ;;  %v1365_v39 = vshll.u32 %v8442_v31, 16  ;;  %v1371_v40 = vshrl.u32 %v8443_v34, 16  ;;  %v1374_v41 = vshll.u32 %v8443_v34, 16  ;;  %v8448_v2 = vld [vmem:[%s8840_s23 + $0x10] sm:$0xfc]  }
  0x19   : > { %1764 = vrot.lane.b32.xlu0 %v1729_v18, %s8789_s26  ;;  %v526_v35 = vor.u32 %v525_v28, %v521_v22  ;;  %v8881_v36 = vrot.slane %v536_v30, 1  ;;  %v534_v38 = vor.u32 %v532_v27, %v530_v33  ;;  %v1731_v47 = vsel %vm12473_vm1, %v1728_v12, %v1730_v29  ;;  %v8908_v6 = vld [vmem:[%s8840_s23 + $0x18] sm:$0xff]   ;;  %v8451_v23 = vld [vmem:[%s8840_s23 + $0x10] sm:$0xf8]  }
  0x1a   : > { %911 = vrot.lane.b32.xlu1 %v876_v19, %s8788_s25  ;;  %v1364_v44 = vrot.slane %v1362_v37, 1  ;;  %v1367_v48 = vrot.slane %v1365_v39, 2  ;;  %v1373_v49 = vrot.slane %v1371_v40, 1  ;;  %v1376_v50 = vrot.slane %v1374_v41, 2  ;;  %v8453_v12 = vld [vmem:[%s8840_s23 + $0x18] sm:$0xff]   ;;  %v8927_v37 = vld [vmem:[%s8840_s23 + $0x20] sm:$0xff]  }
  0x1b   : > { %v531_v43 = vsel %vm12467_vm2, %v526_v35, %v530_v33  ;;  %v539_v52 = vsel %vm12467_vm2, %v534_v38, %v8881_v36  ;;  %v1354_v53 = vshrl.u32 %v8444_v45, 16  ;;  %v1357_v54 = vshll.u32 %v8444_v45, 16  ;;  %v8931_v40 = vld [vmem:[%s8840_s23 + $0x20] sm:$0xff]  }
  0x1c   : > { %v1368_v55 = vor.u32 %v1367_v48, %v1364_v44  ;;  %v8897_v56 = vor.u32 %v1376_v50, %v1373_v49  ;;  %v1968_v58 = vrot.slane %v8446_v42, 2  ;;  %v1970_v59 = vrot.slane %v8888_v46, 2  ;;  %v8456_v42 = vld [vmem:[%s8840_s23 + $0x18] sm:$0xff]  }
  0x1d   : > { %668 = vrot.lane.b32.xlu0 %v531_v43, %s8790_s27  ;;  %v1356_v60 = vrot.slane %v1354_v53, 1  ;;  %v1359_v61 = vrot.slane %v1357_v54, 2  ;;  %v1967_v63 = vrot.slane %v8445_v57, 2  ;;  %v2217_v0 = vshrl.u32 %v8449_v51, 16  ;;  %v8939_v43 = vld [vmem:[%s8840_s23 + $0x20] sm:$0xff]   ;;  %v8461_v54 = vld [vmem:[%s8840_s23 + $0x28] sm:$0xff]  }
  0x1e   : > { %1151 = vrot.lane.b32.xlu1 %v1116_v32, %s8787_s24  ;;  %v1378_v62 = vsel %vm12465_vm3, %v1368_v55, %v8897_v56  ;;  %v2220_v3 = vshll.u32 %v8449_v51, 16  ;;  %v2209_v8 = vshrl.u32 %v8448_v2, 16  ;;  %v2212_v9 = vshll.u32 %v8448_v2, 16  ;;  %v8949_v51 = vld [vmem:[%s8840_s23 + $0x28] sm:$0xff]  }
  0x1f   : > { %v1360_v1 = vor.u32 %v1359_v61, %v1356_v60  ;;  %v2219_v5 = vrot.slane %v2217_v0, 2  ;;  %v1971_v14 = vsel %vm12473_vm1, %v1968_v58, %v1970_v59  ;;  %v2226_v15 = vshrl.u32 %v8450_v4, 16 }
  0x20   : > { %v2222_v10 = vrot.slane %v2220_v3, 3  ;;  %v2229_v17 = vshll.u32 %v8450_v4, 16  ;;  %v1969_v18 = vsel %vm12473_vm1, %v1967_v63, %v1968_v58  ;;  %v2211_v19 = vrot.slane %v2209_v8, 2  ;;  %v8462_v8 = vld [vmem:[%s8840_s23 + $0x20] sm:$0xff]  }
  0x21   : > { %670 = vrot.lane.b32.xlu0 %v539_v52, %s8790_s27  ;;  %v1369_v7 = vsel %vm12465_vm3, %v1360_v1, %v1368_v55  ;;  %v2214_v21 = vrot.slane %v2212_v9, 3  ;;  %v2228_v26 = vrot.slane %v2226_v15, 2  ;;  %v2583_v28 = vrot.slane %v8908_v6, 3  ;;  %v8460_v52 = vld [vmem:[%s8840_s23 + $0x20] sm:$0xff]   ;;  %v8972_v9 = vld [vmem:[%s8840_s23 + $0x28] sm:$0xff]  }
  0x22   : > { %1766 = vrot.lane.b32.xlu1 %v1731_v47, %s8789_s26  ;;  %v2223_v22 = vor.u32 %v2222_v10, %v2219_v5  ;;  %v2231_v27 = vrot.slane %v2229_v17, 3  ;;  %v540_v30 = vshrl.u32 %v8871_v25, 16  ;;  %v2582_v32 = vrot.slane %v8451_v23, 3  ;;  %v8458_v47 = vld [vmem:[%s8840_s23 + $0x20] sm:$0xff]   ;;  %v8466_v10 = vld [vmem:[%s8840_s23 + $0x28] sm:$0xff]   ;;  %v8467_v17 = vld [vmem:[%s8840_s23 + $0x30] sm:$0xff]  }
  0x23   : > { %v2215_v31 = vor.u32 %v2214_v21, %v2211_v19  ;;  %v544_v33 = vshll.u32 %v8453_v12, 16  ;;  %v548_v38 = vshrl.u32 %v8453_v12, 16  ;;  %v2585_v49 = vrot.slane %v8927_v37, 3  ;;  %v8464_v19 = vld [vmem:[%s8840_s23 + $0x28] sm:$0xff]   ;;  %v8989_v21 = vld [vmem:[%s8840_s23 + $0x30] sm:$0xff]  }
  0x24   : > { %v8923_v34 = vor.u32 %v2231_v27, %v2228_v26  ;;  %v542_v35 = vor.u32 %v540_v30, %v8881_v36  ;;  %v552_v36 = vshll.u32 %v8931_v40, 16  ;;  %v2584_v48 = vsel %vm12472_vm5, %v2582_v32, %v2583_v28  ;;  %v8469_v32 = vld [vmem:[%s8840_s23 + $0x28] sm:$0xff]  }
  0x25   : > { %1523 = vrot.lane.b32.xlu0 %v1369_v7, %s8791_s28  ;;  %v2224_v25 = vsel %vm12471_vm4, %v2215_v31, %v2223_v22  ;;  %v546_v39 = vrot.slane %v544_v33, 1  ;;  %v877_v53 = vrot.slane %v8456_v42, 1  ;;  %v879_v55 = vrot.slane %v8939_v43, 1 }
  0x26   : > { %1525 = vrot.lane.b32.xlu1 %v1378_v62, %s8791_s28  ;;  %v2233_v41 = vsel %vm12471_vm4, %v2223_v22, %v8923_v34  ;;  %v8946_v50 = vrot.slane %v552_v36, 1  ;;  %v1380_v57 = vshrl.u32 %v8460_v52, 16  ;;  %v1383_v60 = vshll.u32 %v8460_v52, 16 }
  0x27   : > { %v547_v44 = vsel %vm12467_vm2, %v542_v35, %v546_v39  ;;  %v550_v45 = vor.u32 %v548_v38, %v546_v39  ;;  %v1389_v61 = vshrl.u32 %v8461_v54, 16  ;;  %v1392_v62 = vshll.u32 %v8461_v54, 16 }
  0x28   : > { %v2586_v63 = vsel %vm12472_vm5, %v2583_v28, %v2585_v49  ;;  %v1117_v0 = vrot.slane %v8458_v47, 1  ;;  %v1119_v1 = vrot.slane %v8949_v51, 1  ;;  %v1382_v2 = vrot.slane %v1380_v57, 1  ;;  %v8472_v57 = vld [vmem:[%s8840_s23 + $0x28] sm:$0xff]  }
  0x29   : > { %2004 = vrot.lane.b32.xlu0 %v1969_v18, %s8792_s29  ;;  %v555_v58 = vsel %vm12467_vm2, %v550_v45, %v8946_v50  ;;  %v1385_v3 = vrot.slane %v1383_v60, 2  ;;  %v880_v4 = vsel %vm12470_vm0, %v877_v53, %v879_v55  ;;  %v1391_v5 = vrot.slane %v1389_v61, 1  ;;  %v9016_v45 = vld [vmem:[%s8840_s23 + $0x30] sm:$0xff]  }
  0x2a   : > { %2006 = vrot.lane.b32.xlu1 %v1971_v14, %s8792_s29  ;;  %v1394_v6 = vrot.slane %v1392_v62, 2  ;;  %v878_v7 = vsel %vm12470_vm0, %v875_v16, %v877_v53  ;;  %v1120_v12 = vsel %vm12470_vm0, %v1117_v0, %v1119_v1  ;;  %v1118_v11 = vsel %vm12470_vm0, %v1115_v20, %v1117_v0  ;;  %v8476_v60 = vld [vmem:[%s8840_s23 + $0x30] sm:$0xff]  }
  0x2b   : > { %v1386_v14 = vor.u32 %v1385_v3, %v1382_v2  ;;  %v1732_v16 = vrot.slane %v8462_v8, 2  ;;  %v1734_v18 = vrot.slane %v8972_v9, 2  ;;  %v2235_v22 = vshrl.u32 %v8466_v10, 16  ;;  %v8474_v3 = vld [vmem:[%s8840_s23 + $0x30] sm:$0xff]  }
  0x2c   : > { %v8980_v15 = vor.u32 %v1394_v6, %v1391_v5  ;;  %v2238_v23 = vshll.u32 %v8466_v10, 16  ;;  %v2244_v27 = vshrl.u32 %v8467_v17, 16  ;;  %v2247_v13 = vshll.u32 %v8467_v17, 16  ;;  %v9051_v5 = vld [vmem:[%s8840_s23 + $0x38] sm:$0xff]  }
  0x2d   : > { %2378 = vrot.lane.b32.xlu0 %v2224_v25, %s8793_s30  ;;  %v1387_v20 = vsel %vm12465_vm3, %v8897_v56, %v1386_v14  ;;  %v1972_v28 = vrot.slane %v8464_v19, 2  ;;  %v1735_v30 = vsel %vm12473_vm1, %v1732_v16, %v1734_v18  ;;  %v1974_v31 = vrot.slane %v8989_v21, 2 }
  0x2e   : > { %2380 = vrot.lane.b32.xlu1 %v2233_v41, %s8793_s30  ;;  %v1396_v26 = vsel %vm12465_vm3, %v1386_v14, %v8980_v15  ;;  %v2237_v33 = vrot.slane %v2235_v22, 2  ;;  %v2240_v35 = vrot.slane %v2238_v23, 3  ;;  %v2246_v38 = vrot.slane %v2244_v27, 2  ;;  %v9071_v27 = vld [vmem:[%s8840_s23 + $0x38] sm:$0xff]  }
  0x2f   : > { %v2249_v25 = vrot.slane %v2247_v13, 3  ;;  %v1733_v56 = vsel %vm12473_vm1, %v1730_v29, %v1732_v16  ;;  %v556_v39 = vshrl.u32 %v8931_v40, 16  ;;  %v1975_v41 = vsel %vm12473_vm1, %v1972_v28, %v1974_v31  ;;  %v8468_v29 = vld [vmem:[%s8840_s23 + $0x28] sm:$0xff]   ;;  %v9024_v40 = vld [vmem:[%s8840_s23 + $0x30] sm:$0xff]   ;;  %v8482_v13 = vld [vmem:[%s8840_s23 + $0x38] sm:$0xff]  }
  0x30   : > { %v2241_v42 = vor.u32 %v2240_v35, %v2237_v33  ;;  %v1973_v24 = vsel %vm12473_vm1, %v1970_v59, %v1972_v28  ;;  %v564_v47 = vshrl.u32 %v8469_v32, 16  ;;  %v568_v46 = vshll.u32 %v9016_v45, 16  ;;  %v8478_v16 = vld [vmem:[%s8840_s23 + $0x30] sm:$0xff]   ;;  %v8480_v35 = vld [vmem:[%s8840_s23 + $0x38] sm:$0xff]  }
  0x31   : > { %2619 = vrot.lane.b32.xlu0 %v2584_v48, %s8794_s6  ;;  %v9013_v36 = vor.u32 %v2249_v25, %v2246_v38  ;;  %v558_v52 = vor.u32 %v556_v39, %v8946_v50  ;;  %v2587_v54 = vrot.slane %v8468_v29, 3  ;;  %v2589_v0 = vrot.slane %v9024_v40, 3  ;;  %v9088_v38 = vld [vmem:[%s8840_s23 + $0x40] sm:$0xff]   ;;  %v8516_v40 = vld [vmem:[%s12458_s1 + $0x8] sm:$0xff]  }
  0x32   : > { %672 = vrot.lane.b32.xlu1 %v547_v44, %s8790_s27  ;;  %v560_v44 = vshll.u32 %v8469_v32, 16  ;;  %v2242_v59 = vsel %vm12471_vm4, %v8923_v34, %v2241_v42  ;;  %v9041_v62 = vrot.slane %v568_v46, 1  ;;  %v881_v2 = vrot.slane %v8472_v57, 1 }
  0x33   : > { %v2251_v48 = vsel %vm12471_vm4, %v2241_v42, %v9013_v36  ;;  %v2588_v34 = vsel %vm12472_vm5, %v2585_v49, %v2587_v54  ;;  %v1398_v6 = vshrl.u32 %v8476_v60, 16  ;;  %v2590_v10 = vsel %vm12472_vm5, %v2587_v54, %v2589_v0  ;;  %v8500_v42 = vld [vmem:[%s8840_s23] sm:$0xff]  }
  0x34   : > { %v562_v53 = vrot.slane %v560_v44, 1  ;;  %v1123_v14 = vrot.slane %v9051_v5, 1  ;;  %v1738_v33 = vrot.slane %v9071_v27, 2  ;;  %v2253_v25 = vshrl.u32 %v8482_v13, 16  ;;  %371 = vst.msk [vmem:[#allocation2] sm:$0xff] %vm12468_vm6, %v8500_v42 }
  0x35   : > { %2621 = vrot.lane.b32.xlu0 %v2586_v63, %s8794_s6  ;;  %v8477_v63 = vld [vmem:[%s8840_s23 + $0x38] sm:$0xff]   ;;  %v1400_v17 = vrot.slane %v1398_v6, 1  ;;  %v1978_v29 = vrot.slane %v9088_v38, 2  ;;  %v572_v9 = vshrl.u32 %v9016_v45, 16 }
  0x36   : > { %674 = vrot.lane.b32.xlu1 %v555_v58, %s8790_s27  ;;  %v9035_v58 = vld [vmem:[%s8840_s23 + $0x30] sm:$0xff]   ;;  %v563_v61 = vsel %vm12467_vm2, %v558_v52, %v562_v53  ;;  %v566_v50 = vor.u32 %v564_v47, %v562_v53  ;;  %v1407_v49 = vshrl.u32 %v8477_v63, 16  ;;  %v1410_v8 = vshll.u32 %v8477_v63, 16  ;;  %v8485_v47 = vld [vmem:[%s8840_s23 + $0x38] sm:$0xff]  }
  0x37   : > { %v2255_v52 = vrot.slane %v2253_v25, 2  ;;  %v576_v54 = vshll.u32 %v8485_v47, 16  ;;  %v8484_v63 = vld [vmem:[%s8840_s23 + $0x38] sm:$0xff]   ;;  %v574_v6 = vor.u32 %v572_v9, %v9041_v62  ;;  %v9206_v9 = vld [vmem:[%s8840_s23 + $0x50] sm:$0xff]  }
  0x38   : > { %v571_v37 = vsel %vm12467_vm2, %v566_v50, %v9041_v62  ;;  %v1409_v22 = vrot.slane %v1407_v49, 1  ;;  %v1412_v23 = vrot.slane %v1410_v8, 2  ;;  %v9138_v49 = vld [vmem:[%s8840_s23 + $0x40] sm:$0xff]   ;;  %v8493_v62 = vld [vmem:[%s8840_s23 + $0x48] sm:$0xff]  }
  0x39   : > { %913 = vrot.lane.b32.xlu0 %v878_v7, %s8788_s25  ;;  %v1401_v7 = vshll.u32 %v8476_v60, 16  ;;  %v8492_v8 = vld [vmem:[%s8840_s23 + $0x40] sm:$0xff]  }
  0x3a   : > { %915 = vrot.lane.b32.xlu1 %v880_v4, %s8788_s25  ;;  %v883_v4 = vrot.slane %v9035_v58, 1  ;;  %v9080_v32 = vor.u32 %v1412_v23, %v1409_v22  ;;  %v8490_v23 = vld [vmem:[%s8840_s23 + $0x40] sm:$0xff]   ;;  %v8499_v58 = vld [vmem:[%s8840_s23 + $0x50] sm:$0xff]  }
  0x3b   : > { %v1125_v25 = vrot.slane %v8490_v23, 1  ;;  %v2280_v5 = vshrl.u32 %v8499_v58, 16  ;;  %v9235_v23 = vld [vmem:[%s8840_s23 + $0x50] sm:$0xff]  }
  0x3c   : > { %v884_v19 = vsel %vm12470_vm0, %v881_v2, %v883_v4 }
  0x3d   : > { %1153 = vrot.lane.b32.xlu0 %v1118_v11, %s8787_s24  ;;  %v1403_v11 = vrot.slane %v1401_v7, 2  ;;  %v8488_v7 = vld [vmem:[%s8840_s23 + $0x38] sm:$0xff]  }
  0x3e   : > { %1155 = vrot.lane.b32.xlu1 %v1120_v12, %s8787_s24  ;;  %v1121_v12 = vrot.slane %v8474_v3, 1  ;;  %v580_v3 = vshrl.u32 %v8485_v47, 16  ;;  %v885_v22 = vrot.slane %v8488_v7, 1  ;;  %v8502_v7 = vld [vmem:[%s8840_s23 + $0x48] sm:$0xff]  }
  0x40   : > { %v1124_v28 = vsel %vm12470_vm0, %v1121_v12, %v1123_v14  ;;  %v1122_v43 = vsel %vm12470_vm0, %v1119_v1, %v1121_v12  ;;  %v886_v47 = vsel %vm12470_vm0, %v883_v4, %v885_v22  ;;  %v1126_v4 = vsel %vm12470_vm0, %v1123_v14, %v1125_v25 }
  0x41   : > { %1527 = vrot.lane.b32.xlu0 %v1387_v20, %s8791_s28  ;;  %v8483_v20 = vld [vmem:[%s8840_s23 + $0x40] sm:$0xff]  }
  0x42   : > { %1529 = vrot.lane.b32.xlu1 %v1396_v26, %s8791_s28  ;;  %v882_v26 = vsel %vm12470_vm0, %v879_v55, %v881_v2  ;;  %v1736_v55 = vrot.slane %v8478_v16, 2  ;;  %v2262_v39 = vshrl.u32 %v8483_v20, 16  ;;  %v578_v2 = vrot.slane %v576_v54, 1  ;;  %v8513_v16 = vld [vmem:[%s8840_s23 + $0x10] sm:$0xff]  }
  0x43   : > { %373 = vst.msk [vmem:[#allocation2 + $0x10] sm:$0xff] %vm12468_vm6, %v8513_v16 }
  0x44   : > { %v1739_v44 = vsel %vm12473_vm1, %v1736_v55, %v1738_v33  ;;  %v2264_v53 = vrot.slane %v2262_v39, 2  ;;  %v579_v12 = vsel %vm12467_vm2, %v574_v6, %v578_v2  ;;  %v1982_v6 = vrot.slane %v9206_v9, 2 }
  0x45   : > { %1768 = vrot.lane.b32.xlu0 %v1733_v56, %s8789_s26  ;;  %v2256_v56 = vshll.u32 %v8482_v13, 16  ;;  %v9158_v13 = vld [vmem:[%s8840_s23 + $0x48] sm:$0xff]  }
  0x46   : > { %1770 = vrot.lane.b32.xlu1 %v1735_v30, %s8789_s26  ;;  %v1404_v30 = vor.u32 %v1403_v11, %v1400_v17 }
  0x48   : > { %v1414_v51 = vsel %vm12465_vm3, %v1404_v30, %v9080_v32  ;;  %v1405_v1 = vsel %vm12465_vm3, %v8980_v15, %v1404_v30  ;;  %v2258_v15 = vrot.slane %v2256_v56, 3  ;;  %v1425_v30 = vshrl.u32 %v8493_v62, 16  ;;  %v8520_v56 = vld [vmem:[%s12458_s1 + $0x10] ss:$0 sps:$4 sm:$0x33]  }
  0x49   : > { %2008 = vrot.lane.b32.xlu0 %v1973_v24, %s8792_s29  ;;  %v1976_v24 = vrot.slane %v8480_v35, 2 }
  0x4a   : > { %2010 = vrot.lane.b32.xlu1 %v1975_v41, %s8792_s29  ;;  %v2265_v41 = vshll.u32 %v8483_v20, 16  ;;  %v2259_v60 = vor.u32 %v2258_v15, %v2255_v52  ;;  %v1416_v20 = vshrl.u32 %v8492_v8, 16  ;;  %v1427_v42 = vrot.slane %v1425_v30, 1  ;;  %v9189_v52 = vld [vmem:[%s8840_s23 + $0x48] sm:$0xff]  }
  0x4b   : > { %v1979_v57 = vsel %vm12473_vm1, %v1976_v24, %v1978_v29  ;;  %v1977_v50 = vsel %vm12473_vm1, %v1974_v31, %v1976_v24  ;;  %v2794_v24 = vsel %vm12463_vm7, %v8520_v56, 0  ;;  %v8498_v15 = vld [vmem:[%s8840_s23 + $0x48] sm:$0xff]  }
  0x4c   : > { %v2267_v46 = vrot.slane %v2265_v41, 3  ;;  %v2260_v31 = vsel %vm12471_vm4, %v9013_v36, %v2259_v60  ;;  %v582_v36 = vor.u32 %v580_v3, %v578_v2  ;;  %v1127_v41 = vrot.slane %v9158_v13, 1  ;;  %v8501_v30 = vld [vmem:[%s8840_s23 + $0x48] sm:$0xff]  }
  0x4d   : > { %2382 = vrot.lane.b32.xlu0 %v2242_v59, %s8793_s30  ;;  %v1737_v59 = vsel %vm12473_vm1, %v1734_v18, %v1736_v55  ;;  %v9119_v18 = vld [vmem:[%s8840_s23 + $0x40] sm:$0xff]   ;;  %v8517_v55 = vld [vmem:[%s8840_s23 + $0x18] sm:$0xff]   ;;  %v2283_v3 = vshll.u32 %v8499_v58, 16 }
  0x4e   : > { %2384 = vrot.lane.b32.xlu1 %v2251_v48, %s8793_s30  ;;  %v8503_v48 = vld [vmem:[%s8840_s23 + $0x8] sm:$0xff]   ;;  %v584_v21 = vshll.u32 %v9119_v18, 16  ;;  %374 = vst.msk [vmem:[#allocation2 + $0x18] sm:$0xff] %vm12468_vm6, %v8517_v55  ;;  %v588_v27 = vshrl.u32 %v9119_v18, 16  ;;  %v600_v55 = vshll.u32 %v9235_v23, 16 }
  0x4f   : > { %372 = vst.msk [vmem:[#allocation2 + $0x8] sm:$0xff] %vm12468_vm6, %v8503_v48  ;;  %v8494_v48 = vld [vmem:[%s8840_s23 + $0x40] sm:$0xff]  }
  0x50   : > { %v9149_v11 = vrot.slane %v584_v21, 1  ;;  %v1740_v54 = vrot.slane %v8494_v48, 2 }
  0x51   : > { %2623 = vrot.lane.b32.xlu0 %v2588_v34, %s8794_s6  ;;  %v9126_v34 = vld [vmem:[%s8840_s23 + $0x40] sm:$0xff]  }
  0x52   : > { %676 = vrot.lane.b32.xlu1 %v563_v61, %s8790_s27  ;;  %v9115_v61 = vor.u32 %v2267_v46, %v2264_v53  ;;  %v2593_v17 = vrot.slane %v9126_v34, 3  ;;  %v1128_v53 = vsel %vm12470_vm0, %v1125_v25, %v1127_v41 }
  0x54   : > { %v2269_v45 = vsel %vm12471_vm4, %v2259_v60, %v9115_v61  ;;  %v1742_v60 = vrot.slane %v9189_v52, 2  ;;  %v604_v52 = vshrl.u32 %v9235_v23, 16 }
  0x55   : > { %2625 = vrot.lane.b32.xlu0 %v2590_v10, %s8794_s6  ;;  %v8512_v10 = vld [vmem:[%s12458_s1] sm:$0xff]  }
  0x56   : > { %678 = vrot.lane.b32.xlu1 %v571_v37, %s8790_s27  ;;  %v2591_v37 = vrot.slane %v8484_v63, 3  ;;  %8253 = vmatprep.subr.bf16.mxu0 %v8512_v10  ;;  %v2274_v63 = vshll.u32 %v8498_v15, 16 }
  0x57   : > { %8254 = vmatpush3.bf16.msra.mxu0 %v8512_v10  ;;  %v2285_v10 = vrot.slane %v2283_v3, 3 }
  0x58   : > { %v2594_v35 = vsel %vm12472_vm5, %v2591_v37, %v2593_v17  ;;  %8255 = vmatprep.subr.bf16.mxu0 %v8516_v40 }
  0x59   : > { %917 = vrot.lane.b32.xlu0 %v882_v26, %s8788_s25  ;;  %v887_v26 = vrot.slane %v9138_v49, 1  ;;  %v8521_v49 = vld [vmem:[%s8840_s23 + $0x58] sm:$0xff]  }
  0x5a   : > { %919 = vrot.lane.b32.xlu1 %v884_v19, %s8788_s25  ;;  %v2592_v19 = vsel %vm12472_vm5, %v2589_v0, %v2591_v37  ;;  %v587_v0 = vsel %vm12467_vm2, %v582_v36, %v9149_v11  ;;  %v2276_v37 = vrot.slane %v2274_v63, 3  ;;  %v592_v36 = vshll.u32 %v8502_v7, 16 }
  0x5b   : > { %8256 = vmatpush3.bf16.msra.mxu0 %v8516_v40  ;;  %v888_v39 = vsel %vm12470_vm0, %v885_v22, %v887_v26 }
  0x5c   : > { %8337 = vmatprep.subr.msk.bf16.mxu0 %vm12463_vm7, %v8520_v56  ;;  %v594_v40 = vrot.slane %v592_v36, 1  ;;  %v2595_v56 = vrot.slane %v8501_v30, 3  ;;  %vm12484_vm7 = vcmask 293888  }
  0x5d   : > { %1157 = vrot.lane.b32.xlu0 %v1122_v43, %s8787_s24  ;;  %v1428_v43 = vshll.u32 %v8493_v62, 16  ;;  %v1741_v62 = vsel %vm12473_vm1, %v1738_v33, %v1740_v54  ;;  %v8536_v33 = vld [vmem:[%s8840_s23 + $0x28] sm:$0xff]  }
  0x5e   : > { %1159 = vrot.lane.b32.xlu1 %v1124_v28, %s8787_s24  ;;  %v1419_v28 = vshll.u32 %v8492_v8, 16  ;;  %v2282_v8 = vrot.slane %v2280_v5, 2  ;;  %376 = vst.msk [vmem:[#allocation2 + $0x28] sm:$0xff] %vm12468_vm6, %v8536_v33  ;;  %v2596_v48 = vsel %vm12472_vm5, %v2593_v17, %v2595_v56 }
  0x5f   : > { %8258 = vmatpush3.bf16.msra.mxu0 %v2794_v24  ;;  %v9265_v24 = vrot.slane %v600_v55, 1  ;;  %v2292_v55 = vshll.u32 %v8521_v49, 16 }
  0x60   : > { %v9231_v22 = vor.u32 %v2285_v10, %v2282_v8 }
  0x61   : > { %1531 = vrot.lane.b32.xlu0 %v1405_v1, %s8791_s28  ;;  %v1421_v1 = vrot.slane %v1419_v28, 2 }
  0x62   : > { %1533 = vrot.lane.b32.xlu1 %v1414_v51, %s8791_s28  ;;  %v1418_v51 = vrot.slane %v1416_v20, 1 }
  0x64   : > { %v1422_v46 = vor.u32 %v1421_v1, %v1418_v51  ;;  %v9258_v51 = vld [vmem:[%s8840_s23 + $0x50] sm:$0xff]  }
  0x65   : > { %1772 = vrot.lane.b32.xlu0 %v1737_v59, %s8789_s26  ;;  %v8510_v1 = vld [vmem:[%s8840_s23 + $0x50] sm:$0xff]   ;;  %v891_v58 = vrot.slane %v9258_v51, 1 }
  0x66   : > { %1774 = vrot.lane.b32.xlu1 %v1739_v44, %s8789_s26  ;;  %v1430_v44 = vrot.slane %v1428_v43, 2  ;;  %v1423_v14 = vsel %vm12465_vm3, %v9080_v32, %v1422_v46  ;;  %v8533_v32 = vld [vmem:[%s8840_s23 + $0x20] sm:$0xff]   ;;  %v590_v43 = vor.u32 %v588_v27, %v9149_v11 }
  0x67   : > { %375 = vst.msk [vmem:[#allocation2 + $0x20] sm:$0xff] %vm12468_vm6, %v8533_v32 }
  0x68   : > { %v9197_v59 = vor.u32 %v1430_v44, %v1427_v42  ;;  %v595_v42 = vsel %vm12467_vm2, %v590_v43, %v594_v40  ;;  %v9328_v43 = vld [vmem:[%s8840_s23 + $0x60] sm:$0xff]  }
  0x69   : > { %2012 = vrot.lane.b32.xlu0 %v1977_v50, %s8792_s29  ;;  %v2271_v50 = vshrl.u32 %v8498_v15, 16 }
  0x6a   : > { %2014 = vrot.lane.b32.xlu1 %v1979_v57, %s8792_s29  ;;  %v8496_v57 = vld [vmem:[%s8840_s23 + $0x48] sm:$0xff]   ;;  %v1432_v2 = vsel %vm12465_vm3, %v1422_v46, %v9197_v59 }
  0x6b   : > { %v2273_v21 = vrot.slane %v2271_v50, 2 }
  0x6d   : > { %2386 = vrot.lane.b32.xlu0 %v2260_v31, %s8793_s30  ;;  %v1743_v31 = vsel %vm12473_vm1, %v1740_v54, %v1742_v60  ;;  %v1434_v54 = vshrl.u32 %v8510_v1, 16 }
  0x6e   : > { %2388 = vrot.lane.b32.xlu1 %v2269_v45, %s8793_s30  ;;  %v1980_v45 = vrot.slane %v8496_v57, 2  ;;  %v1437_v57 = vshll.u32 %v8510_v1, 16 }
  0x70   : > { %v1983_v16 = vsel %vm12473_vm1, %v1980_v45, %v1982_v6  ;;  %v1981_v28 = vsel %vm12473_vm1, %v1978_v29, %v1980_v45  ;;  %v596_v29 = vshrl.u32 %v8502_v7, 16  ;;  %v9288_v45 = vld [vmem:[%s8840_s23 + $0x50] sm:$0xff]   ;;  %v1439_v7 = vrot.slane %v1437_v57, 2 }
  0x71   : > { %2627 = vrot.lane.b32.xlu0 %v2592_v19, %s8794_s6  ;;  %v2277_v19 = vor.u32 %v2276_v37, %v2273_v21  ;;  %v1436_v21 = vrot.slane %v1434_v54, 1  ;;  %v1744_v33 = vrot.slane %v9288_v45, 2  ;;  %v9372_v45 = vld [vmem:[%s8840_s23 + $0x60] sm:$0xff]  }
  0x72   : > { %680 = vrot.lane.b32.xlu1 %v579_v12, %s8790_s27  ;;  %v598_v44 = vor.u32 %v596_v29, %v594_v40  ;;  %v2289_v29 = vshrl.u32 %v8521_v49, 16  ;;  %v8569_v49 = vld [vmem:[%s8840_s23 + $0x40] sm:$0xff]  }
  0x73   : > { %v2287_v38 = vsel %vm12471_vm4, %v2277_v19, %v9231_v22  ;;  %v2278_v25 = vsel %vm12471_vm4, %v9115_v61, %v2277_v19  ;;  %v8511_v61 = vld [vmem:[%s8840_s23 + $0x58] sm:$0xff]   ;;  %v1440_v19 = vor.u32 %v1439_v7, %v1436_v21  ;;  %379 = vst.msk [vmem:[#allocation2 + $0x40] sm:$0xff] %vm12468_vm6, %v8569_v49 }
  0x74   : > { %v603_v34 = vsel %vm12467_vm2, %v598_v44, %v9265_v24  ;;  %v1443_v17 = vshrl.u32 %v8511_v61, 16  ;;  %v1446_v50 = vshll.u32 %v8511_v61, 16  ;;  %v1986_v44 = vrot.slane %v9328_v43, 2  ;;  %v8524_v61 = vld [vmem:[%s8840_s23 + $0x58] sm:$0xff]  }
  0x75   : > { %2629 = vrot.lane.b32.xlu0 %v2594_v35, %s8794_s6  ;;  %v608_v57 = vshll.u32 %v8524_v61, 16  ;;  %v612_v21 = vshrl.u32 %v8524_v61, 16 }
  0x76   : > { %682 = vrot.lane.b32.xlu1 %v587_v0, %s8790_s27  ;;  %v9245_v0 = vld [vmem:[%s8840_s23 + $0x50] sm:$0xff]   ;;  %v1445_v37 = vrot.slane %v1443_v17, 1  ;;  %v1448_v8 = vrot.slane %v1446_v50, 2 }
  0x77   : > { %v2597_v11 = vrot.slane %v9245_v0, 3  ;;  %v610_v23 = vrot.slane %v608_v57, 1 }
  0x78   : > { %v9318_v27 = vor.u32 %v1448_v8, %v1445_v37 }
  0x79   : > { %921 = vrot.lane.b32.xlu0 %v886_v47, %s8788_s25 }
  0x7a   : > { %923 = vrot.lane.b32.xlu1 %v888_v39, %s8788_s25  ;;  %v8506_v39 = vld [vmem:[%s8840_s23 + $0x48] sm:$0xff]   ;;  %v1450_v13 = vsel %vm12465_vm3, %v1440_v19, %v9318_v27 }
  0x7b   : > { %v889_v15 = vrot.slane %v8506_v39, 1 }
  0x7d   : > { %1161 = vrot.lane.b32.xlu0 %v1126_v4, %s8787_s24  ;;  %v9274_v4 = vld [vmem:[%s8840_s23 + $0x58] sm:$0xff]   ;;  %v890_v32 = vsel %vm12470_vm0, %v887_v26, %v889_v15 }
  0x7e   : > { %1163 = vrot.lane.b32.xlu1 %v1128_v53, %s8787_s24  ;;  %v8508_v53 = vld [vmem:[%s8840_s23 + $0x50] sm:$0xff]  }
  0x7f   : > { %v1129_v3 = vrot.slane %v8508_v53, 1 }
  0x81   : > { %1535 = vrot.lane.b32.xlu0 %v1423_v14, %s8791_s28  ;;  %v1131_v14 = vrot.slane %v9274_v4, 1  ;;  %v1130_v40 = vsel %vm12470_vm0, %v1127_v41, %v1129_v3 }
  0x82   : > { %1537 = vrot.lane.b32.xlu1 %v1432_v2, %s8791_s28  ;;  %v2598_v2 = vsel %vm12472_vm5, %v2595_v56, %v2597_v11  ;;  %v1441_v56 = vsel %vm12465_vm3, %v9197_v59, %v1440_v19  ;;  %v2294_v59 = vrot.slane %v2292_v55, 3  ;;  %v8532_v19 = vld [vmem:[%s8840_s23 + $0x68] sm:$0xff]  }
  0x83   : > { %v1132_v26 = vsel %vm12470_vm0, %v1129_v3, %v1131_v14 }
  0x85   : > { %1776 = vrot.lane.b32.xlu0 %v1741_v62, %s8789_s26  ;;  %v9302_v62 = vld [vmem:[%s8840_s23 + $0x58] sm:$0xff]  }
  0x86   : > { %1778 = vrot.lane.b32.xlu1 %v1743_v31, %s8789_s26  ;;  %v892_v31 = vsel %vm12470_vm0, %v889_v15, %v891_v58 }
  0x87   : > { %v1150_v12 = vpop.permute.xlu0 %1149 }
  0x88   : > { %v910_v20 = vpop.permute.xlu1 %909 }
  0x89   : > { %2016 = vrot.lane.b32.xlu0 %v1981_v28, %s8792_s29  ;;  %v8554_v28 = vld [vmem:[%s8840_s23 + $0x38] sm:$0xff]  }
  0x8a   : > { %2018 = vrot.lane.b32.xlu1 %v1983_v16, %s8792_s29  ;;  %v8522_v16 = vld [vmem:[%s8840_s23 + $0x60] sm:$0xff]   ;;  %378 = vst.msk [vmem:[#allocation2 + $0x38] sm:$0xff] %vm12468_vm6, %v8554_v28  ;;  %v2601_v28 = vrot.slane %v9372_v45, 3 }
  0x8b   : > { %v9248_v18 = vpop.permute.xlu0 %1764  ;;  %v2298_v41 = vshrl.u32 %v8522_v16, 16 }
  0x8c   : > { %v912_v35 = vpop.permute.xlu1 %911 }
  0x8d   : > { %2390 = vrot.lane.b32.xlu0 %v2278_v25, %s8793_s30 }
  0x8e   : > { %2392 = vrot.lane.b32.xlu1 %v2287_v38, %s8793_s30  ;;  %v1746_v38 = vrot.slane %v9302_v62, 2 }
  0x8f   : > { %v669_v46 = vpop.permute.xlu0 %668 }
  0x90   : > { %v1152_v47 = vpop.permute.xlu1 %1151  ;;  %723 = vst.msk [vmem:[#allocation2] sm:$0xff] %vm12478_vm8, %v669_v46  ;;  %v1745_v46 = vsel %vm12473_vm1, %v1742_v60, %v1744_v33  ;;  %v9362_v60 = vld [vmem:[%s8840_s23 + $0x60] sm:$0xff]  }
  0x91   : > { %964 = vst.msk [vmem:[#allocation2] sm:$0xff] %vm12477_vm9, %v910_v20  ;;  %2631 = vrot.lane.b32.xlu0 %v2596_v48, %s8794_s6  ;;  %v8518_v20 = vld [vmem:[%s8840_s23 + $0x58] sm:$0xff]   ;;  %v2300_v48 = vrot.slane %v2298_v41, 2  ;;  %v616_v7 = vshll.u32 %v9362_v60, 16  ;;  %v8572_v41 = vld [vmem:[%s8840_s23 + $0x48] sm:$0xff]  }
  0x92   : > { %684 = vrot.lane.b32.xlu1 %v595_v42, %s8790_s27  ;;  %1204 = vst.msk [vmem:[#allocation2] sm:$0xff] %vm12476_vm10, %v1150_v12  ;;  %v8551_v12 = vld [vmem:[%s8840_s23 + $0x30] sm:$0xff]   ;;  %v1984_v1 = vrot.slane %v8518_v20, 2  ;;  %v1747_v42 = vsel %vm12473_vm1, %v1744_v33, %v1746_v38 }
  0x93   : > { %v671_v5 = vpop.permute.xlu0 %670  ;;  %377 = vst.msk [vmem:[#allocation2 + $0x30] sm:$0xff] %vm12468_vm6, %v8551_v12  ;;  %380 = vst.msk [vmem:[#allocation2 + $0x48] sm:$0xff] %vm12468_vm6, %v8572_v41 }
  0x94   : > { %v1767_v63 = vpop.permute.xlu1 %1766  ;;  %724 = vst.msk [vmem:[#allocation2 + $0x8] sm:$0xff] %vm12478_vm8, %v671_v5  ;;  %v8523_v5 = vld [vmem:[%s8840_s23 + $0x58] sm:$0xff]  }
  0x95   : > { %965 = vst.msk [vmem:[#allocation2 + $0x8] sm:$0xff] %vm12477_vm9, %v912_v35  ;;  %2633 = vrot.lane.b32.xlu0 %v2598_v2, %s8794_s6  ;;  %v2301_v35 = vshll.u32 %v8522_v16, 16  ;;  %v1985_v2 = vsel %vm12473_vm1, %v1982_v6, %v1984_v1  ;;  %v606_v6 = vor.u32 %v604_v52, %v9265_v24  ;;  %v8531_v24 = vld [vmem:[%s8840_s23 + $0x60] sm:$0xff]   ;;  %v614_v16 = vor.u32 %v612_v21, %v610_v23  ;;  %v9434_v52 = vld [vmem:[%s8840_s23 + $0x68] sm:$0xff]  }
  0x96   : > { %686 = vrot.lane.b32.xlu1 %v603_v34, %s8790_s27  ;;  %1205 = vst.msk [vmem:[#allocation2 + $0x8] sm:$0xff] %vm12476_vm10, %v1152_v47  ;;  %v2291_v47 = vrot.slane %v2289_v29, 2  ;;  %v1987_v34 = vsel %vm12473_vm1, %v1984_v1, %v1986_v44  ;;  %v1452_v0 = vshrl.u32 %v8531_v24, 16 }
  0x97   : > { %v1524_v36 = vpop.permute.xlu0 %1523  ;;  %v2303_v15 = vrot.slane %v2301_v35, 3 }
  0x98   : > { %v1526_v10 = vpop.permute.xlu1 %1525  ;;  %1578 = vst.msk [vmem:[#allocation2] sm:$0xff] %vm12474_vm11, %v1524_v36  ;;  %v2295_v17 = vor.u32 %v2294_v59, %v2291_v47 }
  0x99   : > { %1579 = vst.msk [vmem:[#allocation2 + $0x8] sm:$0xff] %vm12474_vm11, %v1526_v10  ;;  %925 = vrot.lane.b32.xlu0 %v890_v32, %s8788_s25  ;;  %v9358_v50 = vor.u32 %v2303_v15, %v2300_v48  ;;  %v2599_v10 = vrot.slane %v8523_v5, 3  ;;  %v9383_v32 = vld [vmem:[%s8840_s23 + $0x60] sm:$0xff]   ;;  %v1454_v48 = vrot.slane %v1452_v0, 1  ;;  %v8540_v5 = vld [vmem:[%s8840_s23 + $0x70] sm:$0xff]   ;;  %v8590_v0 = vld [vmem:[%s8840_s23 + $0x58] sm:$0xff]  }
  0x9a   : > { %927 = vrot.lane.b32.xlu1 %v892_v31, %s8788_s25  ;;  %1820 = vst.msk [vmem:[#allocation2 + $0x8] sm:$0xff] %vm12485_vm12, %v1767_v63  ;;  %1819 = vst.msk [vmem:[#allocation2] sm:$0xff] %vm12485_vm12, %v9248_v18  ;;  %v8527_v31 = vld [vmem:[%s8840_s23 + $0x58] sm:$0xff]   ;;  %v2296_v8 = vsel %vm12471_vm4, %v9231_v22, %v2295_v17  ;;  %v611_v22 = vsel %vm12467_vm2, %v606_v6, %v610_v23  ;;  %v8537_v6 = vld [vmem:[%s8840_s23 + $0x68] sm:$0xff]  }
  0x9b   : > { %v2005_v18 = vpop.permute.xlu0 %2004  ;;  %v2305_v9 = vsel %vm12471_vm4, %v2295_v17, %v9358_v50  ;;  %v2600_v20 = vsel %vm12472_vm5, %v2597_v11, %v2599_v10  ;;  %v893_v55 = vrot.slane %v8527_v31, 1  ;;  %v1455_v11 = vshll.u32 %v8531_v24, 16  ;;  %v8534_v17 = vld [vmem:[%s8840_s23 + $0x60] sm:$0xff]   ;;  %382 = vst.msk [vmem:[#allocation2 + $0x58] sm:$0xff] %vm12468_vm6, %v8590_v0 }
  0x9c   : > { %v2007_v30 = vpop.permute.xlu1 %2006  ;;  %2059 = vst.msk [vmem:[#allocation2] sm:$0xff] %vm12466_vm13, %v2005_v18  ;;  %v2602_v1 = vsel %vm12472_vm5, %v2599_v10, %v2601_v28  ;;  %v2316_v10 = vshrl.u32 %v8540_v5, 16 }
  0x9d   : > { %2060 = vst.msk [vmem:[#allocation2 + $0x8] sm:$0xff] %vm12466_vm13, %v2007_v30  ;;  %1165 = vrot.lane.b32.xlu0 %v1130_v40, %s8787_s24  ;;  %v8529_v30 = vld [vmem:[%s8840_s23 + $0x60] sm:$0xff]   ;;  %v9403_v40 = vld [vmem:[%s8840_s23 + $0x68] sm:$0xff]   ;;  %v1457_v15 = vrot.slane %v1455_v11, 2  ;;  %v894_v57 = vsel %vm12470_vm0, %v891_v58, %v893_v55  ;;  %v620_v11 = vshrl.u32 %v9362_v60, 16 }
  0x9e   : > { %1167 = vrot.lane.b32.xlu1 %v1132_v26, %s8787_s24  ;;  %v9393_v26 = vrot.slane %v616_v7, 1  ;;  %v1133_v47 = vrot.slane %v8529_v30, 1  ;;  %v1135_v59 = vrot.slane %v9403_v40, 1  ;;  %v9452_v7 = vld [vmem:[%s8840_s23 + $0x70] sm:$0xff]   ;;  %v2318_v30 = vrot.slane %v2316_v10, 2  ;;  %v8541_v60 = vld [vmem:[%s8840_s23 + $0x68] sm:$0xff]  }
  0x9f   : > { %v2379_v39 = vpop.permute.xlu0 %2378  ;;  %v1458_v58 = vor.u32 %v1457_v15, %v1454_v48 }
  0xa0   : > { %v2381_v25 = vpop.permute.xlu1 %2380  ;;  %2433 = vst.msk [vmem:[#allocation2] sm:$0xff] %vm12464_vm14, %v2379_v39  ;;  %v619_v35 = vsel %vm12467_vm2, %v614_v16, %v9393_v26  ;;  %v1136_v51 = vsel %vm12470_vm0, %v1133_v47, %v1135_v59  ;;  %v1134_v23 = vsel %vm12470_vm0, %v1131_v14, %v1133_v47  ;;  %v1750_v14 = vrot.slane %v9434_v52, 2 }
  0xa1   : > { %2434 = vst.msk [vmem:[#allocation2 + $0x8] sm:$0xff] %vm12464_vm14, %v2381_v25  ;;  %1539 = vrot.lane.b32.xlu0 %v1441_v56, %s8791_s28  ;;  %v1461_v25 = vshrl.u32 %v8532_v19, 16  ;;  %v1464_v56 = vshll.u32 %v8532_v19, 16  ;;  %v1459_v49 = vsel %vm12465_vm3, %v9318_v27, %v1458_v58  ;;  %v1990_v16 = vrot.slane %v9452_v7, 2 }
  0xa2   : > { %1541 = vrot.lane.b32.xlu1 %v1450_v13, %s8791_s28  ;;  %v895_v13 = vrot.slane %v9383_v32, 1 }
  0xa3   : > { %v2620_v54 = vpop.permute.xlu0 %2619 }
  0xa4   : > { %v673_v53 = vpop.permute.xlu1 %672  ;;  %2674 = vst.msk [vmem:[#allocation2] sm:$0xff] %vm12479_vm15, %v2620_v54  ;;  %v896_v61 = vsel %vm12470_vm0, %v893_v55, %v895_v13 }
  0xa5   : > { %725 = vst.msk [vmem:[#allocation2 + $0x10] sm:$0xff] %vm12478_vm8, %v673_v53  ;;  %1780 = vrot.lane.b32.xlu0 %v1745_v46, %s8789_s26  ;;  %v1463_v53 = vrot.slane %v1461_v25, 1  ;;  %v1466_v46 = vrot.slane %v1464_v56, 2 }
  0xa6   : > { %1782 = vrot.lane.b32.xlu1 %v1747_v42, %s8789_s26 }
  0xa7   : > { %v2622_v3 = vpop.permute.xlu0 %2621 }
  0xa8   : > { %v675_v63 = vpop.permute.xlu1 %674  ;;  %2675 = vst.msk [vmem:[#allocation2 + $0x8] sm:$0xff] %vm12479_vm15, %v2622_v3 }
  0xa9   : > { %726 = vst.msk [vmem:[#allocation2 + $0x18] sm:$0xff] %vm12478_vm8, %v675_v63  ;;  %2020 = vrot.lane.b32.xlu0 %v1985_v2, %s8792_s29  ;;  %v8539_v63 = vld [vmem:[%s8840_s23 + $0x68] sm:$0xff]   ;;  %v9441_v2 = vor.u32 %v1466_v46, %v1463_v53 }
  0xaa   : > { %2022 = vrot.lane.b32.xlu1 %v1987_v34, %s8792_s29  ;;  %v2307_v31 = vshrl.u32 %v8539_v63, 16 }
  0xab   : > { %v914_v12 = vpop.permute.xlu0 %913  ;;  %v2692_v36 = vld [vmem:[#allocation2] sm:$0xff]  ;;  %v1468_v4 = vsel %vm12465_vm3, %v1458_v58, %v9441_v2  ;;  %v8545_v58 = vld [vmem:[%s8840_s23 + $0x68] sm:$0xff]  }
  0xac   : > { %v916_v37 = vpop.permute.xlu1 %915  ;;  %966 = vst.msk [vmem:[#allocation2 + $0x10] sm:$0xff] %vm12477_vm9, %v914_v12  ;;  %8259 = vmatprep.mubr.msk.bf16.mxu0 %vm12484_vm7, %v2692_v36  ;;  %v2319_v12 = vshll.u32 %v8540_v5, 16  ;;  %v2309_v19 = vrot.slane %v2307_v31, 2  ;;  %v9512_v5 = vld [vmem:[%s8840_s23 + $0x70] sm:$0xff]  }
  0xad   : > { %967 = vst.msk [vmem:[#allocation2 + $0x18] sm:$0xff] %vm12477_vm9, %v916_v37  ;;  %2394 = vrot.lane.b32.xlu0 %v2296_v8, %s8793_s30  ;;  %v2310_v37 = vshll.u32 %v8539_v63, 16  ;;  %v8587_v8 = vld [vmem:[%s8840_s23 + $0x50] sm:$0xff]  }
  0xae   : > { %2396 = vrot.lane.b32.xlu1 %v2305_v9, %s8793_s30  ;;  %v1748_v9 = vrot.slane %v8534_v17, 2  ;;  %381 = vst.msk [vmem:[#allocation2 + $0x50] sm:$0xff] %vm12468_vm6, %v8587_v8 }
  0xaf   : > { %v1154_v18 = vpop.permute.xlu0 %1153  ;;  %v2693_v29 = vld [vmem:[#allocation2 + $0x8] sm:$0xff] }
  0xb0   : > { %v1156_v33 = vpop.permute.xlu1 %1155  ;;  %1206 = vst.msk [vmem:[#allocation2 + $0x10] sm:$0xff] %vm12476_vm10, %v1154_v18  ;;  %8260 = vmatmul.mubr.msk.bf16.vlgmr.msra.gmra.mrb[0].mxu0 %vm12484_vm7, %v2693_v29  ;;  %v1751_v27 = vsel %vm12473_vm1, %v1748_v9, %v1750_v14  ;;  %v2321_v18 = vrot.slane %v2319_v12, 3  ;;  %v1749_v55 = vsel %vm12473_vm1, %v1746_v38, %v1748_v9  ;;  %v897_v12 = vrot.slane %v8545_v58, 1 }
  0xb1   : > { %1207 = vst.msk [vmem:[#allocation2 + $0x18] sm:$0xff] %vm12476_vm10, %v1156_v33  ;;  %2635 = vrot.lane.b32.xlu0 %v2600_v20, %s8794_s6  ;;  %v2312_v33 = vrot.slane %v2310_v37, 3  ;;  %v8542_v20 = vld [vmem:[%s8840_s23 + $0x68] sm:$0xff]  }
  0xb2   : > { %688 = vrot.lane.b32.xlu1 %v611_v22, %s8790_s27  ;;  %v1988_v22 = vrot.slane %v8537_v6, 2  ;;  %v9486_v25 = vor.u32 %v2321_v18, %v2318_v30  ;;  %v624_v56 = vshll.u32 %v8542_v20, 16  ;;  %v628_v15 = vshrl.u32 %v8542_v20, 16 }
  0xb3   : > { %v1528_v42 = vpop.permute.xlu0 %1527  ;;  %v2313_v38 = vor.u32 %v2312_v33, %v2309_v19 }
  0xb4   : > { %v1530_v39 = vpop.permute.xlu1 %1529  ;;  %1580 = vst.msk [vmem:[#allocation2 + $0x10] sm:$0xff] %vm12474_vm11, %v1528_v42  ;;  %v1991_v62 = vsel %vm12473_vm1, %v1988_v22, %v1990_v16  ;;  %v626_v48 = vrot.slane %v624_v56, 1 }
  0xb5   : > { %1581 = vst.msk [vmem:[#allocation2 + $0x18] sm:$0xff] %vm12474_vm11, %v1530_v39  ;;  %2637 = vrot.lane.b32.xlu0 %v2602_v1, %s8794_s6  ;;  %v1989_v1 = vsel %vm12473_vm1, %v1986_v44, %v1988_v22  ;;  %v2323_v43 = vsel %vm12471_vm4, %v2313_v38, %v9486_v25  ;;  %v622_v44 = vor.u32 %v620_v11, %v9393_v26  ;;  %v8597_v26 = vld [vmem:[%s8840_s23 + $0x60] sm:$0xff]  }
  0xb6   : > { %690 = vrot.lane.b32.xlu1 %v619_v35, %s8790_s27  ;;  %v9480_v35 = vld [vmem:[%s8840_s23 + $0x70] sm:$0xff]   ;;  %v2314_v46 = vsel %vm12471_vm4, %v9358_v50, %v2313_v38  ;;  %383 = vst.msk [vmem:[#allocation2 + $0x60] sm:$0xff] %vm12468_vm6, %v8597_v26  ;;  %v898_v11 = vsel %vm12470_vm0, %v895_v13, %v897_v12  ;;  %v8557_v13 = vld [vmem:[%s8840_s23 + $0x78] sm:$0xff]  }
  0xb7   : > { %v1769_v34 = vpop.permute.xlu0 %1768  ;;  %v632_v47 = vshll.u32 %v9480_v35, 16  ;;  %v2325_v40 = vshrl.u32 %v8557_v13, 16 }
  0xb8   : > { %v1771_v54 = vpop.permute.xlu1 %1770  ;;  %1821 = vst.msk [vmem:[#allocation2 + $0x10] sm:$0xff] %vm12485_vm12, %v1769_v34  ;;  %v8550_v34 = vld [vmem:[%s8840_s23 + $0x78] sm:$0xff]  }
  0xb9   : > { %1822 = vst.msk [vmem:[#allocation2 + $0x18] sm:$0xff] %vm12485_vm12, %v1771_v54  ;;  %929 = vrot.lane.b32.xlu0 %v894_v57, %s8788_s25  ;;  %v2603_v54 = vrot.slane %v8541_v60, 3  ;;  %v8549_v57 = vld [vmem:[%s8840_s23 + $0x70] sm:$0xff]   ;;  %v9518_v50 = vrot.slane %v632_v47, 1  ;;  %v1479_v10 = vshrl.u32 %v8550_v34, 16  ;;  %v1482_v45 = vshll.u32 %v8550_v34, 16 }
  0xba   : > { %931 = vrot.lane.b32.xlu1 %v896_v61, %s8788_s25  ;;  %v9495_v61 = vld [vmem:[%s8840_s23 + $0x70] sm:$0xff]   ;;  %v1470_v8 = vshrl.u32 %v8549_v57, 16  ;;  %v8558_v60 = vld [vmem:[%s8840_s23 + $0x80] sm:$0xff]  }
  0xbb   : > { %v2009_v21 = vpop.permute.xlu0 %2008  ;;  %v2604_v6 = vsel %vm12472_vm5, %v2601_v28, %v2603_v54  ;;  %v1481_v30 = vrot.slane %v1479_v10, 1  ;;  %v1484_v18 = vrot.slane %v1482_v45, 2  ;;  %v8599_v10 = vld [vmem:[%s8840_s23 + $0x70] sm:$0xff]  }
  0xbc   : > { %v2011_v3 = vpop.permute.xlu1 %2010  ;;  %2061 = vst.msk [vmem:[#allocation2 + $0x10] sm:$0xff] %vm12466_vm13, %v2009_v21  ;;  %v630_v21 = vor.u32 %v628_v15, %v626_v48  ;;  %v1472_v20 = vrot.slane %v1470_v8, 1 }
  0xbd   : > { %2062 = vst.msk [vmem:[#allocation2 + $0x18] sm:$0xff] %vm12466_vm13, %v2011_v3  ;;  %1169 = vrot.lane.b32.xlu0 %v1134_v23, %s8787_s24  ;;  %v8598_v3 = vld [vmem:[%s8840_s23 + $0x68] sm:$0xff]   ;;  %v627_v23 = vsel %vm12467_vm2, %v622_v44, %v626_v48  ;;  %v9557_v56 = vor.u32 %v1484_v18, %v1481_v30 }
  0xbe   : > { %1171 = vrot.lane.b32.xlu1 %v1136_v51, %s8787_s24  ;;  %v2605_v51 = vrot.slane %v9495_v61, 3  ;;  %384 = vst.msk [vmem:[#allocation2 + $0x68] sm:$0xff] %vm12468_vm6, %v8598_v3  ;;  %v635_v28 = vsel %vm12467_vm2, %v630_v21, %v9518_v50  ;;  %385 = vst.msk [vmem:[#allocation2 + $0x70] sm:$0xff] %vm12468_vm6, %v8599_v10 }
  0xbf   : > { %v2383_v24 = vpop.permute.xlu0 %2382 }
  0xc0   : > { %v2385_v36 = vpop.permute.xlu1 %2384  ;;  %2435 = vst.msk [vmem:[#allocation2 + $0x10] sm:$0xff] %vm12464_vm14, %v2383_v24  ;;  %v9538_v24 = vld [vmem:[%s8840_s23 + $0x78] sm:$0xff]   ;;  %v2606_v19 = vsel %vm12472_vm5, %v2603_v54, %v2605_v51  ;;  %v2334_v54 = vshrl.u32 %v8558_v60, 16 }
  0xc1   : > { %2436 = vst.msk [vmem:[#allocation2 + $0x18] sm:$0xff] %vm12464_vm14, %v2385_v36  ;;  %1543 = vrot.lane.b32.xlu0 %v1459_v49, %s8791_s28  ;;  %v899_v36 = vrot.slane %v9512_v5, 1  ;;  %v8547_v49 = vld [vmem:[%s8840_s23 + $0x70] sm:$0xff]  }
  0xc2   : > { %1545 = vrot.lane.b32.xlu1 %v1468_v4, %s8791_s28  ;;  %v1473_v4 = vshll.u32 %v8549_v57, 16  ;;  %v2337_v57 = vshll.u32 %v8558_v60, 16  ;;  %v9643_v60 = vld [vmem:[%s8840_s23 + $0x80] sm:$0xff]  }
  0xc3   : > { %v2624_v41 = vpop.permute.xlu0 %2623 }
  0xc4   : > { %v677_v29 = vpop.permute.xlu1 %676  ;;  %2676 = vst.msk [vmem:[#allocation2 + $0x10] sm:$0xff] %vm12479_vm15, %v2624_v41  ;;  %v1139_v41 = vrot.slane %v9538_v24, 1 }
  0xc5   : > { %727 = vst.msk [vmem:[#allocation2 + $0x20] sm:$0xff] %vm12478_vm8, %v677_v29  ;;  %1784 = vrot.lane.b32.xlu0 %v1749_v55, %s8789_s26  ;;  %v900_v29 = vsel %vm12470_vm0, %v897_v12, %v899_v36  ;;  %v1137_v55 = vrot.slane %v8547_v49, 1  ;;  %v9609_v12 = vld [vmem:[%s8840_s23 + $0x80] sm:$0xff]  }
  0xc6   : > { %1786 = vrot.lane.b32.xlu1 %v1751_v27, %s8789_s26  ;;  %v1475_v27 = vrot.slane %v1473_v4, 2  ;;  %v636_v4 = vshrl.u32 %v9480_v35, 16  ;;  %v8559_v35 = vld [vmem:[%s8840_s23 + $0x78] sm:$0xff]   ;;  %v648_v30 = vshll.u32 %v9609_v12, 16 }
  0xc7   : > { %v2626_v42 = vpop.permute.xlu0 %2625  ;;  %v1140_v32 = vsel %vm12470_vm0, %v1137_v55, %v1139_v41  ;;  %v1138_v47 = vsel %vm12470_vm0, %v1135_v59, %v1137_v55  ;;  %v2328_v59 = vshll.u32 %v8557_v13, 16  ;;  %v2607_v55 = vrot.slane %v8559_v35, 3  ;;  %v8563_v13 = vld [vmem:[%s8840_s23 + $0x78] sm:$0xff]  }
  0xc8   : > { %v679_v39 = vpop.permute.xlu1 %678  ;;  %2677 = vst.msk [vmem:[#allocation2 + $0x18] sm:$0xff] %vm12479_vm15, %v2626_v42  ;;  %v1476_v38 = vor.u32 %v1475_v27, %v1472_v20  ;;  %v8600_v20 = vld [vmem:[%s8840_s23 + $0x78] sm:$0xff]  }
  0xc9   : > { %728 = vst.msk [vmem:[#allocation2 + $0x28] sm:$0xff] %vm12478_vm8, %v679_v39  ;;  %2024 = vrot.lane.b32.xlu0 %v1989_v1, %s8792_s29  ;;  %v8552_v39 = vld [vmem:[%s8840_s23 + $0x70] sm:$0xff]   ;;  %v9561_v1 = vld [vmem:[%s8840_s23 + $0x78] sm:$0xff]   ;;  %v2330_v21 = vrot.slane %v2328_v59, 3 }
  0xca   : > { %2026 = vrot.lane.b32.xlu1 %v1991_v62, %s8792_s29  ;;  %v1486_v44 = vsel %vm12465_vm3, %v1476_v38, %v9557_v56  ;;  %v1752_v48 = vrot.slane %v8552_v39, 2  ;;  %v1754_v15 = vrot.slane %v9561_v1, 2  ;;  %386 = vst.msk [vmem:[#allocation2 + $0x78] sm:$0xff] %vm12468_vm6, %v8600_v20 }
  0xcb   : > { %v918_v17 = vpop.permute.xlu0 %917  ;;  %v2694_v63 = vld [vmem:[#allocation2 + $0x10] sm:$0xff] }
  0xcc   : > { %v920_v53 = vpop.permute.xlu1 %919  ;;  %968 = vst.msk [vmem:[#allocation2 + $0x20] sm:$0xff] %vm12477_vm9, %v918_v17  ;;  %8263 = vmatprep.mubr.msk.bf16.mxu0 %vm12484_vm7, %v2694_v63  ;;  %v1477_v17 = vsel %vm12465_vm3, %v9441_v2, %v1476_v38  ;;  %v1755_v58 = vsel %vm12473_vm1, %v1752_v48, %v1754_v15  ;;  %v2336_v2 = vrot.slane %v2334_v54, 2  ;;  %v8568_v38 = vld [vmem:[%s8840_s23 + $0x88] sm:$0xff]   ;;  %v901_v54 = vrot.slane %v8563_v13, 1 }
  0xcd   : > { %969 = vst.msk [vmem:[#allocation2 + $0x28] sm:$0xff] %vm12477_vm9, %v920_v53  ;;  %2398 = vrot.lane.b32.xlu0 %v2314_v46, %s8793_s30  ;;  %v8555_v53 = vld [vmem:[%s8840_s23 + $0x78] sm:$0xff]   ;;  %v9580_v46 = vld [vmem:[%s8840_s23 + $0x80] sm:$0xff]   ;;  %v1497_v59 = vshrl.u32 %v8568_v38, 16  ;;  %v1500_v61 = vshll.u32 %v8568_v38, 16 }
  0xce   : > { %2400 = vrot.lane.b32.xlu1 %v2323_v43, %s8793_s30  ;;  %v1992_v26 = vrot.slane %v8555_v53, 2  ;;  %v1994_v3 = vrot.slane %v9580_v46, 2 }
  0xcf   : > { %v1158_v31 = vpop.permute.xlu0 %1157  ;;  %v2695_v37 = vld [vmem:[#allocation2 + $0x18] sm:$0xff] }
  0xd0   : > { %v1160_v9 = vpop.permute.xlu1 %1159  ;;  %1208 = vst.msk [vmem:[#allocation2 + $0x20] sm:$0xff] %vm12476_vm10, %v1158_v31  ;;  %8264 = vmatmul.mubr.msk.bf16.gmra.mrb[4].mxu0 %vm12484_vm7, %v2695_v37  ;;  %v1753_v37 = vsel %vm12473_vm1, %v1750_v14, %v1752_v48  ;;  %v1995_v52 = vsel %vm12473_vm1, %v1992_v26, %v1994_v3 }
  0xd1   : > { %1209 = vst.msk [vmem:[#allocation2 + $0x28] sm:$0xff] %vm12476_vm10, %v1160_v9  ;;  %2639 = vrot.lane.b32.xlu0 %v2604_v6, %s8794_s6  ;;  %v2339_v9 = vrot.slane %v2337_v57, 3  ;;  %v8560_v6 = vld [vmem:[%s8840_s23 + $0x78] sm:$0xff]   ;;  %v903_v57 = vrot.slane %v9643_v60, 1 }
  0xd2   : > { %692 = vrot.lane.b32.xlu1 %v627_v23, %s8790_s27  ;;  %v2327_v23 = vrot.slane %v2325_v40, 2  ;;  %v640_v14 = vshll.u32 %v8560_v6, 16  ;;  %v644_v27 = vshrl.u32 %v8560_v6, 16  ;;  %v8593_v60 = vld [vmem:[%s8840_s23 + $0x98] sm:$0xff]  }
  0xd3   : > { %v1532_v33 = vpop.permute.xlu0 %1531  ;;  %v904_v6 = vsel %vm12470_vm0, %v901_v54, %v903_v57 }
  0xd4   : > { %v1534_v22 = vpop.permute.xlu1 %1533  ;;  %1582 = vst.msk [vmem:[#allocation2 + $0x20] sm:$0xff] %vm12474_vm11, %v1532_v33  ;;  %v2331_v45 = vor.u32 %v2330_v21, %v2327_v23  ;;  %v638_v33 = vor.u32 %v636_v4, %v9518_v50  ;;  %v9628_v50 = vld [vmem:[%s8840_s23 + $0x80] sm:$0xff]   ;;  %v902_v4 = vsel %vm12470_vm0, %v899_v36, %v901_v54  ;;  %v8575_v36 = vld [vmem:[%s8840_s23 + $0x88] sm:$0xff]  }
  0xd5   : > { %1583 = vst.msk [vmem:[#allocation2 + $0x28] sm:$0xff] %vm12474_vm11, %v1534_v22  ;;  %2641 = vrot.lane.b32.xlu0 %v2606_v19, %s8794_s6  ;;  %v1993_v22 = vsel %vm12473_vm1, %v1990_v16, %v1992_v26  ;;  %v642_v16 = vrot.slane %v640_v14, 1  ;;  %v8570_v14 = vld [vmem:[%s8840_s23 + $0x80] sm:$0xff]   ;;  %v2343_v24 = vshrl.u32 %v8575_v36, 16 }
  0xd6   : > { %694 = vrot.lane.b32.xlu1 %v635_v28, %s8790_s27  ;;  %v9606_v28 = vor.u32 %v2339_v9, %v2336_v2  ;;  %v1499_v2 = vrot.slane %v1497_v59, 1  ;;  %v1502_v9 = vrot.slane %v1500_v61, 2  ;;  %v8601_v54 = vld [vmem:[%s8840_s23 + $0x80] sm:$0xff]  }
  0xd7   : > { %v1773_v62 = vpop.permute.xlu0 %1772  ;;  %v646_v39 = vor.u32 %v644_v27, %v642_v16  ;;  %v8573_v27 = vld [vmem:[%s8840_s23 + $0x88] sm:$0xff]   ;;  %v2345_v13 = vrot.slane %v2343_v24, 2  ;;  %387 = vst.msk [vmem:[#allocation2 + $0x80] sm:$0xff] %vm12468_vm6, %v8601_v54 }
  0xd8   : > { %v1775_v0 = vpop.permute.xlu1 %1774  ;;  %1823 = vst.msk [vmem:[#allocation2 + $0x20] sm:$0xff] %vm12485_vm12, %v1773_v62  ;;  %v2341_v7 = vsel %vm12471_vm4, %v2331_v45, %v9606_v28  ;;  %v8567_v62 = vld [vmem:[%s8840_s23 + $0x80] sm:$0xff]   ;;  %v1996_v38 = vrot.slane %v8573_v27, 2 }
  0xd9   : > { %1824 = vst.msk [vmem:[#allocation2 + $0x28] sm:$0xff] %vm12485_vm12, %v1775_v0  ;;  %933 = vrot.lane.b32.xlu0 %v898_v11, %s8788_s25  ;;  %v1488_v53 = vshrl.u32 %v8567_v62, 16  ;;  %v1491_v40 = vshll.u32 %v8567_v62, 16 }
  0xda   : > { %935 = vrot.lane.b32.xlu1 %v900_v29, %s8788_s25  ;;  %v2332_v29 = vsel %vm12471_vm4, %v9486_v25, %v2331_v45  ;;  %v643_v25 = vsel %vm12467_vm2, %v638_v33, %v642_v16  ;;  %v9678_v45 = vor.u32 %v1502_v9, %v1499_v2 }
  0xdb   : > { %v2013_v43 = vpop.permute.xlu0 %2012  ;;  %v1490_v23 = vrot.slane %v1488_v53, 1  ;;  %v1493_v21 = vrot.slane %v1491_v40, 2  ;;  %v652_v40 = vshrl.u32 %v9609_v12, 16 }
  0xdc   : > { %v2015_v42 = vpop.permute.xlu1 %2014  ;;  %2063 = vst.msk [vmem:[#allocation2 + $0x20] sm:$0xff] %vm12466_vm13, %v2013_v43  ;;  %v2609_v43 = vrot.slane %v9628_v50, 3 }
  0xdd   : > { %2064 = vst.msk [vmem:[#allocation2 + $0x28] sm:$0xff] %vm12466_vm13, %v2015_v42  ;;  %1173 = vrot.lane.b32.xlu0 %v1138_v47, %s8787_s24  ;;  %v2608_v47 = vsel %vm12472_vm5, %v2605_v51, %v2607_v55 }
  0xde   : > { %1175 = vrot.lane.b32.xlu1 %v1140_v32, %s8787_s24  ;;  %v9639_v32 = vrot.slane %v648_v30, 1  ;;  %v9701_v30 = vld [vmem:[%s8840_s23 + $0x90] sm:$0xff]  }
  0xdf   : > { %v2387_v63 = vpop.permute.xlu0 %2386 }
  0xe0   : > { %v2389_v34 = vpop.permute.xlu1 %2388  ;;  %2437 = vst.msk [vmem:[#allocation2 + $0x20] sm:$0xff] %vm12464_vm14, %v2387_v63  ;;  %v651_v51 = vsel %vm12467_vm2, %v646_v39, %v9639_v32  ;;  %v8578_v39 = vld [vmem:[%s8840_s23 + $0x88] sm:$0xff]   ;;  %v654_v12 = vor.u32 %v652_v40, %v9639_v32 }
  0xe1   : > { %2438 = vst.msk [vmem:[#allocation2 + $0x28] sm:$0xff] %vm12464_vm14, %v2389_v34  ;;  %1547 = vrot.lane.b32.xlu0 %v1477_v17, %s8791_s28  ;;  %v8565_v34 = vld [vmem:[%s8840_s23 + $0x80] sm:$0xff]   ;;  %v9659_v17 = vld [vmem:[%s8840_s23 + $0x88] sm:$0xff]   ;;  %v656_v59 = vshll.u32 %v8578_v39, 16  ;;  %v660_v2 = vshrl.u32 %v8578_v39, 16 }
  0xe2   : > { %1549 = vrot.lane.b32.xlu1 %v1486_v44, %s8791_s28  ;;  %v8602_v32 = vld [vmem:[%s8840_s23 + $0x88] sm:$0xff]  }
  0xe3   : > { %v2628_v8 = vpop.permute.xlu0 %2627  ;;  %388 = vst.msk [vmem:[#allocation2 + $0x88] sm:$0xff] %vm12468_vm6, %v8602_v32  ;;  %v8591_v32 = vld [vmem:[%s8840_s23 + $0x98] sm:$0xff]  }
  0xe4   : > { %v681_v31 = vpop.permute.xlu1 %680  ;;  %2678 = vst.msk [vmem:[#allocation2 + $0x20] sm:$0xff] %vm12479_vm15, %v2628_v8 }
  0xe5   : > { %729 = vst.msk [vmem:[#allocation2 + $0x30] sm:$0xff] %vm12478_vm8, %v681_v31  ;;  %1788 = vrot.lane.b32.xlu0 %v1753_v37, %s8789_s26  ;;  %v1141_v31 = vrot.slane %v8565_v34, 1  ;;  %v1143_v37 = vrot.slane %v9659_v17, 1 }
  0xe6   : > { %1790 = vrot.lane.b32.xlu1 %v1755_v58, %s8789_s26  ;;  %v2610_v58 = vsel %vm12472_vm5, %v2607_v55, %v2609_v43 }
  0xe7   : > { %v2630_v19 = vpop.permute.xlu0 %2629  ;;  %v1144_v5 = vsel %vm12470_vm0, %v1141_v31, %v1143_v37 }
  0xe8   : > { %v683_v49 = vpop.permute.xlu1 %682  ;;  %2679 = vst.msk [vmem:[#allocation2 + $0x28] sm:$0xff] %vm12479_vm15, %v2630_v19  ;;  %v1142_v19 = vsel %vm12470_vm0, %v1139_v41, %v1141_v31  ;;  %v2346_v41 = vshll.u32 %v8575_v36, 16 }
  0xe9   : > { %730 = vst.msk [vmem:[#allocation2 + $0x38] sm:$0xff] %vm12478_vm8, %v683_v49  ;;  %2028 = vrot.lane.b32.xlu0 %v1993_v22, %s8792_s29  ;;  %v9682_v49 = vld [vmem:[%s8840_s23 + $0x88] sm:$0xff]   ;;  %v8576_v22 = vld [vmem:[%s8840_s23 + $0x90] sm:$0xff]  }
  0xea   : > { %2030 = vrot.lane.b32.xlu1 %v1995_v52, %s8792_s29  ;;  %v1494_v52 = vor.u32 %v1493_v21, %v1490_v23  ;;  %v1758_v16 = vrot.slane %v9682_v49, 2  ;;  %v658_v23 = vrot.slane %v656_v59, 1 }
  0xeb   : > { %v922_v0 = vpop.permute.xlu0 %921  ;;  %v2696_v11 = vld [vmem:[#allocation2 + $0x20] sm:$0xff] }
  0xec   : > { %v924_v18 = vpop.permute.xlu1 %923  ;;  %970 = vst.msk [vmem:[#allocation2 + $0x30] sm:$0xff] %vm12477_vm9, %v922_v0  ;;  %8267 = vmatprep.mubr.msk.bf16.mxu0 %vm12484_vm7, %v2696_v11  ;;  %v1504_v20 = vsel %vm12465_vm3, %v1494_v52, %v9678_v45  ;;  %v1495_v0 = vsel %vm12465_vm3, %v9557_v56, %v1494_v52  ;;  %v2348_v56 = vrot.slane %v2346_v41, 3  ;;  %vm12475_vm3 = vsmask.f32 1280 }
  0xed   : > { %971 = vst.msk [vmem:[#allocation2 + $0x38] sm:$0xff] %vm12477_vm9, %v924_v18  ;;  %2402 = vrot.lane.b32.xlu0 %v2332_v29, %s8793_s30  ;;  %v2352_v18 = vshrl.u32 %v8576_v22, 16  ;;  %v2355_v29 = vshll.u32 %v8576_v22, 16  ;;  %v659_v36 = vsel %vm12467_vm2, %v654_v12, %v658_v23  ;;  %v662_v22 = vor.u32 %v660_v2, %v658_v23  ;;  %v8594_v23 = vld [vmem:[%s8840_s23 + $0xa0] ss:$0 sps:$4 sm:$0x77]  }
  0xee   : > { %2404 = vrot.lane.b32.xlu1 %v2341_v7, %s8793_s30  ;;  %v1756_v7 = vrot.slane %v8570_v14, 2  ;;  %v2349_v1 = vor.u32 %v2348_v56, %v2345_v13  ;;  %v2370_v17 = vshrl.u32 %v8594_v23, 16 }
  0xef   : > { %v1162_v44 = vpop.permute.xlu0 %1161  ;;  %v2697_v48 = vld [vmem:[#allocation2 + $0x28] sm:$0xff] }
  0xf0   : > { %v1164_v42 = vpop.permute.xlu1 %1163  ;;  %1210 = vst.msk [vmem:[#allocation2 + $0x30] sm:$0xff] %vm12476_vm10, %v1162_v44  ;;  %8268 = vmatmul.mubr.msk.bf16.gmra.mrb[8].mxu0 %vm12484_vm7, %v2697_v48  ;;  %v1759_v62 = vsel %vm12473_vm1, %v1756_v7, %v1758_v16  ;;  %v1757_v48 = vsel %vm12473_vm1, %v1754_v15, %v1756_v7  ;;  %v8580_v15 = vld [vmem:[%s8840_s23 + $0x90] ss:$0 sps:$4 sm:$0x11]  }
  0xf1   : > { %1211 = vst.msk [vmem:[#allocation2 + $0x38] sm:$0xff] %vm12476_vm10, %v1164_v42  ;;  %2643 = vrot.lane.b32.xlu0 %v2608_v47, %s8794_s6  ;;  %v2354_v42 = vrot.slane %v2352_v18, 2  ;;  %v2357_v47 = vrot.slane %v2355_v29, 3  ;;  %v664_v9 = vshll.u32 %v8580_v15, 16 }
  0xf2   : > { %696 = vrot.lane.b32.xlu1 %v643_v25, %s8790_s27  ;;  %v1998_v25 = vrot.slane %v9701_v30, 2 }
  0xf3   : > { %v1536_v26 = vpop.permute.xlu0 %1535 }
  0xf4   : > { %v1538_v63 = vpop.permute.xlu1 %1537  ;;  %1584 = vst.msk [vmem:[#allocation2 + $0x30] sm:$0xff] %vm12474_vm11, %v1536_v26  ;;  %v1999_v61 = vsel %vm12473_vm1, %v1996_v38, %v1998_v25 }
  0xf5   : > { %1585 = vst.msk [vmem:[#allocation2 + $0x38] sm:$0xff] %vm12474_vm11, %v1538_v63  ;;  %2645 = vrot.lane.b32.xlu0 %v2610_v58, %s8794_s6  ;;  %v1997_v63 = vsel %vm12473_vm1, %v1994_v3, %v1996_v38  ;;  %v8577_v58 = vld [vmem:[%s8840_s23 + $0x88] sm:$0xff]   ;;  %v3772_v3 = vld [vmem:[#allocation3 + $0x8] sm:$0x3] }
  0xf6   : > { %698 = vrot.lane.b32.xlu1 %v651_v51, %s8790_s27  ;;  %v9726_v51 = vor.u32 %v2357_v47, %v2354_v42  ;;  %v8584_v38 = vld [vmem:[%s8840_s23 + $0x98] ss:$0 sps:$4 sm:$0x11]   ;;  %v12480_v42 = vmov 0  }
  0xf7   : > { %v1777_v10 = vpop.permute.xlu0 %1776 }
  0xf8   : > { %v1779_v8 = vpop.permute.xlu1 %1778  ;;  %1825 = vst.msk [vmem:[#allocation2 + $0x30] sm:$0xff] %vm12485_vm12, %v1777_v10  ;;  %v2359_v21 = vsel %vm12471_vm4, %v2349_v1, %v9726_v51  ;;  %v9753_v10 = vld [vmem:[%s8840_s23 + $0x90] sm:$0xff]  }
  0xf9   : > { %1826 = vst.msk [vmem:[#allocation2 + $0x38] sm:$0xff] %vm12485_vm12, %v1779_v8  ;;  %937 = vrot.lane.b32.xlu0 %v902_v4, %s8788_s25  ;;  %v2350_v8 = vsel %vm12471_vm4, %v9606_v28, %v2349_v1  ;;  %v2611_v4 = vrot.slane %v8577_v58, 3  ;;  %v8586_v28 = vld [vmem:[%s8840_s23 + $0x98] ss:$0 sps:$4 sm:$0x33]   ;;  %v2613_v27 = vrot.slane %v9753_v10, 3 }
  0xfa   : > { %939 = vrot.lane.b32.xlu1 %v904_v6, %s8788_s25  ;;  %v1518_v50 = vshll.u32 %v8586_v28, 16 }
  0xfb   : > { %v2017_v33 = vpop.permute.xlu0 %2016  ;;  %v2612_v7 = vsel %vm12472_vm5, %v2609_v43, %v2611_v4  ;;  %v2614_v13 = vsel %vm12472_vm5, %v2611_v4, %v2613_v27  ;;  %v2364_v4 = vshll.u32 %v8593_v60, 16 }
  0xfc   : > { %v2019_v35 = vpop.permute.xlu1 %2018  ;;  %2065 = vst.msk [vmem:[#allocation2 + $0x30] sm:$0xff] %vm12466_vm13, %v2017_v33  ;;  %v8582_v33 = vld [vmem:[%s8840_s23 + $0x90] ss:$0 sps:$4 sm:$0x11]  }
  0xfd   : > { %2066 = vst.msk [vmem:[#allocation2 + $0x38] sm:$0xff] %vm12466_vm13, %v2019_v35  ;;  %1177 = vrot.lane.b32.xlu0 %v1142_v19, %s8787_s24  ;;  %v666_v35 = vrot.slane %v664_v9, 1  ;;  %v8581_v19 = vld [vmem:[%s8840_s23 + $0x88] sm:$0xff]  }
  0xfe   : > { %1179 = vrot.lane.b32.xlu1 %v1144_v5, %s8787_s24  ;;  %v8585_v5 = vld [vmem:[%s8840_s23 + $0x90] sm:$0xff]  }
  0xff   : > { %v2391_v11 = vpop.permute.xlu0 %2390  ;;  %v1506_v18 = vshrl.u32 %v8585_v5, 16  ;;  %v1509_v29 = vshll.u32 %v8585_v5, 16  ;;  %v667_v43 = vsel %vm12467_vm2, %v662_v22, %v666_v35  ;;  %vm12488_vm2 = vcmask 228544  }
 0x100   : > { %v2393_v55 = vpop.permute.xlu1 %2392  ;;  %2439 = vst.msk [vmem:[#allocation2 + $0x30] sm:$0xff] %vm12464_vm14, %v2391_v11  ;;  %v907_v11 = vrot.slane %v8582_v33, 1  ;;  %vm12489_vm6 = vmmov %vm12488_vm2  ;;  %v2372_v33 = vrot.slane %v2370_v17, 2 }
 0x101   : > { %2440 = vst.msk [vmem:[#allocation2 + $0x38] sm:$0xff] %vm12464_vm14, %v2393_v55  ;;  %1551 = vrot.lane.b32.xlu0 %v1495_v0, %s8791_s28  ;;  %vm3769_vm14 = vcmask 25600   ;;  %v1515_v55 = vshrl.u32 %v8586_v28, 16  ;;  %v905_v0 = vrot.slane %v8581_v19, 1  ;;  %v1508_v47 = vrot.slane %v1506_v18, 1 }
 0x102   : > { %1553 = vrot.lane.b32.xlu1 %v1504_v20, %s8791_s28  ;;  %vm9740_vm13 = vmand %vm3769_vm14, %vm12475_vm3  ;;  %vm12469_vm14 = vcmask 27648   ;;  %v2366_v19 = vrot.slane %v2364_v4, 3 }
 0x103   : > { %v2632_v53 = vpop.permute.xlu0 %2631  ;;  %v3773_v6 = vsel %vm9740_vm13, 0, %v3772_v3  ;;  %3767 = vst.msk [vmem:[#allocation3] sm:$0xf] %vm12469_vm14, %v12480_v42  ;;  %3768 = vst.msk [vmem:[#allocation3 + $0x4] sm:$0xf] %vm12469_vm14, %v12480_v42  ;;  %v908_v40 = vsel %vm12470_vm0, %v905_v0, %v907_v11  ;;  %v906_v15 = vsel %vm12470_vm0, %v903_v57, %v905_v0 }
 0x104   : > { %v685_v44 = vpop.permute.xlu1 %684  ;;  %2680 = vst.msk [vmem:[#allocation2 + $0x30] sm:$0xff] %vm12479_vm15, %v2632_v53  ;;  %3774 = vst [vmem:[#allocation3 + $0x8] sm:$0x3] %v3773_v6  ;;  %v1520_v53 = vrot.slane %v1518_v50, 2 }
 0x105   : > { %731 = vst.msk [vmem:[#allocation2 + $0x40] sm:$0xff] %vm12478_vm8, %v685_v44  ;;  %1792 = vrot.lane.b32.xlu0 %v1757_v48, %s8789_s26  ;;  %v1511_v44 = vrot.slane %v1509_v29, 2  ;;  %v1517_v48 = vrot.slane %v1515_v55, 1  ;;  %v8595_v55 = vld [vmem:[%s8840_s23 + $0x98] sm:$0xff]  }
 0x106   : > { %1794 = vrot.lane.b32.xlu1 %v1759_v62, %s8789_s26  ;;  %v8583_v62 = vld [vmem:[%s8840_s23 + $0x90] sm:$0xff]   ;;  %4328 = vst.msk [vmem:[#allocation3 + $0x9c] sm:$0xf] %vm12469_vm14, %v12480_v42  ;;  %vm12490_vm14 = vsmask.f32 6400  ;;  %v2615_v11 = vrot.slane %v8595_v55, 3 }
 0x107   : > { %v2634_v26 = vpop.permute.xlu0 %2633  ;;  %v1145_v59 = vrot.slane %v8583_v62, 1  ;;  %v1512_v58 = vor.u32 %v1511_v44, %v1508_v47  ;;  %v8596_v50 = vld [vmem:[%s8840_s23 + $0xa0] ss:$0 sps:$4 sm:$0x77]  }
 0x108   : > { %v687_v34 = vpop.permute.xlu1 %686  ;;  %2681 = vst.msk [vmem:[#allocation2 + $0x38] sm:$0xff] %vm12479_vm15, %v2634_v26  ;;  %v1521_v26 = vor.u32 %v1520_v53, %v1517_v48  ;;  %v2617_v62 = vrot.slane %v8596_v50, 3  ;;  %v2616_v47 = vsel %vm12472_vm5, %v2613_v27, %v2615_v11 }
 0x109   : > { %732 = vst.msk [vmem:[#allocation2 + $0x48] sm:$0xff] %vm12478_vm8, %v687_v34  ;;  %2032 = vrot.lane.b32.xlu0 %v1997_v63, %s8792_s29  ;;  %v8588_v34 = vld [vmem:[%s8840_s23 + $0x90] sm:$0xff]   ;;  %v8589_v63 = vld [vmem:[%s8840_s23 + $0x98] ss:$0 sps:$4 sm:$0x33]   ;;  %v1146_v3 = vsel %vm12470_vm0, %v1143_v37, %v1145_v59 }
 0x10a   : > { %2034 = vrot.lane.b32.xlu1 %v1999_v61, %s8792_s29  ;;  %v1147_v61 = vrot.slane %v8584_v38, 1  ;;  %v1760_v2 = vrot.slane %v8588_v34, 2  ;;  %v1762_v9 = vrot.slane %v8589_v63, 2  ;;  %v1522_v6 = vsel %vm12490_vm14, %v1512_v58, %v1521_v26 }
 0x10b   : > { %v926_v52 = vpop.permute.xlu0 %925  ;;  %v2698_v14 = vld [vmem:[#allocation2 + $0x30] sm:$0xff] }
 0x10c   : > { %v928_v31 = vpop.permute.xlu1 %927  ;;  %972 = vst.msk [vmem:[#allocation2 + $0x40] sm:$0xff] %vm12477_vm9, %v926_v52  ;;  %8271 = vmatprep.mubr.msk.bf16.mxu0 %vm12484_vm7, %v2698_v14  ;;  %v1148_v12 = vsel %vm12470_vm0, %v1145_v59, %v1147_v61  ;;  %v2373_v52 = vshll.u32 %v8594_v23, 16  ;;  %vm12491_vm0 = vmmov %vm12490_vm14  ;;  %v1763_v28 = vsel %vm12473_vm1, %v1760_v2, %v1762_v9 }
 0x10d   : > { %973 = vst.msk [vmem:[#allocation2 + $0x48] sm:$0xff] %vm12477_vm9, %v928_v31  ;;  %2406 = vrot.lane.b32.xlu0 %v2350_v8, %s8793_s30  ;;  %v8592_v31 = vld [vmem:[%s8840_s23 + $0xa0] ss:$0 sps:$4 sm:$0x33]   ;;  %v2361_v8 = vshrl.u32 %v8593_v60, 16  ;;  %v1513_v14 = vsel %vm12491_vm0, %v9678_v45, %v1512_v58  ;;  %vm12494_vm0 = vcmask 228544  }
 0x10e   : > { %2408 = vrot.lane.b32.xlu1 %v2359_v21, %s8793_s30  ;;  %v2002_v22 = vrot.slane %v8592_v31, 2  ;;  %vm12495_vm14 = vmmov %vm12494_vm0 }
 0x10f   : > { %v1166_v24 = vpop.permute.xlu0 %1165  ;;  %v2699_v41 = vld [vmem:[#allocation2 + $0x38] sm:$0xff]  ;;  %v2363_v35 = vrot.slane %v2361_v8, 2 }
 0x110   : > { %v1168_v20 = vpop.permute.xlu1 %1167  ;;  %1212 = vst.msk [vmem:[#allocation2 + $0x40] sm:$0xff] %vm12476_vm10, %v1166_v24  ;;  %8272 = vmatmul.mubr.msk.bf16.gmra.mrb[12].mxu0 %vm12484_vm7, %v2699_v41 }
 0x111   : > { %1213 = vst.msk [vmem:[#allocation2 + $0x48] sm:$0xff] %vm12476_vm10, %v1168_v20  ;;  %2647 = vrot.lane.b32.xlu0 %v2612_v7, %s8794_s6  ;;  %v2375_v20 = vrot.slane %v2373_v52, 3  ;;  %v1761_v7 = vsel %vm12473_vm1, %v1758_v16, %v1760_v2  ;;  %v2367_v18 = vor.u32 %v2366_v19, %v2363_v35  ;;  %v3009_v2 = vlaneseq }
 0x112   : > { %700 = vrot.lane.b32.xlu1 %v659_v36, %s8790_s27  ;;  %v2000_v36 = vrot.slane %v8591_v32, 2 }
 0x113   : > { %v1540_v56 = vpop.permute.xlu0 %1539  ;;  %v2376_v29 = vor.u32 %v2375_v20, %v2372_v33  ;;  %v9877_v32 = vshrl.u32 %v3009_v2, 7 }
 0x114   : > { %v1542_v39 = vpop.permute.xlu1 %1541  ;;  %1586 = vst.msk [vmem:[#allocation2 + $0x40] sm:$0xff] %vm12474_vm11, %v1540_v56  ;;  %v2003_v41 = vsel %vm12473_vm1, %v2000_v36, %v2002_v22  ;;  %v2001_v49 = vsel %vm12473_vm1, %v1998_v25, %v2000_v36 }
 0x115   : > { %1587 = vst.msk [vmem:[#allocation2 + $0x48] sm:$0xff] %vm12474_vm11, %v1542_v39  ;;  %2649 = vrot.lane.b32.xlu0 %v2614_v13, %s8794_s6  ;;  %v2377_v0 = vsel %vm12471_vm4, %v2367_v18, %v2376_v29  ;;  %v2368_v39 = vsel %vm12471_vm4, %v9726_v51, %v2367_v18  ;;  %v2618_v13 = vsel %vm12472_vm5, %v2615_v11, %v2617_v62  ;;  %v3012_v4 = vadd.s32 16, %v9877_v32 }
 0x116   : > { %702 = vrot.lane.b32.xlu1 %v667_v43, %s8790_s27  ;;  %v3013_v52 = vadd.s32 24, %v9877_v32  ;;  %v9890_v36 = vmul.u32.u64.low 3817748708, %v9877_v32  ;;  %v9891_v22 = vmul.u32.u64.high 3817748708, %v9877_v32, %v9890_v36  ;;  %v9906_v55 = vadd.s32 48, %v9877_v32 }
 0x117   : > { %v1781_v54 = vpop.permute.xlu0 %1780  ;;  %v9915_v62 = vadd.s32 56, %v9877_v32  ;;  %v10099_v36 = vadd.s32 144, %v9877_v32 }
 0x118   : > { %v1783_v1 = vpop.permute.xlu1 %1782  ;;  %1827 = vst.msk [vmem:[#allocation2 + $0x40] sm:$0xff] %vm12485_vm12, %v1781_v54  ;;  %v9893_v19 = vmul.u32.u64.low 3817748708, %v3013_v52  ;;  %v9894_v33 = vmul.u32.u64.high 3817748708, %v3013_v52, %v9893_v19  ;;  %v3052_v29 = vshrl.u32 %v9891_v22, 4 }
 0x119   : > { %1828 = vst.msk [vmem:[#allocation2 + $0x48] sm:$0xff] %vm12485_vm12, %v1783_v1  ;;  %941 = vrot.lane.b32.xlu0 %v906_v15, %s8788_s25  ;;  %v9987_v19 = vadd.s32 64, %v9877_v32 }
 0x11a   : > { %943 = vrot.lane.b32.xlu1 %v908_v40, %s8788_s25 }
 0x11b   : > { %v2021_v21 = vpop.permute.xlu0 %2020 }
 0x11c   : > { %v2023_v57 = vpop.permute.xlu1 %2022  ;;  %2067 = vst.msk [vmem:[#allocation2 + $0x40] sm:$0xff] %vm12489_vm6, %v2021_v21 }
 0x11d   : > { %2068 = vst.msk [vmem:[#allocation2 + $0x48] sm:$0xff] %vm12488_vm2, %v2023_v57  ;;  %1181 = vrot.lane.b32.xlu0 %v1146_v3, %s8787_s24  ;;  %vm12492_vm2 = vcmask 261344  }
 0x11e   : > { %1183 = vrot.lane.b32.xlu1 %v1148_v12, %s8787_s24  ;;  %vm12493_vm6 = vmmov %vm12492_vm2 }
 0x11f   : > { %v2395_v5 = vpop.permute.xlu0 %2394 }
 0x120   : > { %v2397_v37 = vpop.permute.xlu1 %2396  ;;  %2441 = vst.msk [vmem:[#allocation2 + $0x40] sm:$0xff] %vm12493_vm6, %v2395_v5  ;;  %vm12496_vm6 = vmmov %vm12492_vm2 }
 0x121   : > { %2442 = vst.msk [vmem:[#allocation2 + $0x48] sm:$0xff] %vm12492_vm2, %v2397_v37  ;;  %1555 = vrot.lane.b32.xlu0 %v1513_v14, %s8791_s28  ;;  %v3011_v14 = vadd.s32 8, %v9877_v32 }
 0x122   : > { %1557 = vrot.lane.b32.xlu1 %v1522_v6, %s8791_s28 }
 0x123   : > { %v2636_v24 = vpop.permute.xlu0 %2635 }
 0x124   : > { %v689_v45 = vpop.permute.xlu1 %688  ;;  %2682 = vst.msk [vmem:[#allocation2 + $0x40] sm:$0xff] %vm12479_vm15, %v2636_v24 }
 0x125   : > { %733 = vst.msk [vmem:[#allocation2 + $0x50] sm:$0xff] %vm12478_vm8, %v689_v45  ;;  %1796 = vrot.lane.b32.xlu0 %v1761_v7, %s8789_s26  ;;  %v9897_v45 = vmul.u32.u64.low 3817748708, %v3011_v14  ;;  %v9898_v7 = vmul.u32.u64.high 3817748708, %v3011_v14, %v9897_v45 }
 0x126   : > { %1798 = vrot.lane.b32.xlu1 %v1763_v28, %s8789_s26  ;;  %v9886_v5 = vmul.u32.u64.low 3817748708, %v3012_v4  ;;  %v9887_v28 = vmul.u32.u64.high 3817748708, %v3012_v4, %v9886_v5 }
 0x127   : > { %v2638_v16 = vpop.permute.xlu0 %2637  ;;  %v3063_v11 = vshrl.u32 %v9898_v7, 4 }
 0x128   : > { %v691_v43 = vpop.permute.xlu1 %690  ;;  %2683 = vst.msk [vmem:[#allocation2 + $0x48] sm:$0xff] %vm12479_vm15, %v2638_v16  ;;  %v3074_v18 = vshrl.u32 %v9887_v28, 4 }
 0x129   : > { %734 = vst.msk [vmem:[#allocation2 + $0x58] sm:$0xff] %vm12478_vm8, %v691_v43  ;;  %2036 = vrot.lane.b32.xlu0 %v2001_v49, %s8792_s29  ;;  %v3085_v43 = vshrl.u32 %v9894_v33, 4  ;;  %v9910_v49 = vadd.s32 32, %v9877_v32 }
 0x12a   : > { %2038 = vrot.lane.b32.xlu1 %v2003_v41, %s8792_s29 }
 0x12b   : > { %v930_v30 = vpop.permute.xlu0 %929  ;;  %v2700_v25 = vld [vmem:[#allocation2 + $0x40] sm:$0xff] }
 0x12c   : > { %v932_v38 = vpop.permute.xlu1 %931  ;;  %974 = vst.msk [vmem:[#allocation2 + $0x50] sm:$0xff] %vm12477_vm9, %v930_v30  ;;  %8275 = vmatprep.mubr.msk.bf16.mxu0 %vm12484_vm7, %v2700_v25  ;;  %v9920_v30 = vmul.u32.u64.low 3817748708, %v9906_v55  ;;  %v9921_v25 = vmul.u32.u64.high 3817748708, %v9906_v55, %v9920_v30 }
 0x12d   : > { %975 = vst.msk [vmem:[#allocation2 + $0x58] sm:$0xff] %vm12477_vm9, %v932_v38  ;;  %2410 = vrot.lane.b32.xlu0 %v2368_v39, %s8793_s30  ;;  %v3075_v38 = vmul.u32 18, %v3074_v18  ;;  %v3053_v39 = vmul.u32 18, %v3052_v29 }
 0x12e   : > { %2412 = vrot.lane.b32.xlu1 %v2377_v0, %s8793_s30 }
 0x12f   : > { %v1170_v51 = vpop.permute.xlu0 %1169  ;;  %v2701_v44 = vld [vmem:[#allocation2 + $0x48] sm:$0xff] }
 0x130   : > { %v1172_v56 = vpop.permute.xlu1 %1171  ;;  %1214 = vst.msk [vmem:[#allocation2 + $0x50] sm:$0xff] %vm12476_vm10, %v1170_v51  ;;  %8276 = vmatmul.mubr.msk.bf16.gmra.mrb[16].mxu0 %vm12484_vm7, %v2701_v44  ;;  %v9928_v44 = vadd.s32 40, %v9877_v32 }
 0x131   : > { %1215 = vst.msk [vmem:[#allocation2 + $0x58] sm:$0xff] %vm12476_vm10, %v1172_v56  ;;  %2651 = vrot.lane.b32.xlu0 %v2616_v47, %s8794_s6  ;;  %v3086_v56 = vmul.u32 18, %v3085_v43  ;;  %v9924_v47 = vmul.u32.u64.low 3817748708, %v9910_v49  ;;  %v9925_v51 = vmul.u32.u64.high 3817748708, %v9910_v49, %v9924_v47  ;;  %v10009_v43 = vadd.s32 88, %v9877_v32 }
 0x132   : > { %2653 = vrot.lane.b32.xlu1 %v2618_v13, %s8794_s6 }
 0x133   : > { %v1544_v53 = vpop.permute.xlu0 %1543 }
 0x134   : > { %v1546_v48 = vpop.permute.xlu1 %1545  ;;  %1588 = vst.msk [vmem:[#allocation2 + $0x50] sm:$0xff] %vm12474_vm11, %v1544_v53 }
 0x135   : > { %1589 = vst.msk [vmem:[#allocation2 + $0x58] sm:$0xff] %vm12474_vm11, %v1546_v48 }
 0x137   : > { %v1785_v27 = vpop.permute.xlu0 %1784 }
 0x138   : > { %v1787_v10 = vpop.permute.xlu1 %1786  ;;  %1829 = vst.msk [vmem:[#allocation2 + $0x50] sm:$0xff] %vm12485_vm12, %v1785_v27 }
 0x139   : > { %1830 = vst.msk [vmem:[#allocation2 + $0x58] sm:$0xff] %vm12485_vm12, %v1787_v10  ;;  %v3064_v10 = vmul.u32 18, %v3063_v11 }
 0x13b   : > { %v2025_v59 = vpop.permute.xlu0 %2024 }
 0x13c   : > { %v2027_v40 = vpop.permute.xlu1 %2026  ;;  %2069 = vst.msk [vmem:[#allocation2 + $0x50] sm:$0xff] %vm12495_vm14, %v2025_v59  ;;  %vm12497_vm14 = vmmov %vm12494_vm0  ;;  %v3076_v59 = vsub.s32 %v3012_v4, %v3075_v38 }
 0x13d   : > { %2070 = vst.msk [vmem:[#allocation2 + $0x58] sm:$0xff] %vm12494_vm0, %v2027_v40  ;;  %v9932_v27 = vmul.u32.u64.low 3817748708, %v9915_v62  ;;  %v9933_v40 = vmul.u32.u64.high 3817748708, %v9915_v62, %v9932_v27 }
 0x13f   : > { %v2399_v1 = vpop.permute.xlu0 %2398  ;;  %v3129_v2 = vshrl.u32 %v9933_v40, 4  ;;  %v10054_v40 = vadd.s32 96, %v9877_v32 }
 0x140   : > { %v2401_v61 = vpop.permute.xlu1 %2400  ;;  %2443 = vst.msk [vmem:[#allocation2 + $0x50] sm:$0xff] %vm12496_vm6, %v2399_v1  ;;  %vm12498_vm6 = vmmov %vm12492_vm2 }
 0x141   : > { %2444 = vst.msk [vmem:[#allocation2 + $0x58] sm:$0xff] %vm12492_vm2, %v2401_v61  ;;  %v9938_v61 = vsub.s32 %v9877_v32, %v3053_v39  ;;  %v10015_v38 = vmul.u32.u64.low 3817748708, %v9987_v19  ;;  %v10016_v39 = vmul.u32.u64.high 3817748708, %v9987_v19, %v10015_v38 }
 0x143   : > { %v2640_v54 = vpop.permute.xlu0 %2639 }
 0x144   : > { %v693_v15 = vpop.permute.xlu1 %692  ;;  %2684 = vst.msk [vmem:[#allocation2 + $0x50] sm:$0xff] %vm12479_vm15, %v2640_v54 }
 0x145   : > { %735 = vst.msk [vmem:[#allocation2 + $0x60] sm:$0xff] %vm12478_vm8, %v693_v15  ;;  %v3087_v15 = vsub.s32 %v3013_v52, %v3086_v56  ;;  %v9973_v52 = vld [vmem:[#allocation3] sm:$0xff]  }
 0x147   : > { %v2642_v63 = vpop.permute.xlu0 %2641  ;;  %vm3445_vm4 = vcmp.ne.s32.totalorder %v3087_v15, 0  ;;  %vm3481_vm5 = vcmp.lt.s32.totalorder %v3087_v15, 0 }
 0x148   : > { %v695_v34 = vpop.permute.xlu1 %694  ;;  %2685 = vst.msk [vmem:[#allocation2 + $0x58] sm:$0xff] %vm12479_vm15, %v2642_v63 }
 0x149   : > { %736 = vst.msk [vmem:[#allocation2 + $0x68] sm:$0xff] %vm12478_vm8, %v695_v34  ;;  %v9941_v54 = vmul.u32.u64.low 3817748708, %v9928_v44  ;;  %v9942_v34 = vmul.u32.u64.high 3817748708, %v9928_v44, %v9941_v54 }
 0x14b   : > { %v934_v26 = vpop.permute.xlu0 %933  ;;  %v2702_v12 = vld [vmem:[#allocation2 + $0x50] sm:$0xff] }
 0x14c   : > { %v936_v58 = vpop.permute.xlu1 %935  ;;  %976 = vst.msk [vmem:[#allocation2 + $0x60] sm:$0xff] %vm12477_vm9, %v934_v26  ;;  %8279 = vmatprep.mubr.msk.bf16.mxu0 %vm12484_vm7, %v2702_v12  ;;  %v3118_v26 = vshrl.u32 %v9921_v25, 4  ;;  %v9950_v12 = vadd.s32 80, %v9877_v32 }
 0x14d   : > { %977 = vst.msk [vmem:[#allocation2 + $0x68] sm:$0xff] %vm12477_vm9, %v936_v58  ;;  %v3065_v58 = vsub.s32 %v3011_v14, %v3064_v10  ;;  %v10050_v10 = vmul.u32.u64.low 3817748708, %v10009_v43  ;;  %v10051_v27 = vmul.u32.u64.high 3817748708, %v10009_v43, %v10050_v10 }
 0x14f   : > { %v1174_v23 = vpop.permute.xlu0 %1173  ;;  %v2703_v57 = vld [vmem:[#allocation2 + $0x58] sm:$0xff]  ;;  %vm3479_vm3 = vcmp.lt.s32.totalorder %v3065_v58, 0  ;;  %v3551_v4 = vadd.s32 18, %v3065_v58 }
 0x150   : > { %v1176_v60 = vpop.permute.xlu1 %1175  ;;  %1216 = vst.msk [vmem:[#allocation2 + $0x60] sm:$0xff] %vm12476_vm10, %v1174_v23  ;;  %8280 = vmatmul.mubr.msk.bf16.gmra.mrb[20].mxu0 %vm12484_vm7, %v2703_v57  ;;  %v3552_v23 = vadd.s32 18, %v3076_v59  ;;  %v3096_v57 = vshrl.u32 %v9925_v51, 4  ;;  %v4624_v51 = vshrl.u32 %v9973_v52, 16 }
 0x151   : > { %1217 = vst.msk [vmem:[#allocation2 + $0x68] sm:$0xff] %vm12476_vm10, %v1176_v60 }
 0x152   : > { %v3097_v22 = vmul.u32 18, %v3096_v57 }
 0x153   : > { %v1548_v21 = vpop.permute.xlu0 %1547 }
 0x154   : > { %v1550_v3 = vpop.permute.xlu1 %1549  ;;  %1590 = vst.msk [vmem:[#allocation2 + $0x60] sm:$0xff] %vm12474_vm11, %v1548_v21 }
 0x155   : > { %1591 = vst.msk [vmem:[#allocation2 + $0x68] sm:$0xff] %vm12474_vm11, %v1550_v3 }
 0x157   : > { %v1789_v6 = vpop.permute.xlu0 %1788 }
 0x158   : > { %v1791_v9 = vpop.permute.xlu1 %1790  ;;  %1831 = vst.msk [vmem:[#allocation2 + $0x60] sm:$0xff] %vm12485_vm12, %v1789_v6  ;;  %v3550_v6 = vadd.s32 18, %v9938_v61 }
 0x159   : > { %1832 = vst.msk [vmem:[#allocation2 + $0x68] sm:$0xff] %vm12485_vm12, %v1791_v9 }
 0x15b   : > { %v2029_v8 = vpop.permute.xlu0 %2028 }
 0x15c   : > { %v2031_v31 = vpop.permute.xlu1 %2030  ;;  %2071 = vst.msk [vmem:[#allocation2 + $0x60] sm:$0xff] %vm12497_vm14, %v2029_v8  ;;  %vm3480_vm14 = vcmp.lt.s32.totalorder %v3076_v59, 0 }
 0x15d   : > { %2072 = vst.msk [vmem:[#allocation2 + $0x68] sm:$0xff] %vm12494_vm0, %v2031_v31  ;;  %vm3444_vm0 = vcmp.ne.s32.totalorder %v3076_v59, 0  ;;  %v3553_v31 = vadd.s32 18, %v3087_v15 }
 0x15e   : > { %vm9954_vm1 = vmand %vm3480_vm14, %vm3444_vm0 }
 0x15f   : > { %v2403_v37 = vpop.permute.xlu0 %2402  ;;  %vm9969_vm0 = vmand %vm3481_vm5, %vm3445_vm4  ;;  %v3588_v28 = vsel %vm9954_vm1, %v3552_v23, %v3076_v59  ;;  %vm12507_vm4 = vcmask 228544   ;;  %v10076_v23 = vadd.s32 120, %v9877_v32 }
 0x160   : > { %v2405_v17 = vpop.permute.xlu1 %2404  ;;  %2445 = vst.msk [vmem:[#allocation2 + $0x60] sm:$0xff] %vm12498_vm6, %v2403_v37  ;;  %vm3478_vm6 = vcmp.lt.s32.totalorder %v9938_v61, 0  ;;  %v9976_v37 = vmul.u32.u64.low 3817748708, %v9950_v12  ;;  %v9977_v14 = vmul.u32.u64.high 3817748708, %v9950_v12, %v9976_v37  ;;  %vm12508_vm5 = vmmov %vm12507_vm4  ;;  %v3589_v7 = vsel %vm9969_vm0, %v3553_v31, %v3087_v15 }
 0x161   : > { %2446 = vst.msk [vmem:[#allocation2 + $0x68] sm:$0xff] %vm12492_vm2, %v2405_v17  ;;  %vm3442_vm2 = vcmp.ne.s32.totalorder %v9938_v61, 0  ;;  %v3119_v17 = vmul.u32 18, %v3118_v26  ;;  %vm9998_vm1 = vcmp.lt.s32.totalorder %v3588_v28, 16  ;;  %vm4281_vm0 = vcmask 27649  }
 0x162   : > { %v3140_v28 = vshrl.u32 %v10016_v39, 4 }
 0x163   : > { %v2644_v20 = vpop.permute.xlu0 %2643  ;;  %v10005_v29 = vsub.s32 %v9906_v55, %v3119_v17 }
 0x164   : > { %v697_v35 = vpop.permute.xlu1 %696  ;;  %2686 = vst.msk [vmem:[#allocation2 + $0x60] sm:$0xff] %vm12479_vm15, %v2644_v20  ;;  %v3130_v20 = vmul.u32 18, %v3129_v2  ;;  %v10086_v2 = vadd.s32 104, %v9877_v32  ;;  %v3141_v56 = vmul.u32 18, %v3140_v28  ;;  %v4284_v28 = vld [vmem:[#allocation3 + $0x8] sm:$0xe] }
 0x165   : > { %737 = vst.msk [vmem:[#allocation2 + $0x70] sm:$0xff] %vm12478_vm8, %v697_v35  ;;  %v3107_v35 = vshrl.u32 %v9942_v34, 4 }
 0x167   : > { %v2646_v41 = vpop.permute.xlu0 %2645  ;;  %v3108_v11 = vmul.u32 18, %v3107_v35 }
 0x168   : > { %v699_v24 = vpop.permute.xlu1 %698  ;;  %2687 = vst.msk [vmem:[#allocation2 + $0x68] sm:$0xff] %vm12479_vm15, %v2646_v41 }
 0x169   : > { %738 = vst.msk [vmem:[#allocation2 + $0x78] sm:$0xff] %vm12478_vm8, %v699_v24  ;;  %v9996_v24 = vld [vmem:[#allocation3] sm:$0xfe]   ;;  %v10063_v15 = vsub.s32 %v9928_v44, %v3108_v11 }
 0x16a   : > { %v4973_v47 = vrot.slane %v9996_v24, 1 }
 0x16b   : > { %v938_v16 = vpop.permute.xlu0 %937  ;;  %v2704_v0 = vld [vmem:[#allocation2 + $0x60] sm:$0xff] }
 0x16c   : > { %v940_v50 = vpop.permute.xlu1 %939  ;;  %978 = vst.msk [vmem:[#allocation2 + $0x70] sm:$0xff] %vm12477_vm9, %v938_v16  ;;  %8283 = vmatprep.mubr.msk.bf16.mxu0 %vm12484_vm7, %v2704_v0  ;;  %v10012_v0 = vsub.s32 %v9910_v49, %v3097_v22  ;;  %v10031_v49 = vadd.s32 72, %v9877_v32 }
 0x16d   : > { %979 = vst.msk [vmem:[#allocation2 + $0x78] sm:$0xff] %vm12477_vm9, %v940_v50  ;;  %v4626_v50 = vshll.u32 %v9973_v52, 16 }
 0x16f   : > { %v1178_v48 = vpop.permute.xlu0 %1177  ;;  %v2705_v53 = vld [vmem:[#allocation2 + $0x68] sm:$0xff]  ;;  %v10065_v54 = vrot.slane %v4626_v50, 1 }
 0x170   : > { %v1180_v13 = vpop.permute.xlu1 %1179  ;;  %1218 = vst.msk [vmem:[#allocation2 + $0x70] sm:$0xff] %vm12476_vm10, %v1178_v48  ;;  %8284 = vmatmul.mubr.msk.bf16.gmra.mrb[24].mxu0 %vm12484_vm7, %v2705_v53  ;;  %v10041_v48 = vadd.s32 112, %v9877_v32  ;;  %v3162_v53 = vshrl.u32 %v9977_v14, 4 }
 0x171   : > { %1219 = vst.msk [vmem:[#allocation2 + $0x78] sm:$0xff] %vm12476_vm10, %v1180_v13  ;;  %vm9964_vm10 = vmand %vm3478_vm6, %vm3442_vm2  ;;  %v10028_v13 = vsub.s32 %v9915_v62, %v3130_v20  ;;  %v10046_v62 = vld [vmem:[%s12459_s2] ss:$0 sm:$0xff] }
 0x172   : > { %v3586_v45 = vsel %vm9964_vm10, %v3550_v6, %v9938_v61  ;;  %v10057_v61 = vadd.s32 18, %v10005_v29  ;;  %v10089_v31 = vmul.u32 18, %v3162_v53 }
 0x173   : > { %v1552_v63 = vpop.permute.xlu0 %1551  ;;  %vm10019_vm10 = vcmp.lt.s32.totalorder %v3586_v45, 16  ;;  %v10104_v20 = vmul.u32.u64.low 3817748708, %v10076_v23  ;;  %v10105_v45 = vmul.u32.u64.high 3817748708, %v10076_v23, %v10104_v20 }
 0x174   : > { %v1554_v1 = vpop.permute.xlu1 %1553  ;;  %1592 = vst.msk [vmem:[#allocation2 + $0x70] sm:$0xff] %vm12474_vm11, %v1552_v63 }
 0x175   : > { %1593 = vst.msk [vmem:[#allocation2 + $0x78] sm:$0xff] %vm12474_vm11, %v1554_v1  ;;  %vm3443_vm11 = vcmp.ne.s32.totalorder %v3065_v58, 0  ;;  %v10060_v1 = vadd.s32 18, %v10012_v0 }
 0x176   : > { %vm9981_vm14 = vmand %vm3479_vm3, %vm3443_vm11  ;;  %vm12511_vm3 = vcmask 261344   ;;  %vm10023_vm11 = vcmp.lt.s32.totalorder %v3589_v7, 16 }
 0x177   : > { %v1793_v3 = vpop.permute.xlu0 %1792  ;;  %v3587_v18 = vsel %vm9981_vm14, %v3551_v4, %v3065_v58  ;;  %vm12516_vm2 = vmmov %vm12511_vm3  ;;  %v10069_v58 = vadd.s32 18, %v10028_v13  ;;  %vm4282_vm14 = vsmask.f32 7942 }
 0x178   : > { %v1795_v60 = vpop.permute.xlu1 %1794  ;;  %1833 = vst.msk [vmem:[#allocation2 + $0x70] sm:$0xff] %vm12485_vm12, %v1793_v3  ;;  %vm10034_vm6 = vcmp.lt.s32.totalorder %v3587_v18, 16  ;;  %v10081_v3 = vmul.u32.u64.low 3817748708, %v10041_v48  ;;  %v10082_v21 = vmul.u32.u64.high 3817748708, %v10041_v48, %v10081_v3 }
 0x179   : > { %1834 = vst.msk [vmem:[#allocation2 + $0x78] sm:$0xff] %vm12485_vm12, %v1795_v60  ;;  %v10072_v26 = vmul.u32.u64.low 3817748708, %v10031_v49  ;;  %v10073_v60 = vmul.u32.u64.high 3817748708, %v10031_v49, %v10072_v26  ;;  %v10092_v8 = vmul.u32.u64.low 3817748708, %v10054_v40  ;;  %v10093_v4 = vmul.u32.u64.high 3817748708, %v10054_v40, %v10092_v8 }
 0x17b   : > { %v2033_v33 = vpop.permute.xlu0 %2032 }
 0x17c   : > { %v2035_v5 = vpop.permute.xlu1 %2034  ;;  %2073 = vst.msk [vmem:[#allocation2 + $0x70] sm:$0xff] %vm12508_vm5, %v2033_v33  ;;  %vm3448_vm5 = vcmp.ne.s32.totalorder %v10005_v29, 0 }
 0x17d   : > { %2074 = vst.msk [vmem:[#allocation2 + $0x78] sm:$0xff] %vm12507_vm4, %v2035_v5  ;;  %vm3883_vm4 = vsmask.f32 5392 }
 0x17f   : > { %v2407_v30 = vpop.permute.xlu0 %2406 }
 0x180   : > { %v2409_v16 = vpop.permute.xlu1 %2408  ;;  %2447 = vst.msk [vmem:[#allocation2 + $0x70] sm:$0xff] %vm12516_vm2, %v2407_v30  ;;  %v3173_v30 = vshrl.u32 %v10051_v27, 4  ;;  %vm3485_vm2 = vcmp.lt.s32.totalorder %v10028_v13, 0 }
 0x181   : > { %2448 = vst.msk [vmem:[#allocation2 + $0x78] sm:$0xff] %vm12511_vm3, %v2409_v16  ;;  %v10111_v50 = vmul.u32.u64.low 3817748708, %v10086_v2  ;;  %v10112_v16 = vmul.u32.u64.high 3817748708, %v10086_v2, %v10111_v50  ;;  %vm3446_vm3 = vcmp.ne.s32.totalorder %v10012_v0, 0 }
 0x183   : > { %v2648_v34 = vpop.permute.xlu0 %2647  ;;  %v8261_v63 = vpop.f32.mrb[0].mxu0 }
 0x184   : > { %v701_v59 = vpop.permute.xlu1 %700  ;;  %2688 = vst.msk [vmem:[#allocation2 + $0x70] sm:$0xff] %vm12479_vm15, %v2648_v34  ;;  %v2839_v44 = vadd.f32 %v8261_v63, %v10046_v62  ;;  %v2830_v57 = vpop.f32.mrb[1].mxu0 }
 0x185   : > { %739 = vst.msk [vmem:[#allocation2 + $0x80] sm:$0xff] %vm12478_vm8, %v701_v59  ;;  %v2831_v9 = vadd.f32 %v10046_v62, %v2830_v57  ;;  %v8262_v6 = vpop.f32.mrb[2].mxu0  ;;  %v10120_v59 = vmul.u32.u64.low 3817748708, %v10099_v36  ;;  %v10121_v34 = vmul.u32.u64.high 3817748708, %v10099_v36, %v10120_v59 }
 0x186   : > { %v2975_v17 = vmax.f32 %v2839_v44, 0.0  ;;  %v2842_v37 = vadd.f32 %v8262_v6, %v10046_v62  ;;  %v2833_v14 = vpop.f32.mrb[3].mxu0 }
 0x187   : > { %v2973_v22 = vmax.f32 %v2831_v9, 0.0  ;;  %v2834_v35 = vadd.f32 %v10046_v62, %v2833_v14  ;;  %v2650_v33 = vpop.permute.xlu0 %2649 }
 0x188   : > { %v703_v5 = vpop.permute.xlu1 %702  ;;  %v3732_v7 = vsel %vm9998_vm1, %v2975_v17, 0.0  ;;  %v2976_v18 = vmax.f32 %v2842_v37, 0.0  ;;  %2689 = vst.msk [vmem:[#allocation2 + $0x78] sm:$0xff] %vm12479_vm15, %v2650_v33  ;;  %vm3484_vm1 = vcmp.lt.s32.totalorder %v10005_v29, 0 }
 0x189   : > { %740 = vst.msk [vmem:[#allocation2 + $0x88] sm:$0xff] %vm12478_vm8, %v703_v5  ;;  %v8056_v11 = vpack.c.bf16 %v3732_v7, %v3732_v7  ;;  %v3730_v38 = vsel %vm10019_vm10, %v2973_v22, 0.0  ;;  %v2974_v39 = vmax.f32 %v2834_v35, 0.0  ;;  %vm3482_vm10 = vcmp.lt.s32.totalorder %v10012_v0, 0 }
 0x18a   : > { %v8054_v53 = vpack.c.bf16 %v3730_v38, %v3730_v38  ;;  %v3733_v10 = vsel %vm10023_vm11, %v2976_v18, 0.0  ;;  %vm3449_vm11 = vcmp.ne.s32.totalorder %v10028_v13, 0  ;;  %vm12522_vm8 = vsmask.f32 1280 }
 0x18b   : > { %v3905_v63 = vshrl.u32 %v8056_v11, 16  ;;  %v3908_v26 = vshll.u32 %v8056_v11, 16  ;;  %v8057_v44 = vpack.c.bf16 %v3733_v10, %v3733_v10  ;;  %v3731_v57 = vsel %vm10034_vm6, %v2974_v39, 0.0  ;;  %v942_v55 = vpop.permute.xlu0 %941  ;;  %v2706_v3 = vld [vmem:[#allocation2 + $0x70] sm:$0xff]  ;;  %vm10136_vm6 = vmand %vm4281_vm0, %vm4282_vm14 }
 0x18c   : > { %v944_v41 = vpop.permute.xlu1 %943  ;;  %v3886_v25 = vshrl.u32 %v8054_v53, 16  ;;  %v3889_v27 = vshll.u32 %v8054_v53, 16  ;;  %v8055_v9 = vpack.c.bf16 %v3731_v57, %v3731_v57  ;;  %980 = vst.msk [vmem:[#allocation2 + $0x80] sm:$0xff] %vm12477_vm9, %v942_v55  ;;  %8287 = vmatprep.mubr.msk.bf16.mxu0 %vm12484_vm7, %v2706_v3  ;;  %v3174_v39 = vmul.u32 18, %v3173_v30  ;;  %vm10143_vm15 = vmor %vm12522_vm8, %vm3883_vm4 }
 0x18d   : > { %981 = vst.msk [vmem:[#allocation2 + $0x88] sm:$0xff] %vm12477_vm9, %v944_v41  ;;  %v3907_v6 = vrot.slane %v3905_v63, 6  ;;  %v3910_v8 = vrot.slane %v3908_v26, 7  ;;  %v3915_v17 = vshrl.u32 %v8057_v44, 16  ;;  %v3918_v37 = vshll.u32 %v8057_v44, 16 }
 0x18e   : > { %v3888_v14 = vrot.slane %v3886_v25, 6  ;;  %v3891_v5 = vrot.slane %v3889_v27, 7  ;;  %v3895_v22 = vshrl.u32 %v8055_v9, 16  ;;  %v3898_v35 = vshll.u32 %v8055_v9, 16 }
 0x18f   : > { %v3911_v20 = vor.u32 %v3910_v8, %v3907_v6  ;;  %v3917_v18 = vrot.slane %v3915_v17, 6  ;;  %v3920_v50 = vrot.slane %v3918_v37, 7  ;;  %v1182_v11 = vpop.permute.xlu0 %1181  ;;  %vm12521_vm9 = vcmask 130144   ;;  %v2707_v38 = vld [vmem:[#allocation2 + $0x78] sm:$0xff] }
 0x190   : > { %v1184_v33 = vpop.permute.xlu1 %1183  ;;  %v3892_v10 = vor.u32 %v3891_v5, %v3888_v14  ;;  %v3897_v41 = vrot.slane %v3895_v22, 6  ;;  %v3900_v59 = vrot.slane %v3898_v35, 7  ;;  %vm12525_vm0 = vmmov %vm12521_vm9  ;;  %8288 = vmatmul.mubr.msk.bf16.gmra.mrb[28].mxu0 %vm12484_vm7, %v2707_v38  ;;  %v10151_v63 = vsub.s32 %v9950_v12, %v10089_v31 }
 0x191   : > { %1221 = vst.msk [vmem:[#allocation2 + $0x88] sm:$0xff] %vm12521_vm9, %v1184_v33  ;;  %v3913_v26 = vrot.slane %v3911_v20, 4  ;;  %v10153_v44 = vor.u32 %v3920_v50, %v3917_v18  ;;  %v3151_v30 = vshrl.u32 %v10073_v60, 4  ;;  %v10157_v57 = vadd.s32 128, %v9877_v32  ;;  %v8662_v50 = vld [vmem:[#allocation3] sm:$0xff]  }
 0x192   : > { %1220 = vst.msk [vmem:[#allocation2 + $0x80] sm:$0xff] %vm12525_vm0, %v1182_v11  ;;  %v3893_v55 = vrot.slane %v3892_v10, 4  ;;  %v4285_v3 = vsel %vm10136_vm6, %v3892_v10, %v4284_v28  ;;  %v3901_v25 = vor.u32 %v3900_v59, %v3897_v41  ;;  %v10162_v9 = vsub.s32 %v9987_v19, %v3141_v56  ;;  %vm10194_vm0 = vmand %vm3484_vm1, %vm3448_vm5 }
 0x193   : > { %4286 = vst [vmem:[#allocation3 + $0x8] sm:$0xe] %v4285_v3  ;;  %v3922_v12 = vsel %vm10143_vm15, %v3913_v26, %v10153_v44  ;;  %v1556_v31 = vpop.permute.xlu0 %1555  ;;  %vm12526_vm8 = vcmask 162944   ;;  %v10169_v60 = vsub.s32 %v10009_v43, %v3174_v39  ;;  %v3206_v6 = vshrl.u32 %v10082_v21, 4  ;;  %vm10219_vm5 = vmand %vm3485_vm2, %vm3449_vm11 }
 0x194   : > { %v1558_v27 = vpop.permute.xlu1 %1557  ;;  %v3184_v8 = vshrl.u32 %v10093_v4, 4  ;;  %vm12527_vm9 = vcmask 27648   ;;  %v3902_v19 = vsel %vm10143_vm15, %v3893_v55, %v3901_v25  ;;  %v3903_v56 = vrot.slane %v3901_v25, 4  ;;  %vm12528_vm14 = vmmov %vm12526_vm8 }
 0x195   : > { %1595 = vst.msk [vmem:[#allocation2 + $0x88] sm:$0xff] %vm12526_vm8, %v1558_v27  ;;  %v3217_v17 = vshrl.u32 %v10105_v45, 4  ;;  %v3195_v37 = vshrl.u32 %v10112_v16, 4  ;;  %vm12529_vm4 = vmmov %vm12527_vm9  ;;  %v3250_v43 = vshrl.u32 %v10121_v34, 4  ;;  %v10186_v4 = vadd.s32 152, %v9877_v32 }
 0x196   : > { %4289 = vst.msk [vmem:[#allocation3 + $0x14] sm:$0xf] %vm12527_vm9, %v3922_v12  ;;  %v10182_v21 = vmul.u32.u64.low 3817748708, %v10157_v57  ;;  %v10183_v14 = vmul.u32.u64.high 3817748708, %v10157_v57, %v10182_v21  ;;  %v3912_v5 = vsel %vm10143_vm15, %v3903_v56, %v3911_v20  ;;  %vm3447_vm8 = vcmp.ne.s32.totalorder %v10063_v15, 0 }
 0x197   : > { %1594 = vst.msk [vmem:[#allocation2 + $0x80] sm:$0xff] %vm12528_vm14, %v1556_v31  ;;  %vm3483_vm9 = vcmp.lt.s32.totalorder %v10063_v15, 0  ;;  %v3152_v16 = vmul.u32 18, %v3151_v30  ;;  %vm12532_vm14 = vmmov %vm12529_vm4  ;;  %v1797_v34 = vpop.permute.xlu0 %1796  ;;  %v3555_v33 = vadd.s32 18, %v10063_v15  ;;  %v10212_v20 = vadd.s32 18, %v10151_v63 }
 0x198   : > { %4287 = vst.msk [vmem:[#allocation3 + $0xc] sm:$0xf] %vm12529_vm4, %v3902_v19  ;;  %v1799_v22 = vpop.permute.xlu1 %1798  ;;  %vm10206_vm4 = vmand %vm3482_vm10, %vm3446_vm3  ;;  %v3207_v28 = vmul.u32 18, %v3206_v6  ;;  %v3185_v18 = vmul.u32 18, %v3184_v8  ;;  %v10224_v38 = vadd.s32 18, %v10162_v9  ;;  %v10227_v39 = vadd.s32 18, %v10169_v60 }
 0x199   : > { %4288 = vst.msk [vmem:[#allocation3 + $0x10] sm:$0xf] %vm12532_vm14, %v3912_v5  ;;  %v3218_v10 = vmul.u32 18, %v3217_v17  ;;  %v10229_v41 = vmul.u32 18, %v3195_v37  ;;  %vm10235_vm1 = vmand %vm3483_vm9, %vm3447_vm8  ;;  %v10246_v3 = vadd.s32 136, %v9877_v32  ;;  %vm12539_vm3 = vcmask 31744  }
 0x19a   : > { %1836 = vst.msk [vmem:[#allocation2 + $0x88] sm:$0xff] %vm12485_vm12, %v1799_v22  ;;  %1835 = vst.msk [vmem:[#allocation2 + $0x80] sm:$0xff] %vm12485_vm12, %v1797_v34  ;;  %v10239_v26 = vmul.u32 18, %v3250_v43  ;;  %v10242_v30 = vmul.u32.u64.low 3817748708, %v10186_v4  ;;  %v10243_v55 = vmul.u32.u64.high 3817748708, %v10186_v4, %v10242_v30  ;;  %v3592_v27 = vsel %vm10194_vm0, %v10057_v61, %v10005_v29 }
 0x19b   : > { %4475 = vst.msk [vmem:[#allocation2] sm:$0xff] %vm12539_vm3, %v8662_v50  ;;  %v2037_v12 = vpop.permute.xlu0 %2036  ;;  %vm12540_vm10 = vcmask 228544   ;;  %v3590_v31 = vsel %vm10206_vm4, %v10060_v1, %v10012_v0  ;;  %v3923_v6 = vrot.slane %v10153_v44, 4  ;;  %v3593_v19 = vsel %vm10219_vm5, %v10069_v58, %v10028_v13 }
 0x19c   : > { %v2039_v25 = vpop.permute.xlu1 %2038  ;;  %vm12541_vm11 = vmmov %vm12540_vm10  ;;  %vm10264_vm2 = vcmp.lt.s32.totalorder %v3592_v27, 16  ;;  %v3591_v61 = vsel %vm10235_vm1, %v3555_v33, %v10063_v15  ;;  %v3228_v1 = vshrl.u32 %v10183_v14, 4  ;;  %vm10272_vm0 = vcmp.lt.s32.totalorder %v3590_v31, 16 }
 0x19d   : > { %2076 = vst.msk [vmem:[#allocation2 + $0x88] sm:$0xff] %vm12540_vm10, %v2039_v25  ;;  %vm12546_vm8 = vcmask 261344   ;;  %vm10279_vm9 = vcmp.lt.s32.totalorder %v3593_v19, 16  ;;  %vm12550_vm4 = vcmask 1046528   ;;  %vm10292_vm5 = vcmp.lt.s32.totalorder %v3591_v61, 16 }
 0x19e   : > { %2075 = vst.msk [vmem:[#allocation2 + $0x80] sm:$0xff] %vm12541_vm11, %v2037_v12  ;;  %vm12549_vm14 = vmmov %vm12546_vm8  ;;  %v4629_v50 = vor.u32 %v10065_v54, %v4624_v51  ;;  %v10308_v52 = vsub.s32 %v10031_v49, %v3152_v16  ;;  %v10311_v51 = vsub.s32 %v10041_v48, %v3207_v28  ;;  %vm12554_vm3 = vcmask 294144  }
 0x19f   : > { %v8604_v8 = vld [vmem:[#allocation3 + $0x8] sm:$0xff]   ;;  %v2411_v13 = vpop.permute.xlu0 %2410  ;;  %vm12553_vm1 = vmmov %vm12550_vm4  ;;  %v10318_v61 = vsub.s32 %v10054_v40, %v3185_v18  ;;  %vm12556_vm11 = vsmask.f32 7424  ;;  %v10379_v14 = vsub.s32 %v10086_v2, %v10229_v41  ;;  %v10387_v44 = vsub.s32 %v10099_v36, %v10239_v26 }
 0x1a0   : > { %v8607_v56 = vld [vmem:[#allocation3 + $0x8] sm:$0xff]   ;;  %v2413_v17 = vpop.permute.xlu1 %2412  ;;  %v4974_v37 = vrot.slane %v8604_v8, 1  ;;  %v10276_v21 = vld [vmem:[#allocation3 + $0x10] sm:$0xff]   ;;  %2449 = vst.msk [vmem:[#allocation2 + $0x80] sm:$0xff] %vm12549_vm14, %v2411_v13  ;;  %vm12555_vm10 = vmmov %vm12554_vm3 }
 0x1a1   : > { %v8609_v0 = vld [vmem:[#allocation3 + $0x8] sm:$0xfe]   ;;  %2450 = vst.msk [vmem:[#allocation2 + $0x88] sm:$0xff] %vm12546_vm8, %v2413_v17  ;;  %v4631_v15 = vshll.u32 %v8607_v56, 16  ;;  %v10283_v5 = vld [vmem:[#allocation3 + $0x10] sm:$0xff]   ;;  %v4635_v22 = vshrl.u32 %v8607_v56, 16  ;;  %v10321_v56 = vsub.s32 %v10076_v23, %v3218_v10  ;;  %vm12557_vm8 = vmmov %vm12556_vm11 }
 0x1a2   : > { %v10285_v45 = vld [vmem:[#allocation3 + $0x10] sm:$0xff]   ;;  %v4975_v34 = vsel %vm12550_vm4, %v4973_v47, %v4974_v37  ;;  %v4976_v35 = vrot.slane %v10276_v21, 1  ;;  %v5212_v11 = vrot.slane %v8609_v0, 1  ;;  %v4639_v30 = vshll.u32 %v10283_v5, 16  ;;  %v8611_v12 = vld [vmem:[#allocation3 + $0x8] sm:$0xfc]   ;;  %vm12558_vm14 = vmmov %vm12553_vm1 }
 0x1a3   : > { %5010 = vrot.lane.b32.xlu0 %v4975_v34, %s8788_s25  ;;  %v4633_v59 = vrot.slane %v4631_v15, 1  ;;  %v5213_v24 = vrot.slane %v10285_v45, 1  ;;  %v10302_v25 = vld [vmem:[#allocation3 + $0x10] sm:$0xff]   ;;  %v2652_v54 = vpop.permute.xlu0 %2651  ;;  %v8265_v31 = vpop.f32.mrb[4].mxu0  ;;  %v5823_v28 = vrot.slane %v8611_v12, 2  ;;  %v3261_v10 = vshrl.u32 %v10243_v55, 4 }
 0x1a4   : > { %v2654_v47 = vpop.permute.xlu1 %2653  ;;  %v4977_v27 = vsel %vm12553_vm1, %v4974_v37, %v4976_v35  ;;  %v10315_v19 = vrot.slane %v4639_v30, 1  ;;  %2690 = vst.msk [vmem:[#allocation2 + $0x80] sm:$0xff] %vm12555_vm10, %v2652_v54  ;;  %v2855_v49 = vadd.f32 %v8265_v31, %v10046_v62  ;;  %v2846_v48 = vpop.f32.mrb[5].mxu0  ;;  %v5824_v0 = vrot.slane %v10302_v25, 2  ;;  %v8614_v17 = vld [vmem:[#allocation3 + $0x10] sm:$0xff]   ;;  %v8664_v30 = vld [vmem:[#allocation3 + $0x8] sm:$0xff]  }
 0x1a5   : > { %2691 = vst.msk [vmem:[#allocation2 + $0x88] sm:$0xff] %vm12554_vm3, %v2654_v47  ;;  %5012 = vrot.lane.b32.xlu1 %v4977_v27, %s8788_s25  ;;  %v4637_v8 = vor.u32 %v4635_v22, %v4633_v59  ;;  %v4634_v16 = vsel %vm12556_vm11, %v4629_v50, %v4633_v59  ;;  %v2847_v37 = vadd.f32 %v10046_v62, %v2846_v48  ;;  %v8266_v13 = vpop.f32.mrb[6].mxu0  ;;  %v8613_v18 = vld [vmem:[#allocation3 + $0x8] sm:$0xfe]   ;;  %vm12559_vm4 = vcmask 1045504   ;;  %v8684_v54 = vld [vmem:[#allocation3 + $0x10] sm:$0xff]  }
 0x1a6   : > { %v5214_v23 = vsel %vm12558_vm14, %v5212_v11, %v5213_v24  ;;  %v2979_v15 = vmax.f32 %v2855_v49, 0.0  ;;  %v2858_v22 = vadd.f32 %v8266_v13, %v10046_v62  ;;  %v2849_v34 = vpop.f32.mrb[7].mxu0  ;;  %v5825_v50 = vsel %vm12559_vm4, %v5823_v28, %v5824_v0 }
 0x1a7   : > { %4771 = vrot.lane.b32.xlu0 %v4634_v16, %s8790_s27  ;;  %v4642_v40 = vsel %vm12557_vm8, %v4637_v8, %v10315_v19  ;;  %v5460_v59 = vshrl.u32 %v8614_v17, 16  ;;  %v2977_v47 = vmax.f32 %v2847_v37, 0.0  ;;  %v2850_v27 = vadd.f32 %v10046_v62, %v2849_v34 }
 0x1a8   : > { %v5452_v12 = vshrl.u32 %v8613_v18, 16  ;;  %v5455_v11 = vshll.u32 %v8613_v18, 16  ;;  %v3736_v31 = vsel %vm10264_vm2, %v2979_v15, 0.0  ;;  %v2980_v8 = vmax.f32 %v2858_v22, 0.0 }
 0x1a9   : > { %4773 = vrot.lane.b32.xlu1 %v4642_v40, %s8790_s27  ;;  %v5462_v49 = vrot.slane %v5460_v59, 1  ;;  %v5463_v48 = vshll.u32 %v8614_v17, 16  ;;  %vm12560_vm1 = vcmask 31744   ;;  %v8060_v16 = vpack.c.bf16 %v3736_v31, %v3736_v31 }
 0x1aa   : > { %4476 = vst.msk [vmem:[#allocation2 + $0x8] sm:$0xff] %vm12560_vm1, %v8664_v30  ;;  %v3734_v28 = vsel %vm10272_vm0, %v2977_v47, 0.0  ;;  %v2978_v37 = vmax.f32 %v2850_v27, 0.0  ;;  %v5454_v13 = vrot.slane %v5452_v12, 1  ;;  %vm12561_vm3 = vmmov %vm12560_vm1  ;;  %v3737_v29 = vsel %vm10279_vm9, %v2980_v8, 0.0 }
 0x1ab   : > { %5249 = vrot.lane.b32.xlu0 %v5214_v23, %s8787_s24  ;;  %4477 = vst.msk [vmem:[#allocation2 + $0x10] sm:$0xff] %vm12561_vm3, %v8684_v54  ;;  %v8058_v40 = vpack.c.bf16 %v3734_v28, %v3734_v28  ;;  %v5457_v15 = vrot.slane %v5455_v11, 2  ;;  %v5465_v22 = vrot.slane %v5463_v48, 2  ;;  %v3945_v17 = vshrl.u32 %v8060_v16, 16  ;;  %v2708_v30 = vld [vmem:[#allocation2 + $0x80] sm:$0xff] }
 0x1ac   : > { %v2709_v18 = vld [vmem:[#allocation2 + $0x88] sm:$0xff]  ;;  %v3948_v34 = vshll.u32 %v8060_v16, 16  ;;  %v8061_v59 = vpack.c.bf16 %v3737_v29, %v3737_v29  ;;  %v3735_v43 = vsel %vm10292_vm5, %v2978_v37, 0.0  ;;  %vm3452_vm2 = vcmp.ne.s32.totalorder %v10151_v63, 0  ;;  %8291 = vmatprep.mubr.msk.bf16.mxu0 %vm12484_vm7, %v2708_v30 }
 0x1ad   : > { %vm3488_vm0 = vcmp.lt.s32.totalorder %v10151_v63, 0  ;;  %v3925_v23 = vshrl.u32 %v8058_v40, 16  ;;  %v3928_v47 = vshll.u32 %v8058_v40, 16  ;;  %v8059_v27 = vpack.c.bf16 %v3735_v43, %v3735_v43  ;;  %8292 = vmatmul.mubr.msk.bf16.gmra.mrb[32].mxu0 %vm12484_vm7, %v2709_v18 }
 0x1ae   : > { %v5458_v58 = vor.u32 %v5457_v15, %v5454_v13  ;;  %vm3450_vm9 = vcmp.ne.s32.totalorder %v10162_v9, 0  ;;  %vm3486_vm10 = vcmp.lt.s32.totalorder %v10162_v9, 0  ;;  %v3947_v12 = vrot.slane %v3945_v17, 6  ;;  %v8630_v17 = vld [vmem:[#allocation3 + $0x10] sm:$0xfc]  }
 0x1af   : > { %v3950_v11 = vrot.slane %v3948_v34, 7  ;;  %v3955_v54 = vshrl.u32 %v8061_v59, 16  ;;  %v3958_v33 = vshll.u32 %v8061_v59, 16  ;;  %5860 = vrot.lane.b32.xlu0 %v5825_v50, %s8789_s26  ;;  %vm3453_vm5 = vcmp.ne.s32.totalorder %v10169_v60, 0 }
 0x1b0   : > { %vm3489_vm11 = vcmp.lt.s32.totalorder %v10169_v60, 0  ;;  %v3927_v31 = vrot.slane %v3925_v23, 6  ;;  %v3930_v8 = vrot.slane %v3928_v47, 7  ;;  %v3935_v48 = vshrl.u32 %v8059_v27, 16  ;;  %v10396_v47 = vld [vmem:[#allocation3 + $0x10] sm:$0xf8]  }
 0x1b1   : > { %v3938_v16 = vshll.u32 %v8059_v27, 16  ;;  %vm3451_vm8 = vcmp.ne.s32.totalorder %v10308_v52, 0  ;;  %v3951_v28 = vor.u32 %v3950_v11, %v3947_v12  ;;  %v3957_v37 = vrot.slane %v3955_v54, 6 }
 0x1b2   : > { %v3960_v13 = vrot.slane %v3958_v33, 7  ;;  %v10362_v40 = vor.u32 %v5465_v22, %v5462_v49  ;;  %v3931_v29 = vor.u32 %v3930_v8, %v3927_v31  ;;  %v3937_v15 = vrot.slane %v3935_v48, 6 }
 0x1b3   : > { %v3940_v18 = vrot.slane %v3938_v16, 7  ;;  %v3229_v50 = vmul.u32 18, %v3228_v1  ;;  %v3953_v34 = vrot.slane %v3951_v28, 4  ;;  %vm12562_vm14 = vsmask.f32 6400 }
 0x1b4   : > { %v10366_v59 = vor.u32 %v3960_v13, %v3957_v37  ;;  %v5467_v43 = vsel %vm12562_vm14, %v5458_v58, %v10362_v40  ;;  %v3262_v30 = vmul.u32 18, %v3261_v10  ;;  %v3932_v49 = vsel %vm10143_vm15, %v3923_v6, %v3931_v29  ;;  %v8616_v10 = vld [vmem:[#allocation3 + $0x10] sm:$0xfc]  }
 0x1b5   : > { %v3933_v22 = vrot.slane %v3931_v29, 4  ;;  %v3941_v23 = vor.u32 %v3940_v18, %v3937_v15  ;;  %5621 = vrot.lane.b32.xlu0 %v5467_v43, %s8791_s28  ;;  %vm12563_vm4 = vcmask 27648   ;;  %v6302_v27 = vshrl.u32 %v8630_v17, 16 }
 0x1b6   : > { %4290 = vst.msk [vmem:[#allocation3 + $0x18] sm:$0xf] %vm12563_vm4, %v3932_v49  ;;  %v3962_v55 = vsel %vm10143_vm15, %v3953_v34, %v10366_v59  ;;  %v10390_v6 = vmul.u32.u64.low 3817748708, %v10246_v3  ;;  %v10391_v1 = vmul.u32.u64.high 3817748708, %v10246_v3, %v10390_v6  ;;  %vm12564_vm1 = vmmov %vm12563_vm4  ;;  %vm3487_vm14 = vcmp.lt.s32.totalorder %v10308_v52, 0 }
 0x1b7   : > { %4293 = vst.msk [vmem:[#allocation3 + $0x24] sm:$0xf] %vm12564_vm1, %v3962_v55  ;;  %v3942_v2 = vsel %vm10143_vm15, %v3933_v22, %v3941_v23  ;;  %v3943_v41 = vrot.slane %v3941_v23, 4  ;;  %vm12565_vm3 = vmmov %vm12564_vm1  ;;  %v6305_v36 = vshll.u32 %v8630_v17, 16  ;;  %v10401_v26 = vsub.s32 %v10157_v57, %v3229_v50 }
 0x1b8   : > { %4291 = vst.msk [vmem:[#allocation3 + $0x1c] sm:$0xf] %vm12565_vm3, %v3942_v2  ;;  %v10404_v58 = vsub.s32 %v10186_v4, %v3262_v30  ;;  %vm10412_vm4 = vmand %vm3488_vm0, %vm3452_vm2  ;;  %v3559_v54 = vadd.s32 18, %v10308_v52  ;;  %v10418_v33 = vadd.s32 18, %v10311_v51  ;;  %v10421_v57 = vadd.s32 18, %v10318_v61 }
 0x1b9   : > { %v3952_v12 = vsel %vm10143_vm15, %v3943_v41, %v3951_v28  ;;  %vm10428_vm3 = vmand %vm3486_vm10, %vm3450_vm9  ;;  %v4643_v31 = vshrl.u32 %v10283_v5, 16  ;;  %v10434_v8 = vadd.s32 18, %v10321_v56  ;;  %v10437_v48 = vadd.s32 18, %v10379_v14 }
 0x1ba   : > { %4292 = vst.msk [vmem:[#allocation3 + $0x20] sm:$0xf] %vm12564_vm1, %v3952_v12  ;;  %v10440_v16 = vadd.s32 18, %v10387_v44  ;;  %v3963_v28 = vrot.slane %v10366_v59, 4  ;;  %v6062_v37 = vrot.slane %v8616_v10, 2  ;;  %vm10447_vm2 = vmand %vm3489_vm11, %vm3453_vm5  ;;  %v6673_v5 = vrot.slane %v10396_v47, 3 }
 0x1bb   : > { %v10452_v29 = vrot.slane %v6302_v27, 2  ;;  %vm10458_vm0 = vmand %vm3487_vm14, %vm3451_vm8  ;;  %v10462_v18 = vrot.slane %v6305_v36, 3  ;;  %v10465_v17 = vadd.s32 18, %v10401_v26  ;;  %v10468_v50 = vadd.s32 18, %v10404_v58 }
 0x1bc   : > { %v10471_v34 = vadd.s32 176, %v9877_v32  ;;  %v3596_v43 = vsel %vm10412_vm4, %v10212_v20, %v10151_v63  ;;  %v3594_v30 = vsel %vm10428_vm3, %v10224_v38, %v10162_v9  ;;  %v3597_v22 = vsel %vm10447_vm2, %v10227_v39, %v10169_v60 }
 0x1bd   : > { %vm10488_vm9 = vcmp.lt.s32.totalorder %v3596_v43, 16  ;;  %v3595_v63 = vsel %vm10458_vm0, %v3559_v54, %v10308_v52  ;;  %vm10503_vm10 = vcmp.lt.s32.totalorder %v3594_v30, 16  ;;  %vm10507_vm5 = vcmp.lt.s32.totalorder %v3597_v22, 16 }
 0x1be   : > { %v10498_v9 = vmul.u32.u64.low 3817748708, %v10471_v34  ;;  %v10499_v38 = vmul.u32.u64.high 3817748708, %v10471_v34, %v10498_v9  ;;  %vm12580_vm11 = vcmask 1046528   ;;  %vm10519_vm8 = vcmp.lt.s32.totalorder %v3595_v63, 16 }
 0x1bf   : > { %v10481_v49 = vld [vmem:[#allocation3 + $0x18] sm:$0xff]   ;;  %vm12583_vm14 = vcmask 1045504   ;;  %v4645_v30 = vor.u32 %v4643_v31, %v10315_v19  ;;  %vm12585_vm1 = vcmask 1044480   ;;  %vm12587_vm2 = vmmov %vm12580_vm11  ;;  %vm12588_vm0 = vsmask.f32 7424 }
 0x1c0   : > { %v8617_v55 = vld [vmem:[#allocation3 + $0x18] sm:$0xff]   ;;  %v5215_v60 = vrot.slane %v10481_v49, 1  ;;  %vm12584_vm4 = vmmov %vm12583_vm14  ;;  %vm12634_vm7 = vcmask 27648  }
 0x1c1   : > { %v10495_v20 = vld [vmem:[#allocation3 + $0x18] sm:$0xff]   ;;  %v6063_v41 = vrot.slane %v8617_v55, 2  ;;  %v10512_v47 = vld [vmem:[#allocation3 + $0x20] sm:$0xff]   ;;  %vm12586_vm3 = vmmov %vm12584_vm4 }
 0x1c2   : > { %v8620_v2 = vld [vmem:[#allocation3 + $0x18] sm:$0xff]   ;;  %v12482_v52 = vrot.slane %v10495_v20, 2  ;;  %v5216_v36 = vsel %vm12580_vm11, %v5213_v24, %v5215_v60  ;;  %v12481_v13 = vrot.slane %v10512_v47, 2  ;;  %v10530_v43 = vld [vmem:[#allocation3 + $0x20] sm:$0xff]   ;;  %vm12589_vm11 = vmmov %vm12585_vm1 }
 0x1c3   : > { %v8622_v27 = vld [vmem:[#allocation3 + $0x18] sm:$0xff]   ;;  %v6674_v11 = vrot.slane %v8620_v2, 3  ;;  %5251 = vrot.lane.b32.xlu1 %v5216_v36, %s8787_s24  ;;  %v6064_v4 = vsel %vm12583_vm14, %v6062_v37, %v6063_v41  ;;  %v8269_v24 = vpop.f32.mrb[8].mxu0  ;;  %v10533_v22 = vld [vmem:[#allocation3 + $0x20] sm:$0xff]   ;;  %v6676_v2 = vrot.slane %v10530_v43, 3  ;;  %vm12590_vm14 = vmmov %vm12587_vm2 }
 0x1c4   : > { %v10523_v54 = vld [vmem:[#allocation3 + $0x18] sm:$0xff]   ;;  %v4978_v15 = vrot.slane %v8622_v27, 1  ;;  %6099 = vrot.lane.b32.xlu0 %v6064_v4, %s8792_s29  ;;  %v2871_v55 = vadd.f32 %v8269_v24, %v10046_v62  ;;  %v2862_v63 = vpop.f32.mrb[9].mxu0  ;;  %v5827_v37 = vsel %vm12584_vm4, %v5824_v0, %v12482_v52  ;;  %v10544_v27 = vld [vmem:[#allocation3 + $0x20] sm:$0xff]   ;;  %v6066_v4 = vsel %vm12586_vm3, %v6063_v41, %v12481_v13  ;;  %vm12636_vm12 = vmmov %vm12634_vm7 }
 0x1c5   : > { %v4647_v45 = vshll.u32 %v10523_v54, 16  ;;  %v2863_v36 = vadd.f32 %v10046_v62, %v2862_v63  ;;  %v8270_v19 = vpop.f32.mrb[10].mxu0  ;;  %v6675_v31 = vsel %vm12585_vm1, %v6673_v5, %v6674_v11  ;;  %v12483_v25 = vrot.slane %v10533_v22, 1  ;;  %v8627_v0 = vld [vmem:[#allocation3 + $0x18] sm:$0xff]  }
 0x1c6   : > { %v2874_v24 = vadd.f32 %v8270_v19, %v10046_v62  ;;  %v2865_v42 = vpop.f32.mrb[11].mxu0  ;;  %v4979_v63 = vsel %vm12587_vm2, %v4976_v35, %v4978_v15  ;;  %v6677_v41 = vsel %vm12589_vm11, %v6674_v11, %v6676_v2  ;;  %v5469_v13 = vshrl.u32 %v8627_v0, 16 }
 0x1c7   : > { %v10541_v9 = vrot.slane %v4647_v45, 1  ;;  %5862 = vrot.lane.b32.xlu1 %v5827_v37, %s8789_s26  ;;  %v2983_v45 = vmax.f32 %v2871_v55, 0.0  ;;  %v2981_v37 = vmax.f32 %v2863_v36, 0.0  ;;  %v2866_v23 = vadd.f32 %v10046_v62, %v2865_v42 }
 0x1c8   : > { %6710 = vrot.lane.b32.xlu0 %v6675_v31, %s8794_s6  ;;  %v5217_v55 = vrot.slane %v10544_v27, 1  ;;  %v2984_v31 = vmax.f32 %v2874_v24, 0.0  ;;  %v5472_v21 = vshll.u32 %v8627_v0, 16  ;;  %v4981_v42 = vsel %vm12590_vm14, %v4978_v15, %v12483_v25  ;;  %v10576_v0 = vld [vmem:[#allocation3 + $0x20] sm:$0xff]  }
 0x1c9   : > { %v4650_v5 = vsel %vm12588_vm0, %v4645_v30, %v10541_v9  ;;  %v3740_v19 = vsel %vm10488_vm9, %v2983_v45, 0.0  ;;  %v3738_v35 = vsel %vm10503_vm10, %v2981_v37, 0.0  ;;  %v2982_v30 = vmax.f32 %v2866_v23, 0.0 }
 0x1ca   : > { %v8064_v52 = vpack.c.bf16 %v3740_v19, %v3740_v19  ;;  %v8062_v62 = vpack.c.bf16 %v3738_v35, %v3738_v35  ;;  %v3741_v11 = vsel %vm10507_vm5, %v2984_v31, 0.0  ;;  %v5471_v6 = vrot.slane %v5469_v13, 1  ;;  %vm12591_vm5 = vmmov %vm12587_vm2 }
 0x1cb   : > { %6101 = vrot.lane.b32.xlu1 %v6066_v4, %s8792_s29  ;;  %v5474_v36 = vrot.slane %v5472_v21, 2  ;;  %v8065_v24 = vpack.c.bf16 %v3741_v11, %v3741_v11  ;;  %v3739_v23 = vsel %vm10519_vm8, %v2982_v30, 0.0  ;;  %v10580_v4 = vld [vmem:[#allocation3 + $0x20] sm:$0xff]   ;;  %vm3456_vm9 = vcmp.ne.s32.totalorder %v10311_v51, 0 }
 0x1cc   : > { %5014 = vrot.lane.b32.xlu0 %v4979_v63, %s8788_s25  ;;  %v3985_v45 = vshrl.u32 %v8064_v52, 16  ;;  %v3988_v39 = vshll.u32 %v8064_v52, 16  ;;  %vm3492_vm10 = vcmp.lt.s32.totalorder %v10311_v51, 0  ;;  %v3965_v10 = vshrl.u32 %v8062_v62, 16 }
 0x1cd   : > { %v3968_v15 = vshll.u32 %v8062_v62, 16  ;;  %v8063_v37 = vpack.c.bf16 %v3739_v23, %v3739_v23  ;;  %v5218_v13 = vsel %vm12591_vm5, %v5215_v60, %v5217_v55  ;;  %vm3454_vm4 = vcmp.ne.s32.totalorder %v10318_v61, 0 }
 0x1ce   : > { %vm3490_vm1 = vcmp.lt.s32.totalorder %v10318_v61, 0  ;;  %v3987_v52 = vrot.slane %v3985_v45, 6  ;;  %v3990_v12 = vrot.slane %v3988_v39, 7  ;;  %v3995_v63 = vshrl.u32 %v8065_v24, 16  ;;  %v8705_v45 = vld [vmem:[#allocation3 + $0x20] sm:$0xff]  }
 0x1cf   : > { %v3998_v19 = vshll.u32 %v8065_v24, 16  ;;  %4775 = vrot.lane.b32.xlu1 %v4650_v5, %s8790_s27  ;;  %vm3457_vm8 = vcmp.ne.s32.totalorder %v10321_v56, 0  ;;  %vm3493_vm3 = vcmp.lt.s32.totalorder %v10321_v56, 0  ;;  %v3967_v31 = vrot.slane %v3965_v10, 6  ;;  %v8691_v5 = vld [vmem:[#allocation3 + $0x18] sm:$0xff]  }
 0x1d0   : > { %v3970_v21 = vrot.slane %v3968_v15, 7  ;;  %v3975_v35 = vshrl.u32 %v8063_v37, 16  ;;  %v3978_v49 = vshll.u32 %v8063_v37, 16  ;;  %6712 = vrot.lane.b32.xlu0 %v6677_v41, %s8794_s6  ;;  %vm3455_vm2 = vcmp.ne.s32.totalorder %v10379_v14, 0  ;;  %v8631_v15 = vld [vmem:[#allocation3 + $0x18] sm:$0xff]  }
 0x1d1   : > { %vm3491_vm0 = vcmp.lt.s32.totalorder %v10379_v14, 0  ;;  %v3991_v60 = vor.u32 %v3990_v12, %v3987_v52  ;;  %v3997_v30 = vrot.slane %v3995_v63, 6  ;;  %v4000_v62 = vrot.slane %v3998_v19, 7  ;;  %v8632_v12 = vld [vmem:[#allocation3 + $0x20] sm:$0xff]  }
 0x1d2   : > { %v10597_v11 = vor.u32 %v5474_v36, %v5471_v6  ;;  %v3971_v39 = vor.u32 %v3970_v21, %v3967_v31  ;;  %v3977_v24 = vrot.slane %v3975_v35, 6  ;;  %v3980_v23 = vrot.slane %v3978_v49, 7  ;;  %v8633_v6 = vld [vmem:[#allocation3 + $0x20] sm:$0xff]  }
 0x1d3   : > { %v5828_v10 = vrot.slane %v10576_v0, 2  ;;  %v3993_v37 = vrot.slane %v3991_v60, 4  ;;  %v10600_v25 = vor.u32 %v4000_v62, %v3997_v30  ;;  %5016 = vrot.lane.b32.xlu1 %v4981_v42, %s8788_s25  ;;  %v4651_v41 = vshrl.u32 %v10523_v54, 16 }
 0x1d4   : > { %v4655_v52 = vshll.u32 %v10580_v4, 16  ;;  %vm12592_vm11 = vcmask 31744   ;;  %v3972_v36 = vsel %vm10143_vm15, %v3963_v28, %v3971_v39  ;;  %v3973_v63 = vrot.slane %v3971_v39, 4  ;;  %5253 = vrot.lane.b32.xlu0 %v5218_v13, %s8787_s24 }
 0x1d5   : > { %4478 = vst.msk [vmem:[#allocation2 + $0x18] sm:$0xff] %vm12592_vm11, %v8691_v5  ;;  %vm12593_vm14 = vmmov %vm12592_vm11  ;;  %v3981_v19 = vor.u32 %v3980_v23, %v3977_v24  ;;  %v6308_v54 = vor.u32 %v10462_v18, %v10452_v29  ;;  %vm12594_vm5 = vcmask 27648   ;;  %v4002_v42 = vsel %vm10143_vm15, %v3993_v37, %v10600_v25 }
 0x1d6   : > { %4479 = vst.msk [vmem:[#allocation2 + $0x20] sm:$0xff] %vm12593_vm14, %v8705_v45  ;;  %vm12595_vm11 = vsmask.f32 6400  ;;  %v4653_v31 = vor.u32 %v4651_v41, %v10541_v9  ;;  %v10622_v28 = vrot.slane %v4655_v52, 1  ;;  %vm12596_vm14 = vmmov %vm12594_vm5  ;;  %v6310_v18 = vshrl.u32 %v8631_v15, 16 }
 0x1d7   : > { %4294 = vst.msk [vmem:[#allocation3 + $0x28] sm:$0xf] %vm12594_vm5, %v3972_v36  ;;  %v5476_v59 = vsel %vm12595_vm11, %v10362_v40, %v10597_v11  ;;  %v3982_v13 = vsel %vm10143_vm15, %v3973_v63, %v3981_v19  ;;  %v3983_v29 = vrot.slane %v3981_v19, 4  ;;  %v6313_v21 = vshll.u32 %v8631_v15, 16 }
 0x1d8   : > { %4297 = vst.msk [vmem:[#allocation3 + $0x34] sm:$0xf] %vm12596_vm14, %v4002_v42  ;;  %5623 = vrot.lane.b32.xlu1 %v5476_v59, %s8791_s28  ;;  %v12597_v40 = vrot.slane %v10495_v20, 2  ;;  %vm12598_vm11 = vcmask 1045504   ;;  %v6319_v35 = vshrl.u32 %v8632_v12, 16  ;;  %v6322_v49 = vshll.u32 %v8632_v12, 16  ;;  %vm10641_vm14 = vmand %vm3492_vm10, %vm3456_vm9 }
 0x1d9   : > { %4295 = vst.msk [vmem:[#allocation3 + $0x2c] sm:$0xf] %vm12594_vm5, %v3982_v13  ;;  %v5478_v30 = vshrl.u32 %v8633_v6, 16  ;;  %v3992_v62 = vsel %vm10143_vm15, %v3983_v29, %v3991_v60  ;;  %v6312_v5 = vrot.slane %v6310_v18, 2  ;;  %v6315_v45 = vrot.slane %v6313_v21, 3  ;;  %vm10663_vm10 = vmand %vm3493_vm3, %vm3457_vm8 }
 0x1da   : > { %v5829_v9 = vsel %vm12598_vm11, %v12597_v40, %v5828_v10  ;;  %v5481_v39 = vshll.u32 %v8633_v6, 16  ;;  %4296 = vst.msk [vmem:[#allocation3 + $0x30] sm:$0xf] %vm12594_vm5, %v3992_v62  ;;  %v6321_v20 = vrot.slane %v6319_v35, 2  ;;  %v6324_v23 = vrot.slane %v6322_v49, 3  ;;  %vm10650_vm11 = vmand %vm3490_vm1, %vm3454_vm4 }
 0x1db   : > { %5864 = vrot.lane.b32.xlu0 %v5829_v9, %s8789_s26  ;;  %v5480_v15 = vrot.slane %v5478_v30, 1  ;;  %v10655_v37 = vadd.s32 160, %v9877_v32  ;;  %vm12603_vm9 = vsmask.f32 7424  ;;  %v6316_v52 = vor.u32 %v6315_v45, %v6312_v5  ;;  %vm10677_vm4 = vmand %vm3491_vm0, %vm3455_vm2 }
 0x1dc   : > { %v4658_v41 = vsel %vm12603_vm9, %v4653_v31, %v10622_v28  ;;  %v5483_v12 = vrot.slane %v5481_v39, 2  ;;  %v12606_v36 = vshrl.u32 %v10391_v1, 4  ;;  %v4003_v19 = vrot.slane %v10600_v25, 4 }
 0x1dd   : > { %4777 = vrot.lane.b32.xlu1 %v4658_v41, %s8790_s27  ;;  %v10671_v42 = vor.u32 %v6324_v23, %v6321_v20  ;;  %v4659_v31 = vshrl.u32 %v10580_v4, 16  ;;  %v10683_v13 = vadd.s32 184, %v9877_v32  ;;  %vm12609_vm1 = vsmask.f32 5376 }
 0x1de   : > { %v3240_v63 = vmul.u32 18, %v12606_v36  ;;  %v6317_v1 = vsel %vm12609_vm1, %v6308_v54, %v6316_v52  ;;  %v10686_v29 = vor.u32 %v5483_v12, %v5480_v15  ;;  %v3600_v18 = vsel %vm10641_vm14, %v10418_v33, %v10311_v51  ;;  %vm12610_vm8 = vmmov %vm12609_vm1 }
 0x1df   : > { %6471 = vrot.lane.b32.xlu0 %v6317_v1, %s8793_s30  ;;  %v3598_v21 = vsel %vm10650_vm11, %v10421_v57, %v10318_v61  ;;  %v6326_v4 = vsel %vm12610_vm8, %v6316_v52, %v10671_v42  ;;  %v3601_v54 = vsel %vm10663_vm10, %v10434_v8, %v10321_v56  ;;  %v3294_v9 = vshrl.u32 %v10499_v38, 4 }
 0x1e0   : > { %v10699_v40 = vld [vmem:[#allocation3 + $0x28] sm:$0xff]   ;;  %vm10707_vm3 = vcmp.lt.s32.totalorder %v3600_v18, 16  ;;  %v3599_v61 = vsel %vm10677_vm4, %v10437_v48, %v10379_v14  ;;  %v10718_v35 = vmul.u32.u64.low 3817748708, %v10655_v37  ;;  %v10719_v49 = vmul.u32.u64.high 3817748708, %v10655_v37, %v10718_v35 }
 0x1e1   : > { %6473 = vrot.lane.b32.xlu1 %v6326_v4, %s8793_s30  ;;  %v8635_v51 = vld [vmem:[#allocation3 + $0x28] sm:$0xff]   ;;  %vm12613_vm2 = vsmask.f32 6400  ;;  %v5219_v8 = vrot.slane %v10699_v40, 1  ;;  %vm10726_vm0 = vcmp.lt.s32.totalorder %v3598_v21, 16  ;;  %vm10731_vm14 = vcmp.lt.s32.totalorder %v3601_v54, 16 }
 0x1e2   : > { %v10715_v57 = vld [vmem:[#allocation3 + $0x28] sm:$0xff]   ;;  %v5485_v56 = vsel %vm12613_vm2, %v10597_v11, %v10686_v29  ;;  %v6067_v14 = vrot.slane %v8635_v51, 2  ;;  %v10736_v5 = vld [vmem:[#allocation3 + $0x30] sm:$0xff]   ;;  %vm12618_vm5 = vcmask 1046528   ;;  %vm10745_vm11 = vcmp.lt.s32.totalorder %v3599_v61, 16 }
 0x1e3   : > { %v8637_v30 = vld [vmem:[#allocation3 + $0x28] sm:$0xff]   ;;  %5625 = vrot.lane.b32.xlu0 %v5485_v56, %s8791_s28  ;;  %v5830_v62 = vrot.slane %v10715_v57, 2  ;;  %v5220_v11 = vsel %vm12618_vm5, %v5217_v55, %v5219_v8  ;;  %v12621_v23 = vrot.slane %v10512_v47, 2  ;;  %vm12622_vm9 = vcmask 1045504   ;;  %v10758_v55 = vld [vmem:[#allocation3 + $0x30] sm:$0xff]   ;;  %v8273_v52 = vpop.f32.mrb[12].mxu0  ;;  %vm12627_vm8 = vmmov %vm12618_vm5 }
 0x1e4   : > { %v10738_v45 = vld [vmem:[#allocation3 + $0x28] sm:$0xff]   ;;  %v6678_v24 = vrot.slane %v8637_v30, 3  ;;  %v6069_v60 = vrot.slane %v10736_v5, 2  ;;  %v4661_v12 = vor.u32 %v4659_v31, %v10622_v28  ;;  %v10762_v6 = vld [vmem:[#allocation3 + $0x30] sm:$0xff]   ;;  %v10765_v36 = vsub.s32 %v10246_v3, %v3240_v63  ;;  %v2878_v1 = vpop.f32.mrb[13].mxu0  ;;  %vm12623_vm10 = vmmov %vm12622_vm9 }
 0x1e5   : > { %v10749_v20 = vld [vmem:[#allocation3 + $0x28] sm:$0xff]   ;;  %5255 = vrot.lane.b32.xlu1 %v5220_v11, %s8787_s24  ;;  %v6068_v15 = vsel %vm12622_vm9, %v12621_v23, %v6067_v14  ;;  %v4982_v41 = vrot.slane %v10738_v45, 1  ;;  %v10770_v47 = vld [vmem:[%s12459_s2] ss:$0 sm:$0xff]  ;;  %v5831_v18 = vsel %vm12623_vm10, %v5828_v10, %v5830_v62  ;;  %v10782_v3 = vmul.u32 18, %v3294_v9  ;;  %v8274_v21 = vpop.f32.mrb[14].mxu0  ;;  %vm12625_vm1 = vmmov %vm12622_vm9 }
 0x1e6   : > { %v4663_v27 = vshll.u32 %v10749_v20, 16  ;;  %v2887_v59 = vadd.f32 %v10770_v47, %v8273_v52  ;;  %v10780_v31 = vld [vmem:[#allocation3 + $0x30] sm:$0xff]   ;;  %v2879_v63 = vadd.f32 %v10770_v47, %v2878_v1  ;;  %vm12624_vm4 = vcmask 1044480   ;;  %v8644_v10 = vld [vmem:[#allocation3 + $0x28] sm:$0xff]   ;;  %v2881_v35 = vpop.f32.mrb[15].mxu0 }
 0x1e7   : > { %6103 = vrot.lane.b32.xlu0 %v6068_v15, %s8792_s29  ;;  %v6679_v4 = vsel %vm12624_vm4, %v6676_v2, %v6678_v24  ;;  %v6680_v54 = vrot.slane %v10758_v55, 3  ;;  %v4984_v0 = vrot.slane %v10762_v6, 1  ;;  %v2890_v61 = vadd.f32 %v10770_v47, %v8274_v21  ;;  %vm12629_vm5 = vmmov %vm12624_vm4  ;;  %v10813_v21 = vld [vmem:[#allocation3 + $0x30] sm:$0xff]  }
 0x1e8   : > { %v10778_v28 = vrot.slane %v4663_v27, 1  ;;  %v2987_v51 = vmax.f32 %v2887_v59, 0.0  ;;  %v6070_v9 = vsel %vm12625_vm1, %v6067_v14, %v6069_v60  ;;  %v12626_v56 = vrot.slane %v10533_v22, 1 }
 0x1e9   : > { %5866 = vrot.lane.b32.xlu1 %v5831_v18, %s8789_s26  ;;  %v2985_v43 = vmax.f32 %v2879_v63, 0.0  ;;  %v2882_v2 = vadd.f32 %v10770_v47, %v2881_v35  ;;  %vm12628_vm2 = vsmask.f32 7424  ;;  %v5221_v11 = vrot.slane %v10780_v31, 1 }
 0x1ea   : > { %v4983_v30 = vsel %vm12627_vm8, %v12626_v56, %v4982_v41  ;;  %v4666_v45 = vsel %vm12628_vm2, %v4661_v12, %v10778_v28  ;;  %v3744_v23 = vsel %vm10707_vm3, %v2987_v51, 0.0  ;;  %v2988_v15 = vmax.f32 %v2890_v61, 0.0  ;;  %v10818_v61 = vld [vmem:[#allocation3 + $0x30] sm:$0xff]  }
 0x1eb   : > { %6714 = vrot.lane.b32.xlu0 %v6679_v4, %s8794_s6  ;;  %v5487_v27 = vshrl.u32 %v8644_v10, 16  ;;  %v5490_v14 = vshll.u32 %v8644_v10, 16  ;;  %v8068_v52 = vpack.c.bf16 %v3744_v23, %v3744_v23  ;;  %v3742_v22 = vsel %vm10726_vm0, %v2985_v43, 0.0 }
 0x1ec   : > { %v2986_v59 = vmax.f32 %v2882_v2, 0.0  ;;  %v6681_v1 = vsel %vm12629_vm5, %v6678_v24, %v6680_v54  ;;  %v8066_v12 = vpack.c.bf16 %v3742_v22, %v3742_v22  ;;  %v3745_v18 = vsel %vm10731_vm14, %v2988_v15, 0.0  ;;  %vm12630_vm14 = vmmov %vm12627_vm8  ;;  %v8692_v2 = vld [vmem:[%s12460_s3] sm:$0xff]  }
 0x1ed   : > { %6105 = vrot.lane.b32.xlu1 %v6070_v9, %s8792_s29  ;;  %v5489_v33 = vrot.slane %v5487_v27, 1  ;;  %v5492_v63 = vrot.slane %v5490_v14, 2  ;;  %v4025_v4 = vshrl.u32 %v8068_v52, 16  ;;  %v4028_v10 = vshll.u32 %v8068_v52, 16  ;;  %v8647_v52 = vld [vmem:[#allocation3 + $0x28] sm:$0xff]   ;;  %8295 = vmatprep.subr.bf16.mxu1 %v8692_v2  ;;  %vm12632_vm5 = vmmov %vm12630_vm14 }
 0x1ee   : > { %v8069_v51 = vpack.c.bf16 %v3745_v18, %v3745_v18  ;;  %v3743_v38 = vsel %vm10745_vm11, %v2986_v59, 0.0  ;;  %vm3460_vm3 = vcmp.ne.s32.totalorder %v10387_v44, 0  ;;  %vm3496_vm0 = vcmp.lt.s32.totalorder %v10387_v44, 0  ;;  %v8648_v18 = vld [vmem:[#allocation3 + $0x30] sm:$0xff]   ;;  %8296 = vmatpush3.bf16.msra.mxu1 %v8692_v2 }
 0x1ef   : > { %5018 = vrot.lane.b32.xlu0 %v4983_v30, %s8788_s25  ;;  %v4005_v48 = vshrl.u32 %v8066_v12, 16  ;;  %v4008_v24 = vshll.u32 %v8066_v12, 16  ;;  %v8067_v35 = vpack.c.bf16 %v3743_v38, %v3743_v38  ;;  %v4985_v9 = vsel %vm12630_vm14, %v4982_v41, %v4984_v0  ;;  %v8695_v41 = vld [vmem:[%s12460_s3 + $0x8] sm:$0xff]  }
 0x1f0   : > { %vm3458_vm9 = vcmp.ne.s32.totalorder %v10401_v26, 0  ;;  %vm3494_vm10 = vcmp.lt.s32.totalorder %v10401_v26, 0  ;;  %v4027_v39 = vrot.slane %v4025_v4, 6  ;;  %v4030_v56 = vrot.slane %v4028_v10, 7  ;;  %v8712_v10 = vld [vmem:[#allocation3 + $0x28] sm:$0xff]   ;;  %8297 = vmatprep.subr.bf16.mxu1 %v8695_v41 }
 0x1f1   : > { %v4035_v30 = vshrl.u32 %v8069_v51, 16  ;;  %v4038_v43 = vshll.u32 %v8069_v51, 16  ;;  %4779 = vrot.lane.b32.xlu1 %v4666_v45, %s8790_s27  ;;  %vm3461_vm11 = vcmp.ne.s32.totalorder %v10404_v58, 0  ;;  %vm3497_vm4 = vcmp.lt.s32.totalorder %v10404_v58, 0 }
 0x1f2   : > { %v4007_v23 = vrot.slane %v4005_v48, 6  ;;  %v4010_v15 = vrot.slane %v4008_v24, 7  ;;  %v4015_v27 = vshrl.u32 %v8067_v35, 16  ;;  %v4018_v14 = vshll.u32 %v8067_v35, 16  ;;  %v8723_v35 = vld [vmem:[#allocation3 + $0x30] sm:$0xff]   ;;  %8298 = vmatpush3.bf16.msra.mxu1 %v8695_v41 }
 0x1f3   : > { %vm3459_vm1 = vcmp.ne.s32.totalorder %v10765_v36, 0  ;;  %vm3495_vm8 = vcmp.lt.s32.totalorder %v10765_v36, 0  ;;  %v4031_v45 = vor.u32 %v4030_v56, %v4027_v39  ;;  %v4037_v22 = vrot.slane %v4035_v30, 6  ;;  %6716 = vrot.lane.b32.xlu0 %v6681_v1, %s8794_s6  ;;  %v8698_v4 = vld [vmem:[%s12460_s3 + $0x10] ss:$0 sps:$4 sm:$0x33]  }
 0x1f4   : > { %v4040_v59 = vrot.slane %v4038_v43, 7  ;;  %v10839_v12 = vor.u32 %v5492_v63, %v5489_v33  ;;  %v4011_v51 = vor.u32 %v4010_v15, %v4007_v23  ;;  %v4017_v38 = vrot.slane %v4015_v27, 6  ;;  %v8649_v63 = vld [vmem:[#allocation3 + $0x30] sm:$0xff]  }
 0x1f5   : > { %v4020_v48 = vrot.slane %v4018_v14, 7  ;;  %v5832_v24 = vrot.slane %v10813_v21, 2  ;;  %v4033_v39 = vrot.slane %v4031_v45, 4  ;;  %5020 = vrot.lane.b32.xlu1 %v4985_v9, %s8788_s25  ;;  %v4667_v1 = vshrl.u32 %v10749_v20, 16 }
 0x1f6   : > { %v10845_v56 = vor.u32 %v4040_v59, %v4037_v22  ;;  %v4671_v33 = vshll.u32 %v10818_v61, 16  ;;  %vm12631_vm2 = vcmask 31744   ;;  %v4012_v30 = vsel %vm10143_vm15, %v4003_v19, %v4011_v51 }
 0x1f7   : > { %4480 = vst.msk [vmem:[#allocation2 + $0x28] sm:$0xff] %vm12631_vm2, %v8712_v10  ;;  %v4013_v43 = vrot.slane %v4011_v51, 4  ;;  %v4021_v2 = vor.u32 %v4020_v48, %v4017_v38  ;;  %v5222_v9 = vsel %vm12632_vm5, %v5219_v8, %v5221_v11  ;;  %vm12633_vm14 = vmmov %vm12631_vm2  ;;  %vm12635_vm2 = vsmask.f32 6400 }
 0x1f8   : > { %4481 = vst.msk [vmem:[#allocation2 + $0x30] sm:$0xff] %vm12633_vm14, %v8723_v35  ;;  %v4042_v20 = vsel %vm10143_vm15, %v4033_v39, %v10845_v56  ;;  %5257 = vrot.lane.b32.xlu0 %v5222_v9, %s8787_s24  ;;  %v5494_v25 = vsel %vm12635_vm2, %v10686_v29, %v10839_v12  ;;  %v4669_v19 = vor.u32 %v4667_v1, %v10778_v28  ;;  %v10870_v23 = vrot.slane %v4671_v33, 1  ;;  %vm10889_vm14 = vmand %vm3496_vm0, %vm3460_vm3 }
 0x1f9   : > { %4298 = vst.msk [vmem:[#allocation3 + $0x38] sm:$0xf] %vm12634_vm7, %v4012_v30  ;;  %v4022_v40 = vsel %vm10143_vm15, %v4013_v43, %v4021_v2  ;;  %v4023_v8 = vrot.slane %v4021_v2, 4  ;;  %v6328_v15 = vshrl.u32 %v8647_v52, 16  ;;  %v6331_v27 = vshll.u32 %v8647_v52, 16  ;;  %5627 = vrot.lane.b32.xlu1 %v5494_v25, %s8791_s28  ;;  %vm12641_vm2 = vmmov %vm12634_vm7 }
 0x1fa   : > { %4301 = vst.msk [vmem:[#allocation3 + $0x44] sm:$0xf] %vm12636_vm12, %v4042_v20  ;;  %vm12637_vm5 = vcmask 1045504   ;;  %v6337_v28 = vshrl.u32 %v8648_v18, 16  ;;  %v6340_v14 = vshll.u32 %v8648_v18, 16  ;;  %v5496_v22 = vshrl.u32 %v8649_v63, 16  ;;  %vm10912_vm0 = vmand %vm3497_vm4, %vm3461_vm11 }
 0x1fb   : > { %4299 = vst.msk [vmem:[#allocation3 + $0x3c] sm:$0xf] %vm12634_vm7, %v4022_v40  ;;  %v5833_v29 = vsel %vm12637_vm5, %v5830_v62, %v5832_v24  ;;  %vm12638_vm12 = vcmask 1041408   ;;  %v4032_v59 = vsel %vm10143_vm15, %v4023_v8, %v4031_v45  ;;  %v6330_v52 = vrot.slane %v6328_v15, 2  ;;  %vm10899_vm7 = vmand %vm3494_vm10, %vm3458_vm9 }
 0x1fc   : > { %8338 = vmatprep.subr.msk.bf16.mxu1 %vm12638_vm12, %v8698_v4  ;;  %v6333_v41 = vrot.slane %v6331_v27, 3  ;;  %v5499_v10 = vshll.u32 %v8649_v63, 16  ;;  %4300 = vst.msk [vmem:[#allocation3 + $0x40] sm:$0xf] %vm12641_vm2, %v4032_v59  ;;  %5868 = vrot.lane.b32.xlu0 %v5833_v29, %s8789_s26  ;;  %v6339_v57 = vrot.slane %v6337_v28, 2  ;;  %v6342_v62 = vrot.slane %v6340_v14, 3  ;;  %vm10925_vm9 = vmand %vm3495_vm8, %vm3459_vm1 }
 0x1fd   : > { %v5498_v18 = vrot.slane %v5496_v22, 1  ;;  %v10904_v4 = vadd.s32 168, %v9877_v32  ;;  %vm12644_vm3 = vsmask.f32 7424  ;;  %v3567_v1 = vadd.s32 18, %v10765_v36 }
 0x1fe   : > { %v4674_v38 = vsel %vm12644_vm3, %v4669_v19, %v10870_v23  ;;  %v6334_v48 = vor.u32 %v6333_v41, %v6330_v52  ;;  %v5501_v35 = vrot.slane %v5499_v10, 2  ;;  %v4043_v33 = vrot.slane %v10845_v56, 4 }
 0x1ff   : > { %4781 = vrot.lane.b32.xlu1 %v4674_v38, %s8790_s27  ;;  %v10919_v63 = vor.u32 %v6342_v62, %v6339_v57  ;;  %v10931_v43 = vsub.s32 %v10471_v34, %v10782_v3  ;;  %v3272_v2 = vshrl.u32 %v10719_v49, 4  ;;  %vm12649_vm10 = vsmask.f32 5376 }
 0x200   : > { %v6335_v9 = vsel %vm12649_vm10, %v10671_v42, %v6334_v48  ;;  %v10936_v20 = vor.u32 %v5501_v35, %v5498_v18  ;;  %v3604_v25 = vsel %vm10889_vm14, %v10440_v16, %v10387_v44  ;;  %v3602_v34 = vsel %vm10899_vm7, %v10465_v17, %v10401_v26  ;;  %vm12650_vm11 = vmmov %vm12649_vm10 }
 0x201   : > { %6475 = vrot.lane.b32.xlu0 %v6335_v9, %s8793_s30  ;;  %v6344_v49 = vsel %vm12650_vm11, %v6334_v48, %v10919_v63  ;;  %v3605_v42 = vsel %vm10912_vm0, %v10468_v50, %v10404_v58  ;;  %v4675_v19 = vshrl.u32 %v10818_v61, 16  ;;  %vm10957_vm4 = vcmp.lt.s32.totalorder %v3604_v25, 16 }
 0x202   : > { %v10949_v3 = vld [vmem:[#allocation3 + $0x38] sm:$0xff]   ;;  %v3603_v26 = vsel %vm10925_vm9, %v3567_v1, %v10765_v36  ;;  %v10967_v40 = vadd.s32 18, %v10931_v43  ;;  %v3273_v8 = vmul.u32 18, %v3272_v2  ;;  %vm12653_vm1 = vsmask.f32 6400 }
 0x203   : > { %6477 = vrot.lane.b32.xlu1 %v6344_v49, %s8793_s30  ;;  %v8651_v44 = vld [vmem:[#allocation3 + $0x38] sm:$0xff]   ;;  %v5503_v58 = vsel %vm12653_vm1, %v10839_v12, %v10936_v20  ;;  %v5223_v50 = vrot.slane %v10949_v3, 1  ;;  %vm10973_vm8 = vcmp.lt.s32.totalorder %v3602_v34, 16  ;;  %vm10978_vm5 = vcmp.lt.s32.totalorder %v3605_v42, 16  ;;  %v10983_v28 = vld [vmem:[#allocation3 + $0x40] sm:$0xff]  }
 0x204   : > { %v10964_v17 = vld [vmem:[#allocation3 + $0x38] sm:$0xff]   ;;  %v6071_v36 = vrot.slane %v8651_v44, 2  ;;  %vm12658_vm12 = vcmask 1046528   ;;  %vm10990_vm14 = vcmp.lt.s32.totalorder %v3603_v26, 16  ;;  %vm12661_vm2 = vcmask 1045504   ;;  %v11002_v57 = vld [vmem:[#allocation3 + $0x40] sm:$0xff]  }
 0x205   : > { %v8653_v15 = vld [vmem:[#allocation3 + $0x38] sm:$0xff]   ;;  %5629 = vrot.lane.b32.xlu0 %v5503_v58, %s8791_s28  ;;  %v5834_v29 = vrot.slane %v10964_v17, 2  ;;  %v5224_v12 = vsel %vm12658_vm12, %v5221_v11, %v5223_v50  ;;  %v6073_v10 = vrot.slane %v10983_v28, 2  ;;  %v8277_v11 = vpop.f32.mrb[16].mxu0  ;;  %v4677_v62 = vor.u32 %v4675_v19, %v10870_v23  ;;  %v11006_v18 = vld [vmem:[#allocation3 + $0x40] sm:$0xff]   ;;  %vm12662_vm7 = vmmov %vm12661_vm2 }
 0x206   : > { %v8655_v14 = vld [vmem:[#allocation3 + $0x38] sm:$0xff]   ;;  %v6682_v59 = vrot.slane %v8653_v15, 3  ;;  %v6072_v41 = vsel %vm12661_vm2, %v6069_v60, %v6071_v36  ;;  %v11009_v45 = vsub.s32 %v10655_v37, %v3273_v8  ;;  %v2903_v5 = vadd.f32 %v10770_v47, %v8277_v11  ;;  %v2894_v60 = vpop.f32.mrb[17].mxu0  ;;  %v11020_v39 = vld [vmem:[#allocation3 + $0x40] sm:$0xff]   ;;  %vm12664_vm0 = vmmov %vm12661_vm2 }
 0x207   : > { %v10994_v52 = vld [vmem:[#allocation3 + $0x38] sm:$0xff]   ;;  %5259 = vrot.lane.b32.xlu1 %v5224_v12, %s8787_s24  ;;  %v4986_v51 = vrot.slane %v8655_v14, 1  ;;  %v5835_v38 = vsel %vm12662_vm7, %v5832_v24, %v5834_v29  ;;  %v6684_v35 = vrot.slane %v11002_v57, 3  ;;  %v2895_v23 = vadd.f32 %v10770_v47, %v2894_v60  ;;  %v8278_v1 = vpop.f32.mrb[18].mxu0  ;;  %vm12665_vm9 = vmmov %vm12658_vm12  ;;  %v8666_v3 = vld [vmem:[#allocation3 + $0x40] sm:$0xff]  }
 0x208   : > { %v4679_v31 = vshll.u32 %v10994_v52, 16  ;;  %vm12663_vm3 = vcmask 1044480   ;;  %v6074_v21 = vsel %vm12664_vm0, %v6071_v36, %v6073_v10  ;;  %v4988_v24 = vrot.slane %v11006_v18, 1  ;;  %v8660_v30 = vld [vmem:[#allocation3 + $0x38] sm:$0xff]   ;;  %v2897_v25 = vpop.f32.mrb[19].mxu0  ;;  %vm12668_vm1 = vmmov %vm12665_vm9 }
 0x209   : > { %6107 = vrot.lane.b32.xlu0 %v6072_v41, %s8792_s29  ;;  %v6683_v37 = vsel %vm12663_vm3, %v6680_v54, %v6682_v59  ;;  %v2991_v2 = vmax.f32 %v2903_v5, 0.0  ;;  %v2906_v9 = vadd.f32 %v10770_v47, %v8278_v1  ;;  %v4987_v34 = vsel %vm12665_vm9, %v4984_v0, %v4986_v51  ;;  %vm12667_vm11 = vmmov %vm12663_vm3  ;;  %v11053_v41 = vld [vmem:[#allocation3 + $0x40] sm:$0xff]  }
 0x20a   : > { %v11017_v48 = vrot.slane %v4679_v31, 1  ;;  %vm12666_vm10 = vsmask.f32 7424  ;;  %v2989_v49 = vmax.f32 %v2895_v23, 0.0  ;;  %v2898_v54 = vadd.f32 %v10770_v47, %v2897_v25  ;;  %v11058_v5 = vld [vmem:[#allocation3 + $0x40] sm:$0xff]  }
 0x20b   : > { %5870 = vrot.lane.b32.xlu1 %v5835_v38, %s8789_s26  ;;  %v6685_v42 = vsel %vm12667_vm11, %v6682_v59, %v6684_v35  ;;  %v5225_v19 = vrot.slane %v11020_v39, 1  ;;  %v3748_v44 = vsel %vm10957_vm4, %v2991_v2, 0.0  ;;  %v2992_v6 = vmax.f32 %v2906_v9, 0.0 }
 0x20c   : > { %v4682_v55 = vsel %vm12666_vm10, %v4677_v62, %v11017_v48  ;;  %v5505_v26 = vshrl.u32 %v8660_v30, 16  ;;  %v5508_v0 = vshll.u32 %v8660_v30, 16  ;;  %v8072_v8 = vpack.c.bf16 %v3748_v44, %v3748_v44  ;;  %v8741_v44 = vld [vmem:[#allocation3 + $0x40] sm:$0xff]  }
 0x20d   : > { %6718 = vrot.lane.b32.xlu0 %v6683_v37, %s8794_s6  ;;  %v3746_v58 = vsel %vm10973_vm8, %v2989_v49, 0.0  ;;  %v2990_v15 = vmax.f32 %v2898_v54, 0.0  ;;  %v4989_v36 = vsel %vm12668_vm1, %v4986_v51, %v4988_v24  ;;  %v3749_v12 = vsel %vm10978_vm5, %v2992_v6, 0.0 }
 0x20e   : > { %v8070_v14 = vpack.c.bf16 %v3746_v58, %v3746_v58  ;;  %v5507_v16 = vrot.slane %v5505_v26, 1  ;;  %v5510_v59 = vrot.slane %v5508_v0, 2  ;;  %v4065_v31 = vshrl.u32 %v8072_v8, 16  ;;  %v8665_v58 = vld [vmem:[#allocation3 + $0x38] sm:$0xff]  }
 0x20f   : > { %6109 = vrot.lane.b32.xlu1 %v6074_v21, %s8792_s29  ;;  %v4068_v11 = vshll.u32 %v8072_v8, 16  ;;  %v8073_v62 = vpack.c.bf16 %v3749_v12, %v3749_v12  ;;  %v3747_v61 = vsel %vm10990_vm14, %v2990_v15, 0.0  ;;  %vm3464_vm4 = vcmp.ne.s32.totalorder %v10931_v43, 0  ;;  %vm12669_vm14 = vmmov %vm12668_vm1 }
 0x210   : > { %v4045_v60 = vshrl.u32 %v8070_v14, 16  ;;  %v4048_v51 = vshll.u32 %v8070_v14, 16  ;;  %v8071_v38 = vpack.c.bf16 %v3747_v61, %v3747_v61  ;;  %v11060_v23 = vor.u32 %v5510_v59, %v5507_v16  ;;  %v8667_v16 = vld [vmem:[#allocation3 + $0x40] sm:$0xff]  }
 0x211   : > { %5022 = vrot.lane.b32.xlu0 %v4987_v34, %s8788_s25  ;;  %vm3500_vm8 = vcmp.lt.s32.totalorder %v10931_v43, 0  ;;  %v4067_v27 = vrot.slane %v4065_v31, 6  ;;  %v4070_v1 = vrot.slane %v4068_v11, 7  ;;  %v4075_v37 = vshrl.u32 %v8073_v62, 16 }
 0x212   : > { %v4078_v21 = vshll.u32 %v8073_v62, 16  ;;  %vm3462_vm5 = vcmp.ne.s32.totalorder %v11009_v45, 0  ;;  %vm3498_vm12 = vcmp.lt.s32.totalorder %v11009_v45, 0  ;;  %v4047_v22 = vrot.slane %v4045_v60, 6 }
 0x213   : > { %4783 = vrot.lane.b32.xlu1 %v4682_v55, %s8790_s27  ;;  %v4050_v30 = vrot.slane %v4048_v51, 7  ;;  %v4055_v2 = vshrl.u32 %v8071_v38, 16  ;;  %v4058_v9 = vshll.u32 %v8071_v38, 16  ;;  %v4071_v25 = vor.u32 %v4070_v1, %v4067_v27  ;;  %v8730_v55 = vld [vmem:[#allocation3 + $0x38] sm:$0xff]  }
 0x214   : > { %v4077_v34 = vrot.slane %v4075_v37, 6  ;;  %v4080_v49 = vrot.slane %v4078_v21, 7  ;;  %v5226_v54 = vsel %vm12669_vm14, %v5223_v50, %v5225_v19  ;;  %v5836_v8 = vrot.slane %v11053_v41, 2 }
 0x215   : > { %6720 = vrot.lane.b32.xlu0 %v6685_v42, %s8794_s6  ;;  %v4051_v6 = vor.u32 %v4050_v30, %v4047_v22  ;;  %v4057_v26 = vrot.slane %v4055_v2, 6  ;;  %v4060_v0 = vrot.slane %v4058_v9, 7  ;;  %v4073_v15 = vrot.slane %v4071_v25, 4  ;;  %v5011_v11 = vpop.permute.xlu0 %5010 }
 0x216   : > { %v11074_v14 = vor.u32 %v4080_v49, %v4077_v34  ;;  %v4683_v42 = vshrl.u32 %v10994_v52, 16  ;;  %v4687_v12 = vshll.u32 %v11058_v5, 16  ;;  %vm12670_vm2 = vcmask 31744  }
 0x217   : > { %5024 = vrot.lane.b32.xlu1 %v4989_v36, %s8788_s25  ;;  %4482 = vst.msk [vmem:[#allocation2 + $0x38] sm:$0xff] %vm12670_vm2, %v8730_v55  ;;  %vm12671_vm7 = vmmov %vm12670_vm2  ;;  %v4052_v50 = vsel %vm10143_vm15, %v4043_v33, %v4051_v6  ;;  %v4053_v59 = vrot.slane %v4051_v6, 4  ;;  %v4061_v31 = vor.u32 %v4060_v0, %v4057_v26  ;;  %vm12672_vm3 = vsmask.f32 6400  ;;  %v5013_v38 = vpop.permute.xlu1 %5012 }
 0x218   : > { %4483 = vst.msk [vmem:[#allocation2 + $0x40] sm:$0xff] %vm12671_vm7, %v8741_v44  ;;  %v5512_v36 = vsel %vm12672_vm3, %v10936_v20, %v11060_v23  ;;  %vm12673_vm0 = vcmask 27648   ;;  %v4082_v52 = vsel %vm10143_vm15, %v4073_v15, %v11074_v14  ;;  %vm12674_vm9 = vcmask 1045504   ;;  %vm11116_vm2 = vmand %vm3500_vm8, %vm3464_vm4 }
 0x219   : > { %4302 = vst.msk [vmem:[#allocation3 + $0x48] sm:$0xf] %vm12673_vm0, %v4052_v50  ;;  %5261 = vrot.lane.b32.xlu0 %v5226_v54, %s8787_s24  ;;  %v5837_v56 = vsel %vm12674_vm9, %v5834_v29, %v5836_v8  ;;  %v4685_v33 = vor.u32 %v4683_v42, %v11017_v48  ;;  %v11099_v62 = vrot.slane %v4687_v12, 1  ;;  %vm12675_vm10 = vmmov %vm12673_vm0  ;;  %v4062_v20 = vsel %vm10143_vm15, %v4053_v59, %v4061_v31  ;;  %v4772_v30 = vpop.permute.xlu0 %4771 }
 0x21a   : > { %4305 = vst.msk [vmem:[#allocation3 + $0x54] sm:$0xf] %vm12675_vm10, %v4082_v52  ;;  %v4063_v61 = vrot.slane %v4061_v31, 4  ;;  %v6346_v60 = vshrl.u32 %v8665_v58, 16  ;;  %v6349_v51 = vshll.u32 %v8665_v58, 16  ;;  %vm12676_vm11 = vmmov %vm12673_vm0  ;;  %v6355_v29 = vshrl.u32 %v8666_v3, 16 }
 0x21b   : > { %4303 = vst.msk [vmem:[#allocation3 + $0x4c] sm:$0xf] %vm12676_vm11, %v4062_v20  ;;  %5631 = vrot.lane.b32.xlu1 %v5512_v36, %s8791_s28  ;;  %vm12677_vm1 = vsmask.f32 7424  ;;  %v6358_v48 = vshll.u32 %v8666_v3, 16  ;;  %v5514_v27 = vshrl.u32 %v8667_v16, 16  ;;  %vm12678_vm14 = vmmov %vm12673_vm0  ;;  %v4774_v0 = vpop.permute.xlu1 %4773  ;;  %v3608_v59 = vsel %vm11116_vm2, %v10967_v40, %v10931_v43 }
 0x21c   : > { %v4690_v17 = vsel %vm12677_vm1, %v4685_v33, %v11099_v62  ;;  %v4072_v1 = vsel %vm10143_vm15, %v4063_v61, %v4071_v25  ;;  %v6348_v37 = vrot.slane %v6346_v60, 2  ;;  %v6351_v21 = vrot.slane %v6349_v51, 3  ;;  %vm11126_vm3 = vmand %vm3498_vm12, %vm3462_vm5 }
 0x21d   : > { %v5517_v22 = vshll.u32 %v8667_v16, 16  ;;  %4304 = vst.msk [vmem:[#allocation3 + $0x50] sm:$0xf] %vm12678_vm14, %v4072_v1  ;;  %5872 = vrot.lane.b32.xlu0 %v5837_v56, %s8789_s26  ;;  %v6357_v2 = vrot.slane %v6355_v29, 2  ;;  %v6360_v9 = vrot.slane %v6358_v48, 3  ;;  %v5516_v34 = vrot.slane %v5514_v27, 1  ;;  %v5250_v31 = vpop.permute.xlu0 %5249 }
 0x21e   : > { %v3570_v25 = vadd.s32 18, %v11009_v45  ;;  %vm12681_vm7 = vcmask 64544   ;;  %v6352_v54 = vor.u32 %v6351_v21, %v6348_v37  ;;  %vm12684_vm4 = vcmask 97344  }
 0x21f   : > { %4825 = vst.msk [vmem:[#allocation2] sm:$0xff] %vm12681_vm7, %v4772_v30  ;;  %v5519_v55 = vrot.slane %v5517_v22, 2  ;;  %v11131_v6 = vmul.u32.u64.low 3817748708, %v10683_v13  ;;  %v11132_v26 = vmul.u32.u64.high 3817748708, %v10683_v13, %v11131_v6  ;;  %4785 = vrot.lane.b32.xlu1 %v4690_v17, %s8790_s27  ;;  %v11136_v58 = vor.u32 %v6360_v9, %v6357_v2  ;;  %vm12685_vm8 = vmmov %vm12681_vm7 }
 0x220   : > { %5064 = vst.msk [vmem:[#allocation2] sm:$0xff] %vm12684_vm4, %v5011_v11  ;;  %v11139_v15 = vmul.u32.u64.low 3817748708, %v10904_v4  ;;  %v11140_v42 = vmul.u32.u64.high 3817748708, %v10904_v4, %v11139_v15  ;;  %v11143_v12 = vadd.s32 208, %v9877_v32  ;;  %v4083_v3 = vrot.slane %v11074_v14, 4  ;;  %vm12687_vm12 = vmmov %vm12684_vm4 }
 0x221   : > { %4826 = vst.msk [vmem:[#allocation2 + $0x8] sm:$0xff] %vm12685_vm8, %v4774_v0  ;;  %vm12686_vm5 = vsmask.f32 5376  ;;  %v11149_v50 = vor.u32 %v5519_v55, %v5516_v34  ;;  %v3606_v36 = vsel %vm11126_vm3, %v3570_v25, %v11009_v45  ;;  %vm12688_vm0 = vcmask 130144   ;;  %v5861_v29 = vpop.permute.xlu0 %5860 }
 0x222   : > { %v6353_v16 = vsel %vm12686_vm5, %v10919_v63, %v6352_v54  ;;  %5065 = vst.msk [vmem:[#allocation2 + $0x8] sm:$0xff] %vm12687_vm12, %v5013_v38  ;;  %vm12689_vm9 = vmmov %vm12686_vm5  ;;  %v11163_v52 = vld [vmem:[#allocation3 + $0x48] sm:$0xff]   ;;  %v3305_v11 = vshrl.u32 %v11132_v26, 4  ;;  %vm11167_vm10 = vcmp.lt.s32.totalorder %v3608_v59, 16  ;;  %v3283_v56 = vshrl.u32 %v11140_v42, 4 }
 0x223   : > { %6479 = vrot.lane.b32.xlu0 %v6353_v16, %s8793_s30  ;;  %5303 = vst.msk [vmem:[#allocation2] sm:$0xff] %vm12688_vm0, %v5250_v31  ;;  %v6362_v63 = vsel %vm12689_vm9, %v6352_v54, %v11136_v58  ;;  %v8669_v43 = vld [vmem:[#allocation3 + $0x48] sm:$0xff]   ;;  %v4691_v45 = vshrl.u32 %v11058_v5, 16  ;;  %vm12692_vm11 = vsmask.f32 6400  ;;  %v5227_v61 = vrot.slane %v11163_v52, 1 }
 0x224   : > { %6481 = vrot.lane.b32.xlu1 %v6362_v63, %s8793_s30  ;;  %v11172_v33 = vld [vmem:[#allocation3 + $0x48] sm:$0xff]   ;;  %v5521_v20 = vsel %vm12692_vm11, %v11060_v23, %v11149_v50  ;;  %vm11179_vm1 = vcmp.lt.s32.totalorder %v3606_v36, 16  ;;  %v3306_v51 = vmul.u32 18, %v3305_v11  ;;  %v11185_v17 = vld [vmem:[#allocation3 + $0x50] sm:$0xff]   ;;  %v6075_v48 = vrot.slane %v8669_v43, 2  ;;  %v8281_v28 = vpop.f32.mrb[20].mxu0 }
 0x225   : > { %v11183_v38 = vld [vmem:[#allocation3 + $0x48] sm:$0xff]   ;;  %v3284_v5 = vmul.u32 18, %v3283_v56  ;;  %v5838_v27 = vrot.slane %v11172_v33, 2  ;;  %vm12695_vm14 = vcmask 1046528   ;;  %v6077_v22 = vrot.slane %v11185_v17, 2  ;;  %v11210_v49 = vld [vmem:[#allocation3 + $0x50] sm:$0xff]  }
 0x226   : > { %v8673_v1 = vld [vmem:[#allocation3 + $0x48] sm:$0xff]   ;;  %v5228_v23 = vsel %vm12695_vm14, %v5225_v19, %v5227_v61  ;;  %v3307_v37 = vsub.s32 %v10683_v13, %v3306_v51  ;;  %v6686_v21 = vrot.slane %v11183_v38, 3  ;;  %vm12696_vm2 = vcmask 1045504   ;;  %v2910_v25 = vpop.f32.mrb[21].mxu0  ;;  %v11229_v0 = vld [vmem:[#allocation3 + $0x50] sm:$0xff]  }
 0x227   : > { %5633 = vrot.lane.b32.xlu0 %v5521_v20, %s8791_s28  ;;  %v6076_v30 = vsel %vm12696_vm2, %v6073_v10, %v6075_v48  ;;  %v3285_v2 = vsub.s32 %v10904_v4, %v3284_v5  ;;  %v4990_v9 = vrot.slane %v8673_v1, 1  ;;  %v11202_v34 = vld [vmem:[#allocation3 + $0x48] sm:$0xff]   ;;  %v4693_v39 = vor.u32 %v4691_v45, %v11099_v62  ;;  %vm12697_vm4 = vmmov %vm12696_vm2  ;;  %v5622_v54 = vpop.permute.xlu0 %5621  ;;  %v8282_v6 = vpop.f32.mrb[22].mxu0  ;;  %v11245_v56 = vld [vmem:[#allocation3 + $0x50] sm:$0xff]  }
 0x228   : > { %5263 = vrot.lane.b32.xlu1 %v5228_v23, %s8787_s24  ;;  %vm3465_vm7 = vcmp.ne.s32.totalorder %v3307_v37, 0  ;;  %vm3501_vm3 = vcmp.lt.s32.totalorder %v3307_v37, 0  ;;  %v3573_v13 = vadd.s32 18, %v3307_v37  ;;  %v5839_v19 = vsel %vm12697_vm4, %v5836_v8, %v5838_v27  ;;  %vm12699_vm11 = vmmov %vm12696_vm2  ;;  %v2913_v16 = vpop.f32.mrb[23].mxu0  ;;  %v8678_v45 = vld [vmem:[#allocation3 + $0x48] sm:$0xff]  }
 0x229   : > { %vm3537_vm8 = vmand %vm3501_vm3, %vm3465_vm7  ;;  %vm3463_vm5 = vcmp.ne.s32.totalorder %v3285_v2, 0  ;;  %vm3499_vm12 = vcmp.lt.s32.totalorder %v3285_v2, 0  ;;  %v3571_v4 = vadd.s32 18, %v3285_v2  ;;  %vm12698_vm0 = vcmask 1044480  }
 0x22a   : > { %v6687_v10 = vsel %vm12698_vm0, %v6684_v35, %v6686_v21  ;;  %v2919_v62 = vadd.f32 %v10770_v47, %v8281_v28  ;;  %v3609_v41 = vsel %vm3537_vm8, %v3573_v13, %v3307_v37  ;;  %vm3535_vm9 = vmand %vm3499_vm12, %vm3463_vm5  ;;  %v6078_v8 = vsel %vm12699_vm11, %v6075_v48, %v6077_v22 }
 0x22b   : > { %6111 = vrot.lane.b32.xlu0 %v6076_v30, %s8792_s29  ;;  %v4695_v55 = vshll.u32 %v11202_v34, 16  ;;  %v2911_v44 = vadd.f32 %v10770_v47, %v2910_v25  ;;  %vm12700_vm14 = vcmask 162944   ;;  %vm11223_vm2 = vcmp.lt.s32.totalorder %v3609_v41, 16  ;;  %vm12708_vm5 = vmmov %vm12698_vm0 }
 0x22c   : > { %5675 = vst.msk [vmem:[#allocation2] sm:$0xff] %vm12700_vm14, %v5622_v54  ;;  %v3607_v35 = vsel %vm3535_vm9, %v3571_v4, %v3285_v2  ;;  %5874 = vrot.lane.b32.xlu1 %v5839_v19, %s8789_s26  ;;  %v6688_v26 = vrot.slane %v11210_v49, 3  ;;  %v2995_v15 = vmax.f32 %v2919_v62, 0.0  ;;  %vm12703_vm7 = vcmask 195744   ;;  %v8679_v2 = vld [vmem:[#allocation3 + $0x48] sm:$0xff]  }
 0x22d   : > { %5914 = vst.msk [vmem:[#allocation2] sm:$0xff] %vm12703_vm7, %v5861_v29  ;;  %v2922_v42 = vadd.f32 %v10770_v47, %v8282_v6  ;;  %vm11233_vm3 = vcmp.lt.s32.totalorder %v3607_v35, 16  ;;  %v11237_v31 = vrot.slane %v4695_v55, 1  ;;  %v2993_v36 = vmax.f32 %v2911_v44, 0.0  ;;  %v11273_v35 = vld [vmem:[#allocation3 + $0x50] sm:$0xff]  }
 0x22e   : > { %v2914_v63 = vadd.f32 %v10770_v47, %v2913_v16  ;;  %vm12706_vm4 = vcmask 1046528   ;;  %v4992_v43 = vrot.slane %v11229_v0, 1  ;;  %v3752_v20 = vsel %vm11167_vm10, %v2995_v15, 0.0  ;;  %v8748_v16 = vld [vmem:[#allocation3 + $0x48] sm:$0xff]  }
 0x22f   : > { %6722 = vrot.lane.b32.xlu0 %v6687_v10, %s8794_s6  ;;  %v4991_v11 = vsel %vm12706_vm4, %v4988_v24, %v4990_v9  ;;  %v2996_v51 = vmax.f32 %v2922_v42, 0.0  ;;  %vm12707_vm8 = vsmask.f32 7424  ;;  %v6689_v47 = vsel %vm12708_vm5, %v6686_v21, %v6688_v26  ;;  %vm12709_vm12 = vmmov %vm12706_vm4 }
 0x230   : > { %v4698_v38 = vsel %vm12707_vm8, %v4693_v39, %v11237_v31  ;;  %v8076_v29 = vpack.c.bf16 %v3752_v20, %v3752_v20  ;;  %v3750_v18 = vsel %vm11179_vm1, %v2993_v36, 0.0  ;;  %v2994_v24 = vmax.f32 %v2914_v63, 0.0  ;;  %6113 = vrot.lane.b32.xlu1 %v6078_v8, %s8792_s29  ;;  %vm12710_vm10 = vmmov %vm12706_vm4  ;;  %v8681_v20 = vld [vmem:[#allocation3 + $0x50] sm:$0xff]  }
 0x231   : > { %v4993_v40 = vsel %vm12709_vm12, %v4990_v9, %v4992_v43  ;;  %v8074_v48 = vpack.c.bf16 %v3750_v18, %v3750_v18  ;;  %v3753_v5 = vsel %vm11223_vm2, %v2996_v51, 0.0  ;;  %v5229_v1 = vrot.slane %v11245_v56, 1  ;;  %v8682_v51 = vld [vmem:[#allocation3 + $0x50] sm:$0xff]  }
 0x232   : > { %v5523_v23 = vshrl.u32 %v8678_v45, 16  ;;  %v4105_v37 = vshrl.u32 %v8076_v29, 16  ;;  %v4108_v21 = vshll.u32 %v8076_v29, 16  ;;  %v8077_v30 = vpack.c.bf16 %v3753_v5, %v3753_v5 }
 0x233   : > { %v3751_v60 = vsel %vm11233_vm3, %v2994_v24, 0.0  ;;  %5026 = vrot.lane.b32.xlu0 %v4991_v11, %s8788_s25  ;;  %v4085_v39 = vshrl.u32 %v8074_v48, 16  ;;  %v4088_v13 = vshll.u32 %v8074_v48, 16  ;;  %v5230_v9 = vsel %vm12710_vm10, %v5227_v61, %v5229_v1 }
 0x234   : > { %v8075_v19 = vpack.c.bf16 %v3751_v60, %v3751_v60  ;;  %v4107_v28 = vrot.slane %v4105_v37, 6  ;;  %v4110_v4 = vrot.slane %v4108_v21, 7  ;;  %v4115_v10 = vshrl.u32 %v8077_v30, 16  ;;  %4787 = vrot.lane.b32.xlu1 %v4698_v38, %s8790_s27  ;;  %v8763_v38 = vld [vmem:[#allocation3 + $0x50] sm:$0xff]  }
 0x235   : > { %v4118_v62 = vshll.u32 %v8077_v30, 16  ;;  %v4087_v25 = vrot.slane %v4085_v39, 6  ;;  %v4090_v54 = vrot.slane %v4088_v13, 7  ;;  %v5525_v57 = vrot.slane %v5523_v23, 1  ;;  %v11297_v60 = vld [vmem:[#allocation3 + $0x50] sm:$0xff]  }
 0x236   : > { %v4095_v41 = vshrl.u32 %v8075_v19, 16  ;;  %v4098_v8 = vshll.u32 %v8075_v19, 16  ;;  %v4111_v55 = vor.u32 %v4110_v4, %v4107_v28  ;;  %v4117_v44 = vrot.slane %v4115_v10, 6  ;;  %v6100_v37 = vpop.permute.xlu0 %6099 }
 0x237   : > { %v4120_v6 = vrot.slane %v4118_v62, 7  ;;  %6724 = vrot.lane.b32.xlu0 %v6689_v47, %s8794_s6  ;;  %v4091_v52 = vor.u32 %v4090_v54, %v4087_v25  ;;  %v5526_v42 = vshll.u32 %v8678_v45, 16  ;;  %v6364_v63 = vshrl.u32 %v8679_v2, 16 }
 0x238   : > { %v4097_v61 = vrot.slane %v4095_v41, 6  ;;  %v4100_v15 = vrot.slane %v4098_v8, 7  ;;  %v4113_v59 = vrot.slane %v4111_v55, 4  ;;  %5028 = vrot.lane.b32.xlu1 %v4993_v40, %s8788_s25  ;;  %v6367_v11 = vshll.u32 %v8679_v2, 16  ;;  %v5252_v40 = vpop.permute.xlu1 %5251 }
 0x239   : > { %v11275_v36 = vor.u32 %v4120_v6, %v4117_v44  ;;  %v4092_v47 = vsel %vm10143_vm15, %v4083_v3, %v4091_v52  ;;  %v4093_v29 = vrot.slane %v4091_v52, 4  ;;  %v5528_v24 = vrot.slane %v5526_v42, 2 }
 0x23a   : > { %v4101_v18 = vor.u32 %v4100_v15, %v4097_v61  ;;  %vm12711_vm1 = vcmask 31744   ;;  %vm12712_vm0 = vcmask 27648   ;;  %v6366_v48 = vrot.slane %v6364_v63, 2  ;;  %v11316_v8 = vpop.permute.xlu0 %6710 }
 0x23b   : > { %4484 = vst.msk [vmem:[#allocation2 + $0x48] sm:$0xff] %vm12711_vm1, %v8748_v16  ;;  %v4122_v45 = vsel %vm10143_vm15, %v4113_v59, %v11275_v36  ;;  %5265 = vrot.lane.b32.xlu0 %v5230_v9, %s8787_s24  ;;  %v6369_v5 = vrot.slane %v6367_v11, 3  ;;  %v11289_v14 = vadd.s32 192, %v9877_v32  ;;  %vm12713_vm9 = vmmov %vm12711_vm1  ;;  %vm12715_vm14 = vcmask 130144  }
 0x23c   : > { %4306 = vst.msk [vmem:[#allocation3 + $0x58] sm:$0xf] %vm12712_vm0, %v4092_v47  ;;  %vm12714_vm11 = vmmov %vm12712_vm0  ;;  %v4102_v3 = vsel %vm10143_vm15, %v4093_v29, %v4101_v18  ;;  %v4103_v23 = vrot.slane %v4101_v18, 4  ;;  %v5529_v21 = vor.u32 %v5528_v24, %v5525_v57  ;;  %v4699_v30 = vshrl.u32 %v11202_v34, 16  ;;  %v11311_v62 = vpop.permute.xlu1 %5862 }
 0x23d   : > { %4485 = vst.msk [vmem:[#allocation2 + $0x50] sm:$0xff] %vm12713_vm9, %v8763_v38  ;;  %vm12716_vm2 = vmmov %vm12712_vm0  ;;  %vm12717_vm7 = vcmask 228544   ;;  %v6370_v2 = vor.u32 %v6369_v5, %v6366_v48  ;;  %v4703_v39 = vshll.u32 %v11273_v35, 16  ;;  %v5532_v13 = vshrl.u32 %v8681_v20, 16 }
 0x23e   : > { %4309 = vst.msk [vmem:[#allocation3 + $0x64] sm:$0xf] %vm12714_vm11, %v4122_v45  ;;  %v5535_v19 = vshll.u32 %v8681_v20, 16  ;;  %v4112_v9 = vsel %vm10143_vm15, %v4103_v23, %v4111_v55  ;;  %vm12718_vm3 = vsmask.f32 6400  ;;  %v4701_v4 = vor.u32 %v4699_v30, %v11237_v31  ;;  %vm12719_vm4 = vmmov %vm12712_vm0  ;;  %v5015_v11 = vpop.permute.xlu0 %5014 }
 0x23f   : > { %5304 = vst.msk [vmem:[#allocation2 + $0x8] sm:$0xff] %vm12715_vm14, %v5252_v40  ;;  %v5530_v28 = vsel %vm12718_vm3, %v11149_v50, %v5529_v21  ;;  %v6373_v34 = vshrl.u32 %v8682_v51, 16  ;;  %vm12720_vm8 = vsmask.f32 5376  ;;  %v11313_v25 = vrot.slane %v4703_v39, 1  ;;  %vm12722_vm12 = vmmov %vm12718_vm3 }
 0x240   : > { %4307 = vst.msk [vmem:[#allocation3 + $0x5c] sm:$0xf] %vm12716_vm2, %v4102_v3  ;;  %5635 = vrot.lane.b32.xlu1 %v5530_v28, %s8791_s28  ;;  %v6371_v10 = vsel %vm12720_vm8, %v11136_v58, %v6370_v2  ;;  %v5534_v54 = vrot.slane %v5532_v13, 1  ;;  %v5537_v41 = vrot.slane %v5535_v19, 2  ;;  %v6376_v31 = vshll.u32 %v8682_v51, 16  ;;  %v11336_v16 = vpop.permute.xlu1 %6101  ;;  %vm12723_vm10 = vmmov %vm12720_vm8 }
 0x241   : > { %6153 = vst.msk [vmem:[#allocation2] sm:$0xff] %vm12717_vm7, %v6100_v37  ;;  %6483 = vrot.lane.b32.xlu0 %v6371_v10, %s8793_s30  ;;  %v6375_v50 = vrot.slane %v6373_v34, 2  ;;  %v5840_v55 = vrot.slane %v11297_v60, 2  ;;  %v11322_v6 = vmul.u32.u64.low 3817748708, %v11143_v12  ;;  %v11323_v57 = vmul.u32.u64.high 3817748708, %v11143_v12, %v11322_v6 }
 0x242   : > { %4308 = vst.msk [vmem:[#allocation3 + $0x60] sm:$0xf] %vm12719_vm4, %v4112_v9  ;;  %v11319_v44 = vor.u32 %v5537_v41, %v5534_v54  ;;  %v11326_v58 = vadd.s32 216, %v9877_v32  ;;  %vm12721_vm5 = vsmask.f32 7424  ;;  %v6378_v61 = vrot.slane %v6376_v31, 3  ;;  %v11372_v39 = vpop.permute.xlu0 %6712 }
 0x243   : > { %v4706_v52 = vsel %vm12721_vm5, %v4701_v4, %v11313_v25  ;;  %v11331_v15 = vadd.s32 200, %v9877_v32  ;;  %v11339_v59 = vmul.u32.u64.low 3817748708, %v11289_v14  ;;  %v11340_v63 = vmul.u32.u64.high 3817748708, %v11289_v14, %v11339_v59  ;;  %v8285_v10 = vpop.f32.mrb[24].mxu0  ;;  %v11400_v54 = vld [vmem:[%s12459_s2] ss:$0 sm:$0xff] }
 0x244   : > { %4789 = vrot.lane.b32.xlu1 %v4706_v52, %s8790_s27  ;;  %v5539_v42 = vsel %vm12722_vm12, %v5529_v21, %v11319_v44  ;;  %v11343_v20 = vor.u32 %v6378_v61, %v6375_v50  ;;  %v3338_v47 = vshrl.u32 %v11323_v57, 4  ;;  %vm12724_vm1 = vcmask 1045504   ;;  %v4776_v23 = vpop.permute.xlu1 %4775  ;;  %v2926_v50 = vpop.f32.mrb[25].mxu0 }
 0x245   : > { %5637 = vrot.lane.b32.xlu0 %v5539_v42, %s8791_s28  ;;  %v11351_v29 = vmul.u32.u64.low 3817748708, %v11326_v58  ;;  %v11352_v18 = vmul.u32.u64.high 3817748708, %v11326_v58, %v11351_v29  ;;  %v11358_v40 = vmul.u32.u64.low 3817748708, %v11331_v15  ;;  %v11359_v48 = vmul.u32.u64.high 3817748708, %v11331_v15, %v11358_v40  ;;  %vm12728_vm14 = vmmov %vm12724_vm1  ;;  %v8286_v61 = vpop.f32.mrb[26].mxu0 }
 0x246   : > { %v6380_v24 = vsel %vm12723_vm10, %v6370_v2, %v11343_v20  ;;  %v5841_v3 = vsel %vm12724_vm1, %v5838_v27, %v5840_v55  ;;  %v3339_v21 = vmul.u32 18, %v3338_v47  ;;  %v3316_v30 = vshrl.u32 %v11340_v63, 4  ;;  %vm12729_vm2 = vmmov %vm12724_vm1  ;;  %v5254_v31 = vpop.permute.xlu0 %5253  ;;  %v2929_v47 = vpop.f32.mrb[27].mxu0 }
 0x247   : > { %v11345_v51 = vld [vmem:[#allocation3 + $0x58] sm:$0xff]   ;;  %v4123_v2 = vrot.slane %v11275_v36, 4  ;;  %vm12725_vm0 = vcmask 64544   ;;  %vm12726_vm9 = vcmask 1046528   ;;  %vm12727_vm11 = vcmask 97344  }
 0x248   : > { %v11347_v38 = vld [vmem:[#allocation3 + $0x58] sm:$0xff]   ;;  %v5231_v45 = vrot.slane %v11345_v51, 1  ;;  %6485 = vrot.lane.b32.xlu1 %v6380_v24, %s8793_s30  ;;  %4827 = vst.msk [vmem:[#allocation2 + $0x10] sm:$0xff] %vm12725_vm0, %v4776_v23  ;;  %v3340_v19 = vsub.s32 %v11143_v12, %v3339_v21  ;;  %v3317_v9 = vmul.u32 18, %v3316_v30  ;;  %v3349_v28 = vshrl.u32 %v11352_v18, 4  ;;  %v11394_v12 = vpop.permute.xlu1 %5016 }
 0x249   : > { %v11361_v5 = vld [vmem:[#allocation3 + $0x58] sm:$0xff]   ;;  %v6079_v37 = vrot.slane %v11347_v38, 2  ;;  %5876 = vrot.lane.b32.xlu0 %v5841_v3, %s8789_s26  ;;  %5066 = vst.msk [vmem:[#allocation2 + $0x10] sm:$0xff] %vm12727_vm11, %v5015_v11  ;;  %v3327_v4 = vshrl.u32 %v11359_v48, 4  ;;  %v2935_v41 = vadd.f32 %v11400_v54, %v8285_v10  ;;  %vm12730_vm12 = vcmask 130144  }
 0x24a   : > { %v8688_v60 = vld [vmem:[#allocation3 + $0x58] sm:$0xff]   ;;  %v5232_v33 = vsel %vm12726_vm9, %v5229_v1, %v5231_v45  ;;  %v5842_v27 = vrot.slane %v11361_v5, 2  ;;  %vm3468_vm7 = vcmp.ne.s32.totalorder %v3340_v19, 0  ;;  %vm3504_vm3 = vcmp.lt.s32.totalorder %v3340_v19, 0  ;;  %5305 = vst.msk [vmem:[#allocation2 + $0x10] sm:$0xff] %vm12730_vm12, %v5254_v31 }
 0x24b   : > { %v6080_v13 = vsel %vm12728_vm14, %v6077_v22, %v6079_v37  ;;  %v6382_v1 = vshrl.u32 %v8688_v60, 16  ;;  %v6385_v34 = vshll.u32 %v8688_v60, 16  ;;  %v3576_v17 = vadd.s32 18, %v3340_v19  ;;  %vm3540_vm4 = vmand %vm3504_vm3, %vm3468_vm7 }
 0x24c   : > { %v5843_v56 = vsel %vm12729_vm2, %v5840_v55, %v5842_v27  ;;  %5267 = vrot.lane.b32.xlu1 %v5232_v33, %s8787_s24  ;;  %v3318_v22 = vsub.s32 %v11289_v14, %v3317_v9  ;;  %v3350_v55 = vmul.u32 18, %v3349_v28  ;;  %v3328_v6 = vmul.u32 18, %v3327_v4  ;;  %v5624_v48 = vpop.permute.xlu1 %5623  ;;  %v8689_v33 = vld [vmem:[#allocation3 + $0x58] sm:$0xff]  }
 0x24d   : > { %6115 = vrot.lane.b32.xlu0 %v6080_v13, %s8792_s29  ;;  %v6384_v57 = vrot.slane %v6382_v1, 2  ;;  %v3612_v52 = vsel %vm3540_vm4, %v3576_v17, %v3340_v19  ;;  %v2927_v14 = vadd.f32 %v11400_v54, %v2926_v50  ;;  %v2999_v42 = vmax.f32 %v2935_v41, 0.0  ;;  %v11419_v60 = vpop.permute.xlu0 %5864  ;;  %v11430_v28 = vld [vmem:[#allocation3 + $0x58] sm:$0xff]  }
 0x24e   : > { %vm3466_vm8 = vcmp.ne.s32.totalorder %v3318_v22, 0  ;;  %vm3502_vm5 = vcmp.lt.s32.totalorder %v3318_v22, 0  ;;  %vm3648_vm10 = vcmp.lt.s32.totalorder %v3612_v52, 16  ;;  %v3574_v63 = vadd.s32 18, %v3318_v22  ;;  %v8766_v13 = vld [vmem:[#allocation3 + $0x58] sm:$0xff]  }
 0x24f   : > { %vm11405_vm1 = vmand %vm3502_vm5, %vm3466_vm8  ;;  %v2938_v11 = vadd.f32 %v11400_v54, %v8286_v61  ;;  %v2997_v29 = vmax.f32 %v2927_v14, 0.0  ;;  %v3351_v18 = vsub.s32 %v11326_v58, %v3350_v55  ;;  %v11412_v24 = vadd.f32 %v11400_v54, %v2929_v47  ;;  %v8699_v17 = vld [vmem:[#allocation3 + $0x58] sm:$0xff]  }
 0x250   : > { %v3329_v40 = vsub.s32 %v11331_v15, %v3328_v6  ;;  %5878 = vrot.lane.b32.xlu1 %v5843_v56, %s8789_s26  ;;  %v3756_v3 = vsel %vm3648_vm10, %v2999_v42, 0.0  ;;  %v3610_v23 = vsel %vm11405_vm1, %v3574_v63, %v3318_v22  ;;  %v6387_v30 = vrot.slane %v6385_v34, 3  ;;  %v4778_v34 = vpop.permute.xlu1 %4777 }
 0x251   : > { %v3000_v21 = vmax.f32 %v2938_v11, 0.0  ;;  %vm12733_vm0 = vcmask 162944   ;;  %v8080_v58 = vpack.c.bf16 %v3756_v3, %v3756_v3  ;;  %vm3646_vm9 = vcmp.lt.s32.totalorder %v3610_v23, 16  ;;  %v6472_v52 = vpop.permute.xlu0 %6471 }
 0x252   : > { %5676 = vst.msk [vmem:[#allocation2 + $0x8] sm:$0xff] %vm12733_vm0, %v5624_v48  ;;  %vm3469_vm11 = vcmp.ne.s32.totalorder %v3351_v18, 0  ;;  %vm3505_vm14 = vcmp.lt.s32.totalorder %v3351_v18, 0  ;;  %vm12734_vm2 = vcmask 195744   ;;  %v3754_v15 = vsel %vm3646_vm9, %v2997_v29, 0.0 }
 0x253   : > { %5915 = vst.msk [vmem:[#allocation2 + $0x8] sm:$0xff] %vm12734_vm2, %v11311_v62  ;;  %vm11423_vm7 = vmand %vm3505_vm14, %vm3469_vm11  ;;  %v3577_v19 = vadd.s32 18, %v3351_v18  ;;  %v2998_v9 = vmax.f32 %v11412_v24, 0.0  ;;  %vm3467_vm3 = vcmp.ne.s32.totalorder %v3329_v40, 0  ;;  %vm12737_vm4 = vcmask 228544   ;;  %v11432_v62 = vld [vmem:[#allocation3 + $0x60] sm:$0xff]  }
 0x254   : > { %6154 = vst.msk [vmem:[#allocation2 + $0x8] sm:$0xff] %vm12737_vm4, %v11336_v16  ;;  %v4145_v4 = vshrl.u32 %v8080_v58, 16  ;;  %v4148_v56 = vshll.u32 %v8080_v58, 16  ;;  %v8078_v1 = vpack.c.bf16 %v3754_v15, %v3754_v15  ;;  %vm3503_vm8 = vcmp.lt.s32.totalorder %v3329_v40, 0  ;;  %v6474_v47 = vpop.permute.xlu1 %6473  ;;  %v8696_v24 = vld [vmem:[#allocation3 + $0x60] sm:$0xff]  }
 0x255   : > { %v3613_v10 = vsel %vm11423_vm7, %v3577_v19, %v3351_v18  ;;  %vm11436_vm5 = vmand %vm3503_vm8, %vm3467_vm3  ;;  %v3575_v22 = vadd.s32 18, %v3329_v40  ;;  %v11440_v41 = vor.u32 %v6387_v30, %v6384_v57  ;;  %v5541_v16 = vshrl.u32 %v8689_v33, 16 }
 0x256   : > { %vm12740_vm12 = vcmask 64544   ;;  %v4147_v50 = vrot.slane %v4145_v4, 6  ;;  %v4150_v31 = vrot.slane %v4148_v56, 7  ;;  %v4125_v55 = vshrl.u32 %v8078_v1, 16  ;;  %v8770_v4 = vld [vmem:[#allocation3 + $0x60] sm:$0xff]  }
 0x257   : > { %4828 = vst.msk [vmem:[#allocation2 + $0x18] sm:$0xff] %vm12740_vm12, %v4778_v34  ;;  %v4128_v6 = vshll.u32 %v8078_v1, 16  ;;  %vm12741_vm10 = vcmask 97344   ;;  %vm3649_vm1 = vcmp.lt.s32.totalorder %v3613_v10, 16  ;;  %v3611_v14 = vsel %vm11436_vm5, %v3575_v22, %v3329_v40 }
 0x258   : > { %5067 = vst.msk [vmem:[#allocation2 + $0x18] sm:$0xff] %vm12741_vm10, %v11394_v12  ;;  %vm12742_vm0 = vsmask.f32 5376  ;;  %v5543_v61 = vrot.slane %v5541_v16, 1  ;;  %vm12743_vm9 = vcmask 261344   ;;  %v11451_v42 = vor.u32 %v4150_v31, %v4147_v50  ;;  %v11456_v12 = vld [vmem:[#allocation3 + $0x60] sm:$0xff]  }
 0x259   : > { %v6389_v57 = vsel %vm12742_vm0, %v11343_v20, %v11440_v41  ;;  %6525 = vst.msk [vmem:[#allocation2] sm:$0xff] %vm12743_vm9, %v6472_v52  ;;  %v4127_v59 = vrot.slane %v4125_v55, 6  ;;  %v4130_v63 = vrot.slane %v4128_v6, 7  ;;  %v3757_v11 = vsel %vm3649_vm1, %v3000_v21, 0.0  ;;  %vm12745_vm2 = vmmov %vm12743_vm9  ;;  %v11464_v21 = vld [vmem:[#allocation3 + $0x58] sm:$0xff]   ;;  %v11488_v55 = vld [vmem:[#allocation3 + $0x60] sm:$0xff]  }
 0x25a   : > { %6487 = vrot.lane.b32.xlu0 %v6389_v57, %s8793_s30  ;;  %vm12744_vm11 = vcmask 294144   ;;  %v8081_v29 = vpack.c.bf16 %v3757_v11, %v3757_v11  ;;  %vm3647_vm14 = vcmp.lt.s32.totalorder %v3611_v14, 16  ;;  %v5544_v18 = vshll.u32 %v8689_v33, 16  ;;  %6526 = vst.msk [vmem:[#allocation2 + $0x8] sm:$0xff] %vm12745_vm2, %v6474_v47  ;;  %v11490_v52 = vld [vmem:[#allocation3 + $0x60] sm:$0xff]  }
 0x25b   : > { %6764 = vst.msk [vmem:[#allocation2] sm:$0xff] %vm12744_vm11, %v11316_v8  ;;  %v6690_v20 = vrot.slane %v11430_v28, 3  ;;  %v4153_v40 = vrot.slane %v11451_v42, 4  ;;  %v4131_v48 = vor.u32 %v4130_v63, %v4127_v59  ;;  %v3755_v3 = vsel %vm3647_vm14, %v2998_v9, 0.0  ;;  %vm12746_vm7 = vmmov %vm12744_vm11  ;;  %v5626_v8 = vpop.permute.xlu0 %5625  ;;  %v5256_v28 = vpop.permute.xlu1 %5255  ;;  %v8702_v11 = vld [vmem:[#allocation3 + $0x60] sm:$0xff]  }
 0x25c   : > { %v6081_v23 = vrot.slane %v11432_v62, 2  ;;  %6765 = vst.msk [vmem:[#allocation2 + $0x8] sm:$0xff] %vm12746_vm7, %v11372_v39  ;;  %v4155_v30 = vshrl.u32 %v8081_v29, 16  ;;  %v4158_v58 = vshll.u32 %v8081_v29, 16  ;;  %v8079_v33 = vpack.c.bf16 %v3755_v3, %v3755_v3 }
 0x25d   : > { %v5546_v15 = vrot.slane %v5544_v18, 2  ;;  %vm12747_vm3 = vcmask 162944   ;;  %v4132_v19 = vsel %vm10143_vm15, %v4123_v2, %v4131_v48  ;;  %v4133_v9 = vrot.slane %v4131_v48, 4 }
 0x25e   : > { %5677 = vst.msk [vmem:[#allocation2 + $0x10] sm:$0xff] %vm12747_vm3, %v5626_v8  ;;  %vm12748_vm4 = vcmask 1044480   ;;  %vm12749_vm8 = vcmask 195744   ;;  %vm12750_vm5 = vcmask 27648   ;;  %v4157_v56 = vrot.slane %v4155_v30, 6 }
 0x25f   : > { %v6691_v39 = vsel %vm12748_vm4, %v6688_v26, %v6690_v20  ;;  %5916 = vst.msk [vmem:[#allocation2 + $0x10] sm:$0xff] %vm12749_vm8, %v11419_v60  ;;  %v4160_v1 = vrot.slane %v4158_v58, 7  ;;  %v4135_v34 = vshrl.u32 %v8079_v33, 16  ;;  %v4138_v10 = vshll.u32 %v8079_v33, 16  ;;  %v6104_v60 = vpop.permute.xlu0 %6103  ;;  %vm12756_vm11 = vmmov %vm12748_vm4  ;;  %v11499_v63 = vpop.permute.xlu1 %5866 }
 0x260   : > { %4310 = vst.msk [vmem:[#allocation3 + $0x68] sm:$0xf] %vm12750_vm5, %v4132_v19  ;;  %6726 = vrot.lane.b32.xlu0 %v6691_v39, %s8794_s6  ;;  %vm12751_vm12 = vcmask 130144   ;;  %vm12752_vm10 = vcmask 31744   ;;  %v11480_v49 = vor.u32 %v5546_v15, %v5543_v61  ;;  %v6692_v26 = vrot.slane %v11456_v12, 3  ;;  %vm12758_vm2 = vmmov %vm12750_vm5  ;;  %v11522_v15 = vld [vmem:[#allocation3 + $0x60] sm:$0xff]  }
 0x261   : > { %5306 = vst.msk [vmem:[#allocation2 + $0x18] sm:$0xff] %vm12751_vm12, %v5256_v28  ;;  %v6391_v36 = vshrl.u32 %v8696_v24, 16  ;;  %v6394_v2 = vshll.u32 %v8696_v24, 16  ;;  %vm12753_vm1 = vmmov %vm12752_vm10  ;;  %v11484_v22 = vor.u32 %v4160_v1, %v4157_v56  ;;  %v4137_v16 = vrot.slane %v4135_v34, 6 }
 0x262   : > { %4486 = vst.msk [vmem:[#allocation2 + $0x58] sm:$0xff] %vm12752_vm10, %v8766_v13  ;;  %v4140_v50 = vrot.slane %v4138_v10, 7  ;;  %v4994_v31 = vrot.slane %v11464_v21, 1  ;;  %vm12754_vm0 = vcmask 228544   ;;  %v6782_v6 = vld [vmem:[#allocation2] sm:$0xff]  ;;  %v6693_v57 = vsel %vm12756_vm11, %v6690_v20, %v6692_v26  ;;  %vm12760_vm3 = vmmov %vm12758_vm2 }
 0x263   : > { %4487 = vst.msk [vmem:[#allocation2 + $0x60] sm:$0xff] %vm12753_vm1, %v8770_v4  ;;  %vm12755_vm9 = vsmask.f32 6400  ;;  %v6393_v61 = vrot.slane %v6391_v36, 2  ;;  %v6396_v59 = vrot.slane %v6394_v2, 3  ;;  %vm12757_vm14 = vcmask 293888   ;;  %v11514_v3 = vpop.permute.xlu0 %6714  ;;  %v11535_v28 = vpop.permute.xlu1 %6105  ;;  %vm12763_vm5 = vmmov %vm12758_vm2 }
 0x264   : > { %6155 = vst.msk [vmem:[#allocation2 + $0x10] sm:$0xff] %vm12754_vm0, %v6104_v60  ;;  %v5548_v14 = vsel %vm12755_vm9, %v11319_v44, %v11480_v49  ;;  %8301 = vmatprep.mubr.msk.bf16.mxu1 %vm12757_vm14, %v6782_v6  ;;  %v4162_v47 = vsel %vm10143_vm15, %v4153_v40, %v11484_v22  ;;  %v4141_v29 = vor.u32 %v4140_v50, %v4137_v16  ;;  %v4707_v18 = vshrl.u32 %v11273_v35, 16  ;;  %v8778_v24 = vld [vmem:[%s12460_s3 + $0x10] ss:$0 sps:$4 sm:$0x33]   ;;  %v6783_v33 = vld [vmem:[#allocation2 + $0x8] sm:$0xff]  ;;  %vm12765_vm10 = vmmov %vm12757_vm14 }
 0x265   : > { %5639 = vrot.lane.b32.xlu1 %v5548_v14, %s8791_s28  ;;  %6728 = vrot.lane.b32.xlu0 %v6693_v57, %s8794_s6  ;;  %4313 = vst.msk [vmem:[#allocation3 + $0x74] sm:$0xf] %vm12758_vm2, %v4162_v47  ;;  %v11507_v44 = vor.u32 %v6396_v59, %v6393_v61  ;;  %v4711_v20 = vshll.u32 %v8699_v17, 16  ;;  %vm12759_vm7 = vcmask 1041408   ;;  %v11516_v40 = vld [vmem:[#allocation3 + $0x60] sm:$0xff]   ;;  %v5233_v58 = vrot.slane %v11488_v55, 1 }
 0x266   : > { %v6956_v48 = vsel %vm12759_vm7, %v8778_v24, 0  ;;  %v4142_v8 = vsel %vm10143_vm15, %v4133_v9, %v4141_v29  ;;  %v4143_v30 = vrot.slane %v4141_v29, 4  ;;  %v4719_v35 = vshll.u32 %v11490_v52, 16 }
 0x267   : > { %8300 = vmatpush3.bf16.msra.mxu1 %v6956_v48  ;;  %4311 = vst.msk [vmem:[#allocation3 + $0x6c] sm:$0xf] %vm12760_vm3, %v4142_v8  ;;  %vm12761_vm4 = vcmask 1045504   ;;  %vm12762_vm8 = vcmask 1046528   ;;  %v4713_v9 = vrot.slane %v4711_v20, 1  ;;  %v5550_v39 = vshrl.u32 %v8702_v11, 16  ;;  %v5019_v1 = vpop.permute.xlu0 %5018 }
 0x268   : > { %v6082_v13 = vsel %vm12761_vm4, %v6079_v37, %v6081_v23  ;;  %v4995_v19 = vsel %vm12762_vm8, %v4992_v43, %v4994_v31  ;;  %v4152_v4 = vsel %vm10143_vm15, %v4143_v30, %v11451_v42  ;;  %v4715_v38 = vshrl.u32 %v8699_v17, 16  ;;  %vm12766_vm1 = vmmov %vm12762_vm8  ;;  %v4780_v17 = vpop.permute.xlu1 %4779  ;;  %v8289_v30 = vpop.f32.mrb[28].mxu0 }
 0x269   : > { %6117 = vrot.lane.b32.xlu1 %v6082_v13, %s8792_s29  ;;  %5030 = vrot.lane.b32.xlu0 %v4995_v19, %s8788_s25  ;;  %v11542_v37 = vrot.slane %v4719_v35, 1  ;;  %v5553_v56 = vshll.u32 %v8702_v11, 16  ;;  %4312 = vst.msk [vmem:[#allocation3 + $0x70] sm:$0xf] %vm12763_vm5, %v4152_v4  ;;  %vm12764_vm12 = vsmask.f32 5376  ;;  %v5234_v60 = vsel %vm12766_vm1, %v5231_v45, %v5233_v58  ;;  %vm12770_vm14 = vmmov %vm12766_vm1 }
 0x26a   : > { %v6398_v0 = vsel %vm12764_vm12, %v11440_v41, %v11507_v44  ;;  %v5552_v43 = vrot.slane %v5550_v39, 1  ;;  %8302 = vmatmul.mubr.msk.bf16.vlgmr.msra.gmra.mrb[0].mxu1 %vm12765_vm10, %v6783_v33  ;;  %v4996_v42 = vrot.slane %v11516_v40, 1  ;;  %v5844_v10 = vrot.slane %v11522_v15, 2  ;;  %vm12773_vm3 = vmmov %vm12761_vm4 }
 0x26b   : > { %v5555_v34 = vrot.slane %v5553_v56, 2  ;;  %v3040_v36 = vadd.s32 240, %v9877_v32  ;;  %v3038_v2 = vadd.s32 224, %v9877_v32  ;;  %v4717_v41 = vor.u32 %v4715_v38, %v4713_v9  ;;  %v11572_v45 = vpop.permute.xlu0 %6716  ;;  %vm12774_vm4 = vmmov %vm12766_vm1 }
 0x26c   : > { %v3041_v16 = vadd.s32 248, %v9877_v32  ;;  %v11560_v50 = vadd.s32 232, %v9877_v32  ;;  %v4709_v6 = vor.u32 %v4707_v18, %v11313_v25  ;;  %vm12767_vm0 = vcmask 64544   ;;  %v11596_v35 = vpop.permute.xlu1 %5020  ;;  %vm12776_vm5 = vmmov %vm12773_vm3 }
 0x26d   : > { %6489 = vrot.lane.b32.xlu1 %v6398_v0, %s8793_s30  ;;  %5269 = vrot.lane.b32.xlu0 %v5234_v60, %s8787_s24  ;;  %v11565_v14 = vor.u32 %v5555_v34, %v5552_v43  ;;  %4829 = vst.msk [vmem:[#allocation2 + $0x20] sm:$0xff] %vm12767_vm0, %v4780_v17  ;;  %v11568_v51 = vmul.u32.u64.low 3817748708, %v3040_v36  ;;  %v11569_v57 = vmul.u32.u64.high 3817748708, %v3040_v36, %v11568_v51  ;;  %vm12768_vm9 = vcmask 97344  }
 0x26e   : > { %5068 = vst.msk [vmem:[#allocation2 + $0x20] sm:$0xff] %vm12768_vm9, %v5019_v1  ;;  %v11574_v61 = vmul.u32.u64.low 3817748708, %v3038_v2  ;;  %v11575_v59 = vmul.u32.u64.high 3817748708, %v3038_v2, %v11574_v61  ;;  %v11577_v11 = vmul.u32.u64.low 3817748708, %v3041_v16  ;;  %v11578_v47 = vmul.u32.u64.high 3817748708, %v3041_v16, %v11577_v11  ;;  %v11587_v20 = vld [vmem:[#allocation3 + $0x68] sm:$0xff]  }
 0x26f   : > { %v4163_v25 = vrot.slane %v11484_v22, 4  ;;  %vm12769_vm11 = vsmask.f32 7424  ;;  %v4997_v18 = vsel %vm12770_vm14, %v4994_v31, %v4996_v42  ;;  %vm12772_vm7 = vsmask.f32 6400  ;;  %v11594_v8 = vld [vmem:[#allocation3 + $0x68] sm:$0xff]   ;;  %v5258_v56 = vpop.permute.xlu0 %5257 }
 0x270   : > { %v4714_v29 = vsel %vm12769_vm11, %v4709_v6, %v4713_v9  ;;  %vm12771_vm2 = vmmov %vm12769_vm11  ;;  %v5557_v48 = vsel %vm12772_vm7, %v11480_v49, %v11565_v14  ;;  %v11599_v33 = vmul.u32.u64.low 3817748708, %v11560_v50  ;;  %v11600_v13 = vmul.u32.u64.high 3817748708, %v11560_v50, %v11599_v33  ;;  %v2942_v9 = vpop.f32.mrb[29].mxu0 }
 0x271   : > { %v4722_v24 = vsel %vm12771_vm2, %v4717_v41, %v11542_v37  ;;  %4791 = vrot.lane.b32.xlu1 %v4714_v29, %s8790_s27  ;;  %5641 = vrot.lane.b32.xlu0 %v5557_v48, %s8791_s28  ;;  %v5845_v21 = vsel %vm12773_vm3, %v5842_v27, %v5844_v10  ;;  %v5235_v49 = vrot.slane %v11587_v20, 1  ;;  %v11611_v31 = vadd.f32 %v11400_v54, %v8289_v30  ;;  %v8290_v0 = vpop.f32.mrb[30].mxu0  ;;  %v8708_v27 = vld [vmem:[#allocation3 + $0x68] sm:$0xff]  }
 0x272   : > { %v3382_v19 = vshrl.u32 %v11569_v57, 4  ;;  %v6083_v39 = vrot.slane %v11594_v8, 2  ;;  %v11616_v4 = vadd.f32 %v11400_v54, %v2942_v9  ;;  %v3360_v38 = vshrl.u32 %v11575_v59, 4  ;;  %v2945_v41 = vpop.f32.mrb[31].mxu0  ;;  %v5628_v57 = vpop.permute.xlu1 %5627 }
 0x273   : > { %v3393_v5 = vshrl.u32 %v11578_v47, 4  ;;  %v5236_v43 = vsel %vm12774_vm4, %v5233_v58, %v5235_v49  ;;  %v3003_v1 = vmax.f32 %v11611_v31, 0.0  ;;  %vm12775_vm8 = vcmask 130144   ;;  %v5869_v48 = vpop.permute.xlu0 %5868  ;;  %v11649_v31 = vld [vmem:[#allocation3 + $0x68] sm:$0xff]  }
 0x274   : > { %v3383_v34 = vmul.u32 18, %v3382_v19  ;;  %5307 = vst.msk [vmem:[#allocation2 + $0x20] sm:$0xff] %vm12775_vm8, %v5258_v56  ;;  %v2954_v60 = vadd.f32 %v11400_v54, %v8290_v0  ;;  %v6084_v17 = vsel %vm12776_vm5, %v6081_v23, %v6083_v39  ;;  %v3001_v6 = vmax.f32 %v11616_v4, 0.0 }
 0x275   : > { %v3361_v51 = vmul.u32 18, %v3360_v38  ;;  %v3394_v55 = vmul.u32 18, %v3393_v5  ;;  %4793 = vrot.lane.b32.xlu1 %v4722_v24, %s8790_s27  ;;  %5880 = vrot.lane.b32.xlu0 %v5845_v21, %s8789_s26  ;;  %v11637_v59 = vadd.f32 %v11400_v54, %v2945_v41  ;;  %v3371_v11 = vshrl.u32 %v11600_v13, 4 }
 0x276   : > { %v3384_v58 = vsub.s32 %v3040_v36, %v3383_v34  ;;  %v3004_v61 = vmax.f32 %v2954_v60, 0.0  ;;  %vm12777_vm12 = vcmask 162944   ;;  %v5559_v47 = vshrl.u32 %v8708_v27, 16 }
 0x277   : > { %5678 = vst.msk [vmem:[#allocation2 + $0x18] sm:$0xff] %vm12777_vm12, %v5628_v57  ;;  %v3362_v62 = vsub.s32 %v3038_v2, %v3361_v51  ;;  %v3395_v23 = vsub.s32 %v3041_v16, %v3394_v55  ;;  %v5562_v29 = vshll.u32 %v8708_v27, 16  ;;  %vm12778_vm10 = vcmask 195744   ;;  %v4782_v2 = vpop.permute.xlu1 %4781  ;;  %v11671_v55 = vld [vmem:[#allocation3 + $0x68] sm:$0xff]  }
 0x278   : > { %5917 = vst.msk [vmem:[#allocation2 + $0x18] sm:$0xff] %vm12778_vm10, %v11499_v63  ;;  %vm3472_vm1 = vcmp.ne.s32.totalorder %v3384_v58, 0  ;;  %vm3508_vm0 = vcmp.lt.s32.totalorder %v3384_v58, 0  ;;  %v3580_v24 = vadd.s32 18, %v3384_v58  ;;  %v3002_v36 = vmax.f32 %v11637_v59, 0.0 }
 0x279   : > { %vm12779_vm9 = vcmask 228544   ;;  %vm3544_vm11 = vmand %vm3508_vm0, %vm3472_vm1  ;;  %vm3470_vm14 = vcmp.ne.s32.totalorder %v3362_v62, 0  ;;  %vm3506_vm2 = vcmp.lt.s32.totalorder %v3362_v62, 0  ;;  %v3578_v30 = vadd.s32 18, %v3362_v62  ;;  %5032 = vrot.lane.b32.xlu1 %v4997_v18, %s8788_s25  ;;  %6119 = vrot.lane.b32.xlu0 %v6084_v17, %s8792_s29  ;;  %v6476_v18 = vpop.permute.xlu0 %6475 }
 0x27a   : > { %6156 = vst.msk [vmem:[#allocation2 + $0x18] sm:$0xff] %vm12779_vm9, %v11535_v28  ;;  %vm3473_vm7 = vcmp.ne.s32.totalorder %v3395_v23, 0  ;;  %v3616_v63 = vsel %vm3544_vm11, %v3580_v24, %v3384_v58  ;;  %vm3542_vm3 = vmand %vm3506_vm2, %vm3470_vm14  ;;  %vm3509_vm4 = vcmp.lt.s32.totalorder %v3395_v23, 0  ;;  %v3581_v16 = vadd.s32 18, %v3395_v23  ;;  %v8771_v24 = vld [vmem:[#allocation3 + $0x68] sm:$0xff]  }
 0x27b   : > { %v3372_v33 = vmul.u32 18, %v3371_v11  ;;  %vm12780_vm8 = vcmask 64544   ;;  %vm3652_vm5 = vcmp.lt.s32.totalorder %v3616_v63, 16  ;;  %v3614_v13 = vsel %vm3542_vm3, %v3578_v30, %v3362_v62  ;;  %vm3545_vm12 = vmand %vm3509_vm4, %vm3473_vm7  ;;  %v6478_v5 = vpop.permute.xlu1 %6477 }
 0x27c   : > { %4830 = vst.msk [vmem:[#allocation2 + $0x28] sm:$0xff] %vm12780_vm8, %v4782_v2  ;;  %v5561_v28 = vrot.slane %v5559_v47, 1  ;;  %v5564_v21 = vrot.slane %v5562_v29, 2  ;;  %vm12781_vm10 = vcmask 97344   ;;  %v3760_v19 = vsel %vm3652_vm5, %v3003_v1, 0.0  ;;  %v11678_v29 = vld [vmem:[#allocation3 + $0x70] sm:$0xff]  }
 0x27d   : > { %5069 = vst.msk [vmem:[#allocation2 + $0x28] sm:$0xff] %vm12781_vm10, %v11596_v35  ;;  %vm3650_vm1 = vcmp.lt.s32.totalorder %v3614_v13, 16  ;;  %v3617_v9 = vsel %vm3545_vm12, %v3581_v16, %v3395_v23  ;;  %v3373_v4 = vsub.s32 %v11560_v50, %v3372_v33  ;;  %vm12782_vm0 = vcmask 261344   ;;  %5271 = vrot.lane.b32.xlu1 %v5236_v43, %s8787_s24  ;;  %v8772_v16 = vld [vmem:[#allocation3 + $0x70] sm:$0xff]  }
 0x27e   : > { %6527 = vst.msk [vmem:[#allocation2 + $0x10] sm:$0xff] %vm12782_vm0, %v6476_v18  ;;  %v8084_v38 = vpack.c.bf16 %v3760_v19, %v3760_v19  ;;  %v3758_v56 = vsel %vm3650_vm1, %v3001_v6, 0.0  ;;  %vm3653_vm9 = vcmp.lt.s32.totalorder %v3617_v9, 16  ;;  %v11655_v0 = vor.u32 %v5564_v21, %v5561_v28  ;;  %vm12784_vm7 = vmmov %vm12782_vm0 }
 0x27f   : > { %vm12783_vm11 = vcmask 294144   ;;  %v8082_v35 = vpack.c.bf16 %v3758_v56, %v3758_v56  ;;  %v3761_v27 = vsel %vm3653_vm9, %v3004_v61, 0.0  ;;  %vm3471_vm14 = vcmp.ne.s32.totalorder %v3373_v4, 0  ;;  %6528 = vst.msk [vmem:[#allocation2 + $0x18] sm:$0xff] %vm12784_vm7, %v6478_v5  ;;  %v8711_v5 = vld [vmem:[#allocation3 + $0x68] sm:$0xff]  }
 0x280   : > { %6766 = vst.msk [vmem:[#allocation2 + $0x10] sm:$0xff] %vm12783_vm11, %v11514_v3  ;;  %vm3507_vm2 = vcmp.lt.s32.totalorder %v3373_v4, 0  ;;  %v4185_v50 = vshrl.u32 %v8084_v38, 16  ;;  %v4188_v1 = vshll.u32 %v8084_v38, 16  ;;  %v8085_v34 = vpack.c.bf16 %v3761_v27, %v3761_v27  ;;  %vm12787_vm4 = vmmov %vm12783_vm11  ;;  %v5630_v3 = vpop.permute.xlu0 %5629  ;;  %v8715_v38 = vld [vmem:[#allocation3 + $0x70] sm:$0xff]  }
 0x281   : > { %vm11661_vm3 = vmand %vm3507_vm2, %vm3471_vm14  ;;  %v3579_v41 = vadd.s32 18, %v3373_v4  ;;  %6767 = vst.msk [vmem:[#allocation2 + $0x18] sm:$0xff] %vm12787_vm4, %v11572_v45  ;;  %v4165_v17 = vshrl.u32 %v8082_v35, 16  ;;  %v4168_v43 = vshll.u32 %v8082_v35, 16  ;;  %vm12788_vm8 = vsmask.f32 6400  ;;  %v5260_v45 = vpop.permute.xlu1 %5259 }
 0x282   : > { %v5566_v6 = vsel %vm12788_vm8, %v11565_v14, %v11655_v0  ;;  %v6400_v51 = vshrl.u32 %v11649_v31, 16  ;;  %vm12789_vm5 = vcmask 162944   ;;  %v4187_v57 = vrot.slane %v4185_v50, 6  ;;  %v11705_v35 = vld [vmem:[#allocation3 + $0x70] sm:$0xff]  }
 0x283   : > { %5679 = vst.msk [vmem:[#allocation2 + $0x20] sm:$0xff] %vm12789_vm5, %v5630_v3  ;;  %v4190_v58 = vrot.slane %v4188_v1, 7  ;;  %v4195_v61 = vshrl.u32 %v8085_v34, 16  ;;  %v4198_v11 = vshll.u32 %v8085_v34, 16  ;;  %vm12790_vm12 = vcmask 195744   ;;  %5643 = vrot.lane.b32.xlu1 %v5566_v6, %s8791_s28 }
 0x284   : > { %5918 = vst.msk [vmem:[#allocation2 + $0x20] sm:$0xff] %vm12790_vm12, %v5869_v48  ;;  %v4167_v62 = vrot.slane %v4165_v17, 6  ;;  %v4170_v23 = vrot.slane %v4168_v43, 7  ;;  %v3615_v47 = vsel %vm11661_vm3, %v3579_v41, %v3373_v4  ;;  %v6402_v14 = vrot.slane %v6400_v51, 2  ;;  %v6108_v48 = vpop.permute.xlu0 %6107  ;;  %v11719_v41 = vld [vmem:[#allocation3 + $0x68] sm:$0xff]   ;;  %v11722_v17 = vld [vmem:[#allocation3 + $0x70] sm:$0xff]  }
 0x285   : > { %vm12791_vm10 = vcmask 130144   ;;  %v11681_v30 = vor.u32 %v4190_v58, %v4187_v57  ;;  %v4197_v2 = vrot.slane %v4195_v61, 6  ;;  %v4200_v63 = vrot.slane %v4198_v11, 7  ;;  %v11693_v56 = vpop.permute.xlu1 %5870 }
 0x286   : > { %5308 = vst.msk [vmem:[#allocation2 + $0x28] sm:$0xff] %vm12791_vm10, %v5260_v45  ;;  %vm3651_vm1 = vcmp.lt.s32.totalorder %v3615_v47, 16  ;;  %v4171_v33 = vor.u32 %v4170_v23, %v4167_v62  ;;  %v6403_v28 = vshll.u32 %v11649_v31, 16  ;;  %v5846_v21 = vrot.slane %v11671_v55, 2  ;;  %v11734_v62 = vld [vmem:[#allocation3 + $0x70] sm:$0xff]  }
 0x287   : > { %v3759_v13 = vsel %vm3651_vm1, %v3002_v36, 0.0  ;;  %vm12792_vm0 = vcmask 228544   ;;  %v6784_v18 = vld [vmem:[#allocation2 + $0x10] sm:$0xff]  ;;  %vm12793_vm9 = vcmask 31744   ;;  %v4193_v19 = vrot.slane %v11681_v30, 4  ;;  %v8720_v23 = vld [vmem:[#allocation3 + $0x70] sm:$0xff]  }
 0x288   : > { %6157 = vst.msk [vmem:[#allocation2 + $0x20] sm:$0xff] %vm12792_vm0, %v6108_v48  ;;  %v11690_v9 = vor.u32 %v4200_v63, %v4197_v2  ;;  %v8083_v4 = vpack.c.bf16 %v3759_v13, %v3759_v13  ;;  %vm12794_vm11 = vcmask 293888   ;;  %vm12795_vm14 = vmmov %vm12793_vm9  ;;  %v4172_v59 = vsel %vm10143_vm15, %v4163_v25, %v4171_v33  ;;  %v6785_v27 = vld [vmem:[#allocation2 + $0x18] sm:$0xff]  ;;  %v11714_v34 = vpop.permute.xlu0 %6718 }
 0x289   : > { %4488 = vst.msk [vmem:[#allocation2 + $0x68] sm:$0xff] %vm12793_vm9, %v8771_v24  ;;  %8305 = vmatprep.mubr.msk.bf16.mxu1 %vm12794_vm11, %v6784_v18  ;;  %v6405_v36 = vrot.slane %v6403_v28, 3  ;;  %vm12796_vm2 = vcmask 1045504   ;;  %vm12797_vm7 = vcmask 27648   ;;  %v11712_v25 = vld [vmem:[#allocation3 + $0x68] sm:$0xff]   ;;  %vm12798_vm3 = vmmov %vm12794_vm11  ;;  %v4173_v15 = vrot.slane %v4171_v33, 4  ;;  %v11724_v58 = vpop.permute.xlu1 %6109 }
 0x28a   : > { %4489 = vst.msk [vmem:[#allocation2 + $0x70] sm:$0xff] %vm12795_vm14, %v8772_v16  ;;  %v5847_v31 = vsel %vm12796_vm2, %v5844_v10, %v5846_v21  ;;  %v4202_v22 = vsel %vm10143_vm15, %v4193_v19, %v11690_v9  ;;  %v4175_v50 = vshrl.u32 %v8083_v4, 16  ;;  %v4178_v1 = vshll.u32 %v8083_v4, 16  ;;  %8306 = vmatmul.mubr.msk.bf16.gmra.mrb[4].mxu1 %vm12798_vm3, %v6785_v27  ;;  %vm12799_vm4 = vmmov %vm12797_vm7  ;;  %v11743_v16 = vld [vmem:[#allocation3 + $0x70] sm:$0xff]  }
 0x28b   : > { %4314 = vst.msk [vmem:[#allocation3 + $0x78] sm:$0xf] %vm12797_vm7, %v4172_v59  ;;  %5882 = vrot.lane.b32.xlu1 %v5847_v31, %s8789_s26  ;;  %v6406_v10 = vor.u32 %v6405_v36, %v6402_v14  ;;  %v6085_v60 = vrot.slane %v11678_v29, 2  ;;  %v4723_v3 = vshrl.u32 %v11490_v52, 16  ;;  %v6409_v51 = vshrl.u32 %v8715_v38, 16  ;;  %vm12801_vm5 = vmmov %vm12796_vm2  ;;  %v11749_v19 = vld [vmem:[#allocation3 + $0x70] sm:$0xff]  }
 0x28c   : > { %4317 = vst.msk [vmem:[#allocation3 + $0x84] sm:$0xf] %vm12799_vm4, %v4202_v22  ;;  %v4177_v43 = vrot.slane %v4175_v50, 6  ;;  %v4180_v6 = vrot.slane %v4178_v1, 7  ;;  %v6412_v57 = vshll.u32 %v8715_v38, 16  ;;  %v6694_v11 = vrot.slane %v8711_v5, 3  ;;  %v5023_v2 = vpop.permute.xlu0 %5022  ;;  %vm12802_vm12 = vmmov %vm12799_vm4 }
 0x28d   : > { %vm12800_vm8 = vsmask.f32 5376  ;;  %v6086_v45 = vsel %vm12801_vm5, %v6083_v39, %v6085_v60  ;;  %v6696_v52 = vrot.slane %v11705_v35, 3  ;;  %v6411_v14 = vrot.slane %v6409_v51, 2  ;;  %v4784_v4 = vpop.permute.xlu1 %4783  ;;  %v8293_v31 = vpop.f32.mrb[32].mxu0  ;;  %vm12808_vm14 = vmmov %vm12799_vm4 }
 0x28e   : > { %v6407_v61 = vsel %vm12800_vm8, %v11507_v44, %v6406_v10  ;;  %v4181_v47 = vor.u32 %v4180_v6, %v4177_v43  ;;  %v6414_v24 = vrot.slane %v6412_v57, 3  ;;  %v4727_v44 = vshll.u32 %v11712_v25, 16  ;;  %vm12806_vm9 = vmmov %vm12800_vm8  ;;  %v2958_v50 = vpop.f32.mrb[33].mxu0 }
 0x28f   : > { %6491 = vrot.lane.b32.xlu0 %v6407_v61, %s8793_s30  ;;  %6121 = vrot.lane.b32.xlu1 %v6086_v45, %s8792_s29  ;;  %v4203_v63 = vrot.slane %v11690_v9, 4  ;;  %v4998_v8 = vrot.slane %v11719_v41, 1  ;;  %v4725_v39 = vor.u32 %v4723_v3, %v11542_v37  ;;  %v4735_v48 = vshll.u32 %v11722_v17, 16  ;;  %v8294_v3 = vpop.f32.mrb[34].mxu0 }
 0x290   : > { %v4182_v33 = vsel %vm10143_vm15, %v4173_v15, %v4181_v47  ;;  %v4183_v13 = vrot.slane %v4181_v47, 4  ;;  %v11747_v28 = vor.u32 %v6414_v24, %v6411_v14  ;;  %v4729_v18 = vrot.slane %v4727_v44, 1  ;;  %v11768_v22 = vpop.permute.xlu0 %6720  ;;  %v2961_v51 = vpop.f32.mrb[35].mxu0 }
 0x291   : > { %4315 = vst.msk [vmem:[#allocation3 + $0x7c] sm:$0xf] %vm12802_vm12, %v4182_v33  ;;  %vm12803_vm10 = vcmask 1044480   ;;  %v5237_v38 = vrot.slane %v11734_v62, 1  ;;  %v5568_v59 = vshrl.u32 %v8720_v23, 16  ;;  %v5571_v36 = vshll.u32 %v8720_v23, 16  ;;  %v5025_v57 = vpop.permute.xlu1 %5024 }
 0x292   : > { %v6695_v37 = vsel %vm12803_vm10, %v6692_v26, %v6694_v11  ;;  %vm12804_vm1 = vcmask 64544   ;;  %v4192_v5 = vsel %vm10143_vm15, %v4183_v13, %v11681_v30  ;;  %vm12805_vm0 = vmmov %vm12803_vm10  ;;  %v6416_v12 = vsel %vm12806_vm9, %v6406_v10, %v11747_v28 }
 0x293   : > { %4831 = vst.msk [vmem:[#allocation2 + $0x30] sm:$0xff] %vm12804_vm1, %v4784_v4  ;;  %6730 = vrot.lane.b32.xlu0 %v6695_v37, %s8794_s6  ;;  %v6697_v27 = vsel %vm12805_vm0, %v6694_v11, %v6696_v52  ;;  %v4731_v26 = vshrl.u32 %v11712_v25, 16  ;;  %vm12807_vm11 = vcmask 97344   ;;  %6493 = vrot.lane.b32.xlu1 %v6416_v12, %s8793_s30  ;;  %v11772_v30 = vrot.slane %v4735_v48, 1 }
 0x294   : > { %5070 = vst.msk [vmem:[#allocation2 + $0x30] sm:$0xff] %vm12807_vm11, %v5023_v2  ;;  %v5570_v1 = vrot.slane %v5568_v59, 1  ;;  %v5573_v15 = vrot.slane %v5571_v36, 2  ;;  %v5000_v41 = vrot.slane %v11743_v16, 1  ;;  %vm12809_vm2 = vcmask 1046528   ;;  %v5262_v24 = vpop.permute.xlu0 %5261 }
 0x295   : > { %4316 = vst.msk [vmem:[#allocation3 + $0x80] sm:$0xf] %vm12808_vm14, %v4192_v5  ;;  %v4999_v25 = vsel %vm12809_vm2, %v4996_v42, %v4998_v8  ;;  %v4733_v10 = vor.u32 %v4731_v26, %v4729_v18  ;;  %v11779_v43 = vadd.f32 %v11400_v54, %v8293_v31  ;;  %v3044_v6 = vadd.s32 272, %v9877_v32  ;;  %vm12811_vm3 = vmmov %vm12809_vm2  ;;  %v5632_v4 = vpop.permute.xlu1 %5631 }
 0x296   : > { %v11782_v61 = vor.u32 %v5573_v15, %v5570_v1  ;;  %v5848_v11 = vrot.slane %v11749_v19, 2  ;;  %v11786_v45 = vadd.f32 %v11400_v54, %v2958_v50  ;;  %v3042_v23 = vadd.s32 256, %v9877_v32  ;;  %vm12814_vm5 = vmmov %vm12809_vm2 }
 0x297   : > { %6732 = vrot.lane.b32.xlu0 %v6697_v27, %s8794_s6  ;;  %vm12810_vm7 = vsmask.f32 7424  ;;  %v3007_v42 = vmax.f32 %v11779_v43, 0.0  ;;  %v11792_v47 = vmul.u32.u64.low 3817748708, %v3044_v6  ;;  %v11793_v14 = vmul.u32.u64.high 3817748708, %v3044_v6, %v11792_v47  ;;  %vm12820_vm11 = vmmov %vm12809_vm2 }
 0x298   : > { %v4730_v40 = vsel %vm12810_vm7, %v4725_v39, %v4729_v18  ;;  %v5238_v44 = vsel %vm12811_vm3, %v5235_v49, %v5237_v38  ;;  %v11801_v2 = vmul.u32.u64.low 3817748708, %v3042_v23  ;;  %v11802_v48 = vmul.u32.u64.high 3817748708, %v3042_v23, %v11801_v2  ;;  %vm12813_vm8 = vmmov %vm12810_vm7  ;;  %v11816_v20 = vld [vmem:[#allocation3 + $0x78] sm:$0xff]   ;;  %v11847_v27 = vpop.permute.xlu0 %5872 }
 0x299   : > { %4795 = vrot.lane.b32.xlu1 %v4730_v40, %s8790_s27  ;;  %v11805_v33 = vadd.f32 %v11400_v54, %v8294_v3  ;;  %vm12812_vm4 = vcmask 130144   ;;  %v4738_v39 = vsel %vm12813_vm8, %v4733_v10, %v11772_v30  ;;  %v5001_v13 = vsel %vm12814_vm5, %v4998_v8, %v5000_v41  ;;  %v11832_v36 = vld [vmem:[#allocation3 + $0x78] sm:$0xff]  }
 0x29a   : > { %5309 = vst.msk [vmem:[#allocation2 + $0x30] sm:$0xff] %vm12812_vm4, %v5262_v24  ;;  %v11814_v18 = vadd.s32 280, %v9877_v32  ;;  %v11819_v49 = vadd.f32 %v11400_v54, %v2961_v51  ;;  %vm12815_vm12 = vsmask.f32 6400  ;;  %vm12816_vm10 = vcmask 1045504   ;;  %v8726_v54 = vld [vmem:[#allocation3 + $0x78] sm:$0xff]   ;;  %v4786_v51 = vpop.permute.xlu1 %4785 }
 0x29b   : > { %v5575_v37 = vsel %vm12815_vm12, %v11655_v0, %v11782_v61  ;;  %v11829_v59 = vsel %vm12816_vm10, %v5846_v21, %v5848_v11  ;;  %v3005_v8 = vmax.f32 %v11786_v45, 0.0  ;;  %v11835_v31 = vadd.s32 264, %v9877_v32  ;;  %5034 = vrot.lane.b32.xlu0 %v4999_v25, %s8788_s25  ;;  %v8727_v1 = vld [vmem:[#allocation3 + $0x78] sm:$0xff]   ;;  %vm12821_vm14 = vmmov %vm12816_vm10 }
 0x29c   : > { %vm12817_vm1 = vcmask 162944   ;;  %v3426_v0 = vshrl.u32 %v11793_v14, 4  ;;  %v11841_v5 = vmul.u32.u64.low 3817748708, %v11814_v18  ;;  %v11842_v55 = vmul.u32.u64.high 3817748708, %v11814_v18, %v11841_v5  ;;  %v11855_v15 = vld [vmem:[#allocation3 + $0x78] sm:$0xff]   ;;  %v6480_v62 = vpop.permute.xlu0 %6479  ;;  %v8733_v19 = vld [vmem:[#allocation3 + $0x80] sm:$0xff]  }
 0x29d   : > { %5680 = vst.msk [vmem:[#allocation2 + $0x28] sm:$0xff] %vm12817_vm1, %v5632_v4  ;;  %v5239_v21 = vrot.slane %v11816_v20, 1  ;;  %vm12818_vm0 = vcmask 195744   ;;  %4797 = vrot.lane.b32.xlu1 %v4738_v39, %s8790_s27  ;;  %v3404_v32 = vshrl.u32 %v11802_v48, 4  ;;  %v3008_v12 = vmax.f32 %v11805_v33, 0.0 }
 0x29e   : > { %5919 = vst.msk [vmem:[#allocation2 + $0x28] sm:$0xff] %vm12818_vm0, %v11693_v56  ;;  %v6087_v26 = vrot.slane %v11832_v36, 2  ;;  %v5577_v50 = vshrl.u32 %v8726_v54, 16  ;;  %vm12819_vm9 = vcmask 228544   ;;  %v3427_v3 = vmul.u32 18, %v3426_v0 }
 0x29f   : > { %6158 = vst.msk [vmem:[#allocation2 + $0x28] sm:$0xff] %vm12819_vm9, %v11724_v58  ;;  %v3006_v56 = vmax.f32 %v11819_v49, 0.0  ;;  %v11859_v25 = vmul.u32.u64.low 3817748708, %v11835_v31  ;;  %v11860_v10 = vmul.u32.u64.high 3817748708, %v11835_v31, %v11859_v25  ;;  %v3405_v40 = vmul.u32 18, %v3404_v32  ;;  %5273 = vrot.lane.b32.xlu0 %v5238_v44, %s8787_s24  ;;  %v11889_v32 = vld [vmem:[#allocation3 + $0x78] sm:$0xff]  }
 0x2a0   : > { %v5240_v47 = vsel %vm12820_vm11, %v5237_v38, %v5239_v21  ;;  %v11872_v58 = vsel %vm12821_vm14, %v6085_v60, %v6087_v26  ;;  %v5580_v14 = vshll.u32 %v8726_v54, 16  ;;  %vm12822_vm2 = vcmask 64544   ;;  %v6482_v54 = vpop.permute.xlu1 %6481  ;;  %v8774_v49 = vld [vmem:[#allocation3 + $0x80] sm:$0xff]  }
 0x2a1   : > { %4832 = vst.msk [vmem:[#allocation2 + $0x38] sm:$0xff] %vm12822_vm2, %v4786_v51  ;;  %v3428_v24 = vsub.s32 %v3044_v6, %v3427_v3  ;;  %v3437_v2 = vshrl.u32 %v11842_v55, 4  ;;  %v5579_v48 = vrot.slane %v5577_v50, 1  ;;  %v6418_v39 = vshrl.u32 %v8727_v1, 16  ;;  %5036 = vrot.lane.b32.xlu1 %v5001_v13, %s8788_s25 }
 0x2a2   : > { %vm12823_vm7 = vcmask 97344   ;;  %v3406_v38 = vsub.s32 %v3042_v23, %v3405_v40  ;;  %v5582_v29 = vrot.slane %v5580_v14, 2  ;;  %v6421_v4 = vshll.u32 %v8727_v1, 16 }
 0x2a3   : > { %5071 = vst.msk [vmem:[#allocation2 + $0x38] sm:$0xff] %vm12823_vm7, %v5025_v57  ;;  %v5850_v60 = vrot.slane %v11855_v15, 2  ;;  %vm12824_vm3 = vcmask 261344   ;;  %vm3476_vm4 = vcmp.ne.s32.totalorder %v3428_v24, 0  ;;  %vm3512_vm8 = vcmp.lt.s32.totalorder %v3428_v24, 0  ;;  %5645 = vrot.lane.b32.xlu0 %v5575_v37, %s8791_s28 }
 0x2a4   : > { %6529 = vst.msk [vmem:[#allocation2 + $0x20] sm:$0xff] %vm12824_vm3, %v6480_v62  ;;  %v3584_v44 = vadd.s32 18, %v3428_v24  ;;  %v3438_v6 = vmul.u32 18, %v3437_v2  ;;  %vm12825_vm5 = vcmask 294144   ;;  %vm3548_vm12 = vmand %vm3512_vm8, %vm3476_vm4  ;;  %vm3474_vm10 = vcmp.ne.s32.totalorder %v3406_v38, 0  ;;  %v5264_v37 = vpop.permute.xlu1 %5263 }
 0x2a5   : > { %6768 = vst.msk [vmem:[#allocation2 + $0x20] sm:$0xff] %vm12825_vm5, %v11714_v34  ;;  %vm3510_vm1 = vcmp.lt.s32.totalorder %v3406_v38, 0  ;;  %v3582_v57 = vadd.s32 18, %v3406_v38  ;;  %v3415_v23 = vshrl.u32 %v11860_v10, 4  ;;  %vm12826_vm0 = vmmov %vm12824_vm3  ;;  %v11887_v5 = vor.u32 %v5582_v29, %v5579_v48  ;;  %v5634_v34 = vpop.permute.xlu0 %5633  ;;  %5275 = vrot.lane.b32.xlu1 %v5240_v47, %s8787_s24  ;;  %v11991_v29 = vld [vmem:[#allocation3 + $0x80] sm:$0xff]  }
 0x2a6   : > { %6530 = vst.msk [vmem:[#allocation2 + $0x28] sm:$0xff] %vm12826_vm0, %v6482_v54  ;;  %v3620_v13 = vsel %vm3548_vm12, %v3584_v44, %v3428_v24  ;;  %vm3546_vm9 = vmand %vm3510_vm1, %vm3474_vm10  ;;  %v3439_v0 = vsub.s32 %v11814_v18, %v3438_v6  ;;  %v6420_v55 = vrot.slane %v6418_v39, 2  ;;  %v6423_v3 = vrot.slane %v6421_v4, 3  ;;  %v11930_v44 = vld [vmem:[#allocation3 + $0x80] sm:$0xff]  }
 0x2a7   : > { %vm12827_vm11 = vmmov %vm12825_vm5  ;;  %vm3656_vm14 = vcmp.lt.s32.totalorder %v3620_v13, 16  ;;  %v3618_v50 = vsel %vm3546_vm9, %v3582_v57, %v3406_v38  ;;  %v3416_v1 = vmul.u32 18, %v3415_v23  ;;  %vm12828_vm2 = vcmask 162944   ;;  %5884 = vrot.lane.b32.xlu0 %v11829_v59, %s8789_s26 }
 0x2a8   : > { %6769 = vst.msk [vmem:[#allocation2 + $0x28] sm:$0xff] %vm12827_vm11, %v11768_v22  ;;  %v3764_v18 = vsel %vm3656_vm14, %v3007_v42, 0.0  ;;  %vm3654_vm7 = vcmp.lt.s32.totalorder %v3618_v50, 16  ;;  %vm3477_vm3 = vcmp.ne.s32.totalorder %v3439_v0, 0  ;;  %vm3513_vm4 = vcmp.lt.s32.totalorder %v3439_v0, 0  ;;  %v11922_v48 = vpop.permute.xlu1 %5874 }
 0x2a9   : > { %5681 = vst.msk [vmem:[#allocation2 + $0x30] sm:$0xff] %vm12828_vm2, %v5634_v34  ;;  %vm12829_vm8 = vcmask 195744   ;;  %v8088_v22 = vpack.c.bf16 %v3764_v18, %v3764_v18  ;;  %v3762_v25 = vsel %vm3654_vm7, %v3005_v8, 0.0  ;;  %vm11901_vm5 = vmand %vm3513_vm4, %vm3477_vm3  ;;  %v3585_v51 = vadd.s32 18, %v3439_v0  ;;  %v11915_v8 = vld [vmem:[#allocation3 + $0x80] sm:$0xff]   ;;  %v6112_v47 = vpop.permute.xlu0 %6111 }
 0x2aa   : > { %5920 = vst.msk [vmem:[#allocation2 + $0x30] sm:$0xff] %vm12829_vm8, %v11847_v27  ;;  %v3417_v40 = vsub.s32 %v11835_v31, %v3416_v1  ;;  %vm12832_vm12 = vcmask 130144   ;;  %v8086_v43 = vpack.c.bf16 %v3762_v25, %v3762_v25  ;;  %vm12833_vm10 = vsmask.f32 6400  ;;  %v11953_v1 = vld [vmem:[#allocation3 + $0x78] sm:$0xff]  }
 0x2ab   : > { %5310 = vst.msk [vmem:[#allocation2 + $0x38] sm:$0xff] %vm12832_vm12, %v5264_v37  ;;  %v5584_v42 = vsel %vm12833_vm10, %v11782_v61, %v11887_v5  ;;  %v11912_v27 = vor.u32 %v6423_v3, %v6420_v55  ;;  %v6698_v45 = vrot.slane %v11889_v32, 3  ;;  %v4225_v14 = vshrl.u32 %v8088_v22, 16  ;;  %6123 = vrot.lane.b32.xlu0 %v11872_v58, %s8792_s29 }
 0x2ac   : > { %v4228_v24 = vshll.u32 %v8088_v22, 16  ;;  %v3621_v31 = vsel %vm11901_vm5, %v3585_v51, %v3439_v0  ;;  %vm3475_vm1 = vcmp.ne.s32.totalorder %v3417_v40, 0  ;;  %5647 = vrot.lane.b32.xlu1 %v5584_v42, %s8791_s28  ;;  %vm12834_vm0 = vcmask 228544   ;;  %v6786_v59 = vld [vmem:[#allocation2 + $0x20] sm:$0xff]  ;;  %v11955_v3 = vpop.permute.xlu1 %6113 }
 0x2ad   : > { %6159 = vst.msk [vmem:[#allocation2 + $0x30] sm:$0xff] %vm12834_vm0, %v6112_v47  ;;  %v4205_v2 = vshrl.u32 %v8086_v43, 16  ;;  %v4208_v61 = vshll.u32 %v8086_v43, 16  ;;  %vm3657_vm9 = vcmp.lt.s32.totalorder %v3621_v31, 16  ;;  %vm3511_vm11 = vcmp.lt.s32.totalorder %v3417_v40, 0 }
 0x2ae   : > { %vm12835_vm14 = vcmask 293888   ;;  %v4227_v39 = vrot.slane %v4225_v14, 6  ;;  %v4230_v62 = vrot.slane %v4228_v24, 7  ;;  %v3765_v38 = vsel %vm3657_vm9, %v3008_v12, 0.0  ;;  %vm11926_vm2 = vmand %vm3511_vm11, %vm3475_vm1  ;;  %v11939_v12 = vpop.permute.xlu0 %6722  ;;  %v4322_v47 = vld [vmem:[#allocation3 + $0x98] sm:$0x3] }
 0x2af   : > { %8309 = vmatprep.mubr.msk.bf16.mxu1 %vm12835_vm14, %v6786_v59  ;;  %v3583_v4 = vadd.s32 18, %v3417_v40  ;;  %v6787_v6 = vld [vmem:[#allocation2 + $0x28] sm:$0xff]  ;;  %v4207_v54 = vrot.slane %v4205_v2, 6  ;;  %v4210_v57 = vrot.slane %v4208_v61, 7  ;;  %v8089_v23 = vpack.c.bf16 %v3765_v38, %v3765_v38  ;;  %vm12839_vm3 = vmmov %vm12835_vm14  ;;  %v11983_v24 = vld [vmem:[#allocation3 + $0x80] sm:$0xff]  }
 0x2b0   : > { %vm12838_vm7 = vcmask 1045504   ;;  %8310 = vmatmul.mubr.msk.bf16.gmra.mrb[8].mxu1 %vm12839_vm3, %v6787_v6  ;;  %v11942_v13 = vor.u32 %v4230_v62, %v4227_v39  ;;  %vm12840_vm4 = vsmask.f32 5376  ;;  %v6089_v58 = vrot.slane %v11915_v8, 2  ;;  %v4788_v31 = vpop.permute.xlu1 %4787  ;;  %v8738_v62 = vld [vmem:[#allocation3 + $0x80] sm:$0xff]  }
 0x2b1   : > { %v5851_v33 = vsel %vm12838_vm7, %v5848_v11, %v5850_v60  ;;  %v3619_v0 = vsel %vm11926_vm2, %v3583_v4, %v3417_v40  ;;  %v6425_v55 = vsel %vm12840_vm4, %v11747_v28, %v11912_v27  ;;  %v11951_v34 = vor.u32 %v4210_v57, %v4207_v54  ;;  %v8773_v28 = vld [vmem:[#allocation3 + $0x78] sm:$0xff]   ;;  %vm12841_vm5 = vmmov %vm12838_vm7 }
 0x2b2   : > { %5886 = vrot.lane.b32.xlu1 %v5851_v33, %s8789_s26  ;;  %v4235_v11 = vshrl.u32 %v8089_v23, 16  ;;  %v4238_v50 = vshll.u32 %v8089_v23, 16  ;;  %vm3655_vm8 = vcmp.lt.s32.totalorder %v3619_v0, 16  ;;  %v4233_v18 = vrot.slane %v11942_v13, 4  ;;  %6495 = vrot.lane.b32.xlu0 %v6425_v55, %s8793_s30  ;;  %v5027_v40 = vpop.permute.xlu0 %5026  ;;  %vm12850_vm7 = vmmov %vm12840_vm4 }
 0x2b3   : > { %v3763_v37 = vsel %vm3655_vm8, %v3006_v56, 0.0  ;;  %v4212_v22 = vsel %vm10143_vm15, %v4203_v63, %v11951_v34  ;;  %v6090_v51 = vsel %vm12841_vm5, %v6087_v26, %v6089_v58  ;;  %vm12842_vm12 = vcmask 27648   ;;  %v11980_v26 = vld [vmem:[#allocation3 + $0x78] sm:$0xff]  }
 0x2b4   : > { %v4237_v25 = vrot.slane %v4235_v11, 6  ;;  %v4240_v10 = vrot.slane %v4238_v50, 7  ;;  %4318 = vst.msk [vmem:[#allocation3 + $0x88] sm:$0xf] %vm12842_vm12, %v4212_v22  ;;  %v8087_v56 = vpack.c.bf16 %v3763_v37, %v3763_v37  ;;  %v6700_v9 = vrot.slane %v11930_v44, 3  ;;  %vm12848_vm14 = vmmov %vm12842_vm12 }
 0x2b5   : > { %v6427_v63 = vshrl.u32 %v8733_v19, 16  ;;  %v6430_v43 = vshll.u32 %v8733_v19, 16  ;;  %vm12843_vm10 = vcmask 31744   ;;  %vm12844_vm1 = vcmask 1044480   ;;  %vm12852_vm3 = vmmov %vm12842_vm12 }
 0x2b6   : > { %6125 = vrot.lane.b32.xlu1 %v6090_v51, %s8792_s29  ;;  %4490 = vst.msk [vmem:[#allocation2 + $0x78] sm:$0xff] %vm12843_vm10, %v8773_v28  ;;  %v4241_v42 = vor.u32 %v4240_v10, %v4237_v25  ;;  %v6699_v36 = vsel %vm12844_vm1, %v6696_v52, %v6698_v45  ;;  %v4743_v14 = vshll.u32 %v11953_v1, 16  ;;  %vm12845_vm0 = vmmov %vm12843_vm10  ;;  %v4215_v59 = vshrl.u32 %v8087_v56, 16  ;;  %v11994_v4 = vpop.permute.xlu0 %6724 }
 0x2b7   : > { %4491 = vst.msk [vmem:[#allocation2 + $0x80] sm:$0xff] %vm12845_vm0, %v8774_v49  ;;  %v4218_v2 = vshll.u32 %v8087_v56, 16  ;;  %v6429_v61 = vrot.slane %v6427_v63, 2  ;;  %v6432_v39 = vrot.slane %v6430_v43, 3  ;;  %vm12846_vm9 = vcmask 64544   ;;  %6734 = vrot.lane.b32.xlu0 %v6699_v36, %s8794_s6  ;;  %vm12849_vm2 = vmmov %vm12844_vm1  ;;  %v12035_v43 = vld [vmem:[#allocation3 + $0x80] sm:$0xff]  }
 0x2b8   : > { %4833 = vst.msk [vmem:[#allocation2 + $0x40] sm:$0xff] %vm12846_vm9, %v4788_v31  ;;  %v4213_v35 = vrot.slane %v11951_v34, 4  ;;  %v4242_v52 = vsel %vm10143_vm15, %v4233_v18, %v4241_v42  ;;  %v4243_v38 = vrot.slane %v4241_v42, 4  ;;  %vm12847_vm11 = vcmask 97344   ;;  %v5029_v34 = vpop.permute.xlu1 %5028  ;;  %vm12855_vm5 = vmmov %vm12852_vm3 }
 0x2b9   : > { %5072 = vst.msk [vmem:[#allocation2 + $0x40] sm:$0xff] %vm12847_vm11, %v5027_v40  ;;  %v4217_v6 = vrot.slane %v4215_v59, 6  ;;  %v4220_v54 = vrot.slane %v4218_v2, 7  ;;  %v6701_v57 = vsel %vm12849_vm2, %v6698_v45, %v6700_v9  ;;  %v12002_v23 = vor.u32 %v6432_v39, %v6429_v61 }
 0x2ba   : > { %4321 = vst.msk [vmem:[#allocation3 + $0x94] sm:$0xf] %vm12848_vm14, %v4242_v52  ;;  %v4323_v33 = vsel %vm9740_vm13, %v4243_v38, %v4322_v47  ;;  %v5002_v0 = vrot.slane %v11980_v26, 1  ;;  %v4739_v55 = vshrl.u32 %v11722_v17, 16  ;;  %v4751_v19 = vshll.u32 %v11983_v24, 16  ;;  %v5266_v37 = vpop.permute.xlu0 %5265 }
 0x2bb   : > { %4324 = vst [vmem:[#allocation3 + $0x98] sm:$0x3] %v4323_v33  ;;  %v4221_v11 = vor.u32 %v4220_v54, %v4217_v6  ;;  %v6434_v32 = vsel %vm12850_vm7, %v11912_v27, %v12002_v23  ;;  %v4745_v50 = vrot.slane %v4743_v14, 1  ;;  %v5586_v45 = vshrl.u32 %v8738_v62, 16  ;;  %6736 = vrot.lane.b32.xlu0 %v6701_v57, %s8794_s6  ;;  %v12021_v27 = vld [vmem:[#allocation3 + $0x80] sm:$0xff]  }
 0x2bc   : > { %6497 = vrot.lane.b32.xlu1 %v6434_v32, %s8793_s30  ;;  %v4741_v46 = vor.u32 %v4739_v55, %v11772_v30  ;;  %v5241_v18 = vrot.slane %v11991_v29, 1  ;;  %v5589_v17 = vshll.u32 %v8738_v62, 16  ;;  %v4747_v25 = vshrl.u32 %v11953_v1, 16  ;;  %v5636_v63 = vpop.permute.xlu1 %5635 }
 0x2bd   : > { %v4222_v28 = vsel %vm10143_vm15, %v4213_v35, %v4221_v11  ;;  %v4223_v22 = vrot.slane %v4221_v11, 4  ;;  %v12019_v10 = vrot.slane %v4751_v19, 1  ;;  %vm12851_vm13 = vcmask 130144  }
 0x2be   : > { %5311 = vst.msk [vmem:[#allocation2 + $0x40] sm:$0xff] %vm12851_vm13, %v5266_v37  ;;  %v5588_v51 = vrot.slane %v5586_v45, 1  ;;  %v5591_v30 = vrot.slane %v5589_v17, 2  ;;  %vm12853_vm4 = vcmask 1046528   ;;  %vm12854_vm8 = vsmask.f32 7424  ;;  %v6484_v53 = vpop.permute.xlu0 %6483 }
 0x2bf   : > { %4319 = vst.msk [vmem:[#allocation3 + $0x8c] sm:$0xf] %vm12852_vm3, %v4222_v28  ;;  %v4232_v40 = vsel %vm10143_vm15, %v4223_v22, %v11942_v13  ;;  %v5003_v49 = vsel %vm12853_vm4, %v5000_v41, %v5002_v0  ;;  %v4746_v1 = vsel %vm12854_vm8, %v4741_v46, %v4745_v50  ;;  %v4749_v56 = vor.u32 %v4747_v25, %v4745_v50  ;;  %vm12857_vm10 = vmmov %vm12853_vm4 }
 0x2c0   : > { %4320 = vst.msk [vmem:[#allocation3 + $0x90] sm:$0xf] %vm12855_vm5, %v4232_v40  ;;  %5038 = vrot.lane.b32.xlu0 %v5003_v49, %s8788_s25  ;;  %4799 = vrot.lane.b32.xlu1 %v4746_v1, %s8790_s27  ;;  %vm12856_vm12 = vcmask 162944   ;;  %vm4329_vm15 = vcmask 26624   ;;  %v5242_v16 = vsel %vm12857_vm10, %v5239_v21, %v5241_v18  ;;  %vm12858_vm1 = vcmask 195744   ;;  %vm12861_vm9 = vmmov %vm12854_vm8  ;;  %v4790_v20 = vpop.permute.xlu1 %4789 }
 0x2c1   : > { %5682 = vst.msk [vmem:[#allocation2 + $0x38] sm:$0xff] %vm12856_vm12, %v5636_v63  ;;  %vm12859_vm0 = vcmask 261344   ;;  %v12860_v41 = vmov 0   ;;  %v4754_v47 = vsel %vm12861_vm9, %v4749_v56, %v12019_v10  ;;  %v5592_v36 = vor.u32 %v5591_v30, %v5588_v51  ;;  %vm12866_vm7 = vmmov %vm12856_vm12 }
 0x2c2   : > { %v4325_v13 = vld [vmem:[#allocation3 + $0x98] sm:$0xe]  ;;  %5921 = vst.msk [vmem:[#allocation2 + $0x38] sm:$0xff] %vm12858_vm1, %v11922_v48  ;;  %v5004_v26 = vrot.slane %v12021_v27, 1  ;;  %vm12862_vm11 = vcmask 228544   ;;  %vm12863_vm14 = vcmask 294144   ;;  %v5638_v21 = vpop.permute.xlu0 %5637  ;;  %vm12868_vm3 = vmmov %vm12853_vm4 }
 0x2c3   : > { %6531 = vst.msk [vmem:[#allocation2 + $0x30] sm:$0xff] %vm12859_vm0, %v6484_v53  ;;  %v4326_v42 = vsel %vm10136_vm6, 0, %v4325_v13  ;;  %vm12864_vm6 = vcmask 64544   ;;  %v5852_v48 = vrot.slane %v12035_v43, 2  ;;  %vm12865_vm2 = vcmask 97344   ;;  %vm12869_vm4 = vmmov %vm12859_vm0 }
 0x2c4   : > { %4330 = vst.msk [vmem:[#allocation3 + $0xa0] sm:$0x7] %vm4329_vm15, %v12860_v41  ;;  %4327 = vst [vmem:[#allocation3 + $0x98] sm:$0xe] %v4326_v42  ;;  %5277 = vrot.lane.b32.xlu0 %v5242_v16, %s8787_s24  ;;  %4801 = vrot.lane.b32.xlu1 %v4754_v47, %s8790_s27  ;;  %vm12867_vm13 = vsmask.f32 6400  ;;  %v6486_v62 = vpop.permute.xlu1 %6485 }
 0x2c5   : > { %6160 = vst.msk [vmem:[#allocation2 + $0x38] sm:$0xff] %vm12862_vm11, %v11955_v3  ;;  %v5005_v3 = vsel %vm12868_vm3, %v5002_v0, %v5004_v26  ;;  %vm12870_vm8 = vmmov %vm12863_vm14  ;;  %vm12872_vm12 = vcmask 1045504   ;;  %vm12874_vm10 = vcmask 130144   ;;  %vm12876_vm0 = vcmask 293888  }
 0x2c6   : > { %6770 = vst.msk [vmem:[#allocation2 + $0x30] sm:$0xff] %vm12863_vm14, %v11939_v12  ;;  %v12058_v7 = vld [vmem:[#allocation3 + $0x88] sm:$0xff]   ;;  %v5593_v12 = vsel %vm12867_vm13, %v11887_v5, %v5592_v36  ;;  %v5877_v38 = vpop.permute.xlu0 %5876  ;;  %vm12871_vm5 = vmmov %vm12858_vm1  ;;  %v5853_v33 = vsel %vm12872_vm12, %v5850_v60, %v5852_v48 }
 0x2c7   : > { %4834 = vst.msk [vmem:[#allocation2 + $0x48] sm:$0xff] %vm12864_vm6, %v4790_v20  ;;  %v12062_v14 = vld [vmem:[#allocation3 + $0x88] sm:$0xff]   ;;  %v5243_v59 = vrot.slane %v12058_v7, 1  ;;  %vm12873_vm15 = vmmov %vm12868_vm3  ;;  %v12098_v45 = vld [vmem:[#allocation3 + $0x90] sm:$0xff]   ;;  %vm12880_vm6 = vsmask.f32 5376 }
 0x2c8   : > { %v8744_v31 = vld [vmem:[#allocation3 + $0x88] sm:$0xff]   ;;  %5073 = vst.msk [vmem:[#allocation2 + $0x48] sm:$0xff] %vm12865_vm2, %v5029_v34  ;;  %5649 = vrot.lane.b32.xlu0 %v5593_v12, %s8791_s28  ;;  %5040 = vrot.lane.b32.xlu1 %v5005_v3, %s8788_s25  ;;  %v6091_v5 = vrot.slane %v12062_v14, 2  ;;  %v5268_v11 = vpop.permute.xlu1 %5267  ;;  %vm12875_vm1 = vmmov %vm12872_vm12  ;;  %v6093_v28 = vrot.slane %v12098_v45, 2  ;;  %v12107_v22 = vld [vmem:[#allocation3 + $0x90] sm:$0xff]   ;;  %vm12888_vm12 = vcmask 31744  }
 0x2c9   : > { %5683 = vst.msk [vmem:[#allocation2 + $0x40] sm:$0xff] %vm12866_vm7, %v5638_v21  ;;  %v8745_v2 = vld [vmem:[#allocation3 + $0x88] sm:$0xff]   ;;  %v5595_v61 = vshrl.u32 %v8744_v31, 16  ;;  %v5598_v39 = vshll.u32 %v8744_v31, 16  ;;  %v5244_v0 = vsel %vm12873_vm15, %v5241_v18, %v5243_v59  ;;  %vm12877_vm9 = vmmov %vm12862_vm11  ;;  %v6704_v1 = vrot.slane %v12107_v22, 3  ;;  %v8756_v63 = vld [vmem:[#allocation3 + $0x90] sm:$0xff]  }
 0x2ca   : > { %v6436_v35 = vshrl.u32 %v8745_v2, 16  ;;  %v6439_v52 = vshll.u32 %v8745_v2, 16  ;;  %6532 = vst.msk [vmem:[#allocation2 + $0x38] sm:$0xff] %vm12869_vm4, %v6486_v62  ;;  %v12076_v57 = vld [vmem:[#allocation3 + $0x88] sm:$0xff]   ;;  %v6116_v15 = vpop.permute.xlu0 %6115  ;;  %v6092_v60 = vsel %vm12875_vm1, %v6089_v58, %v6091_v5  ;;  %vm12878_vm11 = vmmov %vm12867_vm13  ;;  %vm12882_vm7 = vcmask 1044480   ;;  %v8754_v42 = vld [vmem:[#allocation3 + $0x90] sm:$0xff]  }
 0x2cb   : > { %v5597_v6 = vrot.slane %v5595_v61, 1  ;;  %v5600_v54 = vrot.slane %v5598_v39, 2  ;;  %6771 = vst.msk [vmem:[#allocation2 + $0x38] sm:$0xff] %vm12870_vm8, %v11994_v4  ;;  %v8751_v4 = vld [vmem:[#allocation3 + $0x90] sm:$0xff]   ;;  %v5854_v29 = vrot.slane %v12076_v57, 2  ;;  %v8747_v50 = vld [vmem:[#allocation3 + $0x88] sm:$0xff]   ;;  %vm12879_vm14 = vmmov %vm12876_vm0 }
 0x2cc   : > { %5922 = vst.msk [vmem:[#allocation2 + $0x40] sm:$0xff] %vm12871_vm5, %v5877_v38  ;;  %v6438_v55 = vrot.slane %v6436_v35, 2  ;;  %v6441_v19 = vrot.slane %v6439_v52, 3  ;;  %5888 = vrot.lane.b32.xlu0 %v5853_v33, %s8789_s26  ;;  %5279 = vrot.lane.b32.xlu1 %v5244_v0, %s8787_s24  ;;  %v6445_v17 = vshrl.u32 %v8751_v4, 16  ;;  %v6448_v37 = vshll.u32 %v8751_v4, 16  ;;  %v8753_v25 = vld [vmem:[#allocation3 + $0x88] sm:$0xff]   ;;  %vm12881_vm2 = vmmov %vm12875_vm1  ;;  %v5879_v14 = vpop.permute.xlu1 %5878 }
 0x2cd   : > { %v12091_v34 = vor.u32 %v5600_v54, %v5597_v6  ;;  %v6788_v32 = vld [vmem:[#allocation2 + $0x30] sm:$0xff]  ;;  %5312 = vst.msk [vmem:[#allocation2 + $0x48] sm:$0xff] %vm12874_vm10, %v5268_v11  ;;  %v6702_v58 = vrot.slane %v8747_v50, 3  ;;  %v5855_v30 = vsel %vm12881_vm2, %v5852_v48, %v5854_v29  ;;  %v8752_v56 = vld [vmem:[#allocation3 + $0x88] sm:$0xff]   ;;  %vm12883_vm13 = vmmov %vm12875_vm1  ;;  %v4759_v13 = vshll.u32 %v8753_v25, 16 }
 0x2ce   : > { %8313 = vmatprep.mubr.msk.bf16.mxu1 %vm12876_vm0, %v6788_v32  ;;  %6161 = vst.msk [vmem:[#allocation2 + $0x40] sm:$0xff] %vm12877_vm9, %v6116_v15  ;;  %v6442_v18 = vor.u32 %v6441_v19, %v6438_v55  ;;  %v6447_v40 = vrot.slane %v6445_v17, 2  ;;  %v6450_v49 = vrot.slane %v6448_v37, 3  ;;  %v8755_v16 = vld [vmem:[#allocation3 + $0x90] ss:$0 sps:$4 sm:$0x11]   ;;  %v6488_v41 = vpop.permute.xlu0 %6487  ;;  %vm12884_vm3 = vmmov %vm12869_vm4 }
 0x2cf   : > { %v5602_v46 = vsel %vm12878_vm11, %v5592_v36, %v12091_v34  ;;  %v6703_v43 = vsel %vm12882_vm7, %v6700_v9, %v6702_v58  ;;  %6533 = vst.msk [vmem:[#allocation2 + $0x40] sm:$0xff] %vm12884_vm3, %v6488_v41  ;;  %vm12885_vm4 = vmmov %vm12882_vm7  ;;  %v4755_v9 = vshrl.u32 %v11983_v24, 16  ;;  %v5604_v47 = vshrl.u32 %v8756_v63, 16  ;;  %v8775_v12 = vld [vmem:[#allocation3 + $0x88] sm:$0xff]   ;;  %v8758_v19 = vld [vmem:[#allocation3 + $0x90] sm:$0xff]  }
 0x2d0   : > { %6127 = vrot.lane.b32.xlu0 %v6092_v60, %s8792_s29  ;;  %5651 = vrot.lane.b32.xlu1 %v5602_v46, %s8791_s28  ;;  %v6443_v51 = vsel %vm12880_vm6, %v12002_v23, %v6442_v18  ;;  %v6094_v23 = vsel %vm12883_vm13, %v6091_v5, %v6093_v28  ;;  %v12124_v53 = vor.u32 %v6450_v49, %v6447_v40  ;;  %v5607_v36 = vshll.u32 %v8756_v63, 16  ;;  %vm12886_vm8 = vmmov %vm12880_vm6  ;;  %v8757_v35 = vld [vmem:[#allocation3 + $0x90] ss:$0 sps:$4 sm:$0x11]   ;;  %v8762_v15 = vld [vmem:[#allocation3 + $0x98] sm:$0xff]  }
 0x2d1   : > { %v6705_v44 = vsel %vm12885_vm4, %v6702_v58, %v6704_v1  ;;  %v5006_v21 = vrot.slane %v8752_v56, 1  ;;  %v4761_v48 = vrot.slane %v4759_v13, 1  ;;  %v4767_v31 = vshll.u32 %v8755_v16, 16  ;;  %4492 = vst.msk [vmem:[#allocation2 + $0x88] sm:$0xff] %vm12888_vm12, %v8775_v12  ;;  %vm12891_vm0 = vmmov %vm12873_vm15  ;;  %v8760_v37 = vld [vmem:[#allocation3 + $0x98] sm:$0xff]  }
 0x2d2   : > { %v6789_v8 = vld [vmem:[#allocation2 + $0x38] sm:$0xff]  ;;  %v6452_v20 = vsel %vm12886_vm8, %v6442_v18, %v12124_v53  ;;  %v4757_v3 = vor.u32 %v4755_v9, %v12019_v10  ;;  %v4763_v2 = vshrl.u32 %v8753_v25, 16  ;;  %v6727_v61 = vpop.permute.xlu0 %6726  ;;  %v5245_v24 = vrot.slane %v8754_v42, 1  ;;  %v8761_v54 = vld [vmem:[#allocation3 + $0x98] ss:$0 sps:$4 sm:$0x33]   ;;  %vm12895_vm6 = vmmov %vm12891_vm0 }
 0x2d3   : > { %8314 = vmatmul.mubr.msk.bf16.gmra.mrb[12].mxu1 %vm12879_vm14, %v6789_v8  ;;  %v5606_v39 = vrot.slane %v5604_v47, 1  ;;  %v5609_v62 = vrot.slane %v5607_v36, 2  ;;  %vm12887_vm5 = vcmask 294144   ;;  %v5007_v52 = vsel %vm12873_vm15, %v5004_v26, %v5006_v21  ;;  %v8759_v4 = vld [vmem:[#allocation3 + $0x98] ss:$0 sps:$4 sm:$0x11]   ;;  %vm12898_vm13 = vmmov %vm12891_vm0 }
 0x2d4   : > { %6499 = vrot.lane.b32.xlu0 %v6443_v51, %s8793_s30  ;;  %5890 = vrot.lane.b32.xlu1 %v5855_v30, %s8789_s26  ;;  %6772 = vst.msk [vmem:[#allocation2 + $0x40] sm:$0xff] %vm12887_vm5, %v6727_v61  ;;  %vm12889_vm10 = vsmask.f32 7424  ;;  %v4765_v5 = vor.u32 %v4763_v2, %v4761_v48  ;;  %v4769_v6 = vrot.slane %v4767_v31, 1  ;;  %vm12890_vm1 = vcmask 162944   ;;  %vm12900_vm8 = vmmov %vm12887_vm5 }
 0x2d5   : > { %v4762_v38 = vsel %vm12889_vm10, %v4757_v3, %v4761_v48  ;;  %v5610_v0 = vor.u32 %v5609_v62, %v5606_v39  ;;  %v5008_v55 = vrot.slane %v8757_v35, 1  ;;  %v5246_v27 = vsel %vm12891_vm0, %v5243_v59, %v5245_v24  ;;  %vm12892_vm9 = vmmov %vm12889_vm10  ;;  %v8764_v56 = vld [vmem:[#allocation3 + $0x98] ss:$0 sps:$4 sm:$0x33]  }
 0x2d6   : > { %v4770_v26 = vsel %vm12892_vm9, %v4765_v5, %v4769_v6  ;;  %vm12893_vm11 = vcmask 195744   ;;  %v5613_v11 = vshrl.u32 %v8761_v54, 16  ;;  %v5616_v32 = vshll.u32 %v8761_v54, 16  ;;  %v8768_v16 = vld [vmem:[#allocation3 + $0xa0] ss:$0 sps:$4 sm:$0x77]  }
 0x2d7   : > { %v5640_v10 = vpop.permute.xlu1 %5639  ;;  %v6729_v33 = vpop.permute.xlu0 %6728  ;;  %vm12894_vm14 = vsmask.f32 6400  ;;  %v5009_v7 = vsel %vm12895_vm6, %v5006_v21, %v5008_v55  ;;  %v5856_v59 = vrot.slane %v8758_v19, 2  ;;  %vm12896_vm2 = vcmask 228544  }
 0x2d8   : > { %6738 = vrot.lane.b32.xlu0 %v6703_v43, %s8794_s6  ;;  %6129 = vrot.lane.b32.xlu1 %v6094_v23, %s8792_s29  ;;  %5684 = vst.msk [vmem:[#allocation2 + $0x48] sm:$0xff] %vm12890_vm1, %v5640_v10  ;;  %v5611_v18 = vsel %vm12894_vm14, %v12091_v34, %v5610_v0  ;;  %v5247_v17 = vrot.slane %v8759_v4, 1  ;;  %vm12897_vm7 = vcmask 293888   ;;  %v5615_v8 = vrot.slane %v5613_v11, 1  ;;  %vm12903_vm15 = vmmov %vm12894_vm14 }
 0x2d9   : > { %5923 = vst.msk [vmem:[#allocation2 + $0x48] sm:$0xff] %vm12893_vm11, %v5879_v14  ;;  %v5618_v58 = vrot.slane %v5616_v32, 2  ;;  %v6454_v25 = vshrl.u32 %v8762_v15, 16  ;;  %v6457_v51 = vshll.u32 %v8762_v15, 16  ;;  %v6095_v49 = vrot.slane %v8760_v37, 2 }
 0x2da   : > { %v5248_v34 = vsel %vm12898_vm13, %v5245_v24, %v5247_v17  ;;  %vm12899_vm4 = vcmask 1045504   ;;  %vm12902_vm12 = vcmask 64544   ;;  %v5858_v57 = vrot.slane %v8764_v56, 2  ;;  %v8767_v36 = vld [vmem:[#allocation3 + $0xa0] ss:$0 sps:$4 sm:$0x33]  }
 0x2db   : > { %v6118_v60 = vpop.permute.xlu1 %6117  ;;  %v5031_v50 = vpop.permute.xlu0 %5030  ;;  %v6790_v46 = vld [vmem:[#allocation2 + $0x40] sm:$0xff]  ;;  %v5857_v63 = vsel %vm12899_vm4, %v5854_v29, %v5856_v59  ;;  %v5619_v43 = vor.u32 %v5618_v58, %v5615_v8  ;;  %v6456_v23 = vrot.slane %v6454_v25, 2  ;;  %v6459_v13 = vrot.slane %v6457_v51, 3  ;;  %vm12901_vm5 = vmmov %vm12899_vm4  ;;  %v8765_v29 = vld [vmem:[#allocation3 + $0x98] sm:$0xff]  }
 0x2dc   : > { %6740 = vrot.lane.b32.xlu0 %v6705_v44, %s8794_s6  ;;  %6501 = vrot.lane.b32.xlu1 %v6452_v20, %s8793_s30  ;;  %6162 = vst.msk [vmem:[#allocation2 + $0x48] sm:$0xff] %vm12896_vm2, %v6118_v60  ;;  %v6096_v9 = vsel %vm12901_vm5, %v6093_v28, %v6095_v49  ;;  %vm12904_vm10 = vcmask 97344   ;;  %v6463_v20 = vshrl.u32 %v8768_v16, 16  ;;  %v6466_v21 = vshll.u32 %v8768_v16, 16  ;;  %vm12907_vm9 = vmmov %vm12899_vm4  ;;  %v6805_v16 = vld [vmem:[%s8840_s23 + $0x8] sm:$0xe] }
 0x2dd   : > { %8317 = vmatprep.mubr.msk.bf16.mxu1 %vm12897_vm7, %v6790_v46  ;;  %v5620_v42 = vsel %vm12903_vm15, %v5610_v0, %v5619_v43  ;;  %v6460_v47 = vor.u32 %v6459_v13, %v6456_v23  ;;  %vm12905_vm1 = vcmask 130144   ;;  %vm12906_vm0 = vcmask 162944   ;;  %vm12908_vm11 = vmmov %vm12902_vm12  ;;  %v8194_v13 = vld [vmem:[%s8840_s23 + $0x10] sm:$0xff]  }
 0x2de   : > { %v5859_v48 = vsel %vm12907_vm9, %v5856_v59, %v5858_v57  ;;  %v6706_v14 = vrot.slane %v8765_v29, 3  ;;  %vm12909_vm14 = vcmask 195744   ;;  %vm12910_vm6 = vsmask.f32 5376  ;;  %vm12911_vm2 = vmmov %vm12897_vm7  ;;  %v12237_v57 = vld [vmem:[%s8840_s23 + $0x18] sm:$0xff]  }
 0x2df   : > { %v6490_v30 = vpop.permute.xlu1 %6489  ;;  %v5270_v40 = vpop.permute.xlu0 %5269  ;;  %v6461_v12 = vsel %vm12910_vm6, %v12124_v53, %v6460_v47  ;;  %v6097_v3 = vrot.slane %v8767_v36, 2  ;;  %v6465_v2 = vrot.slane %v6463_v20, 2  ;;  %v6468_v61 = vrot.slane %v6466_v21, 3  ;;  %vm12912_vm7 = vmmov %vm12904_vm10 }
 0x2e0   : > { %5042 = vrot.lane.b32.xlu0 %v5007_v52, %s8788_s25  ;;  %4803 = vrot.lane.b32.xlu1 %v4762_v38, %s8790_s27  ;;  %6534 = vst.msk [vmem:[#allocation2 + $0x48] sm:$0xff] %vm12884_vm3, %v6490_v30  ;;  %vm12913_vm13 = vcmask 228544   ;;  %vm12914_vm3 = vcmask 1044480   ;;  %v8769_v52 = vld [vmem:[#allocation3 + $0xa0] ss:$0 sps:$4 sm:$0x77]   ;;  %vm12916_vm5 = vmmov %vm12910_vm6  ;;  %v8128_v29 = vunpack.c.l.bf16 %v8194_v13  ;;  %v8132_v20 = vunpack.c.l.bf16 %v12237_v57 }
 0x2e1   : > { %6773 = vst.msk [vmem:[#allocation2 + $0x48] sm:$0xff] %vm12900_vm8, %v6729_v33  ;;  %v6707_v62 = vsel %vm12914_vm3, %v6704_v1, %v6706_v14  ;;  %v6098_v53 = vsel %vm12899_vm4, %v6095_v49, %v6097_v3  ;;  %v6469_v35 = vor.u32 %v6468_v61, %v6465_v2  ;;  %vm12915_vm8 = vmmov %vm12905_vm1  ;;  %v6708_v6 = vrot.slane %v8769_v52, 3 }
 0x2e2   : > { %vm12918_vm15 = vmmov %vm12914_vm3  ;;  %vm12922_vm9 = vcmask 294144   ;;  %vm12925_vm6 = vcmask 64544   ;;  %v12249_v3 = vrot.slane %v8132_v20, 3 }
 0x2e3   : > { %v4792_v41 = vpop.permute.xlu1 %4791  ;;  %v5642_v44 = vpop.permute.xlu0 %5641  ;;  %v6470_v5 = vsel %vm12916_vm5, %v6460_v47, %v6469_v35  ;;  %v6709_v22 = vsel %vm12918_vm15, %v6706_v14, %v6708_v6  ;;  %vm12927_vm3 = vmmov %vm12915_vm8  ;;  %v6842_v47 = vunpack.c.l.bf16 %v6805_v16 }
 0x2e4   : > { %5281 = vrot.lane.b32.xlu0 %v5246_v27, %s8787_s24  ;;  %4805 = vrot.lane.b32.xlu1 %v4770_v26, %s8790_s27  ;;  %4835 = vst.msk [vmem:[#allocation2 + $0x50] sm:$0xff] %vm12902_vm12, %v4792_v41  ;;  %vm12917_vm12 = vmmov %vm12906_vm0  ;;  %v6806_v41 = vld [vmem:[%s8840_s23 + $0xc] sm:$0xf] }
 0x2e5   : > { %5074 = vst.msk [vmem:[#allocation2 + $0x50] sm:$0xff] %vm12904_vm10, %v5031_v50  ;;  %vm12919_vm10 = vmmov %vm12909_vm14  ;;  %v6843_v36 = vunpack.c.l.bf16 %v6806_v41  ;;  %v7173_v14 = vrot.slane %v6842_v47, 3 }
 0x2e6   : > { %5313 = vst.msk [vmem:[#allocation2 + $0x50] sm:$0xff] %vm12905_vm1, %v5270_v40  ;;  %vm12920_vm1 = vcmask 261344   ;;  %vm12928_vm4 = vmmov %vm12911_vm2 }
 0x2e7   : > { %v4794_v45 = vpop.permute.xlu1 %4793  ;;  %5685 = vst.msk [vmem:[#allocation2 + $0x50] sm:$0xff] %vm12906_vm0, %v5642_v44  ;;  %v5881_v28 = vpop.permute.xlu0 %5880  ;;  %vm12921_vm0 = vmmov %vm12913_vm13 }
 0x2e8   : > { %5653 = vrot.lane.b32.xlu0 %v5611_v18, %s8791_s28  ;;  %5044 = vrot.lane.b32.xlu1 %v5009_v7, %s8788_s25  ;;  %4836 = vst.msk [vmem:[#allocation2 + $0x58] sm:$0xff] %vm12908_vm11, %v4794_v45  ;;  %v6791_v31 = vld [vmem:[#allocation2 + $0x48] sm:$0xff]  ;;  %vm12923_vm11 = vmmov %vm12920_vm1 }
 0x2e9   : > { %5924 = vst.msk [vmem:[#allocation2 + $0x50] sm:$0xff] %vm12909_vm14, %v5881_v28  ;;  %8318 = vmatmul.mubr.msk.bf16.gmra.mrb[16].mxu1 %vm12911_vm2, %v6791_v31  ;;  %vm12924_vm14 = vmmov %vm12922_vm9  ;;  %v7176_v28 = vrot.slane %v8128_v29, 3  ;;  %v7174_v31 = vrot.slane %v6843_v36, 3 }
 0x2ea   : > { %vm12930_vm5 = vmmov %vm12917_vm12 }
 0x2eb   : > { %v5033_v24 = vpop.permute.xlu1 %5032  ;;  %v6120_v39 = vpop.permute.xlu0 %6119  ;;  %vm12932_vm15 = vmmov %vm12919_vm10 }
 0x2ec   : > { %5892 = vrot.lane.b32.xlu0 %v5857_v63, %s8789_s26  ;;  %5283 = vrot.lane.b32.xlu1 %v5248_v34, %s8787_s24  ;;  %5075 = vst.msk [vmem:[#allocation2 + $0x58] sm:$0xff] %vm12912_vm7, %v5033_v24 }
 0x2ed   : > { %6163 = vst.msk [vmem:[#allocation2 + $0x50] sm:$0xff] %vm12913_vm13, %v6120_v39  ;;  %vm12926_vm13 = vmmov %vm12925_vm6 }
 0x2ef   : > { %v5272_v38 = vpop.permute.xlu1 %5271 }
 0x2f0   : > { %6131 = vrot.lane.b32.xlu0 %v6096_v9, %s8792_s29  ;;  %5655 = vrot.lane.b32.xlu1 %v5620_v42, %s8791_s28  ;;  %5314 = vst.msk [vmem:[#allocation2 + $0x58] sm:$0xff] %vm12915_vm8, %v5272_v38  ;;  %vm12929_vm8 = vmmov %vm12912_vm7  ;;  %v8129_v42 = vunpack.c.h.bf16 %v8194_v13 }
 0x2f4   : > { %6503 = vrot.lane.b32.xlu0 %v6461_v12, %s8793_s30  ;;  %5894 = vrot.lane.b32.xlu1 %v5859_v48, %s8789_s26  ;;  %v7178_v48 = vrot.slane %v8129_v42, 3  ;;  %v12247_v12 = vld [vmem:[%s12461_s4] ss:$0 sm:$0xff]  ;;  %s8340_s26 = smul.u32 144, %s13044_s19 }
 0x2f5   : > { %v5644_v54 = vpop.permute.xlu1 %5643 }
 0x2f6   : > { %5686 = vst.msk [vmem:[#allocation2 + $0x58] sm:$0xff] %vm12917_vm12, %v5644_v54  ;;  %vm12931_vm12 = vmmov %vm12927_vm3  ;;  %s12268_s28 = scalar_lea.vmem %s12462_s5, %s8340_s26 }
 0x2f8   : > { %6742 = vrot.lane.b32.xlu0 %v6707_v62, %s8794_s6  ;;  %6133 = vrot.lane.b32.xlu1 %v6098_v53, %s8792_s29 }
 0x2fc   : > { %6505 = vrot.lane.b32.xlu1 %v6470_v5, %s8793_s30 }
 0x2fd   : > { %v5883_v1 = vpop.permute.xlu1 %5882 }
 0x2fe   : > { %5925 = vst.msk [vmem:[#allocation2 + $0x58] sm:$0xff] %vm12919_vm10, %v5883_v1  ;;  %vm12933_vm10 = vmmov %vm12930_vm5 }
 0x300   : > { %6744 = vrot.lane.b32.xlu1 %v6709_v22, %s8794_s6 }
 0x301   : > { %v6492_v10 = vpop.permute.xlu0 %6491  ;;  %v6122_v33 = vpop.permute.xlu1 %6121 }
 0x302   : > { %6535 = vst.msk [vmem:[#allocation2 + $0x50] sm:$0xff] %vm12920_vm1, %v6492_v10  ;;  %vm12934_vm1 = vmmov %vm12921_vm0 }
 0x303   : > { %6164 = vst.msk [vmem:[#allocation2 + $0x58] sm:$0xff] %vm12921_vm0, %v6122_v33  ;;  %vm12935_vm0 = vmmov %vm12932_vm15 }
 0x305   : > { %v6731_v0 = vpop.permute.xlu0 %6730  ;;  %v6494_v55 = vpop.permute.xlu1 %6493 }
 0x306   : > { %6774 = vst.msk [vmem:[#allocation2 + $0x50] sm:$0xff] %vm12922_vm9, %v6731_v0  ;;  %vm12936_vm9 = vmmov %vm12923_vm11 }
 0x307   : > { %6536 = vst.msk [vmem:[#allocation2 + $0x58] sm:$0xff] %vm12923_vm11, %v6494_v55  ;;  %vm12937_vm11 = vmmov %vm12934_vm1 }
 0x309   : > { %v6733_v19 = vpop.permute.xlu0 %6732 }
 0x30a   : > { %6775 = vst.msk [vmem:[#allocation2 + $0x58] sm:$0xff] %vm12924_vm14, %v6733_v19 }
 0x30b   : > { %v4796_v4 = vpop.permute.xlu1 %4795 }
 0x30c   : > { %4837 = vst.msk [vmem:[#allocation2 + $0x60] sm:$0xff] %vm12925_vm6, %v4796_v4  ;;  %vm12938_vm6 = vmmov %vm12936_vm9 }
 0x30d   : > { %v5035_v27 = vpop.permute.xlu0 %5034  ;;  %v6792_v26 = vld [vmem:[#allocation2 + $0x50] sm:$0xff] }
 0x30e   : > { %8321 = vmatprep.mubr.msk.bf16.mxu1 %vm12911_vm2, %v6792_v26  ;;  %5076 = vst.msk [vmem:[#allocation2 + $0x60] sm:$0xff] %vm12912_vm7, %v5035_v27  ;;  %vm12939_vm2 = vmmov %vm12924_vm14 }
 0x30f   : > { %v4798_v11 = vpop.permute.xlu1 %4797  ;;  %vm12940_vm7 = vmmov %vm12928_vm4 }
 0x310   : > { %4838 = vst.msk [vmem:[#allocation2 + $0x68] sm:$0xff] %vm12926_vm13, %v4798_v11 }
 0x311   : > { %v5274_v32 = vpop.permute.xlu0 %5273  ;;  %v6793_v15 = vld [vmem:[#allocation2 + $0x58] sm:$0xff] }
 0x312   : > { %5315 = vst.msk [vmem:[#allocation2 + $0x60] sm:$0xff] %vm12927_vm3, %v5274_v32  ;;  %8322 = vmatmul.mubr.msk.bf16.gmra.mrb[20].mxu1 %vm12928_vm4, %v6793_v15  ;;  %vm12941_vm3 = vmmov %vm12929_vm8 }
 0x313   : > { %v5037_v60 = vpop.permute.xlu1 %5036  ;;  %vm12942_vm4 = vmmov %vm12931_vm12 }
 0x314   : > { %5077 = vst.msk [vmem:[#allocation2 + $0x68] sm:$0xff] %vm12929_vm8, %v5037_v60  ;;  %vm12943_vm8 = vmmov %vm12926_vm13 }
 0x315   : > { %v5646_v50 = vpop.permute.xlu0 %5645 }
 0x316   : > { %5687 = vst.msk [vmem:[#allocation2 + $0x60] sm:$0xff] %vm12930_vm5, %v5646_v50  ;;  %vm12944_vm5 = vmmov %vm12940_vm7 }
 0x317   : > { %v5276_v46 = vpop.permute.xlu1 %5275 }
 0x318   : > { %5316 = vst.msk [vmem:[#allocation2 + $0x68] sm:$0xff] %vm12931_vm12, %v5276_v46  ;;  %vm12945_vm12 = vmmov %vm12933_vm10 }
 0x319   : > { %v5885_v18 = vpop.permute.xlu0 %5884 }
 0x31a   : > { %5926 = vst.msk [vmem:[#allocation2 + $0x60] sm:$0xff] %vm12932_vm15, %v5885_v18  ;;  %vm12946_vm15 = vmmov %vm12941_vm3 }
 0x31d   : > { %v6124_v59 = vpop.permute.xlu0 %6123 }
 0x31e   : > { %v5648_v7 = vpop.permute.xlu1 %5647  ;;  %6165 = vst.msk [vmem:[#allocation2 + $0x60] sm:$0xff] %vm12934_vm1, %v6124_v59  ;;  %vm12948_vm1 = vmmov %vm12942_vm4 }
 0x31f   : > { %5688 = vst.msk [vmem:[#allocation2 + $0x68] sm:$0xff] %vm12933_vm10, %v5648_v7  ;;  %vm12947_vm10 = vmmov %vm12935_vm0 }
 0x324   : > { %v5887_v17 = vpop.permute.xlu1 %5886  ;;  %v6496_v37 = vpop.permute.xlu0 %6495 }
 0x325   : > { %5927 = vst.msk [vmem:[#allocation2 + $0x68] sm:$0xff] %vm12935_vm0, %v5887_v17  ;;  %vm12949_vm0 = vmmov %vm12937_vm11 }
 0x326   : > { %6537 = vst.msk [vmem:[#allocation2 + $0x60] sm:$0xff] %vm12936_vm9, %v6496_v37  ;;  %vm12950_vm9 = vmmov %vm12945_vm12 }
 0x328   : > { %v6126_v8 = vpop.permute.xlu1 %6125 }
 0x329   : > { %6166 = vst.msk [vmem:[#allocation2 + $0x68] sm:$0xff] %vm12937_vm11, %v6126_v8  ;;  %v6735_v58 = vpop.permute.xlu0 %6734  ;;  %vm12951_vm11 = vmmov %vm12938_vm6 }
 0x32a   : > { %6776 = vst.msk [vmem:[#allocation2 + $0x60] sm:$0xff] %vm12924_vm14, %v6735_v58  ;;  %vm12952_vm14 = vmmov %vm12947_vm10 }
 0x32d   : > { %v6737_v25 = vpop.permute.xlu0 %6736 }
 0x32e   : > { %v6498_v51 = vpop.permute.xlu1 %6497 }
 0x32f   : > { %6538 = vst.msk [vmem:[#allocation2 + $0x68] sm:$0xff] %vm12938_vm6, %v6498_v51  ;;  %vm12953_vm6 = vcmask 1044480   ;;  %v8196_v51 = vld [vmem:[%s8840_s23 + $0x20] sm:$0xff]  }
 0x330   : > { %6777 = vst.msk [vmem:[#allocation2 + $0x68] sm:$0xff] %vm12939_vm2, %v6737_v25  ;;  %v7179_v39 = vsel %vm12953_vm6, %v7176_v28, %v7178_v48  ;;  %vm12954_vm2 = vmmov %vm12953_vm6 }
 0x331   : > { %v6794_v40 = vld [vmem:[#allocation2 + $0x60] sm:$0xff]  ;;  %v7175_v35 = vsel %vm12954_vm2, %v7173_v14, %v7174_v31 }
 0x332   : > { %v5039_v30 = vpop.permute.xlu0 %5038  ;;  %v4800_v34 = vpop.permute.xlu1 %4799  ;;  %8325 = vmatprep.mubr.msk.bf16.mxu1 %vm12940_vm7, %v6794_v40  ;;  %vm12955_vm7 = vmmov %vm12954_vm2 }
 0x333   : > { %4839 = vst.msk [vmem:[#allocation2 + $0x70] sm:$0xff] %vm12926_vm13, %v4800_v34  ;;  %v7181_v5 = vsel %vm12955_vm7, %v7178_v48, %v12249_v3  ;;  %vm12956_vm13 = vcmask 294144   ;;  %v12288_v34 = vld [vmem:[%s8840_s23 + $0x28] sm:$0xff]   ;;  %vm12971_vm7 = vcmask 162944  }
 0x334   : > { %5078 = vst.msk [vmem:[#allocation2 + $0x70] sm:$0xff] %vm12941_vm3, %v5039_v30  ;;  %vm12957_vm3 = vmmov %vm12949_vm0 }
 0x336   : > { %v5278_v49 = vpop.permute.xlu0 %5277  ;;  %v4802_v56 = vpop.permute.xlu1 %4801 }
 0x337   : > { %5317 = vst.msk [vmem:[#allocation2 + $0x70] sm:$0xff] %vm12942_vm4, %v5278_v49  ;;  %v6795_v63 = vld [vmem:[#allocation2 + $0x68] sm:$0xff]  ;;  %vm12958_vm4 = vmmov %vm12954_vm2  ;;  %v8136_v49 = vunpack.c.l.bf16 %v8196_v51 }
 0x338   : > { %4840 = vst.msk [vmem:[#allocation2 + $0x78] sm:$0xff] %vm12943_vm8, %v4802_v56  ;;  %8326 = vmatmul.mubr.msk.bf16.gmra.mrb[24].mxu1 %vm12944_vm5, %v6795_v63  ;;  %v7177_v0 = vsel %vm12958_vm4, %v7174_v31, %v7176_v28  ;;  %vm12959_vm8 = vmmov %vm12951_vm11  ;;  %v8137_v56 = vunpack.c.h.bf16 %v8196_v51  ;;  %v8133_v63 = vunpack.c.h.bf16 %v12237_v57 }
 0x339   : > { %vm12960_vm5 = vmmov %vm12956_vm13  ;;  %v7184_v16 = vrot.slane %v8136_v49, 3 }
 0x33a   : > { %v5650_v43 = vpop.permute.xlu0 %5649  ;;  %v5041_v23 = vpop.permute.xlu1 %5040  ;;  %v7186_v41 = vrot.slane %v8137_v56, 3 }
 0x33b   : > { %5689 = vst.msk [vmem:[#allocation2 + $0x70] sm:$0xff] %vm12945_vm12, %v5650_v43  ;;  %vm12961_vm12 = vcmask 27648   ;;  %v8140_v43 = vunpack.c.l.bf16 %v12288_v34 }
 0x33c   : > { %5079 = vst.msk [vmem:[#allocation2 + $0x78] sm:$0xff] %vm12946_vm15, %v5041_v23  ;;  %vm12962_vm15 = vmmov %vm12961_vm12 }
 0x33d   : > { %v8303_v24 = vpop.f32.mrb[0].mxu1 }
 0x33e   : > { %v5889_v44 = vpop.permute.xlu0 %5888  ;;  %v5280_v9 = vpop.permute.xlu1 %5279  ;;  %v7001_v62 = vadd.f32 %v8303_v24, %v12247_v12 }
 0x33f   : > { %5928 = vst.msk [vmem:[#allocation2 + $0x70] sm:$0xff] %vm12947_vm10, %v5889_v44  ;;  %v6992_v53 = vpop.f32.mrb[1].mxu1  ;;  %vm12963_vm10 = vmmov %vm12961_vm12  ;;  %v7182_v44 = vrot.slane %v8133_v63, 3 }
 0x340   : > { %5318 = vst.msk [vmem:[#allocation2 + $0x78] sm:$0xff] %vm12948_vm1, %v5280_v9  ;;  %v6993_v52 = vadd.f32 %v12247_v12, %v6992_v53  ;;  %v8304_v38 = vpop.f32.mrb[2].mxu1  ;;  %v7284_v22 = vadd.f32 %v7179_v39, %v7001_v62  ;;  %vm12964_vm1 = vcmask 293888   ;;  %v12296_v9 = vrot.slane %v8140_v43, 3 }
 0x341   : > { %v7004_v1 = vadd.f32 %v8304_v38, %v12247_v12  ;;  %v6995_v33 = vpop.f32.mrb[3].mxu1  ;;  %vm12970_vm2 = vmmov %vm12964_vm1 }
 0x342   : > { %v6128_v21 = vpop.permute.xlu0 %6127  ;;  %v5652_v45 = vpop.permute.xlu1 %5651  ;;  %v7282_v10 = vadd.f32 %v7175_v35, %v6993_v52  ;;  %v7320_v55 = vmax.f32 %v7284_v22, 0.0  ;;  %v6996_v4 = vadd.f32 %v12247_v12, %v6995_v33 }
 0x343   : > { %6167 = vst.msk [vmem:[#allocation2 + $0x70] sm:$0xff] %vm12949_vm0, %v6128_v21  ;;  %v7285_v19 = vadd.f32 %v7181_v5, %v7004_v1  ;;  %vm12965_vm0 = vcmask 64544  }
 0x344   : > { %5690 = vst.msk [vmem:[#allocation2 + $0x78] sm:$0xff] %vm12950_vm9, %v5652_v45  ;;  %v7318_v27 = vmax.f32 %v7282_v10, 0.0  ;;  %v8092_v32 = vpack.c.bf16 %v7320_v55, %v7320_v55  ;;  %v7283_v60 = vadd.f32 %v7177_v0, %v6996_v4  ;;  %vm12966_vm9 = vcmask 97344   ;;  %vm12969_vm6 = vmmov %vm12965_vm0 }
 0x345   : > { %v7321_v15 = vmax.f32 %v7285_v19, 0.0 }
 0x346   : > { %v6500_v2 = vpop.permute.xlu0 %6499  ;;  %v5891_v61 = vpop.permute.xlu1 %5890  ;;  %v8090_v50 = vpack.c.bf16 %v7318_v27, %v7318_v27  ;;  %7500 = vst.msk [vmem:[%s12268_s28 + $0x8] sm:$0xf] %vm12961_vm12, %v8092_v32  ;;  %v7319_v18 = vmax.f32 %v7283_v60, 0.0  ;;  %vm12977_vm12 = vcmask 1044480   ;;  %v8198_v27 = vld [vmem:[%s8840_s23 + $0x30] sm:$0xff]   ;;  %v8141_v60 = vunpack.c.h.bf16 %v12288_v34 }
 0x347   : > { %6539 = vst.msk [vmem:[#allocation2 + $0x70] sm:$0xff] %vm12951_vm11, %v6500_v2  ;;  %v8093_v46 = vpack.c.bf16 %v7321_v15, %v7321_v15  ;;  %vm12967_vm11 = vmmov %vm12963_vm10  ;;  %v7187_v47 = vsel %vm12977_vm12, %v7184_v16, %v7186_v41  ;;  %v8144_v32 = vunpack.c.l.bf16 %v8198_v27  ;;  %v8145_v15 = vunpack.c.h.bf16 %v8198_v27 }
 0x348   : > { %5929 = vst.msk [vmem:[#allocation2 + $0x78] sm:$0xff] %vm12952_vm14, %v5891_v61  ;;  %v8091_v37 = vpack.c.bf16 %v7319_v18, %v7319_v18  ;;  %vm12968_vm14 = vcmask 130144  }
 0x349   : > { %7498 = vst.msk [vmem:[%s12268_s28] sm:$0xf] %vm12962_vm15, %v8090_v50  ;;  %vm12974_vm4 = vmmov %vm12968_vm14  ;;  %v7194_v18 = vrot.slane %v8145_v15, 3 }
 0x34a   : > { %v6739_v6 = vpop.permute.xlu0 %6738  ;;  %v6130_v54 = vpop.permute.xlu1 %6129  ;;  %7501 = vst.msk [vmem:[%s12268_s28 + $0xc] sm:$0xf] %vm12963_vm10, %v8093_v46  ;;  %vm12978_vm15 = vmmov %vm12977_vm12  ;;  %v7192_v46 = vrot.slane %v8144_v32, 3 }
 0x34b   : > { %6778 = vst.msk [vmem:[#allocation2 + $0x70] sm:$0xff] %vm12956_vm13, %v6739_v6  ;;  %vm12972_vm13 = vmmov %vm12966_vm9  ;;  %v7183_v21 = vsel %vm12978_vm15, %v12249_v3, %v7182_v44 }
 0x34c   : > { %6168 = vst.msk [vmem:[#allocation2 + $0x78] sm:$0xff] %vm12957_vm3, %v6130_v54  ;;  %vm12973_vm3 = vcmask 195744   ;;  %vm12979_vm10 = vmmov %vm12977_vm12 }
 0x34d   : > { %7499 = vst.msk [vmem:[%s12268_s28 + $0x4] sm:$0xf] %vm12967_vm11, %v8091_v37  ;;  %v7189_v48 = vsel %vm12979_vm10, %v7186_v41, %v12296_v9  ;;  %vm12983_vm11 = vcmask 294144  }
 0x34e   : > { %v6741_v26 = vpop.permute.xlu0 %6740  ;;  %v6502_v11 = vpop.permute.xlu1 %6501 }
 0x34f   : > { %6540 = vst.msk [vmem:[#allocation2 + $0x78] sm:$0xff] %vm12959_vm8, %v6502_v11  ;;  %vm12975_vm8 = vcmask 228544   ;;  %v8199_v11 = vld [vmem:[%s8840_s23 + $0x38] sm:$0xff]  }
 0x350   : > { %6779 = vst.msk [vmem:[#allocation2 + $0x78] sm:$0xff] %vm12960_vm5, %v6741_v26  ;;  %vm12976_vm5 = vmmov %vm12971_vm7  ;;  %v8148_v50 = vunpack.c.l.bf16 %v8199_v11 }
 0x352   : > { %v5043_v7 = vpop.permute.xlu0 %5042  ;;  %v6796_v59 = vld [vmem:[#allocation2 + $0x70] sm:$0xff]  ;;  %v4804_v17 = vpop.permute.xlu1 %4803 }
 0x353   : > { %8329 = vmatprep.mubr.msk.bf16.mxu1 %vm12964_vm1, %v6796_v59  ;;  %4841 = vst.msk [vmem:[#allocation2 + $0x80] sm:$0xff] %vm12965_vm0, %v4804_v17  ;;  %vm12980_vm1 = vcmask 261344   ;;  %vm12981_vm0 = vmmov %vm12973_vm3  ;;  %v7196_v59 = vrot.slane %v8148_v50, 3  ;;  %v8202_v50 = vld [vmem:[%s8840_s23 + $0x50] sm:$0xff]  }
 0x354   : > { %5080 = vst.msk [vmem:[#allocation2 + $0x80] sm:$0xff] %vm12966_vm9, %v5043_v7  ;;  %vm12982_vm9 = vmmov %vm12979_vm10  ;;  %v7190_v7 = vrot.slane %v8141_v60, 3 }
 0x355   : > { %v7185_v3 = vsel %vm12982_vm9, %v7182_v44, %v7184_v16  ;;  %vm12993_vm12 = vmmov %vm12982_vm9 }
 0x356   : > { %v5282_v8 = vpop.permute.xlu0 %5281  ;;  %v4806_v58 = vpop.permute.xlu1 %4805  ;;  %v7195_v37 = vsel %vm12993_vm12, %v7192_v46, %v7194_v18  ;;  %vm12994_vm15 = vmmov %vm12982_vm9 }
 0x357   : > { %5319 = vst.msk [vmem:[#allocation2 + $0x80] sm:$0xff] %vm12968_vm14, %v5282_v8  ;;  %v6797_v25 = vld [vmem:[#allocation2 + $0x78] sm:$0xff]  ;;  %vm12984_vm14 = vmmov %vm12975_vm8 }
 0x358   : > { %4842 = vst.msk [vmem:[#allocation2 + $0x88] sm:$0xff] %vm12969_vm6, %v4806_v58  ;;  %8330 = vmatmul.mubr.msk.bf16.gmra.mrb[28].mxu1 %vm12970_vm2, %v6797_v25  ;;  %vm12985_vm6 = vcmask 27648   ;;  %v7191_v25 = vsel %vm12994_vm15, %v12296_v9, %v7190_v7  ;;  %vm12995_vm10 = vmmov %vm12982_vm9 }
 0x359   : > { %vm12986_vm2 = vmmov %vm12985_vm6 }
 0x35a   : > { %v5654_v30 = vpop.permute.xlu0 %5653  ;;  %v5045_v40 = vpop.permute.xlu1 %5044 }
 0x35b   : > { %5691 = vst.msk [vmem:[#allocation2 + $0x80] sm:$0xff] %vm12971_vm7, %v5654_v30  ;;  %vm12987_vm7 = vmmov %vm12986_vm2 }
 0x35c   : > { %5081 = vst.msk [vmem:[#allocation2 + $0x88] sm:$0xff] %vm12972_vm13, %v5045_v40  ;;  %vm12988_vm13 = vmmov %vm12980_vm1  ;;  %v7197_v40 = vsel %vm12995_vm10, %v7194_v18, %v7196_v59  ;;  %v8160_v18 = vunpack.c.l.bf16 %v8202_v50 }
 0x35d   : > { %v8307_v57 = vpop.f32.mrb[4].mxu1 }
 0x35e   : > { %v5893_v23 = vpop.permute.xlu0 %5892  ;;  %v5284_v13 = vpop.permute.xlu1 %5283  ;;  %v7017_v36 = vadd.f32 %v8307_v57, %v12247_v12 }
 0x35f   : > { %5930 = vst.msk [vmem:[#allocation2 + $0x80] sm:$0xff] %vm12973_vm3, %v5893_v23  ;;  %v7008_v20 = vpop.f32.mrb[5].mxu1  ;;  %vm12989_vm3 = vmmov %vm12986_vm2 }
 0x360   : > { %5320 = vst.msk [vmem:[#allocation2 + $0x88] sm:$0xff] %vm12974_vm4, %v5284_v13  ;;  %v7009_v45 = vadd.f32 %v12247_v12, %v7008_v20  ;;  %v8308_v28 = vpop.f32.mrb[6].mxu1  ;;  %v7288_v2 = vadd.f32 %v7187_v47, %v7017_v36  ;;  %vm12990_vm4 = vcmask 293888   ;;  %v8200_v20 = vld [vmem:[%s8840_s23 + $0x40] sm:$0xff]  }
 0x361   : > { %v7020_v61 = vadd.f32 %v8308_v28, %v12247_v12  ;;  %v7011_v39 = vpop.f32.mrb[7].mxu1  ;;  %v8153_v28 = vunpack.c.h.bf16 %v8200_v20 }
 0x362   : > { %v6132_v29 = vpop.permute.xlu0 %6131  ;;  %v5656_v42 = vpop.permute.xlu1 %5655  ;;  %v7286_v24 = vadd.f32 %v7183_v21, %v7009_v45  ;;  %v7324_v62 = vmax.f32 %v7288_v2, 0.0  ;;  %v7012_v35 = vadd.f32 %v12247_v12, %v7011_v39  ;;  %v8201_v21 = vld [vmem:[%s8840_s23 + $0x48] sm:$0xff]   ;;  %v8152_v45 = vunpack.c.l.bf16 %v8200_v20 }
 0x363   : > { %6169 = vst.msk [vmem:[#allocation2 + $0x80] sm:$0xff] %vm12975_vm8, %v6132_v29  ;;  %v7289_v53 = vadd.f32 %v7189_v48, %v7020_v61  ;;  %vm12991_vm8 = vmmov %vm12983_vm11  ;;  %v8149_v48 = vunpack.c.h.bf16 %v8199_v11  ;;  %v7202_v2 = vrot.slane %v8153_v28, 3 }
 0x364   : > { %5692 = vst.msk [vmem:[#allocation2 + $0x88] sm:$0xff] %vm12976_vm5, %v5656_v42  ;;  %v7322_v52 = vmax.f32 %v7286_v24, 0.0  ;;  %v8096_v6 = vpack.c.bf16 %v7324_v62, %v7324_v62  ;;  %v7287_v22 = vadd.f32 %v7185_v3, %v7012_v35  ;;  %vm12992_vm5 = vmmov %vm12990_vm4 }
 0x365   : > { %v7325_v54 = vmax.f32 %v7289_v53, 0.0  ;;  %v7198_v61 = vrot.slane %v8149_v48, 3 }
 0x366   : > { %v6504_v14 = vpop.permute.xlu0 %6503  ;;  %v5895_v31 = vpop.permute.xlu1 %5894  ;;  %v8094_v1 = vpack.c.bf16 %v7322_v52, %v7322_v52  ;;  %7504 = vst.msk [vmem:[%s12268_s28 + $0x18] sm:$0xf] %vm12985_vm6, %v8096_v6  ;;  %v7323_v33 = vmax.f32 %v7287_v22, 0.0 }
 0x367   : > { %6541 = vst.msk [vmem:[#allocation2 + $0x80] sm:$0xff] %vm12980_vm1, %v6504_v14  ;;  %v8097_v10 = vpack.c.bf16 %v7325_v54, %v7325_v54  ;;  %vm12996_vm1 = vmmov %vm12982_vm9  ;;  %v8156_v14 = vunpack.c.l.bf16 %v8201_v21 }
 0x368   : > { %5931 = vst.msk [vmem:[#allocation2 + $0x88] sm:$0xff] %vm12981_vm0, %v5895_v31  ;;  %v8095_v55 = vpack.c.bf16 %v7323_v33, %v7323_v33  ;;  %v7193_v63 = vsel %vm12996_vm1, %v7190_v7, %v7192_v46  ;;  %vm12997_vm0 = vmmov %vm12986_vm2  ;;  %v7200_v31 = vrot.slane %v8152_v45, 3  ;;  %v8203_v46 = vld [vmem:[%s8840_s23 + $0x58] sm:$0xff]   ;;  %v8161_v7 = vunpack.c.h.bf16 %v8202_v50 }
 0x369   : > { %7502 = vst.msk [vmem:[%s12268_s28 + $0x10] sm:$0xf] %vm12986_vm2, %v8094_v1  ;;  %vm12998_vm9 = vmmov %vm12997_vm0  ;;  %v7204_v24 = vrot.slane %v8156_v14, 3  ;;  %v8204_v14 = vld [vmem:[%s8840_s23 + $0x60] sm:$0xff]  }
 0x36a   : > { %v6743_v38 = vpop.permute.xlu0 %6742  ;;  %v6134_v5 = vpop.permute.xlu1 %6133  ;;  %7505 = vst.msk [vmem:[%s12268_s28 + $0x1c] sm:$0xf] %vm12987_vm7, %v8097_v10  ;;  %vm13001_vm6 = vmmov %vm12996_vm1 }
 0x36b   : > { %6780 = vst.msk [vmem:[#allocation2 + $0x80] sm:$0xff] %vm12983_vm11, %v6743_v38  ;;  %vm12999_vm11 = vmmov %vm12997_vm0  ;;  %v7203_v3 = vsel %vm13001_vm6, %v7200_v31, %v7202_v2 }
 0x36c   : > { %6170 = vst.msk [vmem:[#allocation2 + $0x88] sm:$0xff] %vm12984_vm14, %v6134_v5  ;;  %vm13000_vm14 = vmmov %vm12997_vm0 }
 0x36d   : > { %7503 = vst.msk [vmem:[%s12268_s28 + $0x14] sm:$0xf] %vm12989_vm3, %v8095_v55  ;;  %vm13002_vm2 = vmmov %vm12996_vm1 }
 0x36e   : > { %v6506_v0 = vpop.permute.xlu1 %6505  ;;  %v7199_v35 = vsel %vm13002_vm2, %v7196_v59, %v7198_v61  ;;  %vm13003_vm7 = vmmov %vm12996_vm1  ;;  %v8157_v59 = vunpack.c.h.bf16 %v8201_v21 }
 0x36f   : > { %6542 = vst.msk [vmem:[#allocation2 + $0x88] sm:$0xff] %vm12988_vm13, %v6506_v0  ;;  %v7205_v5 = vsel %vm13003_vm7, %v7202_v2, %v7204_v24  ;;  %vm13004_vm13 = vmmov %vm12996_vm1  ;;  %v8168_v2 = vunpack.c.l.bf16 %v8204_v14 }
 0x370   : > { %v7201_v1 = vsel %vm13004_vm13, %v7198_v61, %v7200_v31  ;;  %vm13005_vm3 = vmmov %vm12997_vm0  ;;  %v8205_v31 = vld [vmem:[%s8840_s23 + $0x68] sm:$0xff]   ;;  %v8169_v61 = vunpack.c.h.bf16 %v8204_v14 }
 0x371   : > { %vm13009_vm12 = vmmov %vm12996_vm1 }
 0x372   : > { %v6798_v19 = vld [vmem:[#allocation2 + $0x80] sm:$0xff]  ;;  %v6745_v4 = vpop.permute.xlu1 %6744  ;;  %vm13010_vm15 = vmmov %vm12996_vm1 }
 0x373   : > { %8333 = vmatprep.mubr.msk.bf16.mxu1 %vm12990_vm4, %v6798_v19  ;;  %6781 = vst.msk [vmem:[#allocation2 + $0x88] sm:$0xff] %vm12991_vm8, %v6745_v4  ;;  %vm13006_vm4 = vmmov %vm12997_vm0 }
 0x374   : > { %vm13007_vm8 = vmmov %vm12997_vm0 }
 0x375   : > { %vm13011_vm10 = vmmov %vm12996_vm1 }
 0x376   : > { %vm13015_vm6 = vmmov %vm12996_vm1 }
 0x377   : > { %vm13016_vm2 = vmmov %vm12996_vm1 }
 0x378   : > { %vm13017_vm7 = vmmov %vm12996_vm1 }
 0x379   : > { %vm13018_vm13 = vmmov %vm12996_vm1 }
 0x37a   : > { %v6799_v26 = vld [vmem:[#allocation2 + $0x88] sm:$0xff] }
 0x37b   : > { %8334 = vmatmul.mubr.msk.bf16.gmra.mrb[32].mxu1 %vm12992_vm5, %v6799_v26  ;;  %vm13008_vm5 = vmmov %vm12997_vm0 }
 0x383   : > { %v8311_v17 = vpop.f32.mrb[8].mxu1 }
 0x384   : > { %v7033_v8 = vadd.f32 %v8311_v17, %v12247_v12  ;;  %v7024_v58 = vpop.f32.mrb[9].mxu1  ;;  %v8164_v17 = vunpack.c.l.bf16 %v8203_v46 }
 0x385   : > { %v7025_v51 = vadd.f32 %v12247_v12, %v7024_v58  ;;  %v8312_v30 = vpop.f32.mrb[10].mxu1  ;;  %v7206_v58 = vrot.slane %v8157_v59, 3 }
 0x386   : > { %v7292_v34 = vadd.f32 %v7195_v37, %v7033_v8  ;;  %v7036_v49 = vadd.f32 %v8312_v30, %v12247_v12  ;;  %v7027_v56 = vpop.f32.mrb[11].mxu1  ;;  %v7208_v37 = vrot.slane %v8160_v18, 3  ;;  %v7210_v8 = vrot.slane %v8161_v7, 3 }
 0x387   : > { %v7290_v43 = vadd.f32 %v7191_v25, %v7025_v51  ;;  %v7028_v23 = vadd.f32 %v12247_v12, %v7027_v56  ;;  %v7212_v25 = vrot.slane %v8164_v17, 3  ;;  %v8206_v17 = vld [vmem:[%s8840_s23 + $0x70] sm:$0xff]  }
 0x388   : > { %v7328_v13 = vmax.f32 %v7292_v34, 0.0  ;;  %v7293_v16 = vadd.f32 %v7197_v40, %v7036_v49  ;;  %v7211_v30 = vsel %vm13009_vm12, %v7208_v37, %v7210_v8  ;;  %v7207_v49 = vsel %vm13010_vm15, %v7204_v24, %v7206_v58  ;;  %vm13023_vm12 = vmmov %vm12996_vm1 }
 0x389   : > { %v7326_v41 = vmax.f32 %v7290_v43, 0.0  ;;  %v7291_v44 = vadd.f32 %v7193_v63, %v7028_v23  ;;  %v7213_v43 = vsel %vm13011_vm10, %v7210_v8, %v7212_v25  ;;  %v8165_v24 = vunpack.c.h.bf16 %v8203_v46  ;;  %vm13024_vm15 = vmmov %vm12996_vm1 }
 0x38a   : > { %v8100_v9 = vpack.c.bf16 %v7328_v13, %v7328_v13  ;;  %v7329_v29 = vmax.f32 %v7293_v16, 0.0  ;;  %v8176_v8 = vunpack.c.l.bf16 %v8206_v17  ;;  %vm13025_vm10 = vmmov %vm12996_vm1 }
 0x38b   : > { %v8098_v42 = vpack.c.bf16 %v7326_v41, %v7326_v41  ;;  %v7327_v57 = vmax.f32 %v7291_v44, 0.0  ;;  %v7209_v41 = vsel %vm12996_vm1, %v7206_v58, %v7208_v37  ;;  %v8207_v37 = vld [vmem:[%s8840_s23 + $0x78] sm:$0xff]   ;;  %v8177_v58 = vunpack.c.h.bf16 %v8206_v17 }
 0x38c   : > { %7508 = vst.msk [vmem:[%s12268_s28 + $0x28] sm:$0xf] %vm12997_vm0, %v8100_v9  ;;  %v8101_v47 = vpack.c.bf16 %v7329_v29, %v7329_v29 }
 0x38d   : > { %7506 = vst.msk [vmem:[%s12268_s28 + $0x20] sm:$0xf] %vm12998_vm9, %v8098_v42  ;;  %v8099_v36 = vpack.c.bf16 %v7327_v57, %v7327_v57  ;;  %vm13012_vm9 = vmmov %vm12997_vm0 }
 0x38e   : > { %7509 = vst.msk [vmem:[%s12268_s28 + $0x2c] sm:$0xf] %vm12999_vm11, %v8101_v47  ;;  %vm13013_vm11 = vmmov %vm12997_vm0 }
 0x38f   : > { %7507 = vst.msk [vmem:[%s12268_s28 + $0x24] sm:$0xf] %vm13000_vm14, %v8099_v36  ;;  %vm13014_vm14 = vmmov %vm12997_vm0 }
 0x3a6   : > { %v8315_v39 = vpop.f32.mrb[12].mxu1 }
 0x3a7   : > { %v7049_v62 = vadd.f32 %v8315_v39, %v12247_v12  ;;  %v7040_v53 = vpop.f32.mrb[13].mxu1  ;;  %v8172_v39 = vunpack.c.l.bf16 %v8205_v31 }
 0x3a8   : > { %v7041_v52 = vadd.f32 %v12247_v12, %v7040_v53  ;;  %v8316_v38 = vpop.f32.mrb[14].mxu1  ;;  %v7214_v53 = vrot.slane %v8165_v24, 3 }
 0x3a9   : > { %v7296_v6 = vadd.f32 %v7203_v3, %v7049_v62  ;;  %v7052_v54 = vadd.f32 %v8316_v38, %v12247_v12  ;;  %v7043_v22 = vpop.f32.mrb[15].mxu1  ;;  %v7216_v3 = vrot.slane %v8168_v2, 3  ;;  %v7218_v62 = vrot.slane %v8169_v61, 3 }
 0x3aa   : > { %v7294_v10 = vadd.f32 %v7199_v35, %v7041_v52  ;;  %v7044_v33 = vadd.f32 %v12247_v12, %v7043_v22  ;;  %v7220_v35 = vrot.slane %v8172_v39, 3  ;;  %v8208_v39 = vld [vmem:[%s8840_s23 + $0x80] sm:$0xff]  }
 0x3ab   : > { %v7332_v0 = vmax.f32 %v7296_v6, 0.0  ;;  %v7297_v55 = vadd.f32 %v7205_v5, %v7052_v54  ;;  %v7219_v38 = vsel %vm13015_vm6, %v7216_v3, %v7218_v62  ;;  %v7215_v54 = vsel %vm13016_vm2, %v7212_v25, %v7214_v53  ;;  %vm13029_vm6 = vmmov %vm12996_vm1 }
 0x3ac   : > { %v7330_v19 = vmax.f32 %v7294_v10, 0.0  ;;  %v7295_v4 = vadd.f32 %v7201_v1, %v7044_v33  ;;  %v7221_v10 = vsel %vm13017_vm7, %v7218_v62, %v7220_v35  ;;  %v8173_v25 = vunpack.c.h.bf16 %v8205_v31  ;;  %vm13030_vm2 = vmmov %vm12996_vm1 }
 0x3ad   : > { %v8104_v27 = vpack.c.bf16 %v7332_v0, %v7332_v0  ;;  %v7333_v26 = vmax.f32 %v7297_v55, 0.0  ;;  %v8184_v62 = vunpack.c.l.bf16 %v8208_v39  ;;  %vm13031_vm7 = vmmov %vm12996_vm1 }
 0x3ae   : > { %v8102_v11 = vpack.c.bf16 %v7330_v19, %v7330_v19  ;;  %v7331_v32 = vmax.f32 %v7295_v4, 0.0  ;;  %v7217_v19 = vsel %vm13018_vm13, %v7214_v53, %v7216_v3  ;;  %v8209_v3 = vld [vmem:[%s8840_s23 + $0x88] sm:$0xff]   ;;  %v8185_v53 = vunpack.c.h.bf16 %v8208_v39  ;;  %vm13032_vm13 = vmmov %vm12996_vm1 }
 0x3af   : > { %7512 = vst.msk [vmem:[%s12268_s28 + $0x38] sm:$0xf] %vm13005_vm3, %v8104_v27  ;;  %v8105_v15 = vpack.c.bf16 %v7333_v26, %v7333_v26  ;;  %vm13019_vm3 = vmmov %vm12997_vm0 }
 0x3b0   : > { %7510 = vst.msk [vmem:[%s12268_s28 + $0x30] sm:$0xf] %vm13006_vm4, %v8102_v11  ;;  %v8103_v60 = vpack.c.bf16 %v7331_v32, %v7331_v32  ;;  %vm13020_vm4 = vmmov %vm12997_vm0 }
 0x3b1   : > { %7513 = vst.msk [vmem:[%s12268_s28 + $0x3c] sm:$0xf] %vm13007_vm8, %v8105_v15  ;;  %vm13021_vm8 = vmmov %vm12997_vm0 }
 0x3b2   : > { %7511 = vst.msk [vmem:[%s12268_s28 + $0x34] sm:$0xf] %vm13008_vm5, %v8103_v60  ;;  %vm13022_vm5 = vmmov %vm12997_vm0 }
 0x3bc   : > { %v8319_v51 = vpop.f32.mrb[16].mxu1 }
 0x3bd   : > { %v7065_v40 = vadd.f32 %v8319_v51, %v12247_v12  ;;  %v7056_v34 = vpop.f32.mrb[17].mxu1  ;;  %v8180_v51 = vunpack.c.l.bf16 %v8207_v37 }
 0x3be   : > { %v7057_v56 = vadd.f32 %v12247_v12, %v7056_v34  ;;  %v8320_v63 = vpop.f32.mrb[18].mxu1  ;;  %v7222_v34 = vrot.slane %v8173_v25, 3 }
 0x3bf   : > { %v7300_v23 = vadd.f32 %v7211_v30, %v7065_v40  ;;  %v7068_v13 = vadd.f32 %v8320_v63, %v12247_v12  ;;  %v7059_v16 = vpop.f32.mrb[19].mxu1  ;;  %v7224_v30 = vrot.slane %v8176_v8, 3  ;;  %v7226_v40 = vrot.slane %v8177_v58, 3 }
 0x3c0   : > { %v7298_v44 = vadd.f32 %v7207_v49, %v7057_v56  ;;  %v7060_v9 = vadd.f32 %v12247_v12, %v7059_v16  ;;  %v7228_v49 = vrot.slane %v8180_v51, 3  ;;  %v8210_v51 = vld [vmem:[%s8840_s23 + $0x90] sm:$0xff]  }
 0x3c1   : > { %v7336_v29 = vmax.f32 %v7300_v23, 0.0  ;;  %v7301_v42 = vadd.f32 %v7213_v43, %v7068_v13  ;;  %v7227_v63 = vsel %vm13023_vm12, %v7224_v30, %v7226_v40  ;;  %v7223_v13 = vsel %vm13024_vm15, %v7220_v35, %v7222_v34  ;;  %vm13037_vm12 = vmmov %vm12996_vm1 }
 0x3c2   : > { %v7334_v57 = vmax.f32 %v7298_v44, 0.0  ;;  %v7299_v47 = vadd.f32 %v7209_v41, %v7060_v9  ;;  %v7229_v44 = vsel %vm13025_vm10, %v7226_v40, %v7228_v49  ;;  %v8181_v35 = vunpack.c.h.bf16 %v8207_v37  ;;  %vm13038_vm15 = vmmov %vm12996_vm1 }
 0x3c3   : > { %v8108_v36 = vpack.c.bf16 %v7336_v29, %v7336_v29  ;;  %v7337_v20 = vmax.f32 %v7301_v42, 0.0  ;;  %v8192_v40 = vunpack.c.l.bf16 %v8210_v51  ;;  %vm13039_vm10 = vmmov %vm12996_vm1 }
 0x3c4   : > { %v8106_v21 = vpack.c.bf16 %v7334_v57, %v7334_v57  ;;  %v7335_v45 = vmax.f32 %v7299_v47, 0.0  ;;  %v7225_v57 = vsel %vm12996_vm1, %v7222_v34, %v7224_v30  ;;  %v6841_v30 = vld [vmem:[%s8840_s23 + $0x98] sm:$0x3]  ;;  %v8193_v34 = vunpack.c.h.bf16 %v8210_v51 }
 0x3c5   : > { %7516 = vst.msk [vmem:[%s12268_s28 + $0x48] sm:$0xf] %vm12997_vm0, %v8108_v36  ;;  %v8109_v28 = vpack.c.bf16 %v7337_v20, %v7337_v20 }
 0x3c6   : > { %7514 = vst.msk [vmem:[%s12268_s28 + $0x40] sm:$0xf] %vm13012_vm9, %v8106_v21  ;;  %v8107_v48 = vpack.c.bf16 %v7335_v45, %v7335_v45  ;;  %vm13026_vm9 = vmmov %vm12997_vm0 }
 0x3c7   : > { %7517 = vst.msk [vmem:[%s12268_s28 + $0x4c] sm:$0xf] %vm13013_vm11, %v8109_v28  ;;  %vm13027_vm11 = vmmov %vm12997_vm0 }
 0x3c8   : > { %7515 = vst.msk [vmem:[%s12268_s28 + $0x44] sm:$0xf] %vm13014_vm14, %v8107_v48  ;;  %vm13028_vm14 = vmmov %vm12997_vm0 }
 0x3e5   : > { %v8323_v52 = vpop.f32.mrb[20].mxu1 }
 0x3e6   : > { %v7081_v5 = vadd.f32 %v8323_v52, %v12247_v12  ;;  %v7072_v6 = vpop.f32.mrb[21].mxu1  ;;  %v8188_v52 = vunpack.c.l.bf16 %v8209_v3 }
 0x3e7   : > { %v7073_v22 = vadd.f32 %v12247_v12, %v7072_v6  ;;  %v8324_v1 = vpop.f32.mrb[22].mxu1  ;;  %v7230_v6 = vrot.slane %v8181_v35, 3 }
 0x3e8   : > { %v7304_v33 = vadd.f32 %v7219_v38, %v7081_v5  ;;  %v7084_v0 = vadd.f32 %v8324_v1, %v12247_v12  ;;  %v7075_v55 = vpop.f32.mrb[23].mxu1  ;;  %v7232_v38 = vrot.slane %v8184_v62, 3  ;;  %v7234_v5 = vrot.slane %v8185_v53, 3 }
 0x3e9   : > { %v7302_v4 = vadd.f32 %v7215_v54, %v7073_v22  ;;  %v7076_v27 = vadd.f32 %v12247_v12, %v7075_v55  ;;  %v7236_v54 = vrot.slane %v8188_v52, 3 }
 0x3ea   : > { %v7340_v26 = vmax.f32 %v7304_v33, 0.0  ;;  %v7305_v11 = vadd.f32 %v7221_v10, %v7084_v0  ;;  %v7235_v1 = vsel %vm13029_vm6, %v7232_v38, %v7234_v5  ;;  %v7231_v0 = vsel %vm13030_vm2, %v7228_v49, %v7230_v6 }
 0x3eb   : > { %v7338_v32 = vmax.f32 %v7302_v4, 0.0  ;;  %v7303_v15 = vadd.f32 %v7217_v19, %v7076_v27  ;;  %v7237_v4 = vsel %vm13031_vm7, %v7234_v5, %v7236_v54  ;;  %v8189_v49 = vunpack.c.h.bf16 %v8209_v3 }
 0x3ec   : > { %v8112_v60 = vpack.c.bf16 %v7340_v26, %v7340_v26  ;;  %v7341_v50 = vmax.f32 %v7305_v11, 0.0 }
 0x3ed   : > { %v8110_v46 = vpack.c.bf16 %v7338_v32, %v7338_v32  ;;  %v7339_v18 = vmax.f32 %v7303_v15, 0.0  ;;  %v7233_v32 = vsel %vm13032_vm13, %v7230_v6, %v7232_v38 }
 0x3ee   : > { %7520 = vst.msk [vmem:[%s12268_s28 + $0x58] sm:$0xf] %vm13019_vm3, %v8112_v60  ;;  %v8113_v7 = vpack.c.bf16 %v7341_v50, %v7341_v50  ;;  %vm13033_vm3 = vmmov %vm12997_vm0 }
 0x3ef   : > { %7518 = vst.msk [vmem:[%s12268_s28 + $0x50] sm:$0xf] %vm13020_vm4, %v8110_v46  ;;  %v8111_v59 = vpack.c.bf16 %v7339_v18, %v7339_v18  ;;  %vm13034_vm4 = vmmov %vm12997_vm0 }
 0x3f0   : > { %7521 = vst.msk [vmem:[%s12268_s28 + $0x5c] sm:$0xf] %vm13021_vm8, %v8113_v7  ;;  %vm13035_vm8 = vmmov %vm12997_vm0 }
 0x3f1   : > { %7519 = vst.msk [vmem:[%s12268_s28 + $0x54] sm:$0xf] %vm13022_vm5, %v8111_v59  ;;  %vm13036_vm5 = vmmov %vm12997_vm0 }
 0x40b   : > { %v8327_v56 = vpop.f32.mrb[24].mxu1 }
 0x40c   : > { %v7097_v43 = vadd.f32 %v8327_v56, %v12247_v12  ;;  %v7088_v23 = vpop.f32.mrb[25].mxu1  ;;  %v6878_v56 = vunpack.c.l.bf16 %v6841_v30 }
 0x40d   : > { %v7089_v16 = vadd.f32 %v12247_v12, %v7088_v23  ;;  %v8328_v41 = vpop.f32.mrb[26].mxu1  ;;  %v7238_v23 = vrot.slane %v8189_v49, 3 }
 0x40e   : > { %v7308_v9 = vadd.f32 %v7227_v63, %v7097_v43  ;;  %v7100_v29 = vadd.f32 %v8328_v41, %v12247_v12  ;;  %v7091_v42 = vpop.f32.mrb[27].mxu1  ;;  %v7240_v63 = vrot.slane %v8192_v40, 3  ;;  %v7242_v43 = vrot.slane %v8193_v34, 3 }
 0x40f   : > { %v7306_v47 = vadd.f32 %v7223_v13, %v7089_v16  ;;  %v7092_v36 = vadd.f32 %v12247_v12, %v7091_v42  ;;  %v7244_v13 = vrot.slane %v6878_v56, 3 }
 0x410   : > { %v7344_v20 = vmax.f32 %v7308_v9, 0.0  ;;  %v7309_v21 = vadd.f32 %v7229_v44, %v7100_v29  ;;  %v7243_v41 = vsel %vm13037_vm12, %v7240_v63, %v7242_v43  ;;  %v7239_v29 = vsel %vm13038_vm15, %v7236_v54, %v7238_v23 }
 0x411   : > { %v7342_v45 = vmax.f32 %v7306_v47, 0.0  ;;  %v7307_v28 = vadd.f32 %v7225_v57, %v7092_v36  ;;  %v7245_v47 = vsel %vm13039_vm10, %v7242_v43, %v7244_v13 }
 0x412   : > { %v8116_v48 = vpack.c.bf16 %v7344_v20, %v7344_v20  ;;  %v7345_v14 = vmax.f32 %v7309_v21, 0.0 }
 0x413   : > { %v8114_v31 = vpack.c.bf16 %v7342_v45, %v7342_v45  ;;  %v7343_v2 = vmax.f32 %v7307_v28, 0.0  ;;  %v7241_v45 = vsel %vm12996_vm1, %v7238_v23, %v7240_v63 }
 0x414   : > { %7524 = vst.msk [vmem:[%s12268_s28 + $0x68] sm:$0xf] %vm12997_vm0, %v8116_v48  ;;  %v8117_v61 = vpack.c.bf16 %v7345_v14, %v7345_v14 }
 0x415   : > { %7522 = vst.msk [vmem:[%s12268_s28 + $0x60] sm:$0xf] %vm13026_vm9, %v8114_v31  ;;  %v8115_v24 = vpack.c.bf16 %v7343_v2, %v7343_v2  ;;  %vm13040_vm9 = vmmov %vm12997_vm0 }
 0x416   : > { %7525 = vst.msk [vmem:[%s12268_s28 + $0x6c] sm:$0xf] %vm13027_vm11, %v8117_v61  ;;  %vm13041_vm11 = vmmov %vm12997_vm0 }
 0x417   : > { %7523 = vst.msk [vmem:[%s12268_s28 + $0x64] sm:$0xf] %vm13028_vm14, %v8115_v24  ;;  %vm13042_vm14 = vmmov %vm12997_vm0 }
 0x42b   : > { %v8331_v22 = vpop.f32.mrb[28].mxu1 }
 0x42c   : > { %v7113_v10 = vadd.f32 %v8331_v22, %v12247_v12  ;;  %v7104_v33 = vpop.f32.mrb[29].mxu1 }
 0x42d   : > { %v7105_v55 = vadd.f32 %v12247_v12, %v7104_v33  ;;  %v8332_v19 = vpop.f32.mrb[30].mxu1 }
 0x42e   : > { %v7312_v27 = vadd.f32 %v7235_v1, %v7113_v10  ;;  %v7116_v26 = vadd.f32 %v8332_v19, %v12247_v12  ;;  %v7107_v11 = vpop.f32.mrb[31].mxu1 }
 0x42f   : > { %v7310_v15 = vadd.f32 %v7231_v0, %v7105_v55  ;;  %v7108_v60 = vadd.f32 %v12247_v12, %v7107_v11 }
 0x430   : > { %v7348_v50 = vmax.f32 %v7312_v27, 0.0  ;;  %v7313_v46 = vadd.f32 %v7237_v4, %v7116_v26 }
 0x431   : > { %v7346_v18 = vmax.f32 %v7310_v15, 0.0  ;;  %v7311_v7 = vadd.f32 %v7233_v32, %v7108_v60 }
 0x432   : > { %v8120_v59 = vpack.c.bf16 %v7348_v50, %v7348_v50  ;;  %v7349_v17 = vmax.f32 %v7313_v46, 0.0 }
 0x433   : > { %v8118_v37 = vpack.c.bf16 %v7346_v18, %v7346_v18  ;;  %v7347_v8 = vmax.f32 %v7311_v7, 0.0 }
 0x434   : > { %7528 = vst.msk [vmem:[%s12268_s28 + $0x78] sm:$0xf] %vm13033_vm3, %v8120_v59  ;;  %v8121_v58 = vpack.c.bf16 %v7349_v17, %v7349_v17 }
 0x435   : > { %7526 = vst.msk [vmem:[%s12268_s28 + $0x70] sm:$0xf] %vm13034_vm4, %v8118_v37  ;;  %v8119_v25 = vpack.c.bf16 %v7347_v8, %v7347_v8 }
 0x436   : > { %7529 = vst.msk [vmem:[%s12268_s28 + $0x7c] sm:$0xf] %vm13035_vm8, %v8121_v58 }
 0x437   : > { %7527 = vst.msk [vmem:[%s12268_s28 + $0x74] sm:$0xf] %vm13036_vm5, %v8119_v25 }
 0x44e   : > { %v8335_v16 = vpop.f32.mrb[32].mxu1 }
 0x44f   : > { %v7129_v44 = vadd.f32 %v8335_v16, %v12247_v12  ;;  %v7120_v9 = vpop.f32.mrb[33].mxu1 }
 0x450   : > { %v7121_v42 = vadd.f32 %v12247_v12, %v7120_v9  ;;  %v8336_v57 = vpop.f32.mrb[34].mxu1 }
 0x451   : > { %v7316_v36 = vadd.f32 %v7243_v41, %v7129_v44  ;;  %v7132_v20 = vadd.f32 %v8336_v57, %v12247_v12  ;;  %v7123_v21 = vpop.f32.mrb[35].mxu1 }
 0x452   : > { %v7314_v28 = vadd.f32 %v7239_v29, %v7121_v42  ;;  %v7124_v48 = vadd.f32 %v12247_v12, %v7123_v21 }
 0x453   : > { %v7352_v14 = vmax.f32 %v7316_v36, 0.0  ;;  %v7317_v31 = vadd.f32 %v7245_v47, %v7132_v20 }
 0x454   : > { %v7350_v2 = vmax.f32 %v7314_v28, 0.0  ;;  %v7315_v61 = vadd.f32 %v7241_v45, %v7124_v48 }
 0x455   : > { %v8124_v24 = vpack.c.bf16 %v7352_v14, %v7352_v14  ;;  %v7353_v39 = vmax.f32 %v7317_v31, 0.0 }
 0x456   : > { %v8122_v3 = vpack.c.bf16 %v7350_v2, %v7350_v2  ;;  %v7351_v62 = vmax.f32 %v7315_v61, 0.0 }
 0x457   : > { %7532 = vst.msk [vmem:[%s12268_s28 + $0x88] sm:$0xf] %vm12997_vm0, %v8124_v24  ;;  %v8125_v53 = vpack.c.bf16 %v7353_v39, %v7353_v39 }
 0x458   : > { %7530 = vst.msk [vmem:[%s12268_s28 + $0x80] sm:$0xf] %vm13040_vm9, %v8122_v3  ;;  %v8123_v35 = vpack.c.bf16 %v7351_v62, %v7351_v62 }
 0x459   : > { %7533 = vst.msk [vmem:[%s12268_s28 + $0x8c] sm:$0xf] %vm13041_vm11, %v8125_v53 }
 0x45a   : > { %7531 = vst.msk [vmem:[%s12268_s28 + $0x84] sm:$0xf] %vm13042_vm14, %v8123_v35 }
 0x45b PF: > { %s15_s18 = sadd.s32 1, %s8785_s18  }
 0x45c   : > { %p12_p4 = scmp.ge.s32.totalorder %s15_s18, 4  }
 0x45e   :  { %14 = sbr.rel (!%p12_p4) target bundleno = 1 (0x1), region = 70 }

</bundles_post_ra>
